<compile_context>
chip_gen: v7x
topology: tpu7x:2x2x1
jax: 0.10.0
libtpu: 0.0.40
codegen_flags: <defaults>
</compile_context>

<pallas_src>
import jax
import jax.numpy as jnp
from jax.experimental import pallas as pl
from jax.experimental.pallas import tpu as pltpu

# ---- scaled-down config, structurally identical to the torch module ----
EXCEL_COLS = 4                 # excelDataTensor.size()[1]
LATENT = 28                    # latent (400 in the original, scaled down)
GAN_INPUT = EXCEL_COLS + LATENT
NC = 3                         # nc
NGF = 16                       # ngf (128 in the original, scaled down)
EPS = 1e-5                     # nn.BatchNorm2d default eps


# ------------------------------------------------------------------------
# Shared in-kernel BatchNorm(+ReLU) epilogue (training-mode batch statistics)
# ------------------------------------------------------------------------
def _bn_relu_rows(y, gamma, beta, n_groups):
    """y: (n_groups*Cout, M) f32 conv outputs, rows phase-major (p*Cout + c).
    gamma/beta: (Cout, 1) f32.  Two-pass (shifted) variance, per-channel stats
    aggregated across all n_groups row blocks and all M lanes."""
    c4, m = y.shape
    cout = c4 // n_groups
    cnt = float(n_groups * m)
    s = jnp.zeros((cout, 1), jnp.float32)
    for p in range(n_groups):                              # static, sublane-aligned slices
        s = s + jnp.sum(y[p * cout:(p + 1) * cout, :], axis=1, keepdims=True)
    mean = s / cnt
    v = jnp.zeros((cout, 1), jnp.float32)
    for p in range(n_groups):
        d = y[p * cout:(p + 1) * cout, :] - mean
        v = v + jnp.sum(d * d, axis=1, keepdims=True)
    var = v / cnt                                          # >= 0 by construction
    scale = jax.lax.rsqrt(var + EPS) * gamma
    shift = beta - mean * scale
    scale4 = jnp.concatenate([scale] * n_groups, axis=0)   # (n_groups*Cout, 1)
    shift4 = jnp.concatenate([shift] * n_groups, axis=0)
    return jnp.maximum(y * scale4 + shift4, 0.0)


# ------------------------------------------------------------------------
# Pallas kernels
# ------------------------------------------------------------------------
def _conv1_bn_relu_kernel(x_ref, w_ref, g_ref, b_ref, o_ref):
    """Layer 1: ConvTranspose2d(k=6, s=1, p=0) on a 1x1 input + BN + ReLU.

    ONE matmul: y(N, 36*Cout) = x(N, Cin) @ W(Cin, 36*Cout), columns t*Cout + c
    with t = kh*6 + kw.  BN stats per channel c gathered from the 36 lane-aligned
    column groups (Cout = 128-lane multiple at all scales of interest).
      x_ref: (N, Cin) bf16   w_ref: (Cin, 36*Cout) bf16
      g_ref/b_ref: (1, Cout) f32   o_ref: (N, 36*Cout) f32 (lane-dense store)
    """
    n, tc = o_ref.shape
    cout = g_ref.shape[-1]
    t_taps = tc // cout
    cnt = float(n * t_taps)
    y = jnp.dot(x_ref[...], w_ref[...], preferred_element_type=jnp.float32)
    s = jnp.zeros((1, cout), jnp.float32)
    for t in range(t_taps):                                # static, 128-lane-aligned slices
        s = s + jnp.sum(y[:, t * cout:(t + 1) * cout], axis=0, keepdims=True)
    mean = s / cnt
    v = jnp.zeros((1, cout), jnp.float32)
    for t in range(t_taps):
        d = y[:, t * cout:(t + 1) * cout] - mean
        v = v + jnp.sum(d * d, axis=0, keepdims=True)
    var = v / cnt
    scale = jax.lax.rsqrt(var + EPS) * g_ref[...]
    shift = b_ref[...] - mean * scale
    scale_t = jnp.concatenate([scale] * t_taps, axis=1)    # (1, 36*Cout)
    shift_t = jnp.concatenate([shift] * t_taps, axis=1)
    o_ref[...] = jnp.maximum(y * scale_t + shift_t, 0.0)


def _merged_conv_bn_relu_kernel(xc_ref, w_ref, g_ref, b_ref, o_ref):
    """Even-padding stride-2 ConvTranspose2d: all 4 phases share one im2col slab.
      xc_ref: (9*Cin, M) bf16     w_ref: (4*Cout, 9*Cin) bf16 (phase-major rows)
      g_ref/b_ref: (Cout, 1) f32  o_ref: (4*Cout, M) f32
    One MXU dot + fused BatchNorm(train) + ReLU."""
    y = jnp.dot(w_ref[...], xc_ref[...], preferred_element_type=jnp.float32)
    o_ref[...] = _bn_relu_rows(y, g_ref[...], b_ref[...], 4)


def _phase_conv_bn_relu_kernel(xc_ref, w_ref, g_ref, b_ref, o_ref):
    """Odd-padding stride-2 ConvTranspose2d (4 distinct phase slabs) + BN + ReLU.
      xc_ref: (4, 9*Cin, M) bf16  w_ref: (4, Cout, 9*Cin) bf16
      g_ref/b_ref: (Cout, 1) f32  o_ref: (4*Cout, M) f32"""
    ys = [jnp.dot(w_ref[p], xc_ref[p], preferred_element_type=jnp.float32)
          for p in range(4)]
    y = jnp.concatenate(ys, axis=0)                        # (4*Cout, M)
    o_ref[...] = _bn_relu_rows(y, g_ref[...], b_ref[...], 4)


def _merged_conv_tanh_kernel(xc_ref, w_ref, o_ref):
    """Final even-padding stride-2 ConvTranspose2d (phases merged) + tanh.
      xc_ref: (9*Cin, Mb) bf16  w_ref: (4*NC, 9*Cin) bf16  o_ref: (4*NC, Mb) f32"""
    y = jnp.dot(w_ref[...], xc_ref[...], preferred_element_type=jnp.float32)
    o_ref[...] = jnp.tanh(y)


# ------------------------------------------------------------------------
# Wrapper glue: im2col / phase weights / interleave (pure data movement)
# ------------------------------------------------------------------------
def _conv_transpose_out_hw(h, w, padding):
    return (h - 1) * 2 - 2 * padding + 6, (w - 1) * 2 - 2 * padding + 6


def _shared_im2col(x_nchw, padding):
    """Even padding: the 4 sub-pixel phases share the same im2col slab.
    Returns ((9*Cin, N*Hh*Wh) bf16, Ho, Wo); rows ordered (tap_j, tap_i, cin),
    columns ordered (n, out_row, out_col)."""
    n, c, h, w = x_nchw.shape
    ho, wo = _conv_transpose_out_hw(h, w, padding)
    hh, wh = ho // 2, wo // 2
    b = padding // 2
    xp = jnp.pad(x_nchw.astype(jnp.bfloat16), ((0, 0), (0, 0), (2, 2), (2, 2)))
    taps = []
    for j in range(3):
        for i in range(3):
            sl = xp[:, :, b + j:b + j + hh, b + i:b + i + wh]
            taps.append(jnp.transpose(sl, (1, 0, 2, 3)).reshape(c, n * hh * wh))
    return jnp.concatenate(taps, axis=0), ho, wo


def _phase_im2col(x_nchw, padding):
    """Odd padding: per-phase im2col (4, 9*Cin, N*Hh*Wh) bf16, phases p = 2*r + c."""
    n, c_in, h, w = x_nchw.shape
    ho, wo = _conv_transpose_out_hw(h, w, padding)
    hh, wh = ho // 2, wo // 2
    xp = jnp.pad(x_nchw.astype(jnp.bfloat16), ((0, 0), (0, 0), (2, 2), (2, 2)))
    phases = []
    for r in range(2):
        br = (r + padding) // 2
        for c in range(2):
            bc = (c + padding) // 2
            taps = []
            for j in range(3):
                for i in range(3):
                    sl = xp[:, :, br + j:br + j + hh, bc + i:bc + i + wh]
                    taps.append(jnp.transpose(sl, (1, 0, 2, 3)).reshape(c_in, n * hh * wh))
            phases.append(jnp.concatenate(taps, axis=0))
    return jnp.stack(phases, axis=0), ho, wo


def _phase_weights(w_pt, padding):
    """Per-phase 3x3 sub-kernels of the 6x6 ConvTranspose2d weight as
    (4, Cout, 9*Cin) bf16, rows within K ordered (tap_j, tap_i, cin)."""
    cin, cout = w_pt.shape[0], w_pt.shape[1]
    ws = []
    for r in range(2):
        qr = (r + padding) % 2
        for c in range(2):
            qc = (c + padding) % 2
            wsub = w_pt[:, :, qr::2, :][:, :, ::-1, :]      # kh = qr+4, qr+2, qr
            wsub = wsub[:, :, :, qc::2][:, :, :, ::-1]      # kw = qc+4, qc+2, qc
            wsub = jnp.transpose(wsub, (1, 2, 3, 0))        # (Cout, 3, 3, Cin)
            ws.append(wsub.reshape(cout, 9 * cin))
    return jnp.stack(ws, axis=0).astype(jnp.bfloat16)       # (4, Cout, 9*Cin)


def _interleave_phases(y, n, cout, ho, wo):
    """(4, Cout, N*Hh*Wh) -> NCHW (N, Cout, Ho, Wo): out[:, :, 2a+r, 2b+c]."""
    hh, wh = ho // 2, wo // 2
    y = y.reshape(2, 2, cout, n, hh, wh)
    y = jnp.transpose(y, (3, 2, 4, 0, 5, 1))                # (N, Cout, Hh, r, Wh, c)
    return y.reshape(n, cout, ho, wo)


# ------------------------------------------------------------------------
# Layer wrappers (one pallas_call per layer, 5 total)
# ------------------------------------------------------------------------
def conv1_bn_relu(x_nc, w1_mat, gamma, beta):
    n, cin = x_nc.shape
    tc = w1_mat.shape[1]
    cout = gamma.shape[0]
    out = pl.pallas_call(
        _conv1_bn_relu_kernel,
        out_shape=jax.ShapeDtypeStruct((n, tc), jnp.float32),
        grid=(1,),
        in_specs=[
            pl.BlockSpec((n, cin), lambda i: (0, 0)),
            pl.BlockSpec((cin, tc), lambda i: (0, 0)),
            pl.BlockSpec((1, cout), lambda i: (0, 0)),
            pl.BlockSpec((1, cout), lambda i: (0, 0)),
        ],
        out_specs=pl.BlockSpec((n, tc), lambda i: (0, 0)),
        compiler_params=pltpu.CompilerParams(dimension_semantics=("arbitrary",)),
    )(x_nc.astype(jnp.bfloat16), w1_mat,
      gamma.reshape(1, cout).astype(jnp.float32),
      beta.reshape(1, cout).astype(jnp.float32))
    # (N, 36*Cout) with columns t*Cout + c, t = kh*6 + kw  ->  NCHW (N, Cout, 6, 6)
    return jnp.transpose(out.reshape(n, 36, cout), (0, 2, 1)).reshape(n, cout, 6, 6)


def up_conv_bn_relu_shared(x_nchw, w_merged, gamma, beta, padding):
    """Even padding: one shared im2col slab, one merged (4*Cout, K) x (K, M) dot."""
    n = x_nchw.shape[0]
    cout = gamma.shape[0]
    xc, ho, wo = _shared_im2col(x_nchw, padding)             # (K, M) bf16
    k, m = xc.shape
    out = pl.pallas_call(
        _merged_conv_bn_relu_kernel,
        out_shape=jax.ShapeDtypeStruct((4 * cout, m), jnp.float32),
        grid=(1,),                      # BN needs whole-batch statistics
        in_specs=[
            pl.BlockSpec((k, m), lambda i: (0, 0)),
            pl.BlockSpec((4 * cout, k), lambda i: (0, 0)),
            pl.BlockSpec((cout, 1), lambda i: (0, 0)),
            pl.BlockSpec((cout, 1), lambda i: (0, 0)),
        ],
        out_specs=pl.BlockSpec((4 * cout, m), lambda i: (0, 0)),
        compiler_params=pltpu.CompilerParams(dimension_semantics=("arbitrary",)),
    )(xc, w_merged,
      gamma.reshape(cout, 1).astype(jnp.float32),
      beta.reshape(cout, 1).astype(jnp.float32))
    return _interleave_phases(out.reshape(4, cout, m), n, cout, ho, wo)


def up_conv_bn_relu_phased(x_nchw, w_phase, gamma, beta, padding):
    """Odd padding (layer 4): four distinct phase slabs, 4 small dots, fused BN+ReLU."""
    n = x_nchw.shape[0]
    cout = gamma.shape[0]
    xc, ho, wo = _phase_im2col(x_nchw, padding)              # (4, K, M) bf16
    _, k, m = xc.shape
    out = pl.pallas_call(
        _phase_conv_bn_relu_kernel,
        out_shape=jax.ShapeDtypeStruct((4 * cout, m), jnp.float32),
        grid=(1,),
        in_specs=[
            pl.BlockSpec((4, k, m), lambda i: (0, 0, 0)),
            pl.BlockSpec((4, cout, k), lambda i: (0, 0, 0)),
            pl.BlockSpec((cout, 1), lambda i: (0, 0)),
            pl.BlockSpec((cout, 1), lambda i: (0, 0)),
        ],
        out_specs=pl.BlockSpec((4 * cout, m), lambda i: (0, 0)),
        compiler_params=pltpu.CompilerParams(dimension_semantics=("arbitrary",)),
    )(xc, w_phase,
      gamma.reshape(cout, 1).astype(jnp.float32),
      beta.reshape(cout, 1).astype(jnp.float32))
    return _interleave_phases(out.reshape(4, cout, m), n, cout, ho, wo)


def up_conv_tanh_shared(x_nchw, w_merged, padding):
    """Final layer (even padding): merged phases + tanh; 2-step parallel grid over
    M halves (keeps both v7x TensorCores busy on the largest slab)."""
    n = x_nchw.shape[0]
    cout = NC
    xc, ho, wo = _shared_im2col(x_nchw, padding)             # (K, M) bf16
    k, m = xc.shape
    n_blk = 2 if (m % 256 == 0) else 1
    mb = m // n_blk
    out = pl.pallas_call(
        _merged_conv_tanh_kernel,
        out_shape=jax.ShapeDtypeStruct((4 * cout, m), jnp.float32),
        grid=(n_blk,),
        in_specs=[
            pl.BlockSpec((k, mb), lambda b: (0, b)),
            pl.BlockSpec((4 * cout, k), lambda b: (0, 0)),
        ],
        out_specs=pl.BlockSpec((4 * cout, mb), lambda b: (0, b)),
        compiler_params=pltpu.CompilerParams(dimension_semantics=("parallel",)),
    )(xc, w_merged)
    return _interleave_phases(out.reshape(4, cout, m), n, cout, ho, wo)


# ------------------------------------------------------------------------
# Parameters (kernel-form bf16 weights precomputed ONCE here, not per forward)
# ------------------------------------------------------------------------
def init_params(key):
    ks = jax.random.split(key, 9)

    def conv_w(k, cin, cout):
        # DCGAN-style init N(0, 0.02), torch ConvTranspose2d layout (Cin, Cout, 6, 6)
        return (0.02 * jax.random.normal(k, (cin, cout, 6, 6))).astype(jnp.float32)

    def bn(k, c):
        g = (1.0 + 0.02 * jax.random.normal(k, (c,))).astype(jnp.float32)
        b = jnp.zeros((c,), jnp.float32)
        return g, b

    w1 = conv_w(ks[0], GAN_INPUT, NGF * 8)
    w2 = conv_w(ks[2], NGF * 8, NGF * 4)
    w3 = conv_w(ks[4], NGF * 4, NGF * 2)
    w4 = conv_w(ks[6], NGF * 2, NGF)
    w5 = conv_w(ks[8], NGF, NC)
    g1, b1 = bn(ks[1], NGF * 8)
    g2, b2 = bn(ks[3], NGF * 4)
    g3, b3 = bn(ks[5], NGF * 2)
    g4, b4 = bn(ks[7], NGF)

    params = {
        # original torch-layout f32 weights (used only by the pure-JAX reference)
        "w1": w1, "w2": w2, "w3": w3, "w4": w4, "w5": w5,
        "g1": g1, "b1": b1, "g2": g2, "b2": b2,
        "g3": g3, "b3": b3, "g4": g4, "b4": b4,
    }
    # --- precomputed kernel-form bf16 weights ---
    # layer 1: (Cin, 36*Cout), columns t*Cout + c with t = kh*6 + kw
    params["w1_mat"] = jnp.transpose(w1, (0, 2, 3, 1)).reshape(
        GAN_INPUT, 36 * NGF * 8).astype(jnp.bfloat16)
    # even-padding layers: phase-major merged (4*Cout, 9*Cin)
    params["w2_merged"] = _phase_weights(w2, 2).reshape(4 * NGF * 4, 9 * NGF * 8)
    params["w3_merged"] = _phase_weights(w3, 4).reshape(4 * NGF * 2, 9 * NGF * 4)
    params["w5_merged"] = _phase_weights(w5, 4).reshape(4 * NC, 9 * NGF)
    # odd-padding layer 4: per-phase (4, Cout, 9*Cin)
    params["w4_phase"] = _phase_weights(w4, 5)
    return params


def generator_forward(params, x_nchw):
    # input (N, GAN_INPUT, 1, 1) NCHW  ->  output (N, NC, 64, 64) NCHW
    n = x_nchw.shape[0]
    x = x_nchw.reshape(n, GAN_INPUT).astype(jnp.float32)
    x = conv1_bn_relu(x, params["w1_mat"], params["g1"], params["b1"])                 # (N,8f, 6, 6)
    x = up_conv_bn_relu_shared(x, params["w2_merged"], params["g2"], params["b2"], 2)  # (N,4f,12,12)
    x = up_conv_bn_relu_shared(x, params["w3_merged"], params["g3"], params["b3"], 4)  # (N,2f,20,20)
    x = up_conv_bn_relu_phased(x, params["w4_phase"], params["g4"], params["b4"], 5)   # (N, f,34,34)
    return up_conv_tanh_shared(x, params["w5_merged"], 4)                              # (N, 3,64,64)


# ------------------------------------------------------------------------
# Pure-JAX reference (PyTorch semantics) for a runtime correctness check
# ------------------------------------------------------------------------
def _ref_conv_transpose(x, w, stride, padding):
    k = w.shape[-1]
    rhs = jnp.transpose(w[:, :, ::-1, ::-1], (1, 0, 2, 3))   # (Cout, Cin, K, K)
    return jax.lax.conv_general_dilated(
        x, rhs, window_strides=(1, 1),
        padding=[(k - 1 - padding, k - 1 - padding)] * 2,
        lhs_dilation=(stride, stride),
        dimension_numbers=("NCHW", "OIHW", "NCHW"),
        precision=jax.lax.Precision.HIGHEST)


def _ref_bn_relu(x, g, b):
    mean = jnp.mean(x, axis=(0, 2, 3), keepdims=True)
    var = jnp.mean((x - mean) ** 2, axis=(0, 2, 3), keepdims=True)
    y = (x - mean) * jax.lax.rsqrt(var + EPS)
    return jnp.maximum(y * g.reshape(1, -1, 1, 1) + b.reshape(1, -1, 1, 1), 0.0)


def reference_forward(params, x_nchw):
    x = x_nchw.astype(jnp.float32)
    x = _ref_bn_relu(_ref_conv_transpose(x, params["w1"], 1, 0), params["g1"], params["b1"])
    x = _ref_bn_relu(_ref_conv_transpose(x, params["w2"], 2, 2), params["g2"], params["b2"])
    x = _ref_bn_relu(_ref_conv_transpose(x, params["w3"], 2, 4), params["g3"], params["b3"])
    x = _ref_bn_relu(_ref_conv_transpose(x, params["w4"], 2, 5), params["g4"], params["b4"])
    return jnp.tanh(_ref_conv_transpose(x, params["w5"], 2, 4))


if __name__ == "__main__":
    key = jax.random.PRNGKey(0)
    kp, kx = jax.random.split(key)
    params = init_params(kp)
    x = jax.random.normal(kx, (2, GAN_INPUT, 1, 1), dtype=jnp.float32)

    out = jax.block_until_ready(jax.jit(generator_forward)(params, x))
    ref = jax.block_until_ready(jax.jit(reference_forward)(params, x))

    assert out.shape == (2, NC, 64, 64), out.shape
    assert bool(jnp.all(jnp.isfinite(out)))
    assert bool(jnp.all(jnp.abs(out) <= 1.0 + 1e-6))
    max_err = float(jnp.max(jnp.abs(out - ref)))
    assert max_err < 0.1, f"mismatch vs reference: max abs err {max_err}"
    print("KERNEL_OK")
</pallas_src>

<mosaic_0001>
module attributes {stable_mosaic.version = 11 : i64} {
  func.func @_conv1_bn_relu_kernel(%arg0: i32, %arg1: memref<2x32xbf16, #tpu.memory_space<vmem>>, %arg2: memref<32x4608xbf16, #tpu.memory_space<vmem>>, %arg3: memref<1x128xf32, #tpu.memory_space<vmem>>, %arg4: memref<1x128xf32, #tpu.memory_space<vmem>>, %arg5: memref<2x4608xf32, #tpu.memory_space<vmem>>) attributes {dimension_semantics = [#tpu.dimension_semantics<arbitrary>], iteration_bounds = array<i64: 1>, scalar_prefetch = 0 : i64, scratch_operands = 0 : i64, tpu.core_type = #tpu.core_type<tc>, window_params = [{pipeline_mode = #tpu.pipeline_mode<synchronous>, transform_indices = @transform_0, window_bounds = array<i64: 2, 32>}, {pipeline_mode = #tpu.pipeline_mode<synchronous>, transform_indices = @transform_1, window_bounds = array<i64: 32, 4608>}, {pipeline_mode = #tpu.pipeline_mode<synchronous>, transform_indices = @transform_2, window_bounds = array<i64: 1, 128>}, {pipeline_mode = #tpu.pipeline_mode<synchronous>, transform_indices = @transform_3, window_bounds = array<i64: 1, 128>}, {pipeline_mode = #tpu.pipeline_mode<synchronous>, transform_indices = @transform_4, window_bounds = array<i64: 2, 4608>}]} {
    %c0 = arith.constant 0 : index
    %c0_0 = arith.constant 0 : index
    %0 = vector.load %arg1[%c0, %c0_0] : memref<2x32xbf16, #tpu.memory_space<vmem>>, vector<2x32xbf16>
    %c0_1 = arith.constant 0 : index
    %c0_2 = arith.constant 0 : index
    %1 = vector.load %arg2[%c0_1, %c0_2] : memref<32x4608xbf16, #tpu.memory_space<vmem>>, vector<32x4608xbf16>
    %cst = arith.constant dense<0.000000e+00> : vector<2x4608xf32>
    %2 = tpu.matmul %0, %1, %cst {dimension_numbers = #tpu.dot_dimension_numbers<[1], [0], [0], [1], [0, 0, 1, 1], [], []>} : vector<2x32xbf16>, vector<32x4608xbf16>, vector<2x4608xf32> -> vector<2x4608xf32>
    %cst_3 = arith.constant 0.000000e+00 : f32
    %3 = vector.broadcast %cst_3 : f32 to vector<1x128xf32>
    %4 = vector.extract_strided_slice %2 {offsets = [0, 0], sizes = [2, 128], strides = [1, 1]} : vector<2x4608xf32> to vector<2x128xf32>
    %cst_4 = arith.constant dense<0.000000e+00> : vector<128xf32>
    %5 = vector.multi_reduction <add>, %4, %cst_4 [0] : vector<2x128xf32> to vector<128xf32>
    %6 = vector.shape_cast %5 : vector<128xf32> to vector<1x128xf32>
    %7 = arith.addf %3, %6 : vector<1x128xf32>
    %8 = vector.extract_strided_slice %2 {offsets = [0, 128], sizes = [2, 128], strides = [1, 1]} : vector<2x4608xf32> to vector<2x128xf32>
    %cst_5 = arith.constant dense<0.000000e+00> : vector<128xf32>
    %9 = vector.multi_reduction <add>, %8, %cst_5 [0] : vector<2x128xf32> to vector<128xf32>
    %10 = vector.shape_cast %9 : vector<128xf32> to vector<1x128xf32>
    %11 = arith.addf %7, %10 : vector<1x128xf32>
    %12 = vector.extract_strided_slice %2 {offsets = [0, 256], sizes = [2, 128], strides = [1, 1]} : vector<2x4608xf32> to vector<2x128xf32>
    %cst_6 = arith.constant dense<0.000000e+00> : vector<128xf32>
    %13 = vector.multi_reduction <add>, %12, %cst_6 [0] : vector<2x128xf32> to vector<128xf32>
    %14 = vector.shape_cast %13 : vector<128xf32> to vector<1x128xf32>
    %15 = arith.addf %11, %14 : vector<1x128xf32>
    %16 = vector.extract_strided_slice %2 {offsets = [0, 384], sizes = [2, 128], strides = [1, 1]} : vector<2x4608xf32> to vector<2x128xf32>
    %cst_7 = arith.constant dense<0.000000e+00> : vector<128xf32>
    %17 = vector.multi_reduction <add>, %16, %cst_7 [0] : vector<2x128xf32> to vector<128xf32>
    %18 = vector.shape_cast %17 : vector<128xf32> to vector<1x128xf32>
    %19 = arith.addf %15, %18 : vector<1x128xf32>
    %20 = vector.extract_strided_slice %2 {offsets = [0, 512], sizes = [2, 128], strides = [1, 1]} : vector<2x4608xf32> to vector<2x128xf32>
    %cst_8 = arith.constant dense<0.000000e+00> : vector<128xf32>
    %21 = vector.multi_reduction <add>, %20, %cst_8 [0] : vector<2x128xf32> to vector<128xf32>
    %22 = vector.shape_cast %21 : vector<128xf32> to vector<1x128xf32>
    %23 = arith.addf %19, %22 : vector<1x128xf32>
    %24 = vector.extract_strided_slice %2 {offsets = [0, 640], sizes = [2, 128], strides = [1, 1]} : vector<2x4608xf32> to vector<2x128xf32>
    %cst_9 = arith.constant dense<0.000000e+00> : vector<128xf32>
    %25 = vector.multi_reduction <add>, %24, %cst_9 [0] : vector<2x128xf32> to vector<128xf32>
    %26 = vector.shape_cast %25 : vector<128xf32> to vector<1x128xf32>
    %27 = arith.addf %23, %26 : vector<1x128xf32>
    %28 = vector.extract_strided_slice %2 {offsets = [0, 768], sizes = [2, 128], strides = [1, 1]} : vector<2x4608xf32> to vector<2x128xf32>
    %cst_10 = arith.constant dense<0.000000e+00> : vector<128xf32>
    %29 = vector.multi_reduction <add>, %28, %cst_10 [0] : vector<2x128xf32> to vector<128xf32>
    %30 = vector.shape_cast %29 : vector<128xf32> to vector<1x128xf32>
    %31 = arith.addf %27, %30 : vector<1x128xf32>
    %32 = vector.extract_strided_slice %2 {offsets = [0, 896], sizes = [2, 128], strides = [1, 1]} : vector<2x4608xf32> to vector<2x128xf32>
    %cst_11 = arith.constant dense<0.000000e+00> : vector<128xf32>
    %33 = vector.multi_reduction <add>, %32, %cst_11 [0] : vector<2x128xf32> to vector<128xf32>
    %34 = vector.shape_cast %33 : vector<128xf32> to vector<1x128xf32>
    %35 = arith.addf %31, %34 : vector<1x128xf32>
    %36 = vector.extract_strided_slice %2 {offsets = [0, 1024], sizes = [2, 128], strides = [1, 1]} : vector<2x4608xf32> to vector<2x128xf32>
    %cst_12 = arith.constant dense<0.000000e+00> : vector<128xf32>
    %37 = vector.multi_reduction <add>, %36, %cst_12 [0] : vector<2x128xf32> to vector<128xf32>
    %38 = vector.shape_cast %37 : vector<128xf32> to vector<1x128xf32>
    %39 = arith.addf %35, %38 : vector<1x128xf32>
    %40 = vector.extract_strided_slice %2 {offsets = [0, 1152], sizes = [2, 128], strides = [1, 1]} : vector<2x4608xf32> to vector<2x128xf32>
    %cst_13 = arith.constant dense<0.000000e+00> : vector<128xf32>
    %41 = vector.multi_reduction <add>, %40, %cst_13 [0] : vector<2x128xf32> to vector<128xf32>
    %42 = vector.shape_cast %41 : vector<128xf32> to vector<1x128xf32>
    %43 = arith.addf %39, %42 : vector<1x128xf32>
    %44 = vector.extract_strided_slice %2 {offsets = [0, 1280], sizes = [2, 128], strides = [1, 1]} : vector<2x4608xf32> to vector<2x128xf32>
    %cst_14 = arith.constant dense<0.000000e+00> : vector<128xf32>
    %45 = vector.multi_reduction <add>, %44, %cst_14 [0] : vector<2x128xf32> to vector<128xf32>
    %46 = vector.shape_cast %45 : vector<128xf32> to vector<1x128xf32>
    %47 = arith.addf %43, %46 : vector<1x128xf32>
    %48 = vector.extract_strided_slice %2 {offsets = [0, 1408], sizes = [2, 128], strides = [1, 1]} : vector<2x4608xf32> to vector<2x128xf32>
    %cst_15 = arith.constant dense<0.000000e+00> : vector<128xf32>
    %49 = vector.multi_reduction <add>, %48, %cst_15 [0] : vector<2x128xf32> to vector<128xf32>
    %50 = vector.shape_cast %49 : vector<128xf32> to vector<1x128xf32>
    %51 = arith.addf %47, %50 : vector<1x128xf32>
    %52 = vector.extract_strided_slice %2 {offsets = [0, 1536], sizes = [2, 128], strides = [1, 1]} : vector<2x4608xf32> to vector<2x128xf32>
    %cst_16 = arith.constant dense<0.000000e+00> : vector<128xf32>
    %53 = vector.multi_reduction <add>, %52, %cst_16 [0] : vector<2x128xf32> to vector<128xf32>
    %54 = vector.shape_cast %53 : vector<128xf32> to vector<1x128xf32>
    %55 = arith.addf %51, %54 : vector<1x128xf32>
    %56 = vector.extract_strided_slice %2 {offsets = [0, 1664], sizes = [2, 128], strides = [1, 1]} : vector<2x4608xf32> to vector<2x128xf32>
    %cst_17 = arith.constant dense<0.000000e+00> : vector<128xf32>
    %57 = vector.multi_reduction <add>, %56, %cst_17 [0] : vector<2x128xf32> to vector<128xf32>
    %58 = vector.shape_cast %57 : vector<128xf32> to vector<1x128xf32>
    %59 = arith.addf %55, %58 : vector<1x128xf32>
    %60 = vector.extract_strided_slice %2 {offsets = [0, 1792], sizes = [2, 128], strides = [1, 1]} : vector<2x4608xf32> to vector<2x128xf32>
    %cst_18 = arith.constant dense<0.000000e+00> : vector<128xf32>
    %61 = vector.multi_reduction <add>, %60, %cst_18 [0] : vector<2x128xf32> to vector<128xf32>
    %62 = vector.shape_cast %61 : vector<128xf32> to vector<1x128xf32>
    %63 = arith.addf %59, %62 : vector<1x128xf32>
    %64 = vector.extract_strided_slice %2 {offsets = [0, 1920], sizes = [2, 128], strides = [1, 1]} : vector<2x4608xf32> to vector<2x128xf32>
    %cst_19 = arith.constant dense<0.000000e+00> : vector<128xf32>
    %65 = vector.multi_reduction <add>, %64, %cst_19 [0] : vector<2x128xf32> to vector<128xf32>
    %66 = vector.shape_cast %65 : vector<128xf32> to vector<1x128xf32>
    %67 = arith.addf %63, %66 : vector<1x128xf32>
    %68 = vector.extract_strided_slice %2 {offsets = [0, 2048], sizes = [2, 128], strides = [1, 1]} : vector<2x4608xf32> to vector<2x128xf32>
    %cst_20 = arith.constant dense<0.000000e+00> : vector<128xf32>
    %69 = vector.multi_reduction <add>, %68, %cst_20 [0] : vector<2x128xf32> to vector<128xf32>
    %70 = vector.shape_cast %69 : vector<128xf32> to vector<1x128xf32>
    %71 = arith.addf %67, %70 : vector<1x128xf32>
    %72 = vector.extract_strided_slice %2 {offsets = [0, 2176], sizes = [2, 128], strides = [1, 1]} : vector<2x4608xf32> to vector<2x128xf32>
    %cst_21 = arith.constant dense<0.000000e+00> : vector<128xf32>
    %73 = vector.multi_reduction <add>, %72, %cst_21 [0] : vector<2x128xf32> to vector<128xf32>
    %74 = vector.shape_cast %73 : vector<128xf32> to vector<1x128xf32>
    %75 = arith.addf %71, %74 : vector<1x128xf32>
    %76 = vector.extract_strided_slice %2 {offsets = [0, 2304], sizes = [2, 128], strides = [1, 1]} : vector<2x4608xf32> to vector<2x128xf32>
    %cst_22 = arith.constant dense<0.000000e+00> : vector<128xf32>
    %77 = vector.multi_reduction <add>, %76, %cst_22 [0] : vector<2x128xf32> to vector<128xf32>
    %78 = vector.shape_cast %77 : vector<128xf32> to vector<1x128xf32>
    %79 = arith.addf %75, %78 : vector<1x128xf32>
    %80 = vector.extract_strided_slice %2 {offsets = [0, 2432], sizes = [2, 128], strides = [1, 1]} : vector<2x4608xf32> to vector<2x128xf32>
    %cst_23 = arith.constant dense<0.000000e+00> : vector<128xf32>
    %81 = vector.multi_reduction <add>, %80, %cst_23 [0] : vector<2x128xf32> to vector<128xf32>
    %82 = vector.shape_cast %81 : vector<128xf32> to vector<1x128xf32>
    %83 = arith.addf %79, %82 : vector<1x128xf32>
    %84 = vector.extract_strided_slice %2 {offsets = [0, 2560], sizes = [2, 128], strides = [1, 1]} : vector<2x4608xf32> to vector<2x128xf32>
    %cst_24 = arith.constant dense<0.000000e+00> : vector<128xf32>
    %85 = vector.multi_reduction <add>, %84, %cst_24 [0] : vector<2x128xf32> to vector<128xf32>
    %86 = vector.shape_cast %85 : vector<128xf32> to vector<1x128xf32>
    %87 = arith.addf %83, %86 : vector<1x128xf32>
    %88 = vector.extract_strided_slice %2 {offsets = [0, 2688], sizes = [2, 128], strides = [1, 1]} : vector<2x4608xf32> to vector<2x128xf32>
    %cst_25 = arith.constant dense<0.000000e+00> : vector<128xf32>
    %89 = vector.multi_reduction <add>, %88, %cst_25 [0] : vector<2x128xf32> to vector<128xf32>
    %90 = vector.shape_cast %89 : vector<128xf32> to vector<1x128xf32>
    %91 = arith.addf %87, %90 : vector<1x128xf32>
    %92 = vector.extract_strided_slice %2 {offsets = [0, 2816], sizes = [2, 128], strides = [1, 1]} : vector<2x4608xf32> to vector<2x128xf32>
    %cst_26 = arith.constant dense<0.000000e+00> : vector<128xf32>
    %93 = vector.multi_reduction <add>, %92, %cst_26 [0] : vector<2x128xf32> to vector<128xf32>
    %94 = vector.shape_cast %93 : vector<128xf32> to vector<1x128xf32>
    %95 = arith.addf %91, %94 : vector<1x128xf32>
    %96 = vector.extract_strided_slice %2 {offsets = [0, 2944], sizes = [2, 128], strides = [1, 1]} : vector<2x4608xf32> to vector<2x128xf32>
    %cst_27 = arith.constant dense<0.000000e+00> : vector<128xf32>
    %97 = vector.multi_reduction <add>, %96, %cst_27 [0] : vector<2x128xf32> to vector<128xf32>
    %98 = vector.shape_cast %97 : vector<128xf32> to vector<1x128xf32>
    %99 = arith.addf %95, %98 : vector<1x128xf32>
    %100 = vector.extract_strided_slice %2 {offsets = [0, 3072], sizes = [2, 128], strides = [1, 1]} : vector<2x4608xf32> to vector<2x128xf32>
    %cst_28 = arith.constant dense<0.000000e+00> : vector<128xf32>
    %101 = vector.multi_reduction <add>, %100, %cst_28 [0] : vector<2x128xf32> to vector<128xf32>
    %102 = vector.shape_cast %101 : vector<128xf32> to vector<1x128xf32>
    %103 = arith.addf %99, %102 : vector<1x128xf32>
    %104 = vector.extract_strided_slice %2 {offsets = [0, 3200], sizes = [2, 128], strides = [1, 1]} : vector<2x4608xf32> to vector<2x128xf32>
    %cst_29 = arith.constant dense<0.000000e+00> : vector<128xf32>
    %105 = vector.multi_reduction <add>, %104, %cst_29 [0] : vector<2x128xf32> to vector<128xf32>
    %106 = vector.shape_cast %105 : vector<128xf32> to vector<1x128xf32>
    %107 = arith.addf %103, %106 : vector<1x128xf32>
    %108 = vector.extract_strided_slice %2 {offsets = [0, 3328], sizes = [2, 128], strides = [1, 1]} : vector<2x4608xf32> to vector<2x128xf32>
    %cst_30 = arith.constant dense<0.000000e+00> : vector<128xf32>
    %109 = vector.multi_reduction <add>, %108, %cst_30 [0] : vector<2x128xf32> to vector<128xf32>
    %110 = vector.shape_cast %109 : vector<128xf32> to vector<1x128xf32>
    %111 = arith.addf %107, %110 : vector<1x128xf32>
    %112 = vector.extract_strided_slice %2 {offsets = [0, 3456], sizes = [2, 128], strides = [1, 1]} : vector<2x4608xf32> to vector<2x128xf32>
    %cst_31 = arith.constant dense<0.000000e+00> : vector<128xf32>
    %113 = vector.multi_reduction <add>, %112, %cst_31 [0] : vector<2x128xf32> to vector<128xf32>
    %114 = vector.shape_cast %113 : vector<128xf32> to vector<1x128xf32>
    %115 = arith.addf %111, %114 : vector<1x128xf32>
    %116 = vector.extract_strided_slice %2 {offsets = [0, 3584], sizes = [2, 128], strides = [1, 1]} : vector<2x4608xf32> to vector<2x128xf32>
    %cst_32 = arith.constant dense<0.000000e+00> : vector<128xf32>
    %117 = vector.multi_reduction <add>, %116, %cst_32 [0] : vector<2x128xf32> to vector<128xf32>
    %118 = vector.shape_cast %117 : vector<128xf32> to vector<1x128xf32>
    %119 = arith.addf %115, %118 : vector<1x128xf32>
    %120 = vector.extract_strided_slice %2 {offsets = [0, 3712], sizes = [2, 128], strides = [1, 1]} : vector<2x4608xf32> to vector<2x128xf32>
    %cst_33 = arith.constant dense<0.000000e+00> : vector<128xf32>
    %121 = vector.multi_reduction <add>, %120, %cst_33 [0] : vector<2x128xf32> to vector<128xf32>
    %122 = vector.shape_cast %121 : vector<128xf32> to vector<1x128xf32>
    %123 = arith.addf %119, %122 : vector<1x128xf32>
    %124 = vector.extract_strided_slice %2 {offsets = [0, 3840], sizes = [2, 128], strides = [1, 1]} : vector<2x4608xf32> to vector<2x128xf32>
    %cst_34 = arith.constant dense<0.000000e+00> : vector<128xf32>
    %125 = vector.multi_reduction <add>, %124, %cst_34 [0] : vector<2x128xf32> to vector<128xf32>
    %126 = vector.shape_cast %125 : vector<128xf32> to vector<1x128xf32>
    %127 = arith.addf %123, %126 : vector<1x128xf32>
    %128 = vector.extract_strided_slice %2 {offsets = [0, 3968], sizes = [2, 128], strides = [1, 1]} : vector<2x4608xf32> to vector<2x128xf32>
    %cst_35 = arith.constant dense<0.000000e+00> : vector<128xf32>
    %129 = vector.multi_reduction <add>, %128, %cst_35 [0] : vector<2x128xf32> to vector<128xf32>
    %130 = vector.shape_cast %129 : vector<128xf32> to vector<1x128xf32>
    %131 = arith.addf %127, %130 : vector<1x128xf32>
    %132 = vector.extract_strided_slice %2 {offsets = [0, 4096], sizes = [2, 128], strides = [1, 1]} : vector<2x4608xf32> to vector<2x128xf32>
    %cst_36 = arith.constant dense<0.000000e+00> : vector<128xf32>
    %133 = vector.multi_reduction <add>, %132, %cst_36 [0] : vector<2x128xf32> to vector<128xf32>
    %134 = vector.shape_cast %133 : vector<128xf32> to vector<1x128xf32>
    %135 = arith.addf %131, %134 : vector<1x128xf32>
    %136 = vector.extract_strided_slice %2 {offsets = [0, 4224], sizes = [2, 128], strides = [1, 1]} : vector<2x4608xf32> to vector<2x128xf32>
    %cst_37 = arith.constant dense<0.000000e+00> : vector<128xf32>
    %137 = vector.multi_reduction <add>, %136, %cst_37 [0] : vector<2x128xf32> to vector<128xf32>
    %138 = vector.shape_cast %137 : vector<128xf32> to vector<1x128xf32>
    %139 = arith.addf %135, %138 : vector<1x128xf32>
    %140 = vector.extract_strided_slice %2 {offsets = [0, 4352], sizes = [2, 128], strides = [1, 1]} : vector<2x4608xf32> to vector<2x128xf32>
    %cst_38 = arith.constant dense<0.000000e+00> : vector<128xf32>
    %141 = vector.multi_reduction <add>, %140, %cst_38 [0] : vector<2x128xf32> to vector<128xf32>
    %142 = vector.shape_cast %141 : vector<128xf32> to vector<1x128xf32>
    %143 = arith.addf %139, %142 : vector<1x128xf32>
    %144 = vector.extract_strided_slice %2 {offsets = [0, 4480], sizes = [2, 128], strides = [1, 1]} : vector<2x4608xf32> to vector<2x128xf32>
    %cst_39 = arith.constant dense<0.000000e+00> : vector<128xf32>
    %145 = vector.multi_reduction <add>, %144, %cst_39 [0] : vector<2x128xf32> to vector<128xf32>
    %146 = vector.shape_cast %145 : vector<128xf32> to vector<1x128xf32>
    %147 = arith.addf %143, %146 : vector<1x128xf32>
    %cst_40 = arith.constant 7.200000e+01 : f32
    %148 = vector.broadcast %cst_40 : f32 to vector<1x128xf32>
    %149 = arith.divf %147, %148 : vector<1x128xf32>
    %cst_41 = arith.constant 0.000000e+00 : f32
    %150 = vector.broadcast %cst_41 : f32 to vector<1x128xf32>
    %151 = vector.extract_strided_slice %2 {offsets = [0, 0], sizes = [2, 128], strides = [1, 1]} : vector<2x4608xf32> to vector<2x128xf32>
    %152 = vector.broadcast %149 : vector<1x128xf32> to vector<2x128xf32>
    %153 = arith.subf %151, %152 : vector<2x128xf32>
    %154 = arith.mulf %153, %153 : vector<2x128xf32>
    %cst_42 = arith.constant dense<0.000000e+00> : vector<128xf32>
    %155 = vector.multi_reduction <add>, %154, %cst_42 [0] : vector<2x128xf32> to vector<128xf32>
    %156 = vector.shape_cast %155 : vector<128xf32> to vector<1x128xf32>
    %157 = arith.addf %150, %156 : vector<1x128xf32>
    %158 = vector.extract_strided_slice %2 {offsets = [0, 128], sizes = [2, 128], strides = [1, 1]} : vector<2x4608xf32> to vector<2x128xf32>
    %159 = vector.broadcast %149 : vector<1x128xf32> to vector<2x128xf32>
    %160 = arith.subf %158, %159 : vector<2x128xf32>
    %161 = arith.mulf %160, %160 : vector<2x128xf32>
    %cst_43 = arith.constant dense<0.000000e+00> : vector<128xf32>
    %162 = vector.multi_reduction <add>, %161, %cst_43 [0] : vector<2x128xf32> to vector<128xf32>
    %163 = vector.shape_cast %162 : vector<128xf32> to vector<1x128xf32>
    %164 = arith.addf %157, %163 : vector<1x128xf32>
    %165 = vector.extract_strided_slice %2 {offsets = [0, 256], sizes = [2, 128], strides = [1, 1]} : vector<2x4608xf32> to vector<2x128xf32>
    %166 = vector.broadcast %149 : vector<1x128xf32> to vector<2x128xf32>
    %167 = arith.subf %165, %166 : vector<2x128xf32>
    %168 = arith.mulf %167, %167 : vector<2x128xf32>
    %cst_44 = arith.constant dense<0.000000e+00> : vector<128xf32>
    %169 = vector.multi_reduction <add>, %168, %cst_44 [0] : vector<2x128xf32> to vector<128xf32>
    %170 = vector.shape_cast %169 : vector<128xf32> to vector<1x128xf32>
    %171 = arith.addf %164, %170 : vector<1x128xf32>
    %172 = vector.extract_strided_slice %2 {offsets = [0, 384], sizes = [2, 128], strides = [1, 1]} : vector<2x4608xf32> to vector<2x128xf32>
    %173 = vector.broadcast %149 : vector<1x128xf32> to vector<2x128xf32>
    %174 = arith.subf %172, %173 : vector<2x128xf32>
    %175 = arith.mulf %174, %174 : vector<2x128xf32>
    %cst_45 = arith.constant dense<0.000000e+00> : vector<128xf32>
    %176 = vector.multi_reduction <add>, %175, %cst_45 [0] : vector<2x128xf32> to vector<128xf32>
    %177 = vector.shape_cast %176 : vector<128xf32> to vector<1x128xf32>
    %178 = arith.addf %171, %177 : vector<1x128xf32>
    %179 = vector.extract_strided_slice %2 {offsets = [0, 512], sizes = [2, 128], strides = [1, 1]} : vector<2x4608xf32> to vector<2x128xf32>
    %180 = vector.broadcast %149 : vector<1x128xf32> to vector<2x128xf32>
    %181 = arith.subf %179, %180 : vector<2x128xf32>
    %182 = arith.mulf %181, %181 : vector<2x128xf32>
    %cst_46 = arith.constant dense<0.000000e+00> : vector<128xf32>
    %183 = vector.multi_reduction <add>, %182, %cst_46 [0] : vector<2x128xf32> to vector<128xf32>
    %184 = vector.shape_cast %183 : vector<128xf32> to vector<1x128xf32>
    %185 = arith.addf %178, %184 : vector<1x128xf32>
    %186 = vector.extract_strided_slice %2 {offsets = [0, 640], sizes = [2, 128], strides = [1, 1]} : vector<2x4608xf32> to vector<2x128xf32>
    %187 = vector.broadcast %149 : vector<1x128xf32> to vector<2x128xf32>
    %188 = arith.subf %186, %187 : vector<2x128xf32>
    %189 = arith.mulf %188, %188 : vector<2x128xf32>
    %cst_47 = arith.constant dense<0.000000e+00> : vector<128xf32>
    %190 = vector.multi_reduction <add>, %189, %cst_47 [0] : vector<2x128xf32> to vector<128xf32>
    %191 = vector.shape_cast %190 : vector<128xf32> to vector<1x128xf32>
    %192 = arith.addf %185, %191 : vector<1x128xf32>
    %193 = vector.extract_strided_slice %2 {offsets = [0, 768], sizes = [2, 128], strides = [1, 1]} : vector<2x4608xf32> to vector<2x128xf32>
    %194 = vector.broadcast %149 : vector<1x128xf32> to vector<2x128xf32>
    %195 = arith.subf %193, %194 : vector<2x128xf32>
    %196 = arith.mulf %195, %195 : vector<2x128xf32>
    %cst_48 = arith.constant dense<0.000000e+00> : vector<128xf32>
    %197 = vector.multi_reduction <add>, %196, %cst_48 [0] : vector<2x128xf32> to vector<128xf32>
    %198 = vector.shape_cast %197 : vector<128xf32> to vector<1x128xf32>
    %199 = arith.addf %192, %198 : vector<1x128xf32>
    %200 = vector.extract_strided_slice %2 {offsets = [0, 896], sizes = [2, 128], strides = [1, 1]} : vector<2x4608xf32> to vector<2x128xf32>
    %201 = vector.broadcast %149 : vector<1x128xf32> to vector<2x128xf32>
    %202 = arith.subf %200, %201 : vector<2x128xf32>
    %203 = arith.mulf %202, %202 : vector<2x128xf32>
    %cst_49 = arith.constant dense<0.000000e+00> : vector<128xf32>
    %204 = vector.multi_reduction <add>, %203, %cst_49 [0] : vector<2x128xf32> to vector<128xf32>
    %205 = vector.shape_cast %204 : vector<128xf32> to vector<1x128xf32>
    %206 = arith.addf %199, %205 : vector<1x128xf32>
    %207 = vector.extract_strided_slice %2 {offsets = [0, 1024], sizes = [2, 128], strides = [1, 1]} : vector<2x4608xf32> to vector<2x128xf32>
    %208 = vector.broadcast %149 : vector<1x128xf32> to vector<2x128xf32>
    %209 = arith.subf %207, %208 : vector<2x128xf32>
    %210 = arith.mulf %209, %209 : vector<2x128xf32>
    %cst_50 = arith.constant dense<0.000000e+00> : vector<128xf32>
    %211 = vector.multi_reduction <add>, %210, %cst_50 [0] : vector<2x128xf32> to vector<128xf32>
    %212 = vector.shape_cast %211 : vector<128xf32> to vector<1x128xf32>
    %213 = arith.addf %206, %212 : vector<1x128xf32>
    %214 = vector.extract_strided_slice %2 {offsets = [0, 1152], sizes = [2, 128], strides = [1, 1]} : vector<2x4608xf32> to vector<2x128xf32>
    %215 = vector.broadcast %149 : vector<1x128xf32> to vector<2x128xf32>
    %216 = arith.subf %214, %215 : vector<2x128xf32>
    %217 = arith.mulf %216, %216 : vector<2x128xf32>
    %cst_51 = arith.constant dense<0.000000e+00> : vector<128xf32>
    %218 = vector.multi_reduction <add>, %217, %cst_51 [0] : vector<2x128xf32> to vector<128xf32>
    %219 = vector.shape_cast %218 : vector<128xf32> to vector<1x128xf32>
    %220 = arith.addf %213, %219 : vector<1x128xf32>
    %221 = vector.extract_strided_slice %2 {offsets = [0, 1280], sizes = [2, 128], strides = [1, 1]} : vector<2x4608xf32> to vector<2x128xf32>
    %222 = vector.broadcast %149 : vector<1x128xf32> to vector<2x128xf32>
    %223 = arith.subf %221, %222 : vector<2x128xf32>
    %224 = arith.mulf %223, %223 : vector<2x128xf32>
    %cst_52 = arith.constant dense<0.000000e+00> : vector<128xf32>
    %225 = vector.multi_reduction <add>, %224, %cst_52 [0] : vector<2x128xf32> to vector<128xf32>
    %226 = vector.shape_cast %225 : vector<128xf32> to vector<1x128xf32>
    %227 = arith.addf %220, %226 : vector<1x128xf32>
    %228 = vector.extract_strided_slice %2 {offsets = [0, 1408], sizes = [2, 128], strides = [1, 1]} : vector<2x4608xf32> to vector<2x128xf32>
    %229 = vector.broadcast %149 : vector<1x128xf32> to vector<2x128xf32>
    %230 = arith.subf %228, %229 : vector<2x128xf32>
    %231 = arith.mulf %230, %230 : vector<2x128xf32>
    %cst_53 = arith.constant dense<0.000000e+00> : vector<128xf32>
    %232 = vector.multi_reduction <add>, %231, %cst_53 [0] : vector<2x128xf32> to vector<128xf32>
    %233 = vector.shape_cast %232 : vector<128xf32> to vector<1x128xf32>
    %234 = arith.addf %227, %233 : vector<1x128xf32>
    %235 = vector.extract_strided_slice %2 {offsets = [0, 1536], sizes = [2, 128], strides = [1, 1]} : vector<2x4608xf32> to vector<2x128xf32>
    %236 = vector.broadcast %149 : vector<1x128xf32> to vector<2x128xf32>
    %237 = arith.subf %235, %236 : vector<2x128xf32>
    %238 = arith.mulf %237, %237 : vector<2x128xf32>
    %cst_54 = arith.constant dense<0.000000e+00> : vector<128xf32>
    %239 = vector.multi_reduction <add>, %238, %cst_54 [0] : vector<2x128xf32> to vector<128xf32>
    %240 = vector.shape_cast %239 : vector<128xf32> to vector<1x128xf32>
    %241 = arith.addf %234, %240 : vector<1x128xf32>
    %242 = vector.extract_strided_slice %2 {offsets = [0, 1664], sizes = [2, 128], strides = [1, 1]} : vector<2x4608xf32> to vector<2x128xf32>
    %243 = vector.broadcast %149 : vector<1x128xf32> to vector<2x128xf32>
    %244 = arith.subf %242, %243 : vector<2x128xf32>
    %245 = arith.mulf %244, %244 : vector<2x128xf32>
    %cst_55 = arith.constant dense<0.000000e+00> : vector<128xf32>
    %246 = vector.multi_reduction <add>, %245, %cst_55 [0] : vector<2x128xf32> to vector<128xf32>
    %247 = vector.shape_cast %246 : vector<128xf32> to vector<1x128xf32>
    %248 = arith.addf %241, %247 : vector<1x128xf32>
    %249 = vector.extract_strided_slice %2 {offsets = [0, 1792], sizes = [2, 128], strides = [1, 1]} : vector<2x4608xf32> to vector<2x128xf32>
    %250 = vector.broadcast %149 : vector<1x128xf32> to vector<2x128xf32>
    %251 = arith.subf %249, %250 : vector<2x128xf32>
    %252 = arith.mulf %251, %251 : vector<2x128xf32>
    %cst_56 = arith.constant dense<0.000000e+00> : vector<128xf32>
    %253 = vector.multi_reduction <add>, %252, %cst_56 [0] : vector<2x128xf32> to vector<128xf32>
    %254 = vector.shape_cast %253 : vector<128xf32> to vector<1x128xf32>
    %255 = arith.addf %248, %254 : vector<1x128xf32>
    %256 = vector.extract_strided_slice %2 {offsets = [0, 1920], sizes = [2, 128], strides = [1, 1]} : vector<2x4608xf32> to vector<2x128xf32>
    %257 = vector.broadcast %149 : vector<1x128xf32> to vector<2x128xf32>
    %258 = arith.subf %256, %257 : vector<2x128xf32>
    %259 = arith.mulf %258, %258 : vector<2x128xf32>
    %cst_57 = arith.constant dense<0.000000e+00> : vector<128xf32>
    %260 = vector.multi_reduction <add>, %259, %cst_57 [0] : vector<2x128xf32> to vector<128xf32>
    %261 = vector.shape_cast %260 : vector<128xf32> to vector<1x128xf32>
    %262 = arith.addf %255, %261 : vector<1x128xf32>
    %263 = vector.extract_strided_slice %2 {offsets = [0, 2048], sizes = [2, 128], strides = [1, 1]} : vector<2x4608xf32> to vector<2x128xf32>
    %264 = vector.broadcast %149 : vector<1x128xf32> to vector<2x128xf32>
    %265 = arith.subf %263, %264 : vector<2x128xf32>
    %266 = arith.mulf %265, %265 : vector<2x128xf32>
    %cst_58 = arith.constant dense<0.000000e+00> : vector<128xf32>
    %267 = vector.multi_reduction <add>, %266, %cst_58 [0] : vector<2x128xf32> to vector<128xf32>
    %268 = vector.shape_cast %267 : vector<128xf32> to vector<1x128xf32>
    %269 = arith.addf %262, %268 : vector<1x128xf32>
    %270 = vector.extract_strided_slice %2 {offsets = [0, 2176], sizes = [2, 128], strides = [1, 1]} : vector<2x4608xf32> to vector<2x128xf32>
    %271 = vector.broadcast %149 : vector<1x128xf32> to vector<2x128xf32>
    %272 = arith.subf %270, %271 : vector<2x128xf32>
    %273 = arith.mulf %272, %272 : vector<2x128xf32>
    %cst_59 = arith.constant dense<0.000000e+00> : vector<128xf32>
    %274 = vector.multi_reduction <add>, %273, %cst_59 [0] : vector<2x128xf32> to vector<128xf32>
    %275 = vector.shape_cast %274 : vector<128xf32> to vector<1x128xf32>
    %276 = arith.addf %269, %275 : vector<1x128xf32>
    %277 = vector.extract_strided_slice %2 {offsets = [0, 2304], sizes = [2, 128], strides = [1, 1]} : vector<2x4608xf32> to vector<2x128xf32>
    %278 = vector.broadcast %149 : vector<1x128xf32> to vector<2x128xf32>
    %279 = arith.subf %277, %278 : vector<2x128xf32>
    %280 = arith.mulf %279, %279 : vector<2x128xf32>
    %cst_60 = arith.constant dense<0.000000e+00> : vector<128xf32>
    %281 = vector.multi_reduction <add>, %280, %cst_60 [0] : vector<2x128xf32> to vector<128xf32>
    %282 = vector.shape_cast %281 : vector<128xf32> to vector<1x128xf32>
    %283 = arith.addf %276, %282 : vector<1x128xf32>
    %284 = vector.extract_strided_slice %2 {offsets = [0, 2432], sizes = [2, 128], strides = [1, 1]} : vector<2x4608xf32> to vector<2x128xf32>
    %285 = vector.broadcast %149 : vector<1x128xf32> to vector<2x128xf32>
    %286 = arith.subf %284, %285 : vector<2x128xf32>
    %287 = arith.mulf %286, %286 : vector<2x128xf32>
    %cst_61 = arith.constant dense<0.000000e+00> : vector<128xf32>
    %288 = vector.multi_reduction <add>, %287, %cst_61 [0] : vector<2x128xf32> to vector<128xf32>
    %289 = vector.shape_cast %288 : vector<128xf32> to vector<1x128xf32>
    %290 = arith.addf %283, %289 : vector<1x128xf32>
    %291 = vector.extract_strided_slice %2 {offsets = [0, 2560], sizes = [2, 128], strides = [1, 1]} : vector<2x4608xf32> to vector<2x128xf32>
    %292 = vector.broadcast %149 : vector<1x128xf32> to vector<2x128xf32>
    %293 = arith.subf %291, %292 : vector<2x128xf32>
    %294 = arith.mulf %293, %293 : vector<2x128xf32>
    %cst_62 = arith.constant dense<0.000000e+00> : vector<128xf32>
    %295 = vector.multi_reduction <add>, %294, %cst_62 [0] : vector<2x128xf32> to vector<128xf32>
    %296 = vector.shape_cast %295 : vector<128xf32> to vector<1x128xf32>
    %297 = arith.addf %290, %296 : vector<1x128xf32>
    %298 = vector.extract_strided_slice %2 {offsets = [0, 2688], sizes = [2, 128], strides = [1, 1]} : vector<2x4608xf32> to vector<2x128xf32>
    %299 = vector.broadcast %149 : vector<1x128xf32> to vector<2x128xf32>
    %300 = arith.subf %298, %299 : vector<2x128xf32>
    %301 = arith.mulf %300, %300 : vector<2x128xf32>
    %cst_63 = arith.constant dense<0.000000e+00> : vector<128xf32>
    %302 = vector.multi_reduction <add>, %301, %cst_63 [0] : vector<2x128xf32> to vector<128xf32>
    %303 = vector.shape_cast %302 : vector<128xf32> to vector<1x128xf32>
    %304 = arith.addf %297, %303 : vector<1x128xf32>
    %305 = vector.extract_strided_slice %2 {offsets = [0, 2816], sizes = [2, 128], strides = [1, 1]} : vector<2x4608xf32> to vector<2x128xf32>
    %306 = vector.broadcast %149 : vector<1x128xf32> to vector<2x128xf32>
    %307 = arith.subf %305, %306 : vector<2x128xf32>
    %308 = arith.mulf %307, %307 : vector<2x128xf32>
    %cst_64 = arith.constant dense<0.000000e+00> : vector<128xf32>
    %309 = vector.multi_reduction <add>, %308, %cst_64 [0] : vector<2x128xf32> to vector<128xf32>
    %310 = vector.shape_cast %309 : vector<128xf32> to vector<1x128xf32>
    %311 = arith.addf %304, %310 : vector<1x128xf32>
    %312 = vector.extract_strided_slice %2 {offsets = [0, 2944], sizes = [2, 128], strides = [1, 1]} : vector<2x4608xf32> to vector<2x128xf32>
    %313 = vector.broadcast %149 : vector<1x128xf32> to vector<2x128xf32>
    %314 = arith.subf %312, %313 : vector<2x128xf32>
    %315 = arith.mulf %314, %314 : vector<2x128xf32>
    %cst_65 = arith.constant dense<0.000000e+00> : vector<128xf32>
    %316 = vector.multi_reduction <add>, %315, %cst_65 [0] : vector<2x128xf32> to vector<128xf32>
    %317 = vector.shape_cast %316 : vector<128xf32> to vector<1x128xf32>
    %318 = arith.addf %311, %317 : vector<1x128xf32>
    %319 = vector.extract_strided_slice %2 {offsets = [0, 3072], sizes = [2, 128], strides = [1, 1]} : vector<2x4608xf32> to vector<2x128xf32>
    %320 = vector.broadcast %149 : vector<1x128xf32> to vector<2x128xf32>
    %321 = arith.subf %319, %320 : vector<2x128xf32>
    %322 = arith.mulf %321, %321 : vector<2x128xf32>
    %cst_66 = arith.constant dense<0.000000e+00> : vector<128xf32>
    %323 = vector.multi_reduction <add>, %322, %cst_66 [0] : vector<2x128xf32> to vector<128xf32>
    %324 = vector.shape_cast %323 : vector<128xf32> to vector<1x128xf32>
    %325 = arith.addf %318, %324 : vector<1x128xf32>
    %326 = vector.extract_strided_slice %2 {offsets = [0, 3200], sizes = [2, 128], strides = [1, 1]} : vector<2x4608xf32> to vector<2x128xf32>
    %327 = vector.broadcast %149 : vector<1x128xf32> to vector<2x128xf32>
    %328 = arith.subf %326, %327 : vector<2x128xf32>
    %329 = arith.mulf %328, %328 : vector<2x128xf32>
    %cst_67 = arith.constant dense<0.000000e+00> : vector<128xf32>
    %330 = vector.multi_reduction <add>, %329, %cst_67 [0] : vector<2x128xf32> to vector<128xf32>
    %331 = vector.shape_cast %330 : vector<128xf32> to vector<1x128xf32>
    %332 = arith.addf %325, %331 : vector<1x128xf32>
    %333 = vector.extract_strided_slice %2 {offsets = [0, 3328], sizes = [2, 128], strides = [1, 1]} : vector<2x4608xf32> to vector<2x128xf32>
    %334 = vector.broadcast %149 : vector<1x128xf32> to vector<2x128xf32>
    %335 = arith.subf %333, %334 : vector<2x128xf32>
    %336 = arith.mulf %335, %335 : vector<2x128xf32>
    %cst_68 = arith.constant dense<0.000000e+00> : vector<128xf32>
    %337 = vector.multi_reduction <add>, %336, %cst_68 [0] : vector<2x128xf32> to vector<128xf32>
    %338 = vector.shape_cast %337 : vector<128xf32> to vector<1x128xf32>
    %339 = arith.addf %332, %338 : vector<1x128xf32>
    %340 = vector.extract_strided_slice %2 {offsets = [0, 3456], sizes = [2, 128], strides = [1, 1]} : vector<2x4608xf32> to vector<2x128xf32>
    %341 = vector.broadcast %149 : vector<1x128xf32> to vector<2x128xf32>
    %342 = arith.subf %340, %341 : vector<2x128xf32>
    %343 = arith.mulf %342, %342 : vector<2x128xf32>
    %cst_69 = arith.constant dense<0.000000e+00> : vector<128xf32>
    %344 = vector.multi_reduction <add>, %343, %cst_69 [0] : vector<2x128xf32> to vector<128xf32>
    %345 = vector.shape_cast %344 : vector<128xf32> to vector<1x128xf32>
    %346 = arith.addf %339, %345 : vector<1x128xf32>
    %347 = vector.extract_strided_slice %2 {offsets = [0, 3584], sizes = [2, 128], strides = [1, 1]} : vector<2x4608xf32> to vector<2x128xf32>
    %348 = vector.broadcast %149 : vector<1x128xf32> to vector<2x128xf32>
    %349 = arith.subf %347, %348 : vector<2x128xf32>
    %350 = arith.mulf %349, %349 : vector<2x128xf32>
    %cst_70 = arith.constant dense<0.000000e+00> : vector<128xf32>
    %351 = vector.multi_reduction <add>, %350, %cst_70 [0] : vector<2x128xf32> to vector<128xf32>
    %352 = vector.shape_cast %351 : vector<128xf32> to vector<1x128xf32>
    %353 = arith.addf %346, %352 : vector<1x128xf32>
    %354 = vector.extract_strided_slice %2 {offsets = [0, 3712], sizes = [2, 128], strides = [1, 1]} : vector<2x4608xf32> to vector<2x128xf32>
    %355 = vector.broadcast %149 : vector<1x128xf32> to vector<2x128xf32>
    %356 = arith.subf %354, %355 : vector<2x128xf32>
    %357 = arith.mulf %356, %356 : vector<2x128xf32>
    %cst_71 = arith.constant dense<0.000000e+00> : vector<128xf32>
    %358 = vector.multi_reduction <add>, %357, %cst_71 [0] : vector<2x128xf32> to vector<128xf32>
    %359 = vector.shape_cast %358 : vector<128xf32> to vector<1x128xf32>
    %360 = arith.addf %353, %359 : vector<1x128xf32>
    %361 = vector.extract_strided_slice %2 {offsets = [0, 3840], sizes = [2, 128], strides = [1, 1]} : vector<2x4608xf32> to vector<2x128xf32>
    %362 = vector.broadcast %149 : vector<1x128xf32> to vector<2x128xf32>
    %363 = arith.subf %361, %362 : vector<2x128xf32>
    %364 = arith.mulf %363, %363 : vector<2x128xf32>
    %cst_72 = arith.constant dense<0.000000e+00> : vector<128xf32>
    %365 = vector.multi_reduction <add>, %364, %cst_72 [0] : vector<2x128xf32> to vector<128xf32>
    %366 = vector.shape_cast %365 : vector<128xf32> to vector<1x128xf32>
    %367 = arith.addf %360, %366 : vector<1x128xf32>
    %368 = vector.extract_strided_slice %2 {offsets = [0, 3968], sizes = [2, 128], strides = [1, 1]} : vector<2x4608xf32> to vector<2x128xf32>
    %369 = vector.broadcast %149 : vector<1x128xf32> to vector<2x128xf32>
    %370 = arith.subf %368, %369 : vector<2x128xf32>
    %371 = arith.mulf %370, %370 : vector<2x128xf32>
    %cst_73 = arith.constant dense<0.000000e+00> : vector<128xf32>
    %372 = vector.multi_reduction <add>, %371, %cst_73 [0] : vector<2x128xf32> to vector<128xf32>
    %373 = vector.shape_cast %372 : vector<128xf32> to vector<1x128xf32>
    %374 = arith.addf %367, %373 : vector<1x128xf32>
    %375 = vector.extract_strided_slice %2 {offsets = [0, 4096], sizes = [2, 128], strides = [1, 1]} : vector<2x4608xf32> to vector<2x128xf32>
    %376 = vector.broadcast %149 : vector<1x128xf32> to vector<2x128xf32>
    %377 = arith.subf %375, %376 : vector<2x128xf32>
    %378 = arith.mulf %377, %377 : vector<2x128xf32>
    %cst_74 = arith.constant dense<0.000000e+00> : vector<128xf32>
    %379 = vector.multi_reduction <add>, %378, %cst_74 [0] : vector<2x128xf32> to vector<128xf32>
    %380 = vector.shape_cast %379 : vector<128xf32> to vector<1x128xf32>
    %381 = arith.addf %374, %380 : vector<1x128xf32>
    %382 = vector.extract_strided_slice %2 {offsets = [0, 4224], sizes = [2, 128], strides = [1, 1]} : vector<2x4608xf32> to vector<2x128xf32>
    %383 = vector.broadcast %149 : vector<1x128xf32> to vector<2x128xf32>
    %384 = arith.subf %382, %383 : vector<2x128xf32>
    %385 = arith.mulf %384, %384 : vector<2x128xf32>
    %cst_75 = arith.constant dense<0.000000e+00> : vector<128xf32>
    %386 = vector.multi_reduction <add>, %385, %cst_75 [0] : vector<2x128xf32> to vector<128xf32>
    %387 = vector.shape_cast %386 : vector<128xf32> to vector<1x128xf32>
    %388 = arith.addf %381, %387 : vector<1x128xf32>
    %389 = vector.extract_strided_slice %2 {offsets = [0, 4352], sizes = [2, 128], strides = [1, 1]} : vector<2x4608xf32> to vector<2x128xf32>
    %390 = vector.broadcast %149 : vector<1x128xf32> to vector<2x128xf32>
    %391 = arith.subf %389, %390 : vector<2x128xf32>
    %392 = arith.mulf %391, %391 : vector<2x128xf32>
    %cst_76 = arith.constant dense<0.000000e+00> : vector<128xf32>
    %393 = vector.multi_reduction <add>, %392, %cst_76 [0] : vector<2x128xf32> to vector<128xf32>
    %394 = vector.shape_cast %393 : vector<128xf32> to vector<1x128xf32>
    %395 = arith.addf %388, %394 : vector<1x128xf32>
    %396 = vector.extract_strided_slice %2 {offsets = [0, 4480], sizes = [2, 128], strides = [1, 1]} : vector<2x4608xf32> to vector<2x128xf32>
    %397 = vector.broadcast %149 : vector<1x128xf32> to vector<2x128xf32>
    %398 = arith.subf %396, %397 : vector<2x128xf32>
    %399 = arith.mulf %398, %398 : vector<2x128xf32>
    %cst_77 = arith.constant dense<0.000000e+00> : vector<128xf32>
    %400 = vector.multi_reduction <add>, %399, %cst_77 [0] : vector<2x128xf32> to vector<128xf32>
    %401 = vector.shape_cast %400 : vector<128xf32> to vector<1x128xf32>
    %402 = arith.addf %395, %401 : vector<1x128xf32>
    %cst_78 = arith.constant 7.200000e+01 : f32
    %403 = vector.broadcast %cst_78 : f32 to vector<1x128xf32>
    %404 = arith.divf %402, %403 : vector<1x128xf32>
    %cst_79 = arith.constant 9.99999974E-6 : f32
    %405 = vector.broadcast %cst_79 : f32 to vector<1x128xf32>
    %406 = arith.addf %404, %405 : vector<1x128xf32>
    %407 = math.rsqrt %406 : vector<1x128xf32>
    %c0_80 = arith.constant 0 : index
    %c0_81 = arith.constant 0 : index
    %408 = vector.load %arg3[%c0_80, %c0_81] : memref<1x128xf32, #tpu.memory_space<vmem>>, vector<1x128xf32>
    %409 = arith.mulf %407, %408 : vector<1x128xf32>
    %c0_82 = arith.constant 0 : index
    %c0_83 = arith.constant 0 : index
    %410 = vector.load %arg4[%c0_82, %c0_83] : memref<1x128xf32, #tpu.memory_space<vmem>>, vector<1x128xf32>
    %411 = arith.mulf %149, %409 : vector<1x128xf32>
    %412 = arith.subf %410, %411 : vector<1x128xf32>
    %413 = tpu.concatenate %409, %409, %409, %409, %409, %409, %409, %409, %409, %409, %409, %409, %409, %409, %409, %409 in 1 : vector<1x128xf32>, vector<1x128xf32>, vector<1x128xf32>, vector<1x128xf32>, vector<1x128xf32>, vector<1x128xf32>, vector<1x128xf32>, vector<1x128xf32>, vector<1x128xf32>, vector<1x128xf32>, vector<1x128xf32>, vector<1x128xf32>, vector<1x128xf32>, vector<1x128xf32>, vector<1x128xf32>, vector<1x128xf32> -> vector<1x2048xf32>
    %414 = tpu.concatenate %409, %409, %409, %409, %409, %409, %409, %409, %409, %409, %409, %409, %409, %409, %409, %409 in 1 : vector<1x128xf32>, vector<1x128xf32>, vector<1x128xf32>, vector<1x128xf32>, vector<1x128xf32>, vector<1x128xf32>, vector<1x128xf32>, vector<1x128xf32>, vector<1x128xf32>, vector<1x128xf32>, vector<1x128xf32>, vector<1x128xf32>, vector<1x128xf32>, vector<1x128xf32>, vector<1x128xf32>, vector<1x128xf32> -> vector<1x2048xf32>
    %415 = tpu.concatenate %409, %409, %409, %409 in 1 : vector<1x128xf32>, vector<1x128xf32>, vector<1x128xf32>, vector<1x128xf32> -> vector<1x512xf32>
    %416 = tpu.concatenate %413, %414, %415 in 1 : vector<1x2048xf32>, vector<1x2048xf32>, vector<1x512xf32> -> vector<1x4608xf32>
    %417 = tpu.concatenate %412, %412, %412, %412, %412, %412, %412, %412, %412, %412, %412, %412, %412, %412, %412, %412 in 1 : vector<1x128xf32>, vector<1x128xf32>, vector<1x128xf32>, vector<1x128xf32>, vector<1x128xf32>, vector<1x128xf32>, vector<1x128xf32>, vector<1x128xf32>, vector<1x128xf32>, vector<1x128xf32>, vector<1x128xf32>, vector<1x128xf32>, vector<1x128xf32>, vector<1x128xf32>, vector<1x128xf32>, vector<1x128xf32> -> vector<1x2048xf32>
    %418 = tpu.concatenate %412, %412, %412, %412, %412, %412, %412, %412, %412, %412, %412, %412, %412, %412, %412, %412 in 1 : vector<1x128xf32>, vector<1x128xf32>, vector<1x128xf32>, vector<1x128xf32>, vector<1x128xf32>, vector<1x128xf32>, vector<1x128xf32>, vector<1x128xf32>, vector<1x128xf32>, vector<1x128xf32>, vector<1x128xf32>, vector<1x128xf32>, vector<1x128xf32>, vector<1x128xf32>, vector<1x128xf32>, vector<1x128xf32> -> vector<1x2048xf32>
    %419 = tpu.concatenate %412, %412, %412, %412 in 1 : vector<1x128xf32>, vector<1x128xf32>, vector<1x128xf32>, vector<1x128xf32> -> vector<1x512xf32>
    %420 = tpu.concatenate %417, %418, %419 in 1 : vector<1x2048xf32>, vector<1x2048xf32>, vector<1x512xf32> -> vector<1x4608xf32>
    %421 = vector.broadcast %416 : vector<1x4608xf32> to vector<2x4608xf32>
    %422 = arith.mulf %2, %421 : vector<2x4608xf32>
    %423 = vector.broadcast %420 : vector<1x4608xf32> to vector<2x4608xf32>
    %424 = arith.addf %422, %423 : vector<2x4608xf32>
    %cst_84 = arith.constant 0.000000e+00 : f32
    %425 = vector.broadcast %cst_84 : f32 to vector<2x4608xf32>
    %426 = arith.maximumf %424, %425 : vector<2x4608xf32>
    %c0_85 = arith.constant 0 : index
    %c0_86 = arith.constant 0 : index
    %427 = vector.load %arg5[%c0_85, %c0_86] : memref<2x4608xf32, #tpu.memory_space<vmem>>, vector<2x4608xf32>
    tpu.vector_store %arg5[%c0_85, %c0_86], %426 {strides = array<i32>} : memref<2x4608xf32, #tpu.memory_space<vmem>>, vector<2x4608xf32>,
    return
  }
  func.func @transform_0(%arg0: i32) -> (i32, i32) {
    %c0_i32 = arith.constant 0 : i32
    %c0_i32_0 = arith.constant 0 : i32
    %c0_i32_1 = arith.constant 0 : i32
    return %c0_i32, %c0_i32_0 : i32, i32
  }
  func.func @transform_1(%arg0: i32) -> (i32, i32) {
    %c0_i32 = arith.constant 0 : i32
    %c0_i32_0 = arith.constant 0 : i32
    %c0_i32_1 = arith.constant 0 : i32
    return %c0_i32, %c0_i32_0 : i32, i32
  }
  func.func @transform_2(%arg0: i32) -> (i32, i32) {
    %c0_i32 = arith.constant 0 : i32
    %c0_i32_0 = arith.constant 0 : i32
    %c0_i32_1 = arith.constant 0 : i32
    return %c0_i32, %c0_i32_0 : i32, i32
  }
  func.func @transform_3(%arg0: i32) -> (i32, i32) {
    %c0_i32 = arith.constant 0 : i32
    %c0_i32_0 = arith.constant 0 : i32
    %c0_i32_1 = arith.constant 0 : i32
    return %c0_i32, %c0_i32_0 : i32, i32
  }
  func.func @transform_4(%arg0: i32) -> (i32, i32) {
    %c0_i32 = arith.constant 0 : i32
    %c0_i32_0 = arith.constant 0 : i32
    %c0_i32_1 = arith.constant 0 : i32
    return %c0_i32, %c0_i32_0 : i32, i32
  }
}

module attributes {stable_mosaic.version = 11 : i64} {
  func.func @_merged_conv_bn_relu_kernel(%arg0: i32, %arg1: memref<1152x72xbf16, #tpu.memory_space<vmem>>, %arg2: memref<256x1152xbf16, #tpu.memory_space<vmem>>, %arg3: memref<64x1xf32, #tpu.memory_space<vmem>>, %arg4: memref<64x1xf32, #tpu.memory_space<vmem>>, %arg5: memref<256x72xf32, #tpu.memory_space<vmem>>) attributes {dimension_semantics = [#tpu.dimension_semantics<arbitrary>], iteration_bounds = array<i64: 1>, scalar_prefetch = 0 : i64, scratch_operands = 0 : i64, tpu.core_type = #tpu.core_type<tc>, window_params = [{pipeline_mode = #tpu.pipeline_mode<synchronous>, transform_indices = @transform_0, window_bounds = array<i64: 1152, 72>}, {pipeline_mode = #tpu.pipeline_mode<synchronous>, transform_indices = @transform_1, window_bounds = array<i64: 256, 1152>}, {pipeline_mode = #tpu.pipeline_mode<synchronous>, transform_indices = @transform_2, window_bounds = array<i64: 64, 1>}, {pipeline_mode = #tpu.pipeline_mode<synchronous>, transform_indices = @transform_3, window_bounds = array<i64: 64, 1>}, {pipeline_mode = #tpu.pipeline_mode<synchronous>, transform_indices = @transform_4, window_bounds = array<i64: 256, 72>}]} {
    %c0 = arith.constant 0 : index
    %c0_0 = arith.constant 0 : index
    %0 = vector.load %arg2[%c0, %c0_0] : memref<256x1152xbf16, #tpu.memory_space<vmem>>, vector<256x1152xbf16>
    %c0_1 = arith.constant 0 : index
    %c0_2 = arith.constant 0 : index
    %1 = vector.load %arg1[%c0_1, %c0_2] : memref<1152x72xbf16, #tpu.memory_space<vmem>>, vector<1152x72xbf16>
    %cst = arith.constant dense<0.000000e+00> : vector<256x72xf32>
    %2 = tpu.matmul %0, %1, %cst {dimension_numbers = #tpu.dot_dimension_numbers<[1], [0], [0], [1], [0, 0, 1, 1], [], []>} : vector<256x1152xbf16>, vector<1152x72xbf16>, vector<256x72xf32> -> vector<256x72xf32>
    %c0_3 = arith.constant 0 : index
    %c0_4 = arith.constant 0 : index
    %3 = vector.load %arg3[%c0_3, %c0_4] : memref<64x1xf32, #tpu.memory_space<vmem>>, vector<64x1xf32>
    %c0_5 = arith.constant 0 : index
    %c0_6 = arith.constant 0 : index
    %4 = vector.load %arg4[%c0_5, %c0_6] : memref<64x1xf32, #tpu.memory_space<vmem>>, vector<64x1xf32>
    %cst_7 = arith.constant 0.000000e+00 : f32
    %5 = vector.broadcast %cst_7 : f32 to vector<64x1xf32>
    %6 = vector.extract_strided_slice %2 {offsets = [0, 0], sizes = [64, 72], strides = [1, 1]} : vector<256x72xf32> to vector<64x72xf32>
    %cst_8 = arith.constant dense<0.000000e+00> : vector<64xf32>
    %7 = vector.multi_reduction <add>, %6, %cst_8 [1] : vector<64x72xf32> to vector<64xf32>
    %8 = vector.shape_cast %7 : vector<64xf32> to vector<64x1xf32>
    %9 = arith.addf %5, %8 : vector<64x1xf32>
    %10 = vector.extract_strided_slice %2 {offsets = [64, 0], sizes = [64, 72], strides = [1, 1]} : vector<256x72xf32> to vector<64x72xf32>
    %cst_9 = arith.constant dense<0.000000e+00> : vector<64xf32>
    %11 = vector.multi_reduction <add>, %10, %cst_9 [1] : vector<64x72xf32> to vector<64xf32>
    %12 = vector.shape_cast %11 : vector<64xf32> to vector<64x1xf32>
    %13 = arith.addf %9, %12 : vector<64x1xf32>
    %14 = vector.extract_strided_slice %2 {offsets = [128, 0], sizes = [64, 72], strides = [1, 1]} : vector<256x72xf32> to vector<64x72xf32>
    %cst_10 = arith.constant dense<0.000000e+00> : vector<64xf32>
    %15 = vector.multi_reduction <add>, %14, %cst_10 [1] : vector<64x72xf32> to vector<64xf32>
    %16 = vector.shape_cast %15 : vector<64xf32> to vector<64x1xf32>
    %17 = arith.addf %13, %16 : vector<64x1xf32>
    %18 = vector.extract_strided_slice %2 {offsets = [192, 0], sizes = [64, 72], strides = [1, 1]} : vector<256x72xf32> to vector<64x72xf32>
    %cst_11 = arith.constant dense<0.000000e+00> : vector<64xf32>
    %19 = vector.multi_reduction <add>, %18, %cst_11 [1] : vector<64x72xf32> to vector<64xf32>
    %20 = vector.shape_cast %19 : vector<64xf32> to vector<64x1xf32>
    %21 = arith.addf %17, %20 : vector<64x1xf32>
    %cst_12 = arith.constant 2.880000e+02 : f32
    %22 = vector.broadcast %cst_12 : f32 to vector<64x1xf32>
    %23 = arith.divf %21, %22 : vector<64x1xf32>
    %cst_13 = arith.constant 0.000000e+00 : f32
    %24 = vector.broadcast %cst_13 : f32 to vector<64x1xf32>
    %25 = vector.extract_strided_slice %2 {offsets = [0, 0], sizes = [64, 72], strides = [1, 1]} : vector<256x72xf32> to vector<64x72xf32>
    %26 = vector.broadcast %23 : vector<64x1xf32> to vector<64x72xf32>
    %27 = arith.subf %25, %26 : vector<64x72xf32>
    %28 = arith.mulf %27, %27 : vector<64x72xf32>
    %cst_14 = arith.constant dense<0.000000e+00> : vector<64xf32>
    %29 = vector.multi_reduction <add>, %28, %cst_14 [1] : vector<64x72xf32> to vector<64xf32>
    %30 = vector.shape_cast %29 : vector<64xf32> to vector<64x1xf32>
    %31 = arith.addf %24, %30 : vector<64x1xf32>
    %32 = vector.extract_strided_slice %2 {offsets = [64, 0], sizes = [64, 72], strides = [1, 1]} : vector<256x72xf32> to vector<64x72xf32>
    %33 = vector.broadcast %23 : vector<64x1xf32> to vector<64x72xf32>
    %34 = arith.subf %32, %33 : vector<64x72xf32>
    %35 = arith.mulf %34, %34 : vector<64x72xf32>
    %cst_15 = arith.constant dense<0.000000e+00> : vector<64xf32>
    %36 = vector.multi_reduction <add>, %35, %cst_15 [1] : vector<64x72xf32> to vector<64xf32>
    %37 = vector.shape_cast %36 : vector<64xf32> to vector<64x1xf32>
    %38 = arith.addf %31, %37 : vector<64x1xf32>
    %39 = vector.extract_strided_slice %2 {offsets = [128, 0], sizes = [64, 72], strides = [1, 1]} : vector<256x72xf32> to vector<64x72xf32>
    %40 = vector.broadcast %23 : vector<64x1xf32> to vector<64x72xf32>
    %41 = arith.subf %39, %40 : vector<64x72xf32>
    %42 = arith.mulf %41, %41 : vector<64x72xf32>
    %cst_16 = arith.constant dense<0.000000e+00> : vector<64xf32>
    %43 = vector.multi_reduction <add>, %42, %cst_16 [1] : vector<64x72xf32> to vector<64xf32>
    %44 = vector.shape_cast %43 : vector<64xf32> to vector<64x1xf32>
    %45 = arith.addf %38, %44 : vector<64x1xf32>
    %46 = vector.extract_strided_slice %2 {offsets = [192, 0], sizes = [64, 72], strides = [1, 1]} : vector<256x72xf32> to vector<64x72xf32>
    %47 = vector.broadcast %23 : vector<64x1xf32> to vector<64x72xf32>
    %48 = arith.subf %46, %47 : vector<64x72xf32>
    %49 = arith.mulf %48, %48 : vector<64x72xf32>
    %cst_17 = arith.constant dense<0.000000e+00> : vector<64xf32>
    %50 = vector.multi_reduction <add>, %49, %cst_17 [1] : vector<64x72xf32> to vector<64xf32>
    %51 = vector.shape_cast %50 : vector<64xf32> to vector<64x1xf32>
    %52 = arith.addf %45, %51 : vector<64x1xf32>
    %cst_18 = arith.constant 2.880000e+02 : f32
    %53 = vector.broadcast %cst_18 : f32 to vector<64x1xf32>
    %54 = arith.divf %52, %53 : vector<64x1xf32>
    %cst_19 = arith.constant 9.99999974E-6 : f32
    %55 = vector.broadcast %cst_19 : f32 to vector<64x1xf32>
    %56 = arith.addf %54, %55 : vector<64x1xf32>
    %57 = math.rsqrt %56 : vector<64x1xf32>
    %58 = arith.mulf %57, %3 : vector<64x1xf32>
    %59 = arith.mulf %23, %58 : vector<64x1xf32>
    %60 = arith.subf %4, %59 : vector<64x1xf32>
    %61 = tpu.concatenate %58, %58, %58, %58 in 0 : vector<64x1xf32>, vector<64x1xf32>, vector<64x1xf32>, vector<64x1xf32> -> vector<256x1xf32>
    %62 = tpu.concatenate %60, %60, %60, %60 in 0 : vector<64x1xf32>, vector<64x1xf32>, vector<64x1xf32>, vector<64x1xf32> -> vector<256x1xf32>
    %63 = vector.broadcast %61 : vector<256x1xf32> to vector<256x72xf32>
    %64 = arith.mulf %2, %63 : vector<256x72xf32>
    %65 = vector.broadcast %62 : vector<256x1xf32> to vector<256x72xf32>
    %66 = arith.addf %64, %65 : vector<256x72xf32>
    %cst_20 = arith.constant 0.000000e+00 : f32
    %67 = vector.broadcast %cst_20 : f32 to vector<256x72xf32>
    %68 = arith.maximumf %66, %67 : vector<256x72xf32>
    %c0_21 = arith.constant 0 : index
    %c0_22 = arith.constant 0 : index
    %69 = vector.load %arg5[%c0_21, %c0_22] : memref<256x72xf32, #tpu.memory_space<vmem>>, vector<256x72xf32>
    tpu.vector_store %arg5[%c0_21, %c0_22], %68 {strides = array<i32>} : memref<256x72xf32, #tpu.memory_space<vmem>>, vector<256x72xf32>,
    return
  }
  func.func @transform_0(%arg0: i32) -> (i32, i32) {
    %c0_i32 = arith.constant 0 : i32
    %c0_i32_0 = arith.constant 0 : i32
    %c0_i32_1 = arith.constant 0 : i32
    return %c0_i32, %c0_i32_0 : i32, i32
  }
  func.func @transform_1(%arg0: i32) -> (i32, i32) {
    %c0_i32 = arith.constant 0 : i32
    %c0_i32_0 = arith.constant 0 : i32
    %c0_i32_1 = arith.constant 0 : i32
    return %c0_i32, %c0_i32_0 : i32, i32
  }
  func.func @transform_2(%arg0: i32) -> (i32, i32) {
    %c0_i32 = arith.constant 0 : i32
    %c0_i32_0 = arith.constant 0 : i32
    %c0_i32_1 = arith.constant 0 : i32
    return %c0_i32, %c0_i32_0 : i32, i32
  }
  func.func @transform_3(%arg0: i32) -> (i32, i32) {
    %c0_i32 = arith.constant 0 : i32
    %c0_i32_0 = arith.constant 0 : i32
    %c0_i32_1 = arith.constant 0 : i32
    return %c0_i32, %c0_i32_0 : i32, i32
  }
  func.func @transform_4(%arg0: i32) -> (i32, i32) {
    %c0_i32 = arith.constant 0 : i32
    %c0_i32_0 = arith.constant 0 : i32
    %c0_i32_1 = arith.constant 0 : i32
    return %c0_i32, %c0_i32_0 : i32, i32
  }
}

module attributes {stable_mosaic.version = 11 : i64} {
  func.func @_merged_conv_bn_relu_kernel(%arg0: i32, %arg1: memref<576x200xbf16, #tpu.memory_space<vmem>>, %arg2: memref<128x576xbf16, #tpu.memory_space<vmem>>, %arg3: memref<32x1xf32, #tpu.memory_space<vmem>>, %arg4: memref<32x1xf32, #tpu.memory_space<vmem>>, %arg5: memref<128x200xf32, #tpu.memory_space<vmem>>) attributes {dimension_semantics = [#tpu.dimension_semantics<arbitrary>], iteration_bounds = array<i64: 1>, scalar_prefetch = 0 : i64, scratch_operands = 0 : i64, tpu.core_type = #tpu.core_type<tc>, window_params = [{pipeline_mode = #tpu.pipeline_mode<synchronous>, transform_indices = @transform_0, window_bounds = array<i64: 576, 200>}, {pipeline_mode = #tpu.pipeline_mode<synchronous>, transform_indices = @transform_1, window_bounds = array<i64: 128, 576>}, {pipeline_mode = #tpu.pipeline_mode<synchronous>, transform_indices = @transform_2, window_bounds = array<i64: 32, 1>}, {pipeline_mode = #tpu.pipeline_mode<synchronous>, transform_indices = @transform_3, window_bounds = array<i64: 32, 1>}, {pipeline_mode = #tpu.pipeline_mode<synchronous>, transform_indices = @transform_4, window_bounds = array<i64: 128, 200>}]} {
    %c0 = arith.constant 0 : index
    %c0_0 = arith.constant 0 : index
    %0 = vector.load %arg2[%c0, %c0_0] : memref<128x576xbf16, #tpu.memory_space<vmem>>, vector<128x576xbf16>
    %c0_1 = arith.constant 0 : index
    %c0_2 = arith.constant 0 : index
    %1 = vector.load %arg1[%c0_1, %c0_2] : memref<576x200xbf16, #tpu.memory_space<vmem>>, vector<576x200xbf16>
    %cst = arith.constant dense<0.000000e+00> : vector<128x200xf32>
    %2 = tpu.matmul %0, %1, %cst {dimension_numbers = #tpu.dot_dimension_numbers<[1], [0], [0], [1], [0, 0, 1, 1], [], []>} : vector<128x576xbf16>, vector<576x200xbf16>, vector<128x200xf32> -> vector<128x200xf32>
    %c0_3 = arith.constant 0 : index
    %c0_4 = arith.constant 0 : index
    %3 = vector.load %arg3[%c0_3, %c0_4] : memref<32x1xf32, #tpu.memory_space<vmem>>, vector<32x1xf32>
    %c0_5 = arith.constant 0 : index
    %c0_6 = arith.constant 0 : index
    %4 = vector.load %arg4[%c0_5, %c0_6] : memref<32x1xf32, #tpu.memory_space<vmem>>, vector<32x1xf32>
    %cst_7 = arith.constant 0.000000e+00 : f32
    %5 = vector.broadcast %cst_7 : f32 to vector<32x1xf32>
    %6 = vector.extract_strided_slice %2 {offsets = [0, 0], sizes = [32, 200], strides = [1, 1]} : vector<128x200xf32> to vector<32x200xf32>
    %cst_8 = arith.constant dense<0.000000e+00> : vector<32xf32>
    %7 = vector.multi_reduction <add>, %6, %cst_8 [1] : vector<32x200xf32> to vector<32xf32>
    %8 = vector.shape_cast %7 : vector<32xf32> to vector<32x1xf32>
    %9 = arith.addf %5, %8 : vector<32x1xf32>
    %10 = vector.extract_strided_slice %2 {offsets = [32, 0], sizes = [32, 200], strides = [1, 1]} : vector<128x200xf32> to vector<32x200xf32>
    %cst_9 = arith.constant dense<0.000000e+00> : vector<32xf32>
    %11 = vector.multi_reduction <add>, %10, %cst_9 [1] : vector<32x200xf32> to vector<32xf32>
    %12 = vector.shape_cast %11 : vector<32xf32> to vector<32x1xf32>
    %13 = arith.addf %9, %12 : vector<32x1xf32>
    %14 = vector.extract_strided_slice %2 {offsets = [64, 0], sizes = [32, 200], strides = [1, 1]} : vector<128x200xf32> to vector<32x200xf32>
    %cst_10 = arith.constant dense<0.000000e+00> : vector<32xf32>
    %15 = vector.multi_reduction <add>, %14, %cst_10 [1] : vector<32x200xf32> to vector<32xf32>
    %16 = vector.shape_cast %15 : vector<32xf32> to vector<32x1xf32>
    %17 = arith.addf %13, %16 : vector<32x1xf32>
    %18 = vector.extract_strided_slice %2 {offsets = [96, 0], sizes = [32, 200], strides = [1, 1]} : vector<128x200xf32> to vector<32x200xf32>
    %cst_11 = arith.constant dense<0.000000e+00> : vector<32xf32>
    %19 = vector.multi_reduction <add>, %18, %cst_11 [1] : vector<32x200xf32> to vector<32xf32>
    %20 = vector.shape_cast %19 : vector<32xf32> to vector<32x1xf32>
    %21 = arith.addf %17, %20 : vector<32x1xf32>
    %cst_12 = arith.constant 8.000000e+02 : f32
    %22 = vector.broadcast %cst_12 : f32 to vector<32x1xf32>
    %23 = arith.divf %21, %22 : vector<32x1xf32>
    %cst_13 = arith.constant 0.000000e+00 : f32
    %24 = vector.broadcast %cst_13 : f32 to vector<32x1xf32>
    %25 = vector.extract_strided_slice %2 {offsets = [0, 0], sizes = [32, 200], strides = [1, 1]} : vector<128x200xf32> to vector<32x200xf32>
    %26 = vector.broadcast %23 : vector<32x1xf32> to vector<32x200xf32>
    %27 = arith.subf %25, %26 : vector<32x200xf32>
    %28 = arith.mulf %27, %27 : vector<32x200xf32>
    %cst_14 = arith.constant dense<0.000000e+00> : vector<32xf32>
    %29 = vector.multi_reduction <add>, %28, %cst_14 [1] : vector<32x200xf32> to vector<32xf32>
    %30 = vector.shape_cast %29 : vector<32xf32> to vector<32x1xf32>
    %31 = arith.addf %24, %30 : vector<32x1xf32>
    %32 = vector.extract_strided_slice %2 {offsets = [32, 0], sizes = [32, 200], strides = [1, 1]} : vector<128x200xf32> to vector<32x200xf32>
    %33 = vector.broadcast %23 : vector<32x1xf32> to vector<32x200xf32>
    %34 = arith.subf %32, %33 : vector<32x200xf32>
    %35 = arith.mulf %34, %34 : vector<32x200xf32>
    %cst_15 = arith.constant dense<0.000000e+00> : vector<32xf32>
    %36 = vector.multi_reduction <add>, %35, %cst_15 [1] : vector<32x200xf32> to vector<32xf32>
    %37 = vector.shape_cast %36 : vector<32xf32> to vector<32x1xf32>
    %38 = arith.addf %31, %37 : vector<32x1xf32>
    %39 = vector.extract_strided_slice %2 {offsets = [64, 0], sizes = [32, 200], strides = [1, 1]} : vector<128x200xf32> to vector<32x200xf32>
    %40 = vector.broadcast %23 : vector<32x1xf32> to vector<32x200xf32>
    %41 = arith.subf %39, %40 : vector<32x200xf32>
    %42 = arith.mulf %41, %41 : vector<32x200xf32>
    %cst_16 = arith.constant dense<0.000000e+00> : vector<32xf32>
    %43 = vector.multi_reduction <add>, %42, %cst_16 [1] : vector<32x200xf32> to vector<32xf32>
    %44 = vector.shape_cast %43 : vector<32xf32> to vector<32x1xf32>
    %45 = arith.addf %38, %44 : vector<32x1xf32>
    %46 = vector.extract_strided_slice %2 {offsets = [96, 0], sizes = [32, 200], strides = [1, 1]} : vector<128x200xf32> to vector<32x200xf32>
    %47 = vector.broadcast %23 : vector<32x1xf32> to vector<32x200xf32>
    %48 = arith.subf %46, %47 : vector<32x200xf32>
    %49 = arith.mulf %48, %48 : vector<32x200xf32>
    %cst_17 = arith.constant dense<0.000000e+00> : vector<32xf32>
    %50 = vector.multi_reduction <add>, %49, %cst_17 [1] : vector<32x200xf32> to vector<32xf32>
    %51 = vector.shape_cast %50 : vector<32xf32> to vector<32x1xf32>
    %52 = arith.addf %45, %51 : vector<32x1xf32>
    %cst_18 = arith.constant 8.000000e+02 : f32
    %53 = vector.broadcast %cst_18 : f32 to vector<32x1xf32>
    %54 = arith.divf %52, %53 : vector<32x1xf32>
    %cst_19 = arith.constant 9.99999974E-6 : f32
    %55 = vector.broadcast %cst_19 : f32 to vector<32x1xf32>
    %56 = arith.addf %54, %55 : vector<32x1xf32>
    %57 = math.rsqrt %56 : vector<32x1xf32>
    %58 = arith.mulf %57, %3 : vector<32x1xf32>
    %59 = arith.mulf %23, %58 : vector<32x1xf32>
    %60 = arith.subf %4, %59 : vector<32x1xf32>
    %61 = tpu.concatenate %58, %58, %58, %58 in 0 : vector<32x1xf32>, vector<32x1xf32>, vector<32x1xf32>, vector<32x1xf32> -> vector<128x1xf32>
    %62 = tpu.concatenate %60, %60, %60, %60 in 0 : vector<32x1xf32>, vector<32x1xf32>, vector<32x1xf32>, vector<32x1xf32> -> vector<128x1xf32>
    %63 = vector.broadcast %61 : vector<128x1xf32> to vector<128x200xf32>
    %64 = arith.mulf %2, %63 : vector<128x200xf32>
    %65 = vector.broadcast %62 : vector<128x1xf32> to vector<128x200xf32>
    %66 = arith.addf %64, %65 : vector<128x200xf32>
    %cst_20 = arith.constant 0.000000e+00 : f32
    %67 = vector.broadcast %cst_20 : f32 to vector<128x200xf32>
    %68 = arith.maximumf %66, %67 : vector<128x200xf32>
    %c0_21 = arith.constant 0 : index
    %c0_22 = arith.constant 0 : index
    %69 = vector.load %arg5[%c0_21, %c0_22] : memref<128x200xf32, #tpu.memory_space<vmem>>, vector<128x200xf32>
    tpu.vector_store %arg5[%c0_21, %c0_22], %68 {strides = array<i32>} : memref<128x200xf32, #tpu.memory_space<vmem>>, vector<128x200xf32>,
    return
  }
  func.func @transform_0(%arg0: i32) -> (i32, i32) {
    %c0_i32 = arith.constant 0 : i32
    %c0_i32_0 = arith.constant 0 : i32
    %c0_i32_1 = arith.constant 0 : i32
    return %c0_i32, %c0_i32_0 : i32, i32
  }
  func.func @transform_1(%arg0: i32) -> (i32, i32) {
    %c0_i32 = arith.constant 0 : i32
    %c0_i32_0 = arith.constant 0 : i32
    %c0_i32_1 = arith.constant 0 : i32
    return %c0_i32, %c0_i32_0 : i32, i32
  }
  func.func @transform_2(%arg0: i32) -> (i32, i32) {
    %c0_i32 = arith.constant 0 : i32
    %c0_i32_0 = arith.constant 0 : i32
    %c0_i32_1 = arith.constant 0 : i32
    return %c0_i32, %c0_i32_0 : i32, i32
  }
  func.func @transform_3(%arg0: i32) -> (i32, i32) {
    %c0_i32 = arith.constant 0 : i32
    %c0_i32_0 = arith.constant 0 : i32
    %c0_i32_1 = arith.constant 0 : i32
    return %c0_i32, %c0_i32_0 : i32, i32
  }
  func.func @transform_4(%arg0: i32) -> (i32, i32) {
    %c0_i32 = arith.constant 0 : i32
    %c0_i32_0 = arith.constant 0 : i32
    %c0_i32_1 = arith.constant 0 : i32
    return %c0_i32, %c0_i32_0 : i32, i32
  }
}

module attributes {stable_mosaic.version = 11 : i64} {
  func.func @_phase_conv_bn_relu_kernel(%arg0: i32, %arg1: memref<4x288x578xbf16, #tpu.memory_space<vmem>>, %arg2: memref<4x16x288xbf16, #tpu.memory_space<vmem>>, %arg3: memref<16x1xf32, #tpu.memory_space<vmem>>, %arg4: memref<16x1xf32, #tpu.memory_space<vmem>>, %arg5: memref<64x578xf32, #tpu.memory_space<vmem>>) attributes {dimension_semantics = [#tpu.dimension_semantics<arbitrary>], iteration_bounds = array<i64: 1>, scalar_prefetch = 0 : i64, scratch_operands = 0 : i64, tpu.core_type = #tpu.core_type<tc>, window_params = [{pipeline_mode = #tpu.pipeline_mode<synchronous>, transform_indices = @transform_0, window_bounds = array<i64: 4, 288, 578>}, {pipeline_mode = #tpu.pipeline_mode<synchronous>, transform_indices = @transform_1, window_bounds = array<i64: 4, 16, 288>}, {pipeline_mode = #tpu.pipeline_mode<synchronous>, transform_indices = @transform_2, window_bounds = array<i64: 16, 1>}, {pipeline_mode = #tpu.pipeline_mode<synchronous>, transform_indices = @transform_3, window_bounds = array<i64: 16, 1>}, {pipeline_mode = #tpu.pipeline_mode<synchronous>, transform_indices = @transform_4, window_bounds = array<i64: 64, 578>}]} {
    %c0 = arith.constant 0 : index
    %c0_0 = arith.constant 0 : index
    %c0_1 = arith.constant 0 : index
    %0 = vector.load %arg2[%c0, %c0_0, %c0_1] : memref<4x16x288xbf16, #tpu.memory_space<vmem>>, vector<1x16x288xbf16>
    %1 = vector.shape_cast %0 : vector<1x16x288xbf16> to vector<16x288xbf16>
    %c0_2 = arith.constant 0 : index
    %c0_3 = arith.constant 0 : index
    %c0_4 = arith.constant 0 : index
    %2 = vector.load %arg1[%c0_2, %c0_3, %c0_4] : memref<4x288x578xbf16, #tpu.memory_space<vmem>>, vector<1x288x578xbf16>
    %3 = vector.shape_cast %2 : vector<1x288x578xbf16> to vector<288x578xbf16>
    %cst = arith.constant dense<0.000000e+00> : vector<16x578xf32>
    %4 = tpu.matmul %1, %3, %cst {dimension_numbers = #tpu.dot_dimension_numbers<[1], [0], [0], [1], [0, 0, 1, 1], [], []>} : vector<16x288xbf16>, vector<288x578xbf16>, vector<16x578xf32> -> vector<16x578xf32>
    %c1 = arith.constant 1 : index
    %c0_5 = arith.constant 0 : index
    %c0_6 = arith.constant 0 : index
    %5 = vector.load %arg2[%c1, %c0_5, %c0_6] : memref<4x16x288xbf16, #tpu.memory_space<vmem>>, vector<1x16x288xbf16>
    %6 = vector.shape_cast %5 : vector<1x16x288xbf16> to vector<16x288xbf16>
    %c1_7 = arith.constant 1 : index
    %c0_8 = arith.constant 0 : index
    %c0_9 = arith.constant 0 : index
    %7 = vector.load %arg1[%c1_7, %c0_8, %c0_9] : memref<4x288x578xbf16, #tpu.memory_space<vmem>>, vector<1x288x578xbf16>
    %8 = vector.shape_cast %7 : vector<1x288x578xbf16> to vector<288x578xbf16>
    %cst_10 = arith.constant dense<0.000000e+00> : vector<16x578xf32>
    %9 = tpu.matmul %6, %8, %cst_10 {dimension_numbers = #tpu.dot_dimension_numbers<[1], [0], [0], [1], [0, 0, 1, 1], [], []>} : vector<16x288xbf16>, vector<288x578xbf16>, vector<16x578xf32> -> vector<16x578xf32>
    %c2 = arith.constant 2 : index
    %c0_11 = arith.constant 0 : index
    %c0_12 = arith.constant 0 : index
    %10 = vector.load %arg2[%c2, %c0_11, %c0_12] : memref<4x16x288xbf16, #tpu.memory_space<vmem>>, vector<1x16x288xbf16>
    %11 = vector.shape_cast %10 : vector<1x16x288xbf16> to vector<16x288xbf16>
    %c2_13 = arith.constant 2 : index
    %c0_14 = arith.constant 0 : index
    %c0_15 = arith.constant 0 : index
    %12 = vector.load %arg1[%c2_13, %c0_14, %c0_15] : memref<4x288x578xbf16, #tpu.memory_space<vmem>>, vector<1x288x578xbf16>
    %13 = vector.shape_cast %12 : vector<1x288x578xbf16> to vector<288x578xbf16>
    %cst_16 = arith.constant dense<0.000000e+00> : vector<16x578xf32>
    %14 = tpu.matmul %11, %13, %cst_16 {dimension_numbers = #tpu.dot_dimension_numbers<[1], [0], [0], [1], [0, 0, 1, 1], [], []>} : vector<16x288xbf16>, vector<288x578xbf16>, vector<16x578xf32> -> vector<16x578xf32>
    %c3 = arith.constant 3 : index
    %c0_17 = arith.constant 0 : index
    %c0_18 = arith.constant 0 : index
    %15 = vector.load %arg2[%c3, %c0_17, %c0_18] : memref<4x16x288xbf16, #tpu.memory_space<vmem>>, vector<1x16x288xbf16>
    %16 = vector.shape_cast %15 : vector<1x16x288xbf16> to vector<16x288xbf16>
    %c3_19 = arith.constant 3 : index
    %c0_20 = arith.constant 0 : index
    %c0_21 = arith.constant 0 : index
    %17 = vector.load %arg1[%c3_19, %c0_20, %c0_21] : memref<4x288x578xbf16, #tpu.memory_space<vmem>>, vector<1x288x578xbf16>
    %18 = vector.shape_cast %17 : vector<1x288x578xbf16> to vector<288x578xbf16>
    %cst_22 = arith.constant dense<0.000000e+00> : vector<16x578xf32>
    %19 = tpu.matmul %16, %18, %cst_22 {dimension_numbers = #tpu.dot_dimension_numbers<[1], [0], [0], [1], [0, 0, 1, 1], [], []>} : vector<16x288xbf16>, vector<288x578xbf16>, vector<16x578xf32> -> vector<16x578xf32>
    %20 = tpu.concatenate %4, %9, %14, %19 in 0 : vector<16x578xf32>, vector<16x578xf32>, vector<16x578xf32>, vector<16x578xf32> -> vector<64x578xf32>
    %c0_23 = arith.constant 0 : index
    %c0_24 = arith.constant 0 : index
    %21 = vector.load %arg3[%c0_23, %c0_24] : memref<16x1xf32, #tpu.memory_space<vmem>>, vector<16x1xf32>
    %c0_25 = arith.constant 0 : index
    %c0_26 = arith.constant 0 : index
    %22 = vector.load %arg4[%c0_25, %c0_26] : memref<16x1xf32, #tpu.memory_space<vmem>>, vector<16x1xf32>
    %cst_27 = arith.constant 0.000000e+00 : f32
    %23 = vector.broadcast %cst_27 : f32 to vector<16x1xf32>
    %24 = vector.extract_strided_slice %20 {offsets = [0, 0], sizes = [16, 578], strides = [1, 1]} : vector<64x578xf32> to vector<16x578xf32>
    %cst_28 = arith.constant dense<0.000000e+00> : vector<16xf32>
    %25 = vector.multi_reduction <add>, %24, %cst_28 [1] : vector<16x578xf32> to vector<16xf32>
    %26 = vector.shape_cast %25 : vector<16xf32> to vector<16x1xf32>
    %27 = arith.addf %23, %26 : vector<16x1xf32>
    %28 = vector.extract_strided_slice %20 {offsets = [16, 0], sizes = [16, 578], strides = [1, 1]} : vector<64x578xf32> to vector<16x578xf32>
    %cst_29 = arith.constant dense<0.000000e+00> : vector<16xf32>
    %29 = vector.multi_reduction <add>, %28, %cst_29 [1] : vector<16x578xf32> to vector<16xf32>
    %30 = vector.shape_cast %29 : vector<16xf32> to vector<16x1xf32>
    %31 = arith.addf %27, %30 : vector<16x1xf32>
    %32 = vector.extract_strided_slice %20 {offsets = [32, 0], sizes = [16, 578], strides = [1, 1]} : vector<64x578xf32> to vector<16x578xf32>
    %cst_30 = arith.constant dense<0.000000e+00> : vector<16xf32>
    %33 = vector.multi_reduction <add>, %32, %cst_30 [1] : vector<16x578xf32> to vector<16xf32>
    %34 = vector.shape_cast %33 : vector<16xf32> to vector<16x1xf32>
    %35 = arith.addf %31, %34 : vector<16x1xf32>
    %36 = vector.extract_strided_slice %20 {offsets = [48, 0], sizes = [16, 578], strides = [1, 1]} : vector<64x578xf32> to vector<16x578xf32>
    %cst_31 = arith.constant dense<0.000000e+00> : vector<16xf32>
    %37 = vector.multi_reduction <add>, %36, %cst_31 [1] : vector<16x578xf32> to vector<16xf32>
    %38 = vector.shape_cast %37 : vector<16xf32> to vector<16x1xf32>
    %39 = arith.addf %35, %38 : vector<16x1xf32>
    %cst_32 = arith.constant 2.312000e+03 : f32
    %40 = vector.broadcast %cst_32 : f32 to vector<16x1xf32>
    %41 = arith.divf %39, %40 : vector<16x1xf32>
    %cst_33 = arith.constant 0.000000e+00 : f32
    %42 = vector.broadcast %cst_33 : f32 to vector<16x1xf32>
    %43 = vector.extract_strided_slice %20 {offsets = [0, 0], sizes = [16, 578], strides = [1, 1]} : vector<64x578xf32> to vector<16x578xf32>
    %44 = vector.broadcast %41 : vector<16x1xf32> to vector<16x578xf32>
    %45 = arith.subf %43, %44 : vector<16x578xf32>
    %46 = arith.mulf %45, %45 : vector<16x578xf32>
    %cst_34 = arith.constant dense<0.000000e+00> : vector<16xf32>
    %47 = vector.multi_reduction <add>, %46, %cst_34 [1] : vector<16x578xf32> to vector<16xf32>
    %48 = vector.shape_cast %47 : vector<16xf32> to vector<16x1xf32>
    %49 = arith.addf %42, %48 : vector<16x1xf32>
    %50 = vector.extract_strided_slice %20 {offsets = [16, 0], sizes = [16, 578], strides = [1, 1]} : vector<64x578xf32> to vector<16x578xf32>
    %51 = vector.broadcast %41 : vector<16x1xf32> to vector<16x578xf32>
    %52 = arith.subf %50, %51 : vector<16x578xf32>
    %53 = arith.mulf %52, %52 : vector<16x578xf32>
    %cst_35 = arith.constant dense<0.000000e+00> : vector<16xf32>
    %54 = vector.multi_reduction <add>, %53, %cst_35 [1] : vector<16x578xf32> to vector<16xf32>
    %55 = vector.shape_cast %54 : vector<16xf32> to vector<16x1xf32>
    %56 = arith.addf %49, %55 : vector<16x1xf32>
    %57 = vector.extract_strided_slice %20 {offsets = [32, 0], sizes = [16, 578], strides = [1, 1]} : vector<64x578xf32> to vector<16x578xf32>
    %58 = vector.broadcast %41 : vector<16x1xf32> to vector<16x578xf32>
    %59 = arith.subf %57, %58 : vector<16x578xf32>
    %60 = arith.mulf %59, %59 : vector<16x578xf32>
    %cst_36 = arith.constant dense<0.000000e+00> : vector<16xf32>
    %61 = vector.multi_reduction <add>, %60, %cst_36 [1] : vector<16x578xf32> to vector<16xf32>
    %62 = vector.shape_cast %61 : vector<16xf32> to vector<16x1xf32>
    %63 = arith.addf %56, %62 : vector<16x1xf32>
    %64 = vector.extract_strided_slice %20 {offsets = [48, 0], sizes = [16, 578], strides = [1, 1]} : vector<64x578xf32> to vector<16x578xf32>
    %65 = vector.broadcast %41 : vector<16x1xf32> to vector<16x578xf32>
    %66 = arith.subf %64, %65 : vector<16x578xf32>
    %67 = arith.mulf %66, %66 : vector<16x578xf32>
    %cst_37 = arith.constant dense<0.000000e+00> : vector<16xf32>
    %68 = vector.multi_reduction <add>, %67, %cst_37 [1] : vector<16x578xf32> to vector<16xf32>
    %69 = vector.shape_cast %68 : vector<16xf32> to vector<16x1xf32>
    %70 = arith.addf %63, %69 : vector<16x1xf32>
    %cst_38 = arith.constant 2.312000e+03 : f32
    %71 = vector.broadcast %cst_38 : f32 to vector<16x1xf32>
    %72 = arith.divf %70, %71 : vector<16x1xf32>
    %cst_39 = arith.constant 9.99999974E-6 : f32
    %73 = vector.broadcast %cst_39 : f32 to vector<16x1xf32>
    %74 = arith.addf %72, %73 : vector<16x1xf32>
    %75 = math.rsqrt %74 : vector<16x1xf32>
    %76 = arith.mulf %75, %21 : vector<16x1xf32>
    %77 = arith.mulf %41, %76 : vector<16x1xf32>
    %78 = arith.subf %22, %77 : vector<16x1xf32>
    %79 = tpu.concatenate %76, %76, %76, %76 in 0 : vector<16x1xf32>, vector<16x1xf32>, vector<16x1xf32>, vector<16x1xf32> -> vector<64x1xf32>
    %80 = tpu.concatenate %78, %78, %78, %78 in 0 : vector<16x1xf32>, vector<16x1xf32>, vector<16x1xf32>, vector<16x1xf32> -> vector<64x1xf32>
    %81 = vector.broadcast %79 : vector<64x1xf32> to vector<64x578xf32>
    %82 = arith.mulf %20, %81 : vector<64x578xf32>
    %83 = vector.broadcast %80 : vector<64x1xf32> to vector<64x578xf32>
    %84 = arith.addf %82, %83 : vector<64x578xf32>
    %cst_40 = arith.constant 0.000000e+00 : f32
    %85 = vector.broadcast %cst_40 : f32 to vector<64x578xf32>
    %86 = arith.maximumf %84, %85 : vector<64x578xf32>
    %c0_41 = arith.constant 0 : index
    %c0_42 = arith.constant 0 : index
    %87 = vector.load %arg5[%c0_41, %c0_42] : memref<64x578xf32, #tpu.memory_space<vmem>>, vector<64x578xf32>
    tpu.vector_store %arg5[%c0_41, %c0_42], %86 {strides = array<i32>} : memref<64x578xf32, #tpu.memory_space<vmem>>, vector<64x578xf32>,
    return
  }
  func.func @transform_0(%arg0: i32) -> (i32, i32, i32) {
    %c0_i32 = arith.constant 0 : i32
    %c0_i32_0 = arith.constant 0 : i32
    %c0_i32_1 = arith.constant 0 : i32
    %c0_i32_2 = arith.constant 0 : i32
    return %c0_i32, %c0_i32_0, %c0_i32_1 : i32, i32, i32
  }
  func.func @transform_1(%arg0: i32) -> (i32, i32, i32) {
    %c0_i32 = arith.constant 0 : i32
    %c0_i32_0 = arith.constant 0 : i32
    %c0_i32_1 = arith.constant 0 : i32
    %c0_i32_2 = arith.constant 0 : i32
    return %c0_i32, %c0_i32_0, %c0_i32_1 : i32, i32, i32
  }
  func.func @transform_2(%arg0: i32) -> (i32, i32) {
    %c0_i32 = arith.constant 0 : i32
    %c0_i32_0 = arith.constant 0 : i32
    %c0_i32_1 = arith.constant 0 : i32
    return %c0_i32, %c0_i32_0 : i32, i32
  }
  func.func @transform_3(%arg0: i32) -> (i32, i32) {
    %c0_i32 = arith.constant 0 : i32
    %c0_i32_0 = arith.constant 0 : i32
    %c0_i32_1 = arith.constant 0 : i32
    return %c0_i32, %c0_i32_0 : i32, i32
  }
  func.func @transform_4(%arg0: i32) -> (i32, i32) {
    %c0_i32 = arith.constant 0 : i32
    %c0_i32_0 = arith.constant 0 : i32
    %c0_i32_1 = arith.constant 0 : i32
    return %c0_i32, %c0_i32_0 : i32, i32
  }
}

module attributes {stable_mosaic.version = 11 : i64} {
  func.func @_merged_conv_tanh_kernel(%arg0: i32, %arg1: memref<144x1024xbf16, #tpu.memory_space<vmem>>, %arg2: memref<12x144xbf16, #tpu.memory_space<vmem>>, %arg3: memref<12x1024xf32, #tpu.memory_space<vmem>>) attributes {dimension_semantics = [#tpu.dimension_semantics<parallel>], iteration_bounds = array<i64: 2>, scalar_prefetch = 0 : i64, scratch_operands = 0 : i64, tpu.core_type = #tpu.core_type<tc>, window_params = [{transform_indices = @transform_0, window_bounds = array<i64: 144, 1024>}, {pipeline_mode = #tpu.pipeline_mode<synchronous>, transform_indices = @transform_1, window_bounds = array<i64: 12, 144>}, {transform_indices = @transform_2, window_bounds = array<i64: 12, 1024>}]} {
    %c0 = arith.constant 0 : index
    %c0_0 = arith.constant 0 : index
    %0 = vector.load %arg2[%c0, %c0_0] : memref<12x144xbf16, #tpu.memory_space<vmem>>, vector<12x144xbf16>
    %c0_1 = arith.constant 0 : index
    %c0_2 = arith.constant 0 : index
    %1 = vector.load %arg1[%c0_1, %c0_2] : memref<144x1024xbf16, #tpu.memory_space<vmem>>, vector<144x1024xbf16>
    %cst = arith.constant dense<0.000000e+00> : vector<12x1024xf32>
    %2 = tpu.matmul %0, %1, %cst {dimension_numbers = #tpu.dot_dimension_numbers<[1], [0], [0], [1], [0, 0, 1, 1], [], []>} : vector<12x144xbf16>, vector<144x1024xbf16>, vector<12x1024xf32> -> vector<12x1024xf32>
    %3 = math.tanh %2 : vector<12x1024xf32>
    %c0_3 = arith.constant 0 : index
    %c0_4 = arith.constant 0 : index
    %4 = vector.load %arg3[%c0_3, %c0_4] : memref<12x1024xf32, #tpu.memory_space<vmem>>, vector<12x1024xf32>
    tpu.vector_store %arg3[%c0_3, %c0_4], %3 {strides = array<i32>} : memref<12x1024xf32, #tpu.memory_space<vmem>>, vector<12x1024xf32>,
    return
  }
  func.func @transform_0(%arg0: i32) -> (i32, i32) {
    %c0_i32 = arith.constant 0 : i32
    %c0_i32_0 = arith.constant 0 : i32
    return %c0_i32, %arg0 : i32, i32
  }
  func.func @transform_1(%arg0: i32) -> (i32, i32) {
    %c0_i32 = arith.constant 0 : i32
    %c0_i32_0 = arith.constant 0 : i32
    %c0_i32_1 = arith.constant 0 : i32
    return %c0_i32, %c0_i32_0 : i32, i32
  }
  func.func @transform_2(%arg0: i32) -> (i32, i32) {
    %c0_i32 = arith.constant 0 : i32
    %c0_i32_0 = arith.constant 0 : i32
    return %c0_i32, %arg0 : i32, i32
  }
}

</mosaic_0001>

<bundles_post_ra>
// kernel: generator_forward.5
= control target key start
LH: loop header
LB: loop body
LE: loop exit
PB: predicated region body
PF: predicated region fallthrough
CT: control target
= control target key end

     0   :  { %9 = vsyncpa [#allocation3], 0  ;;  %s3075_s0 = inlined_call_operand.vmem [shape: bf16[2,32], index: 0, kind: input, shape index: {}]   ;;  %s3076_s1 = inlined_call_operand.hbm [shape: bf16[32,4608], index: 1, kind: input, shape index: {}]   ;;  %s3077_s2 = inlined_call_operand.hbm [shape: f32[1,128], index: 2, kind: input, shape index: {}]   ;;  %s3078_s3 = inlined_call_operand.hbm [shape: f32[1,128], index: 3, kind: input, shape index: {}]   ;;  %s3079_s4 = inlined_call_operand.vmem [shape: f32[2,4608], index: 4, kind: output, shape index: {}]  }
   0x1   :  { %10 = vsyncpa [#allocation5], 0  ;;  %s2495_s15 = smov [#allocation4]   ;;  %s2496_s17 = smov [#allocation2]  }
   0x2   :  { %s31_s16 = sshll.u32 %s2495_s15, 4  ;;  %s18_s18 = sshll.u32 %s2496_s17, 4  ;;  %s32_s16 = int_to_ptr.vmem [resolvable:$true] %s31_s16  ;;  %s2527_s18 = int_to_ptr.vmem [resolvable:$true] %s18_s18 }
   0x3   :  { %s2425_s21 = scalar_lea.hbm %s3077_s2, 16 }
   0x4   :  { %p2426_p0 = scmp.ne.s32.totalorder %s3077_s2, %s2425_s21  ;;  %p2429_p1 = scmp.lt.u32.totalorder %s2425_s21, %s3077_s2 }
   0x6   :  { %p2431_p2 = pnand %p2429_p1, %p2426_p0 }
   0x8   :  { %2434 = shalt.err (!%p2431_p2)
}
   0x9   :  { %s2435_s26 = scalar_lea.vmem %s32_s16, 16  ;;  %s2439_s27 = scalar_lea.vmem %s32_s16, 32 }
   0xa   :  { %p2436_p3 = scmp.ne.s32.totalorder %s32_s16, %s2435_s26  ;;  %p2440_p4 = scmp.lt.s32.totalorder %s32_s16, %s32_s16 }
   0xb   :  { %p2441_p5 = scmp.lt.s32.totalorder %s2439_s27, %s2435_s26 }
   0xd   :  { %p2442_p6 = por %p2441_p5, %p2440_p4 }
   0xf   :  { %p2443_p7 = pnand %p2442_p6, %p2436_p3 }
  0x11   :  { %2446 = shalt.err (!%p2443_p7)
}
  0x12   :  { %34 = dma.hbm_to_vmem [thread:$0]  %s3077_s2, 16, %s32_s16, [#allocation5]  }
  0x13   :  { %s2447_s6 = scalar_lea.hbm %s3076_s1, 9216 }
  0x14   :  { %p2448_p8 = scmp.ne.s32.totalorder %s3076_s1, %s2447_s6  ;;  %p2451_p9 = scmp.lt.u32.totalorder %s2447_s6, %s3076_s1 }
  0x16   :  { %p2453_p10 = pnand %p2451_p9, %p2448_p8 }
  0x18   :  { %2456 = shalt.err (!%p2453_p10)
}
  0x19   :  { %s2457_s11 = scalar_lea.vmem %s2527_s18, 9216  ;;  %p2462_p12 = scmp.lt.s32.totalorder %s2527_s18, %s2527_s18 }
  0x1a   :  { %p2458_p11 = scmp.ne.s32.totalorder %s2527_s18, %s2457_s11  ;;  %p2463_p13 = scmp.lt.s32.totalorder %s2457_s11, %s2457_s11 }
  0x1c   :  { %p2464_p0 = por %p2463_p13, %p2462_p12 }
  0x1e   :  { %p2465_p1 = pnand %p2464_p0, %p2458_p11 }
  0x20   :  { %2468 = shalt.err (!%p2465_p1)
}
  0x21   :  { %s2497_s2 = smov 2304   ;;  %s2498_s12 = smov 144  }
  0x22   :  { %24 = dma.hbm_to_vmem [thread:$0]  %s3076_s1, 9216, %s2527_s18, [#allocation3], %s2497_s2, %s2497_s2, %s2498_s12  }
  0x23   :  { %s2499_s15 = smov [#allocation6]   ;;  %s2469_s20 = scalar_lea.hbm %s3078_s3, 16 }
  0x24   :  { %s41_s16 = sshll.u32 %s2499_s15, 4  ;;  %p2470_p2 = scmp.ne.s32.totalorder %s3078_s3, %s2469_s20  ;;  %s42_s16 = int_to_ptr.vmem [resolvable:$true] %s41_s16 }
  0x25   :  { %p2473_p3 = scmp.lt.u32.totalorder %s2469_s20, %s3078_s3 }
  0x27   :  { %p2475_p4 = pnand %p2473_p3, %p2470_p2 }
  0x29   :  { %2478 = shalt.err (!%p2475_p4)
}
  0x2a   :  { %s2479_s25 = scalar_lea.vmem %s42_s16, 16  ;;  %s2483_s1 = scalar_lea.vmem %s42_s16, 32 }
  0x2b   :  { %p2480_p5 = scmp.ne.s32.totalorder %s42_s16, %s2479_s25  ;;  %p2484_p6 = scmp.lt.s32.totalorder %s42_s16, %s42_s16 }
  0x2c   :  { %p2485_p7 = scmp.lt.s32.totalorder %s2483_s1, %s2479_s25 }
  0x2e   :  { %p2486_p8 = por %p2485_p7, %p2484_p6 }
  0x30   :  { %p2487_p9 = pnand %p2486_p8, %p2480_p5 }
  0x32   :  { %2490 = shalt.err (!%p2487_p9)
}
  0x33   :  { %44 = dma.hbm_to_vmem [thread:$0]  %s3078_s3, 16, %s42_s16, [#allocation5]  }
  0x34   :  { %2491 = dma.done.wait [#allocation3], 9216  }
  0x35   :  { %2492 = vsyncadd [#allocation3], 4294958080 }
  0x36   :  { %2493 = dma.done.wait [#allocation5], 32  }
  0x37   :  { %2494 = vsyncadd [#allocation5], 4294967264  ;;  %v2500_v0 = vmov 0   ;;  %v2315_v1 = vld [vmem:[#allocation2 + $0x4] ss:$144 sps:$4 sm:$0xff]   ;;  %vm488_vm0 = vcmask 261120  }
  0x38   :  { %524 = vmatprep.mubr.bf16.mxu0 %v2500_v0  ;;  %565 = vmatprep.mubr.bf16.mxu1 %v2500_v0  ;;  %v2317_v2 = vld [vmem:[#allocation2 + $0xc] ss:$144 sps:$4 sm:$0xff]   ;;  %v2319_v3 = vld [vmem:[#allocation2] ss:$144 sps:$4 sm:$0xff]   ;;  %v2320_v4 = vld [vmem:[#allocation2 + $0x8] ss:$144 sps:$4 sm:$0xff]  }
  0x39   :  { %492 = vmatprep.subr.bf16.mxu0 %v2315_v1  ;;  %533 = vmatprep.subr.bf16.mxu1 %v2317_v2  ;;  %v2321_v5 = vld [vmem:[#allocation2 + $0x124] ss:$144 sps:$4 sm:$0xff]   ;;  %v2323_v6 = vld [vmem:[#allocation2 + $0x12c] ss:$144 sps:$4 sm:$0xff]   ;;  %v2325_v7 = vld [vmem:[#allocation2 + $0x120] ss:$144 sps:$4 sm:$0xff]  }
  0x3a   :  { %493 = vmatpush1.bf16.msra.mxu0 %v2319_v3  ;;  %534 = vmatpush1.bf16.msra.mxu1 %v2320_v4  ;;  %v2326_v8 = vld [vmem:[#allocation2 + $0x128] ss:$144 sps:$4 sm:$0xff]   ;;  %v2575_v9 = vld [vmem:[%s3075_s0] sm:$0x1]  ;;  %v2329_v11 = vld [vmem:[#allocation2 + $0x14] ss:$144 sps:$4 sm:$0xff]  }
  0x3b   :  { %494 = vmatprep.subr.bf16.mxu0 %v2321_v5  ;;  %535 = vmatprep.subr.bf16.mxu1 %v2323_v6  ;;  %v2327_v10 = vld [vmem:[#allocation2 + $0x10] ss:$144 sps:$4 sm:$0xff]   ;;  %v2330_v12 = vld [vmem:[#allocation2 + $0x18] ss:$144 sps:$4 sm:$0xff]   ;;  %v2332_v13 = vld [vmem:[#allocation2 + $0x1c] ss:$144 sps:$4 sm:$0xff]  }
  0x3c   :  { %v2335_v14 = vld [vmem:[#allocation2 + $0x134] ss:$144 sps:$4 sm:$0xff]   ;;  %v2338_v15 = vld [vmem:[#allocation2 + $0x13c] ss:$144 sps:$4 sm:$0xff]   ;;  %v2333_v16 = vld [vmem:[#allocation2 + $0x130] ss:$144 sps:$4 sm:$0xff]  }
  0x3d   :  { %v2336_v17 = vld [vmem:[#allocation2 + $0x138] ss:$144 sps:$4 sm:$0xff]   ;;  %v2341_v18 = vld [vmem:[#allocation2 + $0x24] ss:$144 sps:$4 sm:$0xff]   ;;  %v2344_v19 = vld [vmem:[#allocation2 + $0x2c] ss:$144 sps:$4 sm:$0xff]  }
  0x3e   :  { %495 = vmatpush1.bf16.msra.mxu0 %v2325_v7  ;;  %536 = vmatpush1.bf16.msra.mxu1 %v2326_v8  ;;  %v2339_v20 = vld [vmem:[#allocation2 + $0x20] ss:$144 sps:$4 sm:$0xff]   ;;  %v2342_v21 = vld [vmem:[#allocation2 + $0x28] ss:$144 sps:$4 sm:$0xff]   ;;  %v2347_v22 = vld [vmem:[#allocation2 + $0x144] ss:$144 sps:$4 sm:$0xff]  }
  0x3f   :  { %574 = vmatprep.subr.bf16.mxu0 %v2329_v11  ;;  %615 = vmatprep.subr.bf16.mxu1 %v2332_v13  ;;  %v2350_v23 = vld [vmem:[#allocation2 + $0x14c] ss:$144 sps:$4 sm:$0xff]   ;;  %v2345_v24 = vld [vmem:[#allocation2 + $0x140] ss:$144 sps:$4 sm:$0xff]   ;;  %v2348_v25 = vld [vmem:[#allocation2 + $0x148] ss:$144 sps:$4 sm:$0xff]  }
  0x40   :  { %v2353_v26 = vld [vmem:[#allocation2 + $0x34] ss:$144 sps:$4 sm:$0xff]   ;;  %v2356_v27 = vld [vmem:[#allocation2 + $0x3c] ss:$144 sps:$4 sm:$0xff]   ;;  %v2351_v28 = vld [vmem:[#allocation2 + $0x30] ss:$144 sps:$4 sm:$0xff]  }
  0x41   :  { %2290 = vmatmul.mubr.msk.bf16.vlgmr.msra.gmra.mrb[0].mxu0 %vm488_vm0, %v2575_v9  ;;  %2291 = vmatmul.mubr.msk.bf16.vlgmr.msra.gmra.mrb[0].mxu1 %vm488_vm0, %v2575_v9  ;;  %v2354_v29 = vld [vmem:[#allocation2 + $0x38] ss:$144 sps:$4 sm:$0xff]   ;;  %v2359_v30 = vld [vmem:[#allocation2 + $0x154] ss:$144 sps:$4 sm:$0xff]   ;;  %v2362_v31 = vld [vmem:[#allocation2 + $0x15c] ss:$144 sps:$4 sm:$0xff]  }
  0x42   :  { %575 = vmatpush1.bf16.msra.mxu0 %v2327_v10  ;;  %616 = vmatpush1.bf16.msra.mxu1 %v2330_v12  ;;  %v2357_v32 = vld [vmem:[#allocation2 + $0x150] ss:$144 sps:$4 sm:$0xff]   ;;  %v2360_v33 = vld [vmem:[#allocation2 + $0x158] ss:$144 sps:$4 sm:$0xff]   ;;  %v2365_v34 = vld [vmem:[#allocation2 + $0x44] ss:$144 sps:$4 sm:$0xff]  }
  0x43   :  { %576 = vmatprep.subr.bf16.mxu0 %v2335_v14  ;;  %617 = vmatprep.subr.bf16.mxu1 %v2338_v15  ;;  %v2368_v35 = vld [vmem:[#allocation2 + $0x4c] ss:$144 sps:$4 sm:$0xff]   ;;  %v2363_v36 = vld [vmem:[#allocation2 + $0x40] ss:$144 sps:$4 sm:$0xff]   ;;  %v2366_v37 = vld [vmem:[#allocation2 + $0x48] ss:$144 sps:$4 sm:$0xff]  }
  0x44   :  { %606 = vmatprep.mubr.bf16.mxu0 %v2500_v0  ;;  %647 = vmatprep.mubr.bf16.mxu1 %v2500_v0  ;;  %v2371_v38 = vld [vmem:[#allocation2 + $0x164] ss:$144 sps:$4 sm:$0xff]   ;;  %v2374_v39 = vld [vmem:[#allocation2 + $0x16c] ss:$144 sps:$4 sm:$0xff]   ;;  %v2369_v40 = vld [vmem:[#allocation2 + $0x160] ss:$144 sps:$4 sm:$0xff]  }
  0x45   :  { %v2372_v41 = vld [vmem:[#allocation2 + $0x168] ss:$144 sps:$4 sm:$0xff]   ;;  %v2377_v42 = vld [vmem:[#allocation2 + $0x54] ss:$144 sps:$4 sm:$0xff]   ;;  %v2380_v43 = vld [vmem:[#allocation2 + $0x5c] ss:$144 sps:$4 sm:$0xff]  }
  0x46   :  { %577 = vmatpush1.bf16.msra.mxu0 %v2333_v16  ;;  %618 = vmatpush1.bf16.msra.mxu1 %v2336_v17  ;;  %v2375_v44 = vld [vmem:[#allocation2 + $0x50] ss:$144 sps:$4 sm:$0xff]   ;;  %v2378_v45 = vld [vmem:[#allocation2 + $0x58] ss:$144 sps:$4 sm:$0xff]   ;;  %v2383_v46 = vld [vmem:[#allocation2 + $0x174] ss:$144 sps:$4 sm:$0xff]  }
  0x47   :  { %656 = vmatprep.subr.bf16.mxu0 %v2341_v18  ;;  %697 = vmatprep.subr.bf16.mxu1 %v2344_v19  ;;  %v2386_v47 = vld [vmem:[#allocation2 + $0x17c] ss:$144 sps:$4 sm:$0xff]   ;;  %v2381_v48 = vld [vmem:[#allocation2 + $0x170] ss:$144 sps:$4 sm:$0xff]   ;;  %v2384_v49 = vld [vmem:[#allocation2 + $0x178] ss:$144 sps:$4 sm:$0xff]  }
  0x48   :  { %v2389_v50 = vld [vmem:[#allocation2 + $0x64] ss:$144 sps:$4 sm:$0xff]   ;;  %v2392_v51 = vld [vmem:[#allocation2 + $0x6c] ss:$144 sps:$4 sm:$0xff]   ;;  %v2387_v52 = vld [vmem:[#allocation2 + $0x60] ss:$144 sps:$4 sm:$0xff]  }
  0x49   :  { %2292 = vmatmul.mubr.msk.bf16.vlgmr.msra.gmra.mrb[4].mxu0 %vm488_vm0, %v2575_v9  ;;  %2293 = vmatmul.mubr.msk.bf16.vlgmr.msra.gmra.mrb[4].mxu1 %vm488_vm0, %v2575_v9  ;;  %v2390_v53 = vld [vmem:[#allocation2 + $0x68] ss:$144 sps:$4 sm:$0xff]   ;;  %v2395_v54 = vld [vmem:[#allocation2 + $0x184] ss:$144 sps:$4 sm:$0xff]   ;;  %v2398_v55 = vld [vmem:[#allocation2 + $0x18c] ss:$144 sps:$4 sm:$0xff]  }
  0x4a   :  { %657 = vmatpush1.bf16.msra.mxu0 %v2339_v20  ;;  %698 = vmatpush1.bf16.msra.mxu1 %v2342_v21  ;;  %v2393_v56 = vld [vmem:[#allocation2 + $0x180] ss:$144 sps:$4 sm:$0xff]   ;;  %v2396_v57 = vld [vmem:[#allocation2 + $0x188] ss:$144 sps:$4 sm:$0xff]   ;;  %v2401_v58 = vld [vmem:[#allocation2 + $0x74] ss:$144 sps:$4 sm:$0xff]  }
  0x4b   :  { %658 = vmatprep.subr.bf16.mxu0 %v2347_v22  ;;  %699 = vmatprep.subr.bf16.mxu1 %v2350_v23  ;;  %v2404_v59 = vld [vmem:[#allocation2 + $0x7c] ss:$144 sps:$4 sm:$0xff]   ;;  %v2399_v60 = vld [vmem:[#allocation2 + $0x70] ss:$144 sps:$4 sm:$0xff]   ;;  %v2402_v61 = vld [vmem:[#allocation2 + $0x78] ss:$144 sps:$4 sm:$0xff]  }
  0x4c   :  { %688 = vmatprep.mubr.bf16.mxu0 %v2500_v0  ;;  %729 = vmatprep.mubr.bf16.mxu1 %v2500_v0  ;;  %v2407_v62 = vld [vmem:[#allocation2 + $0x194] ss:$144 sps:$4 sm:$0xff]   ;;  %v2410_v63 = vld [vmem:[#allocation2 + $0x19c] ss:$144 sps:$4 sm:$0xff]   ;;  %v2405_v1 = vld [vmem:[#allocation2 + $0x190] ss:$144 sps:$4 sm:$0xff]  }
  0x4d   :  { %v2408_v2 = vld [vmem:[#allocation2 + $0x198] ss:$144 sps:$4 sm:$0xff]   ;;  %v2413_v3 = vld [vmem:[#allocation2 + $0x84] ss:$144 sps:$4 sm:$0xff]   ;;  %v2416_v4 = vld [vmem:[#allocation2 + $0x8c] ss:$144 sps:$4 sm:$0xff]  }
  0x4e   :  { %659 = vmatpush1.bf16.msra.mxu0 %v2345_v24  ;;  %700 = vmatpush1.bf16.msra.mxu1 %v2348_v25  ;;  %v2411_v5 = vld [vmem:[#allocation2 + $0x80] ss:$144 sps:$4 sm:$0xff]   ;;  %v2414_v6 = vld [vmem:[#allocation2 + $0x88] ss:$144 sps:$4 sm:$0xff]   ;;  %v2419_v7 = vld [vmem:[#allocation2 + $0x1a4] ss:$144 sps:$4 sm:$0xff]  }
  0x4f   :  { %738 = vmatprep.subr.bf16.mxu0 %v2353_v26  ;;  %779 = vmatprep.subr.bf16.mxu1 %v2356_v27  ;;  %v2422_v8 = vld [vmem:[#allocation2 + $0x1ac] ss:$144 sps:$4 sm:$0xff]   ;;  %v2417_v10 = vld [vmem:[#allocation2 + $0x1a0] ss:$144 sps:$4 sm:$0xff]   ;;  %v2420_v11 = vld [vmem:[#allocation2 + $0x1a8] ss:$144 sps:$4 sm:$0xff]  }
  0x50   :  { %vm1230_vm1 = vcmask 1041408  }
  0x51   :  { %2294 = vmatmul.mubr.msk.bf16.vlgmr.msra.gmra.mrb[8].mxu0 %vm488_vm0, %v2575_v9  ;;  %2295 = vmatmul.mubr.msk.bf16.vlgmr.msra.gmra.mrb[8].mxu1 %vm488_vm0, %v2575_v9 }
  0x52   :  { %739 = vmatpush1.bf16.msra.mxu0 %v2351_v28  ;;  %780 = vmatpush1.bf16.msra.mxu1 %v2354_v29 }
  0x53   :  { %740 = vmatprep.subr.bf16.mxu0 %v2359_v30  ;;  %781 = vmatprep.subr.bf16.mxu1 %v2362_v31 }
  0x54   :  { %770 = vmatprep.mubr.bf16.mxu0 %v2500_v0  ;;  %811 = vmatprep.mubr.bf16.mxu1 %v2500_v0 }
  0x56   :  { %741 = vmatpush1.bf16.msra.mxu0 %v2357_v32  ;;  %782 = vmatpush1.bf16.msra.mxu1 %v2360_v33 }
  0x57   :  { %820 = vmatprep.subr.bf16.mxu0 %v2365_v34  ;;  %861 = vmatprep.subr.bf16.mxu1 %v2368_v35 }
  0x59   :  { %2296 = vmatmul.mubr.msk.bf16.vlgmr.msra.gmra.mrb[12].mxu0 %vm488_vm0, %v2575_v9  ;;  %2297 = vmatmul.mubr.msk.bf16.vlgmr.msra.gmra.mrb[12].mxu1 %vm488_vm0, %v2575_v9 }
  0x5a   :  { %821 = vmatpush1.bf16.msra.mxu0 %v2363_v36  ;;  %862 = vmatpush1.bf16.msra.mxu1 %v2366_v37 }
  0x5b   :  { %822 = vmatprep.subr.bf16.mxu0 %v2371_v38  ;;  %863 = vmatprep.subr.bf16.mxu1 %v2374_v39 }
  0x5c   :  { %852 = vmatprep.mubr.bf16.mxu0 %v2500_v0  ;;  %893 = vmatprep.mubr.bf16.mxu1 %v2500_v0 }
  0x5e   :  { %823 = vmatpush1.bf16.msra.mxu0 %v2369_v40  ;;  %864 = vmatpush1.bf16.msra.mxu1 %v2372_v41 }
  0x5f   :  { %902 = vmatprep.subr.bf16.mxu0 %v2377_v42  ;;  %943 = vmatprep.subr.bf16.mxu1 %v2380_v43 }
  0x61   :  { %2298 = vmatmul.mubr.msk.bf16.vlgmr.msra.gmra.mrb[16].mxu0 %vm488_vm0, %v2575_v9  ;;  %2299 = vmatmul.mubr.msk.bf16.vlgmr.msra.gmra.mrb[16].mxu1 %vm488_vm0, %v2575_v9 }
  0x62   :  { %903 = vmatpush1.bf16.msra.mxu0 %v2375_v44  ;;  %944 = vmatpush1.bf16.msra.mxu1 %v2378_v45 }
  0x63   :  { %904 = vmatprep.subr.bf16.mxu0 %v2383_v46  ;;  %945 = vmatprep.subr.bf16.mxu1 %v2386_v47 }
  0x64   :  { %934 = vmatprep.mubr.bf16.mxu0 %v2500_v0  ;;  %975 = vmatprep.mubr.bf16.mxu1 %v2500_v0 }
  0x66   :  { %905 = vmatpush1.bf16.msra.mxu0 %v2381_v48  ;;  %946 = vmatpush1.bf16.msra.mxu1 %v2384_v49 }
  0x67   :  { %984 = vmatprep.subr.bf16.mxu0 %v2389_v50  ;;  %1025 = vmatprep.subr.bf16.mxu1 %v2392_v51 }
  0x69   :  { %2300 = vmatmul.mubr.msk.bf16.vlgmr.msra.gmra.mrb[20].mxu0 %vm488_vm0, %v2575_v9  ;;  %2301 = vmatmul.mubr.msk.bf16.vlgmr.msra.gmra.mrb[20].mxu1 %vm488_vm0, %v2575_v9 }
  0x6a   :  { %985 = vmatpush1.bf16.msra.mxu0 %v2387_v52  ;;  %1026 = vmatpush1.bf16.msra.mxu1 %v2390_v53 }
  0x6b   :  { %986 = vmatprep.subr.bf16.mxu0 %v2395_v54  ;;  %1027 = vmatprep.subr.bf16.mxu1 %v2398_v55 }
  0x6c   :  { %1016 = vmatprep.mubr.bf16.mxu0 %v2500_v0  ;;  %1057 = vmatprep.mubr.bf16.mxu1 %v2500_v0 }
  0x6e   :  { %987 = vmatpush1.bf16.msra.mxu0 %v2393_v56  ;;  %1028 = vmatpush1.bf16.msra.mxu1 %v2396_v57 }
  0x6f   :  { %1066 = vmatprep.subr.bf16.mxu0 %v2401_v58  ;;  %1107 = vmatprep.subr.bf16.mxu1 %v2404_v59 }
  0x71   :  { %2302 = vmatmul.mubr.msk.bf16.vlgmr.msra.gmra.mrb[24].mxu0 %vm488_vm0, %v2575_v9  ;;  %2303 = vmatmul.mubr.msk.bf16.vlgmr.msra.gmra.mrb[24].mxu1 %vm488_vm0, %v2575_v9 }
  0x72   :  { %1067 = vmatpush1.bf16.msra.mxu0 %v2399_v60  ;;  %1108 = vmatpush1.bf16.msra.mxu1 %v2402_v61 }
  0x73   :  { %1068 = vmatprep.subr.bf16.mxu0 %v2407_v62  ;;  %1109 = vmatprep.subr.bf16.mxu1 %v2410_v63 }
  0x74   :  { %1098 = vmatprep.mubr.bf16.mxu0 %v2500_v0  ;;  %1139 = vmatprep.mubr.bf16.mxu1 %v2500_v0 }
  0x76   :  { %1069 = vmatpush1.bf16.msra.mxu0 %v2405_v1  ;;  %1110 = vmatpush1.bf16.msra.mxu1 %v2408_v2 }
  0x77   :  { %1148 = vmatprep.subr.bf16.mxu0 %v2413_v3  ;;  %1189 = vmatprep.subr.bf16.mxu1 %v2416_v4 }
  0x79   :  { %2304 = vmatmul.mubr.msk.bf16.vlgmr.msra.gmra.mrb[28].mxu0 %vm488_vm0, %v2575_v9  ;;  %2305 = vmatmul.mubr.msk.bf16.vlgmr.msra.gmra.mrb[28].mxu1 %vm488_vm0, %v2575_v9 }
  0x7a   :  { %1149 = vmatpush1.bf16.msra.mxu0 %v2411_v5  ;;  %1190 = vmatpush1.bf16.msra.mxu1 %v2414_v6 }
  0x7b   :  { %1150 = vmatprep.subr.bf16.mxu0 %v2419_v7  ;;  %1191 = vmatprep.subr.bf16.mxu1 %v2422_v8 }
  0x7c   :  { %1180 = vmatprep.mubr.bf16.mxu0 %v2500_v0  ;;  %1221 = vmatprep.mubr.bf16.mxu1 %v2500_v0 }
  0x7e   :  { %1151 = vmatpush1.bf16.msra.mxu0 %v2417_v10  ;;  %1192 = vmatpush1.bf16.msra.mxu1 %v2420_v11 }
  0x81   :  { %2306 = vmatmul.mubr.msk.bf16.vlgmr.msra.gmra.mrb[32].mxu0 %vm488_vm0, %v2575_v9  ;;  %2307 = vmatmul.mubr.msk.bf16.vlgmr.msra.gmra.mrb[32].mxu1 %vm488_vm0, %v2575_v9 }
 0x114   :  { %v2629_v12 = vpop.f32.mrb[0].mxu0  ;;  %v2631_v13 = vpop.f32.mrb[0].mxu1 }
 0x115   :  { %v1231_v14 = vsel %vm1230_vm1, %v2629_v12, 0.0  ;;  %v1247_v15 = vsel %vm1230_vm1, %v2631_v13, 0.0  ;;  %v2637_v0 = vpop.f32.mrb[1].mxu0  ;;  %v2639_v16 = vpop.f32.mrb[1].mxu1 }
 0x116   :  { %v1232_v17 = vrot.slane %v1231_v14, 4  ;;  %v1248_v18 = vrot.slane %v1247_v15, 4  ;;  %v1239_v9 = vsel %vm1230_vm1, %v2637_v0, 0.0  ;;  %v1255_v19 = vsel %vm1230_vm1, %v2639_v16, 0.0  ;;  %v530_v20 = vpop.f32.mrb[2].mxu0  ;;  %v571_v21 = vpop.f32.mrb[2].mxu1 }
 0x117   :  { %v1240_v22 = vrot.slane %v1239_v9, 4  ;;  %v1256_v23 = vrot.slane %v1255_v19, 4  ;;  %v531_v24 = vpop.f32.mrb[3].mxu0  ;;  %v572_v25 = vpop.f32.mrb[3].mxu1 }
 0x118   :  { %v1233_v26 = vadd.f32 %v1232_v17, %v1231_v14  ;;  %v1249_v27 = vadd.f32 %v1248_v18, %v1247_v15 }
 0x119   :  { %v1241_v28 = vadd.f32 %v1240_v22, %v1239_v9  ;;  %v1257_v29 = vadd.f32 %v1256_v23, %v1255_v19 }
 0x11a   :  { %v1234_v30 = vrot.slane %v1233_v26, 2  ;;  %v1250_v31 = vrot.slane %v1249_v27, 2 }
 0x11b   :  { %v1242_v32 = vrot.slane %v1241_v28, 2  ;;  %v1258_v33 = vrot.slane %v1257_v29, 2 }
 0x11c   :  { %v1235_v34 = vadd.f32 %v1234_v30, %v1233_v26  ;;  %v1251_v35 = vadd.f32 %v1250_v31, %v1249_v27  ;;  %v2645_v36 = vpop.f32.mrb[4].mxu0  ;;  %v2647_v37 = vpop.f32.mrb[4].mxu1 }
 0x11d   :  { %3094 = vst [vmem:[#allocation9_spill] sm:$0xff] %v2645_v36  ;;  %3095 = vst [vmem:[#allocation10_spill] sm:$0xff] %v2647_v37  ;;  %v1243_v38 = vadd.f32 %v1242_v32, %v1241_v28  ;;  %v1259_v39 = vadd.f32 %v1258_v33, %v1257_v29  ;;  %v1263_v40 = vsel %vm1230_vm1, %v2645_v36, 0.0  ;;  %v1279_v41 = vsel %vm1230_vm1, %v2647_v37, 0.0  ;;  %v2653_v42 = vpop.f32.mrb[5].mxu0  ;;  %v2655_v43 = vpop.f32.mrb[5].mxu1 }
 0x11e   :  { %3096 = vst [vmem:[#allocation11_spill] sm:$0xff] %v2653_v42  ;;  %3097 = vst [vmem:[#allocation12_spill] sm:$0xff] %v2655_v43  ;;  %v1236_v44 = vrot.slane %v1235_v34, 1  ;;  %v1264_v45 = vrot.slane %v1263_v40, 4  ;;  %v1280_v46 = vrot.slane %v1279_v41, 4  ;;  %v612_v47 = vpop.f32.mrb[6].mxu0 }
 0x11f   :  { %v653_v48 = vpop.f32.mrb[6].mxu1  ;;  %v1252_v49 = vrot.slane %v1251_v35, 1  ;;  %v1244_v50 = vrot.slane %v1243_v38, 1  ;;  %v1271_v51 = vsel %vm1230_vm1, %v2653_v42, 0.0  ;;  %v1287_v52 = vsel %vm1230_vm1, %v2655_v43, 0.0  ;;  %v613_v53 = vpop.f32.mrb[7].mxu0 }
 0x120   :  { %v654_v54 = vpop.f32.mrb[7].mxu1  ;;  %v1237_v55 = vadd.f32 %v1236_v44, %v1235_v34  ;;  %v1260_v56 = vrot.slane %v1259_v39, 1  ;;  %v1265_v57 = vadd.f32 %v1264_v45, %v1263_v40  ;;  %v1281_v58 = vadd.f32 %v1280_v46, %v1279_v41 }
 0x121   :  { %v1245_v59 = vadd.f32 %v1244_v50, %v1243_v38  ;;  %v1272_v60 = vrot.slane %v1271_v51, 4  ;;  %v1288_v61 = vrot.slane %v1287_v52, 4  ;;  %v1253_v1 = vadd.f32 %v1252_v49, %v1251_v35 }
 0x122   :  { %v1266_v62 = vrot.slane %v1265_v57, 2  ;;  %v1282_v63 = vrot.slane %v1281_v58, 2  ;;  %v1261_v5 = vadd.f32 %v1260_v56, %v1259_v39 }
 0x123   :  { %v1246_v2 = vadd.f32 %v1245_v59, %v1237_v55  ;;  %v1273_v3 = vadd.f32 %v1272_v60, %v1271_v51  ;;  %v1289_v4 = vadd.f32 %v1288_v61, %v1287_v52 }
 0x124   :  { %v1267_v6 = vadd.f32 %v1266_v62, %v1265_v57  ;;  %v1283_v7 = vadd.f32 %v1282_v63, %v1281_v58  ;;  %v2661_v8 = vpop.f32.mrb[8].mxu0  ;;  %v2663_v10 = vpop.f32.mrb[8].mxu1 }
 0x125   :  { %v1254_v11 = vadd.f32 %v1253_v1, %v1246_v2  ;;  %v1274_v14 = vrot.slane %v1273_v3, 2  ;;  %v1290_v15 = vrot.slane %v1289_v4, 2  ;;  %v1295_v17 = vsel %vm1230_vm1, %v2661_v8, 0.0  ;;  %v2667_v18 = vpop.f32.mrb[9].mxu0  ;;  %v2669_v9 = vpop.f32.mrb[9].mxu1 }
 0x126   :  { %v1268_v19 = vrot.slane %v1267_v6, 1  ;;  %v1296_v20 = vrot.slane %v1295_v17, 4  ;;  %v1311_v21 = vsel %vm1230_vm1, %v2663_v10, 0.0  ;;  %v694_v22 = vpop.f32.mrb[10].mxu0  ;;  %v735_v23 = vpop.f32.mrb[10].mxu1  ;;  %v1284_v31 = vrot.slane %v1283_v7, 1 }
 0x127   :  { %v1262_v24 = vadd.f32 %v1261_v5, %v1254_v11  ;;  %v1275_v25 = vadd.f32 %v1274_v14, %v1273_v3  ;;  %v1291_v26 = vadd.f32 %v1290_v15, %v1289_v4  ;;  %v1312_v27 = vrot.slane %v1311_v21, 4  ;;  %v695_v28 = vpop.f32.mrb[11].mxu0  ;;  %v736_v29 = vpop.f32.mrb[11].mxu1 }
 0x128   :  { %v1269_v30 = vadd.f32 %v1268_v19, %v1267_v6  ;;  %v1297_v32 = vadd.f32 %v1296_v20, %v1295_v17  ;;  %v1303_v33 = vsel %vm1230_vm1, %v2667_v18, 0.0  ;;  %v1319_v44 = vsel %vm1230_vm1, %v2669_v9, 0.0 }
 0x129   :  { %v1276_v34 = vrot.slane %v1275_v25, 1  ;;  %v1292_v35 = vrot.slane %v1291_v26, 1  ;;  %v1313_v38 = vadd.f32 %v1312_v27, %v1311_v21  ;;  %v1304_v39 = vrot.slane %v1303_v33, 4 }
 0x12a   :  { %v1270_v40 = vadd.f32 %v1269_v30, %v1262_v24  ;;  %v1298_v41 = vrot.slane %v1297_v32, 2  ;;  %v1285_v48 = vadd.f32 %v1284_v31, %v1283_v7  ;;  %v1320_v51 = vrot.slane %v1319_v44, 4 }
 0x12b   :  { %v1277_v45 = vadd.f32 %v1276_v34, %v1275_v25  ;;  %v1314_v46 = vrot.slane %v1313_v38, 2  ;;  %v1305_v47 = vadd.f32 %v1304_v39, %v1303_v33  ;;  %v1293_v49 = vadd.f32 %v1292_v35, %v1291_v26 }
 0x12c   :  { %v1299_v50 = vadd.f32 %v1298_v41, %v1297_v32  ;;  %v2677_v52 = vpop.f32.mrb[12].mxu0  ;;  %v2679_v53 = vpop.f32.mrb[12].mxu1  ;;  %v1321_v61 = vadd.f32 %v1320_v51, %v1319_v44 }
 0x12d   :  { %v1278_v54 = vadd.f32 %v1277_v45, %v1270_v40  ;;  %v1315_v55 = vadd.f32 %v1314_v46, %v1313_v38  ;;  %v1306_v56 = vrot.slane %v1305_v47, 2  ;;  %v1327_v57 = vsel %vm1230_vm1, %v2677_v52, 0.0  ;;  %v2683_v58 = vpop.f32.mrb[13].mxu0  ;;  %v2685_v59 = vpop.f32.mrb[13].mxu1 }
 0x12e   :  { %v1300_v60 = vrot.slane %v1299_v50, 1  ;;  %v1328_v62 = vrot.slane %v1327_v57, 4  ;;  %v1343_v63 = vsel %vm1230_vm1, %v2679_v53, 0.0  ;;  %v776_v1 = vpop.f32.mrb[14].mxu0  ;;  %v817_v2 = vpop.f32.mrb[14].mxu1  ;;  %v1322_v15 = vrot.slane %v1321_v61, 2 }
 0x12f   :  { %v1286_v3 = vadd.f32 %v1285_v48, %v1278_v54  ;;  %v1316_v4 = vrot.slane %v1315_v55, 1  ;;  %v1307_v5 = vadd.f32 %v1306_v56, %v1305_v47  ;;  %v1344_v6 = vrot.slane %v1343_v63, 4  ;;  %v777_v7 = vpop.f32.mrb[15].mxu0  ;;  %v818_v11 = vpop.f32.mrb[15].mxu1 }
 0x130   :  { %v1301_v14 = vadd.f32 %v1300_v60, %v1299_v50  ;;  %v1329_v17 = vadd.f32 %v1328_v62, %v1327_v57  ;;  %v1335_v19 = vsel %vm1230_vm1, %v2683_v58, 0.0  ;;  %v1323_v23 = vadd.f32 %v1322_v15, %v1321_v61 }
 0x131   :  { %v1294_v20 = vadd.f32 %v1293_v49, %v1286_v3  ;;  %v1308_v21 = vrot.slane %v1307_v5, 1  ;;  %v1345_v22 = vadd.f32 %v1344_v6, %v1343_v63  ;;  %v1336_v25 = vrot.slane %v1335_v19, 4 }
 0x132   :  { %v1330_v24 = vrot.slane %v1329_v17, 2  ;;  %v1351_v26 = vsel %vm1230_vm1, %v2685_v59, 0.0  ;;  %v1317_v31 = vadd.f32 %v1316_v4, %v1315_v55  ;;  %v1324_v32 = vrot.slane %v1323_v23, 1 }
 0x133   :  { %v1302_v27 = vadd.f32 %v1301_v14, %v1294_v20  ;;  %v1309_v28 = vadd.f32 %v1308_v21, %v1307_v5  ;;  %v1346_v29 = vrot.slane %v1345_v22, 2  ;;  %v1352_v30 = vrot.slane %v1351_v26, 4 }
 0x134   :  { %v1331_v33 = vadd.f32 %v1330_v24, %v1329_v17  ;;  %v1337_v34 = vadd.f32 %v1336_v25, %v1335_v19  ;;  %v2693_v35 = vpop.f32.mrb[16].mxu0  ;;  %v2695_v38 = vpop.f32.mrb[16].mxu1  ;;  %v1325_v47 = vadd.f32 %v1324_v32, %v1323_v23 }
 0x135   :  { %v1310_v39 = vadd.f32 %v1309_v28, %v1302_v27  ;;  %v1347_v40 = vadd.f32 %v1346_v29, %v1345_v22  ;;  %v1353_v41 = vadd.f32 %v1352_v30, %v1351_v26  ;;  %v1359_v44 = vsel %vm1230_vm1, %v2693_v35, 0.0  ;;  %v2699_v45 = vpop.f32.mrb[17].mxu0  ;;  %v2701_v46 = vpop.f32.mrb[17].mxu1 }
 0x136   :  { %v1332_v48 = vrot.slane %v1331_v33, 1  ;;  %v1338_v49 = vrot.slane %v1337_v34, 2  ;;  %v1360_v50 = vrot.slane %v1359_v44, 4  ;;  %v858_v51 = vpop.f32.mrb[18].mxu0  ;;  %v899_v54 = vpop.f32.mrb[18].mxu1  ;;  %v1375_v60 = vsel %vm1230_vm1, %v2695_v38, 0.0 }
 0x137   :  { %v1318_v55 = vadd.f32 %v1317_v31, %v1310_v39  ;;  %v1348_v56 = vrot.slane %v1347_v40, 1  ;;  %v1354_v57 = vrot.slane %v1353_v41, 2  ;;  %v859_v61 = vpop.f32.mrb[19].mxu0  ;;  %v900_v62 = vpop.f32.mrb[19].mxu1  ;;  %v1376_v3 = vrot.slane %v1375_v60, 4 }
 0x138   :  { %v1333_v63 = vadd.f32 %v1332_v48, %v1331_v33  ;;  %v1339_v1 = vadd.f32 %v1338_v49, %v1337_v34  ;;  %v1361_v2 = vadd.f32 %v1360_v50, %v1359_v44  ;;  %v1367_v6 = vsel %vm1230_vm1, %v2699_v45, 0.0 }
 0x139   :  { %v1326_v4 = vadd.f32 %v1325_v47, %v1318_v55  ;;  %v1355_v5 = vadd.f32 %v1354_v57, %v1353_v41  ;;  %v1377_v14 = vadd.f32 %v1376_v3, %v1375_v60  ;;  %v1368_v15 = vrot.slane %v1367_v6, 4 }
 0x13a   :  { %v1340_v7 = vrot.slane %v1339_v1, 1  ;;  %v1362_v11 = vrot.slane %v1361_v2, 2  ;;  %v1349_v19 = vadd.f32 %v1348_v56, %v1347_v40  ;;  %v1383_v21 = vsel %vm1230_vm1, %v2701_v46, 0.0 }
 0x13b   :  { %v1334_v17 = vadd.f32 %v1333_v63, %v1326_v4  ;;  %v1356_v20 = vrot.slane %v1355_v5, 1  ;;  %v1378_v24 = vrot.slane %v1377_v14, 2  ;;  %v1369_v25 = vadd.f32 %v1368_v15, %v1367_v6 }
 0x13c   :  { %v1341_v22 = vadd.f32 %v1340_v7, %v1339_v1  ;;  %v1363_v23 = vadd.f32 %v1362_v11, %v1361_v2  ;;  %v2709_v26 = vpop.f32.mrb[20].mxu0  ;;  %v2711_v27 = vpop.f32.mrb[20].mxu1  ;;  %v1384_v29 = vrot.slane %v1383_v21, 4 }
 0x13d   :  { %v1357_v28 = vadd.f32 %v1356_v20, %v1355_v5  ;;  %v1391_v30 = vsel %vm1230_vm1, %v2709_v26, 0.0  ;;  %v1407_v31 = vsel %vm1230_vm1, %v2711_v27, 0.0  ;;  %v2717_v32 = vpop.f32.mrb[21].mxu0  ;;  %v2719_v33 = vpop.f32.mrb[21].mxu1  ;;  %v1379_v40 = vadd.f32 %v1378_v24, %v1377_v14 }
 0x13e   :  { %v1342_v34 = vadd.f32 %v1341_v22, %v1334_v17  ;;  %v1364_v39 = vrot.slane %v1363_v23, 1  ;;  %v1370_v41 = vrot.slane %v1369_v25, 2  ;;  %v940_v44 = vpop.f32.mrb[22].mxu0  ;;  %v981_v47 = vpop.f32.mrb[22].mxu1  ;;  %v1385_v48 = vadd.f32 %v1384_v29, %v1383_v21 }
 0x13f   :  { %v1392_v49 = vrot.slane %v1391_v30, 4  ;;  %v1408_v50 = vrot.slane %v1407_v31, 4  ;;  %v1399_v51 = vsel %vm1230_vm1, %v2717_v32, 0.0  ;;  %v941_v54 = vpop.f32.mrb[23].mxu0  ;;  %v982_v55 = vpop.f32.mrb[23].mxu1  ;;  %v1380_v60 = vrot.slane %v1379_v40, 1 }
 0x140   :  { %v1350_v56 = vadd.f32 %v1349_v19, %v1342_v34  ;;  %v1365_v57 = vadd.f32 %v1364_v39, %v1363_v23  ;;  %v1371_v61 = vadd.f32 %v1370_v41, %v1369_v25  ;;  %v1386_v62 = vrot.slane %v1385_v48, 2 }
 0x141   :  { %v1393_v63 = vadd.f32 %v1392_v49, %v1391_v30  ;;  %v1409_v1 = vadd.f32 %v1408_v50, %v1407_v31  ;;  %v1400_v2 = vrot.slane %v1399_v51, 4  ;;  %v1415_v5 = vsel %vm1230_vm1, %v2719_v33, 0.0 }
 0x142   :  { %v1358_v3 = vadd.f32 %v1357_v28, %v1350_v56  ;;  %v1372_v4 = vrot.slane %v1371_v61, 1  ;;  %v1387_v6 = vadd.f32 %v1386_v62, %v1385_v48  ;;  %v1381_v17 = vadd.f32 %v1380_v60, %v1379_v40 }
 0x143   :  { %v1394_v7 = vrot.slane %v1393_v63, 2  ;;  %v1410_v11 = vrot.slane %v1409_v1, 2  ;;  %v1401_v14 = vadd.f32 %v1400_v2, %v1399_v51  ;;  %v1416_v19 = vrot.slane %v1415_v5, 4 }
 0x144   :  { %v1366_v15 = vadd.f32 %v1365_v57, %v1358_v3  ;;  %v1373_v20 = vadd.f32 %v1372_v4, %v1371_v61  ;;  %v2725_v21 = vpop.f32.mrb[24].mxu0  ;;  %v2727_v22 = vpop.f32.mrb[24].mxu1  ;;  %v1388_v23 = vrot.slane %v1387_v6, 1 }
 0x145   :  { %v1395_v24 = vadd.f32 %v1394_v7, %v1393_v63  ;;  %v1411_v25 = vadd.f32 %v1410_v11, %v1409_v1  ;;  %v1402_v28 = vrot.slane %v1401_v14, 2  ;;  %v2729_v29 = vpop.f32.mrb[25].mxu0  ;;  %v2731_v30 = vpop.f32.mrb[25].mxu1  ;;  %v1417_v34 = vadd.f32 %v1416_v19, %v1415_v5 }
 0x146   :  { %v1374_v31 = vadd.f32 %v1373_v20, %v1366_v15  ;;  %v1423_v39 = vsel %vm1230_vm1, %v2725_v21, 0.0  ;;  %v1439_v40 = vsel %vm1230_vm1, %v2727_v22, 0.0  ;;  %v1022_v41 = vpop.f32.mrb[26].mxu0  ;;  %v1063_v44 = vpop.f32.mrb[26].mxu1  ;;  %v1389_v47 = vadd.f32 %v1388_v23, %v1387_v6 }
 0x147   :  { %v1396_v48 = vrot.slane %v1395_v24, 1  ;;  %v1403_v49 = vadd.f32 %v1402_v28, %v1401_v14  ;;  %v1023_v50 = vpop.f32.mrb[27].mxu0  ;;  %v1064_v51 = vpop.f32.mrb[27].mxu1  ;;  %v1418_v55 = vrot.slane %v1417_v34, 2  ;;  %v1424_v56 = vrot.slane %v1423_v39, 4 }
 0x148   :  { %v1382_v54 = vadd.f32 %v1381_v17, %v1374_v31  ;;  %v1440_v57 = vrot.slane %v1439_v40, 4  ;;  %v1412_v61 = vrot.slane %v1411_v25, 1  ;;  %v1431_v63 = vsel %vm1230_vm1, %v2729_v29, 0.0 }
 0x149   :  { %v1397_v60 = vadd.f32 %v1396_v48, %v1395_v24  ;;  %v1404_v62 = vrot.slane %v1403_v49, 1  ;;  %v1419_v2 = vadd.f32 %v1418_v55, %v1417_v34  ;;  %v1425_v3 = vadd.f32 %v1424_v56, %v1423_v39 }
 0x14a   :  { %v1390_v1 = vadd.f32 %v1389_v47, %v1382_v54  ;;  %v1441_v4 = vadd.f32 %v1440_v57, %v1439_v40  ;;  %v1432_v6 = vrot.slane %v1431_v63, 4  ;;  %v1447_v7 = vsel %vm1230_vm1, %v2731_v30, 0.0 }
 0x14b   :  { %v1405_v5 = vadd.f32 %v1404_v62, %v1403_v49  ;;  %v1420_v14 = vrot.slane %v1419_v2, 1  ;;  %v1426_v15 = vrot.slane %v1425_v3, 2  ;;  %v1448_v24 = vrot.slane %v1447_v7, 4 }
 0x14c   :  { %v1398_v11 = vadd.f32 %v1397_v60, %v1390_v1  ;;  %v1442_v17 = vrot.slane %v1441_v4, 2  ;;  %v2741_v20 = vpop.f32.mrb[28].mxu0  ;;  %v2743_v19 = vpop.f32.mrb[28].mxu1  ;;  %v1433_v23 = vadd.f32 %v1432_v6, %v1431_v63  ;;  %v1413_v40 = vadd.f32 %v1412_v61, %v1411_v25 }
 0x14d   :  { %3098 = vst [vmem:[#allocation13_spill] sm:$0xff] %v2743_v19  ;;  %v1455_v28 = vsel %vm1230_vm1, %v2741_v20, 0.0  ;;  %v1471_v31 = vsel %vm1230_vm1, %v2743_v19, 0.0  ;;  %v2749_v34 = vpop.f32.mrb[29].mxu0  ;;  %v2751_v39 = vpop.f32.mrb[29].mxu1  ;;  %v1427_v44 = vadd.f32 %v1426_v15, %v1425_v3  ;;  %v1449_v51 = vadd.f32 %v1448_v24, %v1447_v7 }
 0x14e   :  { %3099 = vst [vmem:[#allocation14_spill] sm:$0xff] %v2751_v39  ;;  %v1406_v41 = vadd.f32 %v1405_v5, %v1398_v11  ;;  %v1443_v47 = vadd.f32 %v1442_v17, %v1441_v4  ;;  %v1104_v48 = vpop.f32.mrb[30].mxu0  ;;  %v1145_v49 = vpop.f32.mrb[30].mxu1  ;;  %v1434_v50 = vrot.slane %v1433_v23, 2  ;;  %v1456_v54 = vrot.slane %v1455_v28, 4 }
 0x14f   :  { %v1472_v55 = vrot.slane %v1471_v31, 4  ;;  %v1105_v56 = vpop.f32.mrb[31].mxu0  ;;  %v1146_v57 = vpop.f32.mrb[31].mxu1  ;;  %v1421_v62 = vadd.f32 %v1420_v14, %v1419_v2  ;;  %v1428_v63 = vrot.slane %v1427_v44, 1  ;;  %v1463_v1 = vsel %vm1230_vm1, %v2749_v34, 0.0 }
 0x150   :  { %v1414_v60 = vadd.f32 %v1413_v40, %v1406_v41  ;;  %v1435_v6 = vadd.f32 %v1434_v50, %v1433_v23  ;;  %v1450_v19 = vrot.slane %v1449_v51, 2  ;;  %v1457_v25 = vadd.f32 %v1456_v54, %v1455_v28 }
 0x151   :  { %v1473_v61 = vadd.f32 %v1472_v55, %v1471_v31  ;;  %v1429_v4 = vadd.f32 %v1428_v63, %v1427_v44  ;;  %v1444_v5 = vrot.slane %v1443_v47, 1  ;;  %v1464_v11 = vrot.slane %v1463_v1, 4 }
 0x152   :  { %v1422_v3 = vadd.f32 %v1421_v62, %v1414_v60  ;;  %v1436_v15 = vrot.slane %v1435_v6, 1  ;;  %v1451_v7 = vadd.f32 %v1450_v19, %v1449_v51  ;;  %v1458_v17 = vrot.slane %v1457_v25, 2 }
 0x153   :  { %v1474_v24 = vrot.slane %v1473_v61, 2  ;;  %v1465_v49 = vadd.f32 %v1464_v11, %v1463_v1  ;;  %v1479_v2 = vsel %vm1230_vm1, %v2751_v39, 0.0  ;;  %v1445_v60 = vadd.f32 %v1444_v5, %v1443_v47 }
 0x154   :  { %v1430_v48 = vadd.f32 %v1429_v4, %v1422_v3  ;;  %v2757_v14 = vpop.f32.mrb[32].mxu0  ;;  %v2759_v40 = vpop.f32.mrb[32].mxu1  ;;  %v1437_v23 = vadd.f32 %v1436_v15, %v1435_v6  ;;  %v1452_v28 = vrot.slane %v1451_v7, 1  ;;  %v1459_v31 = vadd.f32 %v1458_v17, %v1457_v25 }
 0x155   :  { %3100 = vst [vmem:[#allocation15_spill] sm:$0xff] %v2757_v14  ;;  %3101 = vst [vmem:[#allocation16_spill] sm:$0xff] %v2759_v40  ;;  %v1475_v41 = vadd.f32 %v1474_v24, %v1473_v61  ;;  %v2761_v44 = vpop.f32.mrb[33].mxu0  ;;  %v2763_v50 = vpop.f32.mrb[33].mxu1  ;;  %v1466_v19 = vrot.slane %v1465_v49, 2  ;;  %v1480_v51 = vrot.slane %v1479_v2, 4 }
 0x156   :  { %3102 = vst [vmem:[#allocation17_spill] sm:$0xff] %v2763_v50  ;;  %v1487_v54 = vsel %vm1230_vm1, %v2757_v14, 0.0  ;;  %v1503_v55 = vsel %vm1230_vm1, %v2759_v40, 0.0  ;;  %v1186_v56 = vpop.f32.mrb[34].mxu0  ;;  %v1227_v57 = vpop.f32.mrb[34].mxu1  ;;  %v1438_v62 = vadd.f32 %v1437_v23, %v1430_v48  ;;  %v1453_v63 = vadd.f32 %v1452_v28, %v1451_v7 }
 0x157   :  { %v1460_v1 = vrot.slane %v1459_v31, 1  ;;  %v1187_v6 = vpop.f32.mrb[35].mxu0  ;;  %v1228_v25 = vpop.f32.mrb[35].mxu1  ;;  %v1467_v61 = vadd.f32 %v1466_v19, %v1465_v49  ;;  %v1481_v3 = vadd.f32 %v1480_v51, %v1479_v2  ;;  %v1488_v4 = vrot.slane %v1487_v54, 4 }
 0x158   :  { %v1504_v11 = vrot.slane %v1503_v55, 4  ;;  %v1446_v15 = vadd.f32 %v1445_v60, %v1438_v62  ;;  %v1476_v24 = vrot.slane %v1475_v41, 1  ;;  %v1495_v14 = vsel %vm1230_vm1, %v2761_v44, 0.0 }
 0x159   :  { %v1461_v17 = vadd.f32 %v1460_v1, %v1459_v31  ;;  %v1468_v39 = vrot.slane %v1467_v61, 1  ;;  %v1482_v40 = vrot.slane %v1481_v3, 2  ;;  %v1489_v56 = vadd.f32 %v1488_v4, %v1487_v54 }
 0x15a   :  { %v1505_v57 = vadd.f32 %v1504_v11, %v1503_v55  ;;  %v1454_v47 = vadd.f32 %v1453_v63, %v1446_v15  ;;  %v1496_v5 = vrot.slane %v1495_v14, 4  ;;  %v1511_v7 = vsel %vm1230_vm1, %v2763_v50, 0.0 }
 0x15b   :  { %v1469_v48 = vadd.f32 %v1468_v39, %v1467_v61  ;;  %v1483_v49 = vadd.f32 %v1482_v40, %v1481_v3  ;;  %v1490_v2 = vrot.slane %v1489_v56, 2  ;;  %v1512_v31 = vrot.slane %v1511_v7, 4 }
 0x15c   :  { %v1506_v23 = vrot.slane %v1505_v57, 2  ;;  %v1462_v28 = vadd.f32 %v1461_v17, %v1454_v47  ;;  %v1497_v19 = vadd.f32 %v1496_v5, %v1495_v14  ;;  %v1477_v51 = vadd.f32 %v1476_v24, %v1475_v41 }
 0x15d   :  { %v1484_v60 = vrot.slane %v1483_v49, 1  ;;  %v1491_v62 = vadd.f32 %v1490_v2, %v1489_v56  ;;  %v1513_v54 = vadd.f32 %v1512_v31, %v1511_v7 }
 0x15e   :  { %v1470_v1 = vadd.f32 %v1469_v48, %v1462_v28  ;;  %v1507_v6 = vadd.f32 %v1506_v23, %v1505_v57  ;;  %v1498_v25 = vrot.slane %v1497_v19, 2 }
 0x15f   :  { %v1492_v55 = vrot.slane %v1491_v62, 1  ;;  %v1485_v4 = vadd.f32 %v1484_v60, %v1483_v49  ;;  %v1514_v15 = vrot.slane %v1513_v54, 2 }
 0x160   :  { %v1478_v63 = vadd.f32 %v1477_v51, %v1470_v1  ;;  %v1499_v11 = vadd.f32 %v1498_v25, %v1497_v19  ;;  %v1508_v40 = vrot.slane %v1507_v6, 1 }
 0x161   :  { %v1493_v50 = vadd.f32 %v1492_v55, %v1491_v62  ;;  %v1515_v3 = vadd.f32 %v1514_v15, %v1513_v54 }
 0x162   :  { %v1486_v39 = vadd.f32 %v1485_v4, %v1478_v63  ;;  %v1500_v61 = vrot.slane %v1499_v11, 1  ;;  %v1509_v41 = vadd.f32 %v1508_v40, %v1507_v6 }
 0x163   :  { %v1516_v47 = vrot.slane %v1515_v3, 1 }
 0x164   :  { %v1494_v17 = vadd.f32 %v1493_v50, %v1486_v39  ;;  %v1501_v14 = vadd.f32 %v1500_v61, %v1499_v11 }
 0x165   :  { %v1517_v5 = vadd.f32 %v1516_v47, %v1515_v3 }
 0x166   :  { %v1502_v24 = vadd.f32 %v1501_v14, %v1494_v17 }
 0x168   :  { %v1510_v56 = vadd.f32 %v1509_v41, %v1502_v24 }
 0x16a   :  { %v1518_v57 = vadd.f32 %v1517_v5, %v1510_v56 }
 0x16c   :  { %v2773_v48 = vmul.f32 0.013888889, %v1518_v57 }
 0x16e   :  { %v1521_v7 = vsub.f32 %v2629_v12, %v2773_v48  ;;  %v1531_v49 = vsub.f32 %v2637_v0, %v2773_v48  ;;  %v1541_v2 = vsub.f32 %v2631_v13, %v2773_v48  ;;  %v1551_v50 = vsub.f32 %v2639_v16, %v2773_v48 }
 0x16f   :  { %v1561_v23 = vsub.f32 %v2645_v36, %v2773_v48  ;;  %v1571_v28 = vsub.f32 %v2653_v42, %v2773_v48  ;;  %v1581_v19 = vsub.f32 %v2647_v37, %v2773_v48  ;;  %v1591_v31 = vsub.f32 %v2655_v43, %v2773_v48 }
 0x170   :  { %v1522_v51 = vmul.f32 %v1521_v7, %v1521_v7  ;;  %v1532_v60 = vmul.f32 %v1531_v49, %v1531_v49  ;;  %v1542_v62 = vmul.f32 %v1541_v2, %v1541_v2  ;;  %v1552_v1 = vmul.f32 %v1551_v50, %v1551_v50 }
 0x171   :  { %v1562_v6 = vmul.f32 %v1561_v23, %v1561_v23  ;;  %v1572_v25 = vmul.f32 %v1571_v28, %v1571_v28  ;;  %v1582_v54 = vmul.f32 %v1581_v19, %v1581_v19  ;;  %v1592_v55 = vmul.f32 %v1591_v31, %v1591_v31 }
 0x172   :  { %v1523_v63 = vsel %vm1230_vm1, %v1522_v51, 0.0  ;;  %v1533_v4 = vsel %vm1230_vm1, %v1532_v60, 0.0  ;;  %v1543_v11 = vsel %vm1230_vm1, %v1542_v62, 0.0  ;;  %v1553_v15 = vsel %vm1230_vm1, %v1552_v1, 0.0 }
 0x173   :  { %v1524_v39 = vrot.slane %v1523_v63, 4  ;;  %v1534_v40 = vrot.slane %v1533_v4, 4  ;;  %v1544_v61 = vrot.slane %v1543_v11, 4  ;;  %v1554_v3 = vrot.slane %v1553_v15, 4 }
 0x174   :  { %v1563_v17 = vsel %vm1230_vm1, %v1562_v6, 0.0  ;;  %v1573_v14 = vsel %vm1230_vm1, %v1572_v25, 0.0  ;;  %v1583_v47 = vsel %vm1230_vm1, %v1582_v54, 0.0  ;;  %v1593_v41 = vsel %vm1230_vm1, %v1592_v55, 0.0 }
 0x175   :  { %v1525_v24 = vadd.f32 %v1524_v39, %v1523_v63  ;;  %v1535_v56 = vadd.f32 %v1534_v40, %v1533_v4  ;;  %v1545_v5 = vadd.f32 %v1544_v61, %v1543_v11  ;;  %v1555_v57 = vadd.f32 %v1554_v3, %v1553_v15 }
 0x176   :  { %v1564_v7 = vrot.slane %v1563_v17, 4  ;;  %v1574_v49 = vrot.slane %v1573_v14, 4  ;;  %v1584_v2 = vrot.slane %v1583_v47, 4  ;;  %v1594_v50 = vrot.slane %v1593_v41, 4 }
 0x177   :  { %v1526_v23 = vrot.slane %v1525_v24, 2  ;;  %v1536_v28 = vrot.slane %v1535_v56, 2  ;;  %v1546_v19 = vrot.slane %v1545_v5, 2  ;;  %v1556_v31 = vrot.slane %v1555_v57, 2 }
 0x178   :  { %v1565_v51 = vadd.f32 %v1564_v7, %v1563_v17  ;;  %v1575_v60 = vadd.f32 %v1574_v49, %v1573_v14  ;;  %v1585_v62 = vadd.f32 %v1584_v2, %v1583_v47  ;;  %v1595_v1 = vadd.f32 %v1594_v50, %v1593_v41 }
 0x179   :  { %v1527_v6 = vadd.f32 %v1526_v23, %v1525_v24  ;;  %v1537_v25 = vadd.f32 %v1536_v28, %v1535_v56  ;;  %v1547_v54 = vadd.f32 %v1546_v19, %v1545_v5  ;;  %v1557_v55 = vadd.f32 %v1556_v31, %v1555_v57 }
 0x17a   :  { %v1566_v63 = vrot.slane %v1565_v51, 2  ;;  %v1576_v4 = vrot.slane %v1575_v60, 2  ;;  %v1586_v11 = vrot.slane %v1585_v62, 2  ;;  %v1596_v15 = vrot.slane %v1595_v1, 2 }
 0x17b   :  { %v1528_v39 = vrot.slane %v1527_v6, 1  ;;  %v1538_v40 = vrot.slane %v1537_v25, 1  ;;  %v1548_v61 = vrot.slane %v1547_v54, 1  ;;  %v1558_v3 = vrot.slane %v1557_v55, 1 }
 0x17c   :  { %v1567_v43 = vadd.f32 %v1566_v63, %v1565_v51  ;;  %v1577_v37 = vadd.f32 %v1576_v4, %v1575_v60  ;;  %v1587_v42 = vadd.f32 %v1586_v11, %v1585_v62  ;;  %v1597_v36 = vadd.f32 %v1596_v15, %v1595_v1 }
 0x17d   :  { %v1529_v17 = vadd.f32 %v1528_v39, %v1527_v6  ;;  %v1539_v14 = vadd.f32 %v1538_v40, %v1537_v25  ;;  %v1549_v47 = vadd.f32 %v1548_v61, %v1547_v54  ;;  %v1559_v41 = vadd.f32 %v1558_v3, %v1557_v55 }
 0x17e   :  { %v1568_v24 = vrot.slane %v1567_v43, 1  ;;  %v1578_v56 = vrot.slane %v1577_v37, 1  ;;  %v1588_v5 = vrot.slane %v1587_v42, 1  ;;  %v1598_v57 = vrot.slane %v1597_v36, 1 }
 0x17f   :  { %v1540_v7 = vadd.f32 %v1539_v14, %v1529_v17  ;;  %v1601_v49 = vsub.f32 %v2661_v8, %v2773_v48  ;;  %v1611_v2 = vsub.f32 %v2667_v18, %v2773_v48  ;;  %v1621_v50 = vsub.f32 %v2663_v10, %v2773_v48 }
 0x180   :  { %v1569_v23 = vadd.f32 %v1568_v24, %v1567_v43  ;;  %v1579_v28 = vadd.f32 %v1578_v56, %v1577_v37  ;;  %v1589_v19 = vadd.f32 %v1588_v5, %v1587_v42  ;;  %v1599_v31 = vadd.f32 %v1598_v57, %v1597_v36 }
 0x181   :  { %v1550_v51 = vadd.f32 %v1549_v47, %v1540_v7  ;;  %v1602_v60 = vmul.f32 %v1601_v49, %v1601_v49  ;;  %v1612_v62 = vmul.f32 %v1611_v2, %v1611_v2  ;;  %v1622_v1 = vmul.f32 %v1621_v50, %v1621_v50 }
 0x182   :  { %v1631_v6 = vsub.f32 %v2669_v9, %v2773_v48  ;;  %v1641_v25 = vsub.f32 %v2677_v52, %v2773_v48  ;;  %v1651_v54 = vsub.f32 %v2683_v58, %v2773_v48  ;;  %v1661_v55 = vsub.f32 %v2679_v53, %v2773_v48 }
 0x183   :  { %v1560_v43 = vadd.f32 %v1559_v41, %v1550_v51  ;;  %v1603_v37 = vsel %vm1230_vm1, %v1602_v60, 0.0  ;;  %v1613_v36 = vsel %vm1230_vm1, %v1612_v62, 0.0  ;;  %v1623_v42 = vsel %vm1230_vm1, %v1622_v1, 0.0 }
 0x184   :  { %v1604_v63 = vrot.slane %v1603_v37, 4  ;;  %v1614_v4 = vrot.slane %v1613_v36, 4  ;;  %v1624_v11 = vrot.slane %v1623_v42, 4  ;;  %v1632_v15 = vmul.f32 %v1631_v6, %v1631_v6 }
 0x185   :  { %v1570_v39 = vadd.f32 %v1569_v23, %v1560_v43  ;;  %v1642_v40 = vmul.f32 %v1641_v25, %v1641_v25  ;;  %v1652_v61 = vmul.f32 %v1651_v54, %v1651_v54  ;;  %v1662_v3 = vmul.f32 %v1661_v55, %v1661_v55 }
 0x186   :  { %v1605_v17 = vadd.f32 %v1604_v63, %v1603_v37  ;;  %v1615_v14 = vadd.f32 %v1614_v4, %v1613_v36  ;;  %v1625_v47 = vadd.f32 %v1624_v11, %v1623_v42  ;;  %v1633_v24 = vsel %vm1230_vm1, %v1632_v15, 0.0 }
 0x187   :  { %v1580_v41 = vadd.f32 %v1579_v28, %v1570_v39  ;;  %v1634_v56 = vrot.slane %v1633_v24, 4  ;;  %v1643_v5 = vsel %vm1230_vm1, %v1642_v40, 0.0  ;;  %v1653_v57 = vsel %vm1230_vm1, %v1652_v61, 0.0 }
 0x188   :  { %v1606_v7 = vrot.slane %v1605_v17, 2  ;;  %v1616_v49 = vrot.slane %v1615_v14, 2  ;;  %v1626_v2 = vrot.slane %v1625_v47, 2  ;;  %v1644_v50 = vrot.slane %v1643_v5, 4 }
 0x189   :  { %v1590_v51 = vadd.f32 %v1589_v19, %v1580_v41  ;;  %v1635_v23 = vadd.f32 %v1634_v56, %v1633_v24  ;;  %v1654_v60 = vrot.slane %v1653_v57, 4  ;;  %v1663_v62 = vsel %vm1230_vm1, %v1662_v3, 0.0 }
 0x18a   :  { %v1607_v1 = vadd.f32 %v1606_v7, %v1605_v17  ;;  %v1617_v6 = vadd.f32 %v1616_v49, %v1615_v14  ;;  %v1627_v25 = vadd.f32 %v1626_v2, %v1625_v47  ;;  %v1645_v54 = vadd.f32 %v1644_v50, %v1643_v5 }
 0x18b   :  { %v1600_v55 = vadd.f32 %v1599_v31, %v1590_v51  ;;  %v1636_v28 = vrot.slane %v1635_v23, 2  ;;  %v1655_v43 = vadd.f32 %v1654_v60, %v1653_v57  ;;  %v1664_v37 = vrot.slane %v1663_v62, 4 }
 0x18c   :  { %v1608_v36 = vrot.slane %v1607_v1, 1  ;;  %v1618_v42 = vrot.slane %v1617_v6, 1  ;;  %v1628_v63 = vrot.slane %v1627_v25, 1  ;;  %v1646_v4 = vrot.slane %v1645_v54, 2 }
 0x18d   :  { %v1637_v11 = vadd.f32 %v1636_v28, %v1635_v23  ;;  %v1656_v15 = vrot.slane %v1655_v43, 2  ;;  %v1665_v39 = vadd.f32 %v1664_v37, %v1663_v62  ;;  %v1671_v19 = vsub.f32 %v2685_v59, %v2773_v48 }
 0x18e   :  { %v1609_v40 = vadd.f32 %v1608_v36, %v1607_v1  ;;  %v1619_v61 = vadd.f32 %v1618_v42, %v1617_v6  ;;  %v1629_v3 = vadd.f32 %v1628_v63, %v1627_v25  ;;  %v1647_v17 = vadd.f32 %v1646_v4, %v1645_v54 }
 0x18f   :  { %v1638_v14 = vrot.slane %v1637_v11, 1  ;;  %v1657_v47 = vadd.f32 %v1656_v15, %v1655_v43  ;;  %v1666_v31 = vrot.slane %v1665_v39, 2  ;;  %v1672_v24 = vmul.f32 %v1671_v19, %v1671_v19 }
 0x190   :  { %v1610_v41 = vadd.f32 %v1609_v40, %v1600_v55  ;;  %v1648_v56 = vrot.slane %v1647_v17, 1  ;;  %v1681_v5 = vsub.f32 %v2693_v35, %v2773_v48  ;;  %v1691_v57 = vsub.f32 %v2699_v45, %v2773_v48 }
 0x191   :  { %v1639_v7 = vadd.f32 %v1638_v14, %v1637_v11  ;;  %v1658_v49 = vrot.slane %v1657_v47, 1  ;;  %v1667_v2 = vadd.f32 %v1666_v31, %v1665_v39  ;;  %v1673_v50 = vsel %vm1230_vm1, %v1672_v24, 0.0 }
 0x192   :  { %v1620_v51 = vadd.f32 %v1619_v61, %v1610_v41  ;;  %v1649_v23 = vadd.f32 %v1648_v56, %v1647_v17  ;;  %v1674_v60 = vrot.slane %v1673_v50, 4  ;;  %v1682_v62 = vmul.f32 %v1681_v5, %v1681_v5 }
 0x193   :  { %v1659_v1 = vadd.f32 %v1658_v49, %v1657_v47  ;;  %v1668_v6 = vrot.slane %v1667_v2, 1  ;;  %v1692_v25 = vmul.f32 %v1691_v57, %v1691_v57  ;;  %v1701_v54 = vsub.f32 %v2695_v38, %v2773_v48 }
 0x194   :  { %v1630_v55 = vadd.f32 %v1629_v3, %v1620_v51  ;;  %v1675_v28 = vadd.f32 %v1674_v60, %v1673_v50  ;;  %v1683_v43 = vsel %vm1230_vm1, %v1682_v62, 0.0  ;;  %v1711_v37 = vsub.f32 %v2701_v46, %v2773_v48 }
 0x195   :  { %v1669_v36 = vadd.f32 %v1668_v6, %v1667_v2  ;;  %v1684_v42 = vrot.slane %v1683_v43, 4  ;;  %v1693_v63 = vsel %vm1230_vm1, %v1692_v25, 0.0  ;;  %v1702_v4 = vmul.f32 %v1701_v54, %v1701_v54 }
 0x196   :  { %v1640_v11 = vadd.f32 %v1639_v7, %v1630_v55  ;;  %v1676_v15 = vrot.slane %v1675_v28, 2  ;;  %v1694_v39 = vrot.slane %v1693_v63, 4  ;;  %v1712_v19 = vmul.f32 %v1711_v37, %v1711_v37 }
 0x197   :  { %v1685_v40 = vadd.f32 %v1684_v42, %v1683_v43  ;;  %v1703_v61 = vsel %vm1230_vm1, %v1702_v4, 0.0  ;;  %v1721_v3 = vsub.f32 %v2709_v26, %v2773_v48  ;;  %v1731_v17 = vsub.f32 %v2717_v32, %v2773_v48 }
 0x198   :  { %v1650_v14 = vadd.f32 %v1649_v23, %v1640_v11  ;;  %v1677_v47 = vadd.f32 %v1676_v15, %v1675_v28  ;;  %v1695_v31 = vadd.f32 %v1694_v39, %v1693_v63  ;;  %v1704_v24 = vrot.slane %v1703_v61, 4 }
 0x199   :  { %v1686_v41 = vrot.slane %v1685_v40, 2  ;;  %v1713_v56 = vsel %vm1230_vm1, %v1712_v19, 0.0  ;;  %v1722_v5 = vmul.f32 %v1721_v3, %v1721_v3  ;;  %v1732_v57 = vmul.f32 %v1731_v17, %v1731_v17 }
 0x19a   :  { %v1660_v7 = vadd.f32 %v1659_v1, %v1650_v14  ;;  %v1678_v49 = vrot.slane %v1677_v47, 1  ;;  %v1696_v2 = vrot.slane %v1695_v31, 2  ;;  %v1705_v50 = vadd.f32 %v1704_v24, %v1703_v61 }
 0x19b   :  { %v1687_v51 = vadd.f32 %v1686_v41, %v1685_v40  ;;  %v1714_v60 = vrot.slane %v1713_v56, 4  ;;  %v1723_v62 = vsel %vm1230_vm1, %v1722_v5, 0.0  ;;  %v1733_v6 = vsel %vm1230_vm1, %v1732_v57, 0.0 }
 0x19c   :  { %v1670_v25 = vadd.f32 %v1669_v36, %v1660_v7  ;;  %v1679_v23 = vadd.f32 %v1678_v49, %v1677_v47  ;;  %v1697_v54 = vadd.f32 %v1696_v2, %v1695_v31  ;;  %v1706_v55 = vrot.slane %v1705_v50, 2 }
 0x19d   :  { %v1688_v28 = vrot.slane %v1687_v51, 1  ;;  %v1715_v43 = vadd.f32 %v1714_v60, %v1713_v56  ;;  %v1724_v37 = vrot.slane %v1723_v62, 4  ;;  %v1734_v42 = vrot.slane %v1733_v6, 4 }
 0x19e   :  { %v1680_v63 = vadd.f32 %v1679_v23, %v1670_v25  ;;  %v1698_v4 = vrot.slane %v1697_v54, 1  ;;  %v1707_v1 = vadd.f32 %v1706_v55, %v1705_v50  ;;  %v1741_v11 = vsub.f32 %v2711_v27, %v2773_v48 }
 0x19f   :  { %v1689_v15 = vadd.f32 %v1688_v28, %v1687_v51  ;;  %v1716_v39 = vrot.slane %v1715_v43, 2  ;;  %v1725_v19 = vadd.f32 %v1724_v37, %v1723_v62  ;;  %v1735_v40 = vadd.f32 %v1734_v42, %v1733_v6 }
 0x1a0   :  { %v1699_v61 = vadd.f32 %v1698_v4, %v1697_v54  ;;  %v1708_v3 = vrot.slane %v1707_v1, 1  ;;  %v1742_v36 = vmul.f32 %v1741_v11, %v1741_v11  ;;  %v1751_v17 = vsub.f32 %v2719_v33, %v2773_v48 }
 0x1a1   :  { %v1690_v14 = vadd.f32 %v1689_v15, %v1680_v63  ;;  %v1717_v47 = vadd.f32 %v1716_v39, %v1715_v43  ;;  %v1726_v31 = vrot.slane %v1725_v19, 2  ;;  %v1736_v24 = vrot.slane %v1735_v40, 2 }
 0x1a2   :  { %v1709_v41 = vadd.f32 %v1708_v3, %v1707_v1  ;;  %v1743_v56 = vsel %vm1230_vm1, %v1742_v36, 0.0  ;;  %v1752_v5 = vmul.f32 %v1751_v17, %v1751_v17  ;;  %v1761_v57 = vsub.f32 %v2725_v21, %v2773_v48 }
 0x1a3   :  { %v1700_v7 = vadd.f32 %v1699_v61, %v1690_v14  ;;  %v1718_v49 = vrot.slane %v1717_v47, 1  ;;  %v1727_v2 = vadd.f32 %v1726_v31, %v1725_v19  ;;  %v1737_v50 = vadd.f32 %v1736_v24, %v1735_v40 }
 0x1a4   :  { %v1744_v51 = vrot.slane %v1743_v56, 4  ;;  %v1753_v60 = vsel %vm1230_vm1, %v1752_v5, 0.0  ;;  %v1762_v62 = vmul.f32 %v1761_v57, %v1761_v57  ;;  %v1771_v6 = vsub.f32 %v2729_v29, %v2773_v48 }
 0x1a5   :  { %v1710_v25 = vadd.f32 %v1709_v41, %v1700_v7  ;;  %v1719_v23 = vadd.f32 %v1718_v49, %v1717_v47  ;;  %v1728_v54 = vrot.slane %v1727_v2, 1  ;;  %v1738_v55 = vrot.slane %v1737_v50, 1 }
 0x1a6   :  { %v1745_v28 = vadd.f32 %v1744_v51, %v1743_v56  ;;  %v1754_v43 = vrot.slane %v1753_v60, 4  ;;  %v1763_v37 = vsel %vm1230_vm1, %v1762_v62, 0.0  ;;  %v1772_v42 = vmul.f32 %v1771_v6, %v1771_v6 }
 0x1a7   :  { %v1720_v63 = vadd.f32 %v1719_v23, %v1710_v25  ;;  %v1729_v4 = vadd.f32 %v1728_v54, %v1727_v2  ;;  %v1739_v1 = vadd.f32 %v1738_v55, %v1737_v50  ;;  %v1764_v11 = vrot.slane %v1763_v37, 4 }
 0x1a8   :  { %v1746_v15 = vrot.slane %v1745_v28, 2  ;;  %v1755_v39 = vadd.f32 %v1754_v43, %v1753_v60  ;;  %v1773_v19 = vsel %vm1230_vm1, %v1772_v42, 0.0  ;;  %v1781_v40 = vsub.f32 %v2727_v22, %v2773_v48 }
 0x1a9   :  { %v1730_v61 = vadd.f32 %v1729_v4, %v1720_v63  ;;  %v1765_v3 = vadd.f32 %v1764_v11, %v1763_v37  ;;  %v1774_v36 = vrot.slane %v1773_v19, 4  ;;  %v1791_v17 = vsub.f32 %v2731_v30, %v2773_v48 }
 0x1aa   :  { %v1747_v14 = vadd.f32 %v1746_v15, %v1745_v28  ;;  %v1756_v47 = vrot.slane %v1755_v39, 2  ;;  %v1782_v31 = vmul.f32 %v1781_v40, %v1781_v40  ;;  %v1801_v24 = vsub.f32 %v2741_v20, %v2773_v48 }
 0x1ab   :  { %v1740_v41 = vadd.f32 %v1739_v1, %v1730_v61  ;;  %v1766_v56 = vrot.slane %v1765_v3, 2  ;;  %v1775_v5 = vadd.f32 %v1774_v36, %v1773_v19  ;;  %v1792_v57 = vmul.f32 %v1791_v17, %v1791_v17  ;;  %v3103_v17 = vld [vmem:[#allocation13_spill] sm:$0xff] }
 0x1ac   :  { %v1748_v7 = vrot.slane %v1747_v14, 1  ;;  %v1757_v49 = vadd.f32 %v1756_v47, %v1755_v39  ;;  %v1783_v2 = vsel %vm1230_vm1, %v1782_v31, 0.0  ;;  %v1802_v50 = vmul.f32 %v1801_v24, %v1801_v24 }
 0x1ad   :  { %v1767_v51 = vadd.f32 %v1766_v56, %v1765_v3  ;;  %v1776_v60 = vrot.slane %v1775_v5, 2  ;;  %v1784_v62 = vrot.slane %v1783_v2, 4  ;;  %v1793_v6 = vsel %vm1230_vm1, %v1792_v57, 0.0 }
 0x1ae   :  { %v1749_v25 = vadd.f32 %v1748_v7, %v1747_v14  ;;  %v1758_v23 = vrot.slane %v1757_v49, 1  ;;  %v1794_v54 = vrot.slane %v1793_v6, 4  ;;  %v1803_v55 = vsel %vm1230_vm1, %v1802_v50, 0.0 }
 0x1af   :  { %v1768_v28 = vrot.slane %v1767_v51, 1  ;;  %v1777_v43 = vadd.f32 %v1776_v60, %v1775_v5  ;;  %v1785_v37 = vadd.f32 %v1784_v62, %v1783_v2  ;;  %v1804_v42 = vrot.slane %v1803_v55, 4 }
 0x1b0   :  { %v1750_v63 = vadd.f32 %v1749_v25, %v1740_v41  ;;  %v1759_v4 = vadd.f32 %v1758_v23, %v1757_v49  ;;  %v1795_v1 = vadd.f32 %v1794_v54, %v1793_v6  ;;  %v1811_v11 = vsub.f32 %v2749_v34, %v2773_v48  ;;  %v3104_v41 = vld [vmem:[#allocation14_spill] sm:$0xff]  ;;  %v3105_v23 = vld [vmem:[#allocation15_spill] sm:$0xff] }
 0x1b1   :  { %v1769_v15 = vadd.f32 %v1768_v28, %v1767_v51  ;;  %v1778_v39 = vrot.slane %v1777_v43, 1  ;;  %v1786_v19 = vrot.slane %v1785_v37, 2  ;;  %v1805_v40 = vadd.f32 %v1804_v42, %v1803_v55 }
 0x1b2   :  { %v1760_v61 = vadd.f32 %v1759_v4, %v1750_v63  ;;  %v1796_v3 = vrot.slane %v1795_v1, 2  ;;  %v1812_v36 = vmul.f32 %v1811_v11, %v1811_v11  ;;  %v1821_v14 = vsub.f32 %v3103_v17, %v2773_v48 }
 0x1b3   :  { %v1779_v47 = vadd.f32 %v1778_v39, %v1777_v43  ;;  %v1787_v31 = vadd.f32 %v1786_v19, %v1785_v37  ;;  %v1806_v24 = vrot.slane %v1805_v40, 2  ;;  %v1831_v56 = vsub.f32 %v3104_v41, %v2773_v48 }
 0x1b4   :  { %v1770_v5 = vadd.f32 %v1769_v15, %v1760_v61  ;;  %v1797_v57 = vadd.f32 %v1796_v3, %v1795_v1  ;;  %v1813_v7 = vsel %vm1230_vm1, %v1812_v36, 0.0  ;;  %v1822_v49 = vmul.f32 %v1821_v14, %v1821_v14  ;;  %v3106_v36 = vld [vmem:[#allocation16_spill] sm:$0xff] }
 0x1b5   :  { %v1788_v2 = vrot.slane %v1787_v31, 1  ;;  %v1807_v50 = vadd.f32 %v1806_v24, %v1805_v40  ;;  %v1814_v51 = vrot.slane %v1813_v7, 4  ;;  %v1832_v60 = vmul.f32 %v1831_v56, %v1831_v56 }
 0x1b6   :  { %v1780_v62 = vadd.f32 %v1779_v47, %v1770_v5  ;;  %v1798_v6 = vrot.slane %v1797_v57, 1  ;;  %v1823_v25 = vsel %vm1230_vm1, %v1822_v49, 0.0  ;;  %v1841_v54 = vsub.f32 %v3105_v23, %v2773_v48  ;;  %v3107_v49 = vld [vmem:[#allocation17_spill] sm:$0xff] }
 0x1b7   :  { %v1789_v55 = vadd.f32 %v1788_v2, %v1787_v31  ;;  %v1808_v28 = vrot.slane %v1807_v50, 1  ;;  %v1815_v43 = vadd.f32 %v1814_v51, %v1813_v7  ;;  %v1824_v37 = vrot.slane %v1823_v25, 4 }
 0x1b8   :  { %v1799_v42 = vadd.f32 %v1798_v6, %v1797_v57  ;;  %v1833_v63 = vsel %vm1230_vm1, %v1832_v60, 0.0  ;;  %v1842_v4 = vmul.f32 %v1841_v54, %v1841_v54  ;;  %v1851_v1 = vsub.f32 %v2761_v44, %v2773_v48 }
 0x1b9   :  { %v1790_v11 = vadd.f32 %v1789_v55, %v1780_v62  ;;  %v1809_v15 = vadd.f32 %v1808_v28, %v1807_v50  ;;  %v1816_v39 = vrot.slane %v1815_v43, 2  ;;  %v1825_v19 = vadd.f32 %v1824_v37, %v1823_v25 }
 0x1ba   :  { %v1834_v40 = vrot.slane %v1833_v63, 4  ;;  %v1843_v61 = vsel %vm1230_vm1, %v1842_v4, 0.0  ;;  %v1852_v3 = vmul.f32 %v1851_v1, %v1851_v1  ;;  %v1861_v14 = vsub.f32 %v3106_v36, %v2773_v48 }
 0x1bb   :  { %v1800_v47 = vadd.f32 %v1799_v42, %v1790_v11  ;;  %v1817_v31 = vadd.f32 %v1816_v39, %v1815_v43  ;;  %v1826_v24 = vrot.slane %v1825_v19, 2  ;;  %v1844_v56 = vrot.slane %v1843_v61, 4 }
 0x1bc   :  { %v1835_v5 = vadd.f32 %v1834_v40, %v1833_v63  ;;  %v1853_v57 = vsel %vm1230_vm1, %v1852_v3, 0.0  ;;  %v1862_v7 = vmul.f32 %v1861_v14, %v1861_v14  ;;  %v1871_v2 = vsub.f32 %v3107_v49, %v2773_v48 }
 0x1bd   :  { %v1810_v50 = vadd.f32 %v1809_v15, %v1800_v47  ;;  %v1818_v51 = vrot.slane %v1817_v31, 1  ;;  %v1827_v60 = vadd.f32 %v1826_v24, %v1825_v19  ;;  %v1845_v62 = vadd.f32 %v1844_v56, %v1843_v61 }
 0x1be   :  { %v1836_v6 = vrot.slane %v1835_v5, 2  ;;  %v1854_v25 = vrot.slane %v1853_v57, 4  ;;  %v1863_v54 = vsel %vm1230_vm1, %v1862_v7, 0.0  ;;  %v1872_v55 = vmul.f32 %v1871_v2, %v1871_v2 }
 0x1bf   :  { %v1819_v28 = vadd.f32 %v1818_v51, %v1817_v31  ;;  %v1828_v43 = vrot.slane %v1827_v60, 1  ;;  %v1846_v37 = vrot.slane %v1845_v62, 2  ;;  %v1864_v42 = vrot.slane %v1863_v54, 4 }
 0x1c0   :  { %v1837_v63 = vadd.f32 %v1836_v6, %v1835_v5  ;;  %v1855_v4 = vadd.f32 %v1854_v25, %v1853_v57  ;;  %v1873_v1 = vsel %vm1230_vm1, %v1872_v55, 0.0 }
 0x1c1   :  { %v1820_v11 = vadd.f32 %v1819_v28, %v1810_v50  ;;  %v1829_v39 = vadd.f32 %v1828_v43, %v1827_v60  ;;  %v1847_v40 = vadd.f32 %v1846_v37, %v1845_v62  ;;  %v1865_v15 = vadd.f32 %v1864_v42, %v1863_v54 }
 0x1c2   :  { %v1838_v3 = vrot.slane %v1837_v63, 1  ;;  %v1856_v19 = vrot.slane %v1855_v4, 2  ;;  %v1874_v61 = vrot.slane %v1873_v1, 4 }
 0x1c3   :  { %v1830_v14 = vadd.f32 %v1829_v39, %v1820_v11  ;;  %v1848_v47 = vrot.slane %v1847_v40, 1  ;;  %v1866_v24 = vrot.slane %v1865_v15, 2 }
 0x1c4   :  { %v1839_v56 = vadd.f32 %v1838_v3, %v1837_v63  ;;  %v1857_v7 = vadd.f32 %v1856_v19, %v1855_v4  ;;  %v1875_v31 = vadd.f32 %v1874_v61, %v1873_v1  ;;  %v1889_v63 = vlaneseq  ;;  %v1884_v1 = vld [vmem:[#allocation4] sm:$0x1] }
 0x1c5   :  { %v1867_v2 = vadd.f32 %v1866_v24, %v1865_v15  ;;  %v1849_v49 = vadd.f32 %v1848_v47, %v1847_v40  ;;  %v2501_v15 = vmov 1983009808  }
 0x1c6   :  { %v1840_v51 = vadd.f32 %v1839_v56, %v1830_v14  ;;  %v1858_v5 = vrot.slane %v1857_v7, 1  ;;  %v1876_v57 = vrot.slane %v1875_v31, 2  ;;  %v1890_v4 = vshrl.u32 %v1889_v63, 7 }
 0x1c7   :  { %v1868_v6 = vrot.slane %v1867_v2, 1  ;;  %v2044_v3 = vunpack.c.l.s4 %v2501_v15 }
 0x1c8   :  { %v1850_v25 = vadd.f32 %v1849_v49, %v1840_v51  ;;  %v1859_v50 = vadd.f32 %v1858_v5, %v1857_v7  ;;  %v1877_v60 = vadd.f32 %v1876_v57, %v1875_v31  ;;  %v1891_v39 = vsub.s32 0, %v1890_v4  ;;  %v1886_v49 = vld [vmem:[#allocation6] sm:$0x1]  ;;  %v3108_v51 = vld [vmem:[#allocation9_spill] sm:$0xff]  ;;  %v3109_v57 = vld [vmem:[#allocation11_spill] sm:$0xff] }
 0x1c9   :  { %v1869_v54 = vadd.f32 %v1868_v6, %v1867_v2  ;;  %v2045_v47 = vunpack.c.0.s8 %v2044_v3 }
 0x1ca   :  { %v1860_v62 = vadd.f32 %v1859_v50, %v1850_v25  ;;  %v1878_v55 = vrot.slane %v1877_v60, 1  ;;  %v3110_v25 = vld [vmem:[#allocation10_spill] sm:$0xff] }
 0x1cc   :  { %v1870_v28 = vadd.f32 %v1869_v54, %v1860_v62  ;;  %v1879_v43 = vadd.f32 %v1878_v55, %v1877_v60  ;;  %v3111_v60 = vld [vmem:[#allocation12_spill] sm:$0xff] }
 0x1ce   :  { %v1880_v37 = vadd.f32 %v1879_v43, %v1870_v28 }
 0x1d0   :  { %v1881_v42 = vmul.f32 0.013888889, %v1880_v37 }
 0x1d2   :  { %v1882_v11 = vadd.f32 1e-05, %v1881_v42  ;;  %v3112_v42 = vld [vmem:[#allocation17_spill] sm:$0xff] }
 0x1d4   :  { %2423 = vrsqrt.f32 %v1882_v11 }
 0x1de   :  { %v2424_v40 = vpop.eup %2423 }
 0x1df   :  { %v1885_v19 = vmul.f32 %v2424_v40, %v1884_v1 }
 0x1e1   :  { %v1887_v61 = vmul.f32 %v1885_v19, %v2773_v48  ;;  %v1892_v14 = vrot.slane %v1885_v19, %v1891_v39 }
 0x1e3   :  { %v1888_v24 = vsub.f32 %v1886_v49, %v1887_v61  ;;  %v1893_v56 = vmul.f32 %v1892_v14, %v2629_v12  ;;  %v1894_v7 = vmul.f32 %v1892_v14, %v2637_v0  ;;  %v1895_v31 = vmul.f32 %v1892_v14, %v2631_v13 }
 0x1e4   :  { %v1896_v2 = vmul.f32 %v1892_v14, %v2639_v16  ;;  %v1897_v5 = vmul.f32 %v1892_v14, %v3108_v51  ;;  %v1898_v6 = vmul.f32 %v1892_v14, %v3109_v57  ;;  %v1899_v50 = vmul.f32 %v1892_v14, %v3110_v25 }
 0x1e5   :  { %v1900_v62 = vmul.f32 %v1892_v14, %v3111_v60  ;;  %v1901_v48 = vmul.f32 %v1892_v14, %v2661_v8  ;;  %v1902_v54 = vmul.f32 %v1892_v14, %v2667_v18  ;;  %v1903_v12 = vmul.f32 %v1892_v14, %v2663_v10 }
 0x1e6   :  { %v1904_v0 = vmul.f32 %v1892_v14, %v2669_v9  ;;  %v1905_v13 = vmul.f32 %v1892_v14, %v2677_v52  ;;  %v1906_v16 = vmul.f32 %v1892_v14, %v2683_v58  ;;  %v1907_v55 = vmul.f32 %v1892_v14, %v2679_v53 }
 0x1e7   :  { %v1908_v28 = vmul.f32 %v1892_v14, %v2685_v59  ;;  %v1909_v43 = vmul.f32 %v1892_v14, %v2693_v35  ;;  %v1910_v37 = vmul.f32 %v1892_v14, %v2699_v45  ;;  %v1911_v8 = vmul.f32 %v1892_v14, %v2695_v38 }
 0x1e8   :  { %v1912_v18 = vmul.f32 %v1892_v14, %v2701_v46  ;;  %v1913_v10 = vmul.f32 %v1892_v14, %v2709_v26  ;;  %v1914_v9 = vmul.f32 %v1892_v14, %v2717_v32  ;;  %v1915_v52 = vmul.f32 %v1892_v14, %v2711_v27 }
 0x1e9   :  { %v1916_v58 = vmul.f32 %v1892_v14, %v2719_v33  ;;  %v1917_v53 = vmul.f32 %v1892_v14, %v2725_v21  ;;  %v1918_v59 = vmul.f32 %v1892_v14, %v2729_v29  ;;  %v1919_v35 = vmul.f32 %v1892_v14, %v2727_v22 }
 0x1ea   :  { %v1920_v45 = vmul.f32 %v1892_v14, %v2731_v30  ;;  %v1921_v38 = vmul.f32 %v1892_v14, %v2741_v20  ;;  %v1922_v46 = vmul.f32 %v1892_v14, %v2749_v34  ;;  %v1923_v26 = vmul.f32 %v1892_v14, %v3103_v17 }
 0x1eb   :  { %v1924_v32 = vmul.f32 %v1892_v14, %v3104_v41  ;;  %v1925_v27 = vmul.f32 %v1892_v14, %v3105_v23  ;;  %v1926_v33 = vmul.f32 %v1892_v14, %v2761_v44  ;;  %v1927_v21 = vmul.f32 %v1892_v14, %v3106_v36 }
 0x1ec   :  { %v1928_v29 = vmul.f32 %v1892_v14, %v3112_v42  ;;  %v1932_v11 = vrot.slane %v1888_v24, %v1891_v39  ;;  %v2920_v22 = vsub.s32 %v2045_v47, %v1890_v4 }
 0x1ee   :  { %v2922_v30 = vadd.f32 %v1932_v11, %v1893_v56  ;;  %v2924_v20 = vadd.f32 %v1932_v11, %v1894_v7  ;;  %v2926_v34 = vadd.f32 %v1932_v11, %v1895_v31  ;;  %v2928_v17 = vadd.f32 %v1932_v11, %v1896_v2 }
 0x1ef   :  { %v2930_v41 = vadd.f32 %v1932_v11, %v1897_v5  ;;  %v2932_v23 = vadd.f32 %v1932_v11, %v1898_v6  ;;  %v2934_v44 = vadd.f32 %v1932_v11, %v1899_v50  ;;  %v2936_v36 = vadd.f32 %v1932_v11, %v1900_v62 }
 0x1f0   :  { %v2938_v63 = vadd.f32 %v1932_v11, %v1901_v48  ;;  %v2940_v4 = vadd.f32 %v1932_v11, %v1902_v54  ;;  %v2942_v1 = vadd.f32 %v1932_v11, %v1903_v12  ;;  %v2944_v39 = vadd.f32 %v1932_v11, %v1904_v0 }
 0x1f1   :  { %v2946_v40 = vadd.f32 %v1932_v11, %v1905_v13  ;;  %v2948_v15 = vadd.f32 %v1932_v11, %v1906_v16  ;;  %v2950_v3 = vadd.f32 %v1932_v11, %v1907_v55  ;;  %v2952_v19 = vadd.f32 %v1932_v11, %v1908_v28 }
 0x1f2   :  { %v2954_v49 = vadd.f32 %v1932_v11, %v1909_v43  ;;  %v2956_v61 = vadd.f32 %v1932_v11, %v1910_v37  ;;  %v2958_v14 = vadd.f32 %v1932_v11, %v1911_v8  ;;  %v2960_v47 = vadd.f32 %v1932_v11, %v1912_v18 }
 0x1f3   :  { %v2962_v24 = vadd.f32 %v1932_v11, %v1913_v10  ;;  %v2964_v56 = vadd.f32 %v1932_v11, %v1914_v9  ;;  %v2966_v7 = vadd.f32 %v1932_v11, %v1915_v52  ;;  %v2968_v31 = vadd.f32 %v1932_v11, %v1916_v58 }
 0x1f4   :  { %v2970_v2 = vadd.f32 %v1932_v11, %v1917_v53  ;;  %v2972_v51 = vadd.f32 %v1932_v11, %v1918_v59  ;;  %v2974_v5 = vadd.f32 %v1932_v11, %v1919_v35  ;;  %v2976_v57 = vadd.f32 %v1932_v11, %v1920_v45 }
 0x1f5   :  { %v2978_v6 = vadd.f32 %v1932_v11, %v1921_v38  ;;  %v2980_v25 = vadd.f32 %v1932_v11, %v1922_v46  ;;  %v2982_v50 = vadd.f32 %v1932_v11, %v1923_v26  ;;  %v2984_v60 = vadd.f32 %v1932_v11, %v1924_v32 }
 0x1f6   :  { %v2986_v62 = vadd.f32 %v1932_v11, %v1925_v27  ;;  %v2988_v48 = vadd.f32 %v1932_v11, %v1926_v33  ;;  %v2990_v54 = vadd.f32 %v1932_v11, %v1927_v21  ;;  %v2992_v12 = vadd.f32 %v1932_v11, %v1928_v29 }
 0x1f7   :  { %v1969_v0 = vmax.f32 %v2922_v30, 0.0  ;;  %v1970_v13 = vmax.f32 %v2924_v20, 0.0  ;;  %v1971_v16 = vmax.f32 %v2926_v34, 0.0  ;;  %v1972_v55 = vmax.f32 %v2928_v17, 0.0 }
 0x1f8   :  { %v1973_v28 = vmax.f32 %v2930_v41, 0.0  ;;  %v1974_v43 = vmax.f32 %v2932_v23, 0.0  ;;  %v1975_v37 = vmax.f32 %v2934_v44, 0.0  ;;  %v1976_v8 = vmax.f32 %v2936_v36, 0.0 }
 0x1f9   :  { %v1977_v18 = vmax.f32 %v2938_v63, 0.0  ;;  %v1978_v10 = vmax.f32 %v2940_v4, 0.0  ;;  %v1979_v9 = vmax.f32 %v2942_v1, 0.0  ;;  %v1980_v52 = vmax.f32 %v2944_v39, 0.0 }
 0x1fa   :  { %v1981_v58 = vmax.f32 %v2946_v40, 0.0  ;;  %v1982_v53 = vmax.f32 %v2948_v15, 0.0  ;;  %v1983_v59 = vmax.f32 %v2950_v3, 0.0  ;;  %v1984_v35 = vmax.f32 %v2952_v19, 0.0 }
 0x1fb   :  { %v1985_v45 = vmax.f32 %v2954_v49, 0.0  ;;  %v1986_v38 = vmax.f32 %v2956_v61, 0.0  ;;  %v1987_v46 = vmax.f32 %v2958_v14, 0.0  ;;  %v1988_v26 = vmax.f32 %v2960_v47, 0.0 }
 0x1fc   :  { %v1989_v32 = vmax.f32 %v2962_v24, 0.0  ;;  %v1990_v27 = vmax.f32 %v2964_v56, 0.0  ;;  %v1991_v33 = vmax.f32 %v2966_v7, 0.0  ;;  %v1992_v21 = vmax.f32 %v2968_v31, 0.0 }
 0x1fd   :  { %v1993_v42 = vmax.f32 %v2970_v2, 0.0  ;;  %v1994_v29 = vmax.f32 %v2972_v51, 0.0  ;;  %v1995_v11 = vmax.f32 %v2974_v5, 0.0  ;;  %v1996_v30 = vmax.f32 %v2976_v57, 0.0 }
 0x1fe   :  { %v1997_v20 = vmax.f32 %v2978_v6, 0.0  ;;  %v1998_v34 = vmax.f32 %v2980_v25, 0.0  ;;  %v1999_v17 = vmax.f32 %v2982_v50, 0.0  ;;  %v2000_v41 = vmax.f32 %v2984_v60, 0.0 }
 0x1ff   :  { %v2001_v23 = vmax.f32 %v2986_v62, 0.0  ;;  %v2002_v44 = vmax.f32 %v2988_v48, 0.0  ;;  %v2003_v36 = vmax.f32 %v2990_v54, 0.0  ;;  %v2004_v63 = vmax.f32 %v2992_v12, 0.0 }
 0x200   :  { %v2041_v4 = vcombine.low %v1969_v0, %v1970_v13  ;;  %v2042_v1 = vcombine.low %v1971_v16, %v1972_v55  ;;  %v2058_v39 = vcombine.low %v1973_v28, %v1974_v43  ;;  %v2059_v40 = vcombine.low %v1975_v37, %v1976_v8 }
 0x201   :  { %v2075_v15 = vcombine.low %v1977_v18, %v1978_v10  ;;  %v2076_v3 = vcombine.low %v1979_v9, %v1980_v52  ;;  %v2092_v19 = vcombine.low %v1981_v58, %v1982_v53  ;;  %v2093_v49 = vcombine.low %v1983_v59, %v1984_v35 }
 0x202   :  { %v2049_v61 = vrot.slane %v2041_v4, %v2920_v22  ;;  %v2056_v14 = vrot.slane %v2042_v1, %v2920_v22  ;;  %v2066_v47 = vrot.slane %v2058_v39, %v2920_v22  ;;  %v2073_v24 = vrot.slane %v2059_v40, %v2920_v22 }
 0x203   :  { %v2083_v56 = vrot.slane %v2075_v15, %v2920_v22  ;;  %v2090_v7 = vrot.slane %v2076_v3, %v2920_v22  ;;  %v2100_v31 = vrot.slane %v2092_v19, %v2920_v22  ;;  %v2107_v2 = vrot.slane %v2093_v49, %v2920_v22 }
 0x204   :  { %v2057_v51 = vcombine.low %v2049_v61, %v2056_v14  ;;  %v2074_v5 = vcombine.low %v2066_v47, %v2073_v24  ;;  %v2109_v57 = vcombine.low %v1985_v45, %v1986_v38  ;;  %v2110_v6 = vcombine.low %v1987_v46, %v1988_v26 }
 0x205   :  { %v2091_v25 = vcombine.low %v2083_v56, %v2090_v7  ;;  %v2108_v50 = vcombine.low %v2100_v31, %v2107_v2  ;;  %v2126_v60 = vcombine.low %v1989_v32, %v1990_v27  ;;  %v2127_v62 = vcombine.low %v1991_v33, %v1992_v21 }
 0x206   :  { %v2117_v48 = vrot.slane %v2109_v57, %v2920_v22  ;;  %v2124_v54 = vrot.slane %v2110_v6, %v2920_v22  ;;  %v2143_v12 = vcombine.low %v1993_v42, %v1994_v29  ;;  %v2144_v0 = vcombine.low %v1995_v11, %v1996_v30  ;;  %2203 = vst [vmem:[%s3079_s4] sm:$0xff] %v2057_v51 }
 0x207   :  { %2204 = vst [vmem:[%s3079_s4 + $0x8] sm:$0xff] %v2074_v5  ;;  %v2134_v13 = vrot.slane %v2126_v60, %v2920_v22  ;;  %v2141_v16 = vrot.slane %v2127_v62, %v2920_v22  ;;  %v2160_v55 = vcombine.low %v1997_v20, %v1998_v34  ;;  %v2161_v28 = vcombine.low %v1999_v17, %v2000_v41 }
 0x208   :  { %2205 = vst [vmem:[%s3079_s4 + $0x10] sm:$0xff] %v2091_v25  ;;  %2206 = vst [vmem:[%s3079_s4 + $0x18] sm:$0xff] %v2108_v50  ;;  %v2125_v43 = vcombine.low %v2117_v48, %v2124_v54  ;;  %v2151_v37 = vrot.slane %v2143_v12, %v2920_v22  ;;  %v2158_v8 = vrot.slane %v2144_v0, %v2920_v22 }
 0x209   :  { %v2177_v18 = vcombine.low %v2001_v23, %v2002_v44  ;;  %v2142_v10 = vcombine.low %v2134_v13, %v2141_v16  ;;  %v2168_v9 = vrot.slane %v2160_v55, %v2920_v22  ;;  %v2175_v52 = vrot.slane %v2161_v28, %v2920_v22 }
 0x20a   :  { %v2178_v58 = vcombine.low %v2003_v36, %v2004_v63  ;;  %v2159_v53 = vcombine.low %v2151_v37, %v2158_v8  ;;  %2207 = vst [vmem:[%s3079_s4 + $0x20] sm:$0xff] %v2125_v43 }
 0x20b   :  { %v2185_v59 = vrot.slane %v2177_v18, %v2920_v22  ;;  %v2176_v35 = vcombine.low %v2168_v9, %v2175_v52  ;;  %2208 = vst [vmem:[%s3079_s4 + $0x28] sm:$0xff] %v2142_v10 }
 0x20c   :  { %v2192_v45 = vrot.slane %v2178_v58, %v2920_v22  ;;  %2209 = vst [vmem:[%s3079_s4 + $0x30] sm:$0xff] %v2159_v53 }
 0x20d   :  { %2210 = vst [vmem:[%s3079_s4 + $0x38] sm:$0xff] %v2176_v35 }
 0x20e   :  { %v2193_v38 = vcombine.low %v2185_v59, %v2192_v45 }
 0x210   :  { %2211 = vst [vmem:[%s3079_s4 + $0x40] sm:$0xff] %v2193_v38 }
 0x211   :  { %2216 = vsyncpa [#allocation3], 1 }
 0x212   :  { %2217 = vsyncpa [#allocation5], 1 }

// kernel: generator_forward.6
= control target key start
LH: loop header
LB: loop body
LE: loop exit
PB: predicated region body
PF: predicated region fallthrough
CT: control target
= control target key end

     0   :  { %vm2311_vm0 = vcmask 588800   ;;  %s5445_s0 = inlined_call_operand.vmem [shape: bf16[1152,72], index: 0, kind: input, shape index: {}]   ;;  %s5446_s1 = inlined_call_operand.vmem [shape: bf16[256,1152], index: 1, kind: input, shape index: {}]   ;;  %s5447_s2 = inlined_call_operand.vmem [shape: f32[64,1], index: 2, kind: input, shape index: {}]   ;;  %s5448_s3 = inlined_call_operand.vmem [shape: f32[64,1], index: 3, kind: input, shape index: {}]   ;;  %s5449_s4 = inlined_call_operand.vmem [shape: f32[256,72], index: 4, kind: output, shape index: {}]  }
   0x1   :  { %v3656_v0 = vld [vmem:[%s5445_s0 + $0x40] sm:$0xff]   ;;  %v3658_v2 = vld [vmem:[%s5445_s0 + $0x48] sm:$0xff]   ;;  %v3660_v4 = vld [vmem:[%s5445_s0 + $0x50] sm:$0xff]  }
   0x2   :  { %v3657_v1 = vld [vmem:[%s5445_s0] sm:$0xff]   ;;  %3117 = vmatprep.subr.bf16.mxu0 %v3656_v0  ;;  %3637 = vmatprep.subr.bf16.mxu1 %v3656_v0  ;;  %v3659_v3 = vld [vmem:[%s5445_s0 + $0x8] sm:$0xff]   ;;  %v3661_v5 = vld [vmem:[%s5445_s0 + $0x10] sm:$0xff]  }
   0x3   :  { %3118 = vmatpush3.bf16.msra.mxu0 %v3657_v1  ;;  %3645 = vmatpush3.bf16.msra.mxu1 %v3657_v1  ;;  %v3662_v6 = vld [vmem:[%s5445_s0 + $0x58] sm:$0xff]   ;;  %v3664_v8 = vld [vmem:[%s5445_s0 + $0x60] sm:$0xff]   ;;  %v3666_v10 = vld [vmem:[%s5445_s0 + $0x68] sm:$0xff]  }
   0x4   :  { %3119 = vmatprep.subr.bf16.mxu0 %v3658_v2  ;;  %3638 = vmatprep.subr.bf16.mxu1 %v3658_v2  ;;  %v3663_v7 = vld [vmem:[%s5445_s0 + $0x18] sm:$0xff]   ;;  %v3665_v9 = vld [vmem:[%s5445_s0 + $0x20] sm:$0xff]   ;;  %v3667_v13 = vld [vmem:[%s5445_s0 + $0x28] sm:$0xff]  }
   0x5   :  { %v3674_v11 = vld [vmem:[%s5446_s1 + $0x4] ss:$36 sps:$4 sm:$0xff]   ;;  %v3668_v14 = vld [vmem:[%s5445_s0 + $0x70] sm:$0xff]   ;;  %v3670_v16 = vld [vmem:[%s5445_s0 + $0x78] sm:$0xff]  }
   0x6   :  { %v3677_v12 = vld [vmem:[%s5446_s1 + $0x364] ss:$36 sps:$4 sm:$0xff]   ;;  %1522 = vmatprep.mubr.bf16.mxu0 %v3674_v11  ;;  %v3669_v15 = vld [vmem:[%s5445_s0 + $0x30] sm:$0xff]   ;;  %v3671_v17 = vld [vmem:[%s5445_s0 + $0x38] sm:$0xff]  }
   0x7   :  { %3120 = vmatpush3.bf16.msra.mxu0 %v3659_v3  ;;  %3646 = vmatpush3.bf16.msra.mxu1 %v3659_v3  ;;  %v3678_v18 = vld [vmem:[%s5445_s0 + $0xc0] sm:$0xff]   ;;  %v3682_v24 = vld [vmem:[%s5445_s0 + $0xc8] sm:$0xff]   ;;  %v3690_v32 = vld [vmem:[%s5445_s0 + $0xd0] sm:$0xff]  }
   0x8   :  { %3121 = vmatprep.subr.bf16.mxu0 %v3660_v4  ;;  %3639 = vmatprep.subr.bf16.mxu1 %v3660_v4  ;;  %v3672_v19 = vld [vmem:[%s5446_s1] ss:$36 sps:$4 sm:$0xff]   ;;  %v3684_v25 = vld [vmem:[%s5446_s1 + $0x4c] ss:$36 sps:$4 sm:$0xff]   ;;  %v3692_v34 = vld [vmem:[%s5445_s0 + $0xd8] sm:$0xff]  }
   0x9   :  { %1618 = vmatprep.mubr.bf16.mxu1 %v3677_v12  ;;  %v3675_v20 = vld [vmem:[%s5446_s1 + $0x360] ss:$36 sps:$4 sm:$0xff]   ;;  %v3686_v26 = vld [vmem:[%s5446_s1 + $0x3ac] ss:$36 sps:$4 sm:$0xff]   ;;  %v3696_v35 = vld [vmem:[%s5446_s1 + $0x94] ss:$36 sps:$4 sm:$0xff]  }
   0xa   :  { %v3679_v21 = vld [vmem:[%s5445_s0 + $0x140] sm:$0xff]   ;;  %v3693_v27 = vld [vmem:[%s5445_s0 + $0x148] sm:$0xff]   ;;  %v3691_v33 = vld [vmem:[%s5445_s0 + $0x90] sm:$0xff]  }
   0xb   :  { %3122 = vmatpush3.bf16.msra.mxu0 %v3661_v5  ;;  %3647 = vmatpush3.bf16.msra.mxu1 %v3661_v5  ;;  %v3680_v22 = vld [vmem:[%s5445_s0 + $0x80] sm:$0xff]   ;;  %v3683_v28 = vld [vmem:[%s5445_s0 + $0x88] sm:$0xff]   ;;  %v3698_v36 = vld [vmem:[%s5446_s1 + $0x3f4] ss:$36 sps:$4 sm:$0xff]  }
   0xc   :  { %3123 = vmatprep.subr.bf16.mxu0 %v3662_v6  ;;  %3640 = vmatprep.subr.bf16.mxu1 %v3662_v6  ;;  %v3681_v23 = vld [vmem:[%s5445_s0 + $0x100] sm:$0xff]   ;;  %v3695_v29 = vld [vmem:[%s5445_s0 + $0x108] sm:$0xff]   ;;  %v3694_v37 = vld [vmem:[%s5445_s0 + $0x98] sm:$0xff]  }
   0xd   :  { %v3688_v30 = vld [vmem:[%s5446_s1 + $0x48] ss:$36 sps:$4 sm:$0xff]   ;;  %v3702_v38 = vld [vmem:[%s5445_s0 + $0xe0] sm:$0xff]   ;;  %v3700_v39 = vld [vmem:[%s5446_s1 + $0x90] ss:$36 sps:$4 sm:$0xff]  }
   0xe   :  { %v3689_v31 = vld [vmem:[%s5446_s1 + $0x3a8] ss:$36 sps:$4 sm:$0xff]   ;;  %v3701_v40 = vld [vmem:[%s5446_s1 + $0x3f0] ss:$36 sps:$4 sm:$0xff]   ;;  %v3703_v42 = vld [vmem:[%s5445_s0 + $0xa0] sm:$0xff]  }
   0xf   :  { %3124 = vmatpush3.bf16.msra.mxu0 %v3663_v7  ;;  %3648 = vmatpush3.bf16.msra.mxu1 %v3663_v7  ;;  %v3713_v41 = vld [vmem:[%s5445_s0 + $0x150] sm:$0xff]   ;;  %v3704_v43 = vld [vmem:[%s5445_s0 + $0xe8] sm:$0xff]   ;;  %v3706_v45 = vld [vmem:[%s5446_s1 + $0xdc] ss:$36 sps:$4 sm:$0xff]  }
  0x10   :  { %3125 = vmatprep.subr.bf16.mxu0 %v3664_v8  ;;  %3641 = vmatprep.subr.bf16.mxu1 %v3664_v8  ;;  %v3715_v44 = vld [vmem:[%s5445_s0 + $0x110] sm:$0xff]   ;;  %v3708_v46 = vld [vmem:[%s5446_s1 + $0x43c] ss:$36 sps:$4 sm:$0xff]   ;;  %v3705_v47 = vld [vmem:[%s5445_s0 + $0xa8] sm:$0xff]  }
  0x11   :  { %v3712_v48 = vld [vmem:[%s5445_s0 + $0xf0] sm:$0xff]   ;;  %v3710_v49 = vld [vmem:[%s5446_s1 + $0xd8] ss:$36 sps:$4 sm:$0xff]   ;;  %v3718_v55 = vld [vmem:[%s5446_s1 + $0x124] ss:$36 sps:$4 sm:$0xff]  }
  0x12   :  { %v3711_v50 = vld [vmem:[%s5446_s1 + $0x438] ss:$36 sps:$4 sm:$0xff]   ;;  %v3714_v52 = vld [vmem:[%s5445_s0 + $0xb0] sm:$0xff]   ;;  %v3720_v58 = vld [vmem:[%s5446_s1 + $0x8] ss:$36 sps:$4 sm:$0xff]  }
  0x13   :  { %3126 = vmatpush3.bf16.msra.mxu0 %v3665_v9  ;;  %3649 = vmatpush3.bf16.msra.mxu1 %v3665_v9  ;;  %v3724_v51 = vld [vmem:[%s5445_s0 + $0x158] sm:$0xff]   ;;  %v3722_v56 = vld [vmem:[%s5446_s1 + $0xc] ss:$36 sps:$4 sm:$0xff]   ;;  %v3723_v59 = vld [vmem:[%s5446_s1 + $0x120] ss:$36 sps:$4 sm:$0xff]  }
  0x14   :  { %3127 = vmatprep.subr.bf16.mxu0 %v3666_v10  ;;  %3642 = vmatprep.subr.bf16.mxu1 %v3666_v10  ;;  %v3716_v53 = vld [vmem:[%s5445_s0 + $0xf8] sm:$0xff]   ;;  %v3725_v60 = vld [vmem:[%s5445_s0 + $0x1c0] sm:$0xff]   ;;  %v3728_v62 = vld [vmem:[%s5446_s1 + $0x16c] ss:$36 sps:$4 sm:$0xff]  }
  0x15   :  { %v3726_v54 = vld [vmem:[%s5445_s0 + $0x118] sm:$0xff]   ;;  %v3727_v61 = vld [vmem:[%s5445_s0 + $0x180] sm:$0xff]   ;;  %v3742_v2 = vld [vmem:[%s5445_s0 + $0x1c8] sm:$0xff]  }
  0x16   :  { %v3717_v57 = vld [vmem:[%s5445_s0 + $0xb8] sm:$0xff]   ;;  %v3740_v63 = vld [vmem:[%s5445_s0 + $0x160] sm:$0xff]   ;;  %v3743_v3 = vld [vmem:[%s5445_s0 + $0x188] sm:$0xff]  }
  0x17   :  { %3128 = vmatpush3.bf16.msra.mxu0 %v3667_v13  ;;  %3650 = vmatpush3.bf16.msra.mxu1 %v3667_v13  ;;  %v3741_v0 = vld [vmem:[%s5445_s0 + $0x120] sm:$0xff]   ;;  %v3730_v1 = vld [vmem:[%s5446_s1 + $0x54] ss:$36 sps:$4 sm:$0xff]   ;;  %v3732_v4 = vld [vmem:[%s5446_s1 + $0x168] ss:$36 sps:$4 sm:$0xff]  }
  0x18   :  { %3129 = vmatprep.subr.bf16.mxu0 %v3668_v14  ;;  %3643 = vmatprep.subr.bf16.mxu1 %v3668_v14  ;;  %v3750_v5 = vld [vmem:[%s5445_s0 + $0x168] sm:$0xff]   ;;  %v3733_v7 = vld [vmem:[%s5446_s1 + $0x50] ss:$36 sps:$4 sm:$0xff]   ;;  %v3736_v9 = vld [vmem:[%s5446_s1 + $0x9c] ss:$36 sps:$4 sm:$0xff]  }
  0x19   :  { %v3751_v6 = vld [vmem:[%s5445_s0 + $0x128] sm:$0xff]   ;;  %v3734_v8 = vld [vmem:[%s5446_s1 + $0x1b4] ss:$36 sps:$4 sm:$0xff]   ;;  %v3744_v14 = vld [vmem:[%s5446_s1 + $0x1fc] ss:$36 sps:$4 sm:$0xff]  }
  0x1a   :  { %v3758_v10 = vld [vmem:[%s5445_s0 + $0x1d0] sm:$0xff]   ;;  %v3739_v13 = vld [vmem:[%s5446_s1 + $0x98] ss:$36 sps:$4 sm:$0xff]  }
  0x1b   :  { %3130 = vmatpush3.bf16.msra.mxu0 %v3669_v15  ;;  %3651 = vmatpush3.bf16.msra.mxu1 %v3669_v15  ;;  %v3759_v11 = vld [vmem:[%s5445_s0 + $0x190] sm:$0xff]  }
  0x1c   :  { %3131 = vmatprep.subr.bf16.mxu0 %v3670_v16  ;;  %3644 = vmatprep.subr.bf16.mxu1 %v3670_v16  ;;  %v3738_v12 = vld [vmem:[%s5446_s1 + $0x1b0] ss:$36 sps:$4 sm:$0xff]  }
  0x1d   :  { %v3766_v15 = vld [vmem:[%s5445_s0 + $0x170] sm:$0xff]  }
  0x1e   :  { %v3767_v16 = vld [vmem:[%s5445_s0 + $0x130] sm:$0xff]  }
  0x1f   :  { %3132 = vmatpush3.bf16.msra.mxu0 %v3671_v17  ;;  %3652 = vmatpush3.bf16.msra.mxu1 %v3671_v17  ;;  %v3746_v17 = vld [vmem:[%s5446_s1 + $0xe4] ss:$36 sps:$4 sm:$0xff]  }
  0x20   :  { %3229 = vmatprep.subr.bf16.mxu1 %v3678_v18  ;;  %3341 = vmatprep.subr.bf16.mxu0 %v3679_v21  ;;  %v3774_v18 = vld [vmem:[%s5445_s0 + $0x178] sm:$0xff]  }
  0x21   :  { %v3776_v21 = vld [vmem:[%s5445_s0 + $0x138] sm:$0xff]  }
  0x22   :  { %1523 = vmatmul.mubr.bf16.vlgmr.msra.gmra.mrb[0].mxu0 %v3672_v19  ;;  %1619 = vmatmul.mubr.bf16.vlgmr.msra.gmra.mrb[0].mxu1 %v3675_v20  ;;  %v3775_v19 = vld [vmem:[%s5445_s0 + $0x1d8] sm:$0xff]  }
  0x23   :  { %3230 = vmatpush3.bf16.msra.mxu1 %v3680_v22  ;;  %3342 = vmatpush3.bf16.msra.mxu0 %v3681_v23  ;;  %v3748_v20 = vld [vmem:[%s5446_s1 + $0x1f8] ss:$36 sps:$4 sm:$0xff]   ;;  %v3749_v23 = vld [vmem:[%s5446_s1 + $0xe0] ss:$36 sps:$4 sm:$0xff]  }
  0x24   :  { %3231 = vmatprep.subr.bf16.mxu1 %v3682_v24  ;;  %1530 = vmatprep.mubr.bf16.mxu0 %v3684_v25  ;;  %v3777_v22 = vld [vmem:[%s5445_s0 + $0x198] sm:$0xff]   ;;  %v3752_v24 = vld [vmem:[%s5446_s1 + $0x244] ss:$36 sps:$4 sm:$0xff]   ;;  %v3754_v25 = vld [vmem:[%s5446_s1 + $0x12c] ss:$36 sps:$4 sm:$0xff]  }
  0x25   :  { %1626 = vmatprep.mubr.bf16.mxu1 %v3686_v26  ;;  %3343 = vmatprep.subr.bf16.mxu0 %v3693_v27  ;;  %v3790_v26 = vld [vmem:[%s5445_s0 + $0x200] sm:$0xff]  }
  0x26   :  { %v3756_v27 = vld [vmem:[%s5446_s1 + $0x240] ss:$36 sps:$4 sm:$0xff]  }
  0x27   :  { %3232 = vmatpush3.bf16.msra.mxu1 %v3683_v28  ;;  %3344 = vmatpush3.bf16.msra.mxu0 %v3695_v29  ;;  %v3791_v28 = vld [vmem:[%s5445_s0 + $0x1e0] sm:$0xff]  }
  0x28   :  { %3233 = vmatprep.subr.bf16.mxu1 %v3690_v32  ;;  %3345 = vmatprep.subr.bf16.mxu0 %v3713_v41  ;;  %v3792_v29 = vld [vmem:[%s5445_s0 + $0x1a0] sm:$0xff]   ;;  %v3762_v32 = vld [vmem:[%s5446_s1 + $0x174] ss:$36 sps:$4 sm:$0xff]  }
  0x29   :  { %v3778_v41 = vld [vmem:[%s5446_s1 + $0x31c] ss:$36 sps:$4 sm:$0xff]  }
  0x2a   :  { %1531 = vmatmul.mubr.bf16.gmra.mrb[4].mxu0 %v3688_v30  ;;  %1627 = vmatmul.mubr.bf16.gmra.mrb[4].mxu1 %v3689_v31  ;;  %v3757_v30 = vld [vmem:[%s5446_s1 + $0x128] ss:$36 sps:$4 sm:$0xff]  }
  0x2b   :  { %3234 = vmatpush3.bf16.msra.mxu1 %v3691_v33  ;;  %1538 = vmatprep.mubr.bf16.mxu0 %v3696_v35  ;;  %v3760_v31 = vld [vmem:[%s5446_s1 + $0x28c] ss:$36 sps:$4 sm:$0xff]  }
  0x2c   :  { %3235 = vmatprep.subr.bf16.mxu1 %v3692_v34  ;;  %1634 = vmatprep.mubr.bf16.mxu1 %v3698_v36  ;;  %v3764_v33 = vld [vmem:[%s5446_s1 + $0x288] ss:$36 sps:$4 sm:$0xff]   ;;  %v3765_v34 = vld [vmem:[%s5446_s1 + $0x170] ss:$36 sps:$4 sm:$0xff]  }
  0x2d   :  { %3346 = vmatpush3.bf16.msra.mxu0 %v3715_v44  ;;  %v3806_v35 = vld [vmem:[%s5445_s0 + $0x1e8] sm:$0xff]  }
  0x2e   :  { %3347 = vmatprep.subr.bf16.mxu0 %v3724_v51  ;;  %v3807_v36 = vld [vmem:[%s5445_s0 + $0x1a8] sm:$0xff]   ;;  %v3786_v51 = vld [vmem:[%s5446_s1 + $0x10] ss:$36 sps:$4 sm:$0xff]  }
  0x2f   :  { %3236 = vmatpush3.bf16.msra.mxu1 %v3694_v37  ;;  %v3768_v37 = vld [vmem:[%s5446_s1 + $0x2d4] ss:$36 sps:$4 sm:$0xff]   ;;  %v3780_v44 = vld [vmem:[%s5446_s1 + $0x204] ss:$36 sps:$4 sm:$0xff]  }
  0x30   :  { %3237 = vmatprep.subr.bf16.mxu1 %v3702_v38  ;;  %v3770_v38 = vld [vmem:[%s5446_s1 + $0x1bc] ss:$36 sps:$4 sm:$0xff]  }
  0x31   :  { %3348 = vmatpush3.bf16.msra.mxu0 %v3726_v54  ;;  %v3795_v54 = vld [vmem:[%s5446_s1 + $0x5c] ss:$36 sps:$4 sm:$0xff]  }
  0x32   :  { %1539 = vmatmul.mubr.bf16.gmra.mrb[8].mxu0 %v3700_v39  ;;  %1635 = vmatmul.mubr.bf16.gmra.mrb[8].mxu1 %v3701_v40  ;;  %v3772_v39 = vld [vmem:[%s5446_s1 + $0x2d0] ss:$36 sps:$4 sm:$0xff]   ;;  %v3773_v40 = vld [vmem:[%s5446_s1 + $0x1b8] ss:$36 sps:$4 sm:$0xff]  }
  0x33   :  { %3238 = vmatpush3.bf16.msra.mxu1 %v3703_v42  ;;  %1546 = vmatprep.mubr.bf16.mxu0 %v3706_v45  ;;  %v3821_v42 = vld [vmem:[%s5445_s0 + $0x1f0] sm:$0xff]   ;;  %v3782_v45 = vld [vmem:[%s5446_s1 + $0x318] ss:$36 sps:$4 sm:$0xff]  }
  0x34   :  { %3239 = vmatprep.subr.bf16.mxu1 %v3704_v43  ;;  %1642 = vmatprep.mubr.bf16.mxu1 %v3708_v46  ;;  %v3822_v43 = vld [vmem:[%s5445_s0 + $0x1b0] sm:$0xff]   ;;  %v3783_v46 = vld [vmem:[%s5446_s1 + $0x200] ss:$36 sps:$4 sm:$0xff]  }
  0x35   :  { %3349 = vmatprep.subr.bf16.mxu0 %v3740_v63  ;;  %v3803_v63 = vld [vmem:[%s5446_s1 + $0x2d8] ss:$36 sps:$4 sm:$0xff]  }
  0x36   :  { %3350 = vmatpush3.bf16.msra.mxu0 %v3741_v0  ;;  %v3804_v0 = vld [vmem:[%s5446_s1 + $0xa0] ss:$36 sps:$4 sm:$0xff]  }
  0x37   :  { %3240 = vmatpush3.bf16.msra.mxu1 %v3705_v47  ;;  %3351 = vmatprep.subr.bf16.mxu0 %v3750_v5  ;;  %v3784_v47 = vld [vmem:[%s5446_s1 + $0x24c] ss:$36 sps:$4 sm:$0xff]  }
  0x38   :  { %3241 = vmatprep.subr.bf16.mxu1 %v3712_v48  ;;  %v3836_v48 = vld [vmem:[%s5445_s0 + $0x1f8] sm:$0xff]   ;;  %v3813_v5 = vld [vmem:[%s5446_s1 + $0xe8] ss:$36 sps:$4 sm:$0xff]  }
  0x3a   :  { %1547 = vmatmul.mubr.bf16.gmra.mrb[12].mxu0 %v3710_v49  ;;  %1643 = vmatmul.mubr.bf16.gmra.mrb[12].mxu1 %v3711_v50  ;;  %v3837_v49 = vld [vmem:[%s5445_s0 + $0x1b8] sm:$0xff]  }
  0x3b   :  { %3242 = vmatpush3.bf16.msra.mxu1 %v3714_v52  ;;  %1554 = vmatprep.mubr.bf16.mxu0 %v3718_v55  ;;  %v3788_v50 = vld [vmem:[%s5446_s1 + $0x14] ss:$36 sps:$4 sm:$0xff]   ;;  %v3789_v52 = vld [vmem:[%s5446_s1 + $0x248] ss:$36 sps:$4 sm:$0xff]  }
  0x3c   :  { %3243 = vmatprep.subr.bf16.mxu1 %v3716_v53  ;;  %1683 = vmatprep.mubr.bf16.mxu1 %v3722_v56  ;;  %v3793_v53 = vld [vmem:[%s5446_s1 + $0x294] ss:$36 sps:$4 sm:$0xff]   ;;  %v3805_v55 = vld [vmem:[%s5445_s0 + $0x208] sm:$0xff]  }
  0x3d   :  { %3352 = vmatpush3.bf16.msra.mxu0 %v3751_v6  ;;  %v3820_v56 = vld [vmem:[%s5445_s0 + $0x210] sm:$0xff]  }
  0x3e   :  { %3353 = vmatprep.subr.bf16.mxu0 %v3766_v15  ;;  %v3876_v6 = vld [vmem:[%s5445_s0 + $0x230] sm:$0xff]   ;;  %v3828_v15 = vld [vmem:[%s5446_s1 + $0x178] ss:$36 sps:$4 sm:$0xff]  }
  0x3f   :  { %3244 = vmatpush3.bf16.msra.mxu1 %v3717_v57  ;;  %v3797_v57 = vld [vmem:[%s5446_s1 + $0x290] ss:$36 sps:$4 sm:$0xff]  }
  0x40   :  { %3453 = vmatprep.subr.bf16.mxu1 %v3725_v60  ;;  %v3801_v60 = vld [vmem:[%s5446_s1 + $0xa4] ss:$36 sps:$4 sm:$0xff]  }
  0x41   :  { %3354 = vmatpush3.bf16.msra.mxu0 %v3767_v16  ;;  %v3829_v16 = vld [vmem:[%s5446_s1 + $0x3fc] ss:$36 sps:$4 sm:$0xff]  }
  0x42   :  { %1555 = vmatmul.mubr.bf16.gmra.mrb[16].mxu0 %v3723_v59  ;;  %1684 = vmatmul.mubr.bf16.vlgmr.msra.gmra.mrb[16].mxu1 %v3720_v58  ;;  %v3798_v58 = vld [vmem:[%s5446_s1 + $0x58] ss:$36 sps:$4 sm:$0xff]  }
  0x43   :  { %3454 = vmatpush3.bf16.msra.mxu1 %v3727_v61  ;;  %1562 = vmatprep.mubr.bf16.mxu0 %v3728_v62  ;;  %v3799_v59 = vld [vmem:[%s5446_s1 + $0x2dc] ss:$36 sps:$4 sm:$0xff]  }
  0x44   :  { %1691 = vmatprep.mubr.bf16.mxu1 %v3730_v1  ;;  %3455 = vmatprep.subr.bf16.mxu1 %v3742_v2  ;;  %v3835_v61 = vld [vmem:[%s5445_s0 + $0x218] sm:$0xff]   ;;  %v3850_v62 = vld [vmem:[%s5445_s0 + $0x220] sm:$0xff]   ;;  %v3810_v2 = vld [vmem:[%s5446_s1 + $0xec] ss:$36 sps:$4 sm:$0xff]  }
  0x45   :  { %3355 = vmatprep.subr.bf16.mxu0 %v3774_v18  ;;  %v3808_v1 = vld [vmem:[%s5446_s1 + $0x324] ss:$36 sps:$4 sm:$0xff]   ;;  %v3833_v18 = vld [vmem:[%s5446_s1 + $0x3f8] ss:$36 sps:$4 sm:$0xff]  }
  0x46   :  { %3356 = vmatpush3.bf16.msra.mxu0 %v3776_v21  ;;  %v3840_v21 = vld [vmem:[%s5446_s1 + $0x20c] ss:$36 sps:$4 sm:$0xff]  }
  0x47   :  { %3456 = vmatpush3.bf16.msra.mxu1 %v3743_v3  ;;  %3589 = vmatprep.subr.bf16.mxu0 %v3790_v26  ;;  %v3863_v3 = vld [vmem:[%s5445_s0 + $0x228] sm:$0xff]  }
  0x48   :  { %3457 = vmatprep.subr.bf16.mxu1 %v3758_v10  ;;  %v3818_v10 = vld [vmem:[%s5446_s1 + $0x368] ss:$36 sps:$4 sm:$0xff]  }
  0x4a   :  { %1563 = vmatmul.mubr.bf16.gmra.mrb[20].mxu0 %v3732_v4  ;;  %1692 = vmatmul.mubr.bf16.gmra.mrb[20].mxu1 %v3733_v7  ;;  %v3812_v4 = vld [vmem:[%s5446_s1 + $0x320] ss:$36 sps:$4 sm:$0xff]   ;;  %v3814_v7 = vld [vmem:[%s5446_s1 + $0x36c] ss:$36 sps:$4 sm:$0xff]  }
  0x4b   :  { %1570 = vmatprep.mubr.bf16.mxu0 %v3734_v8  ;;  %1699 = vmatprep.mubr.bf16.mxu1 %v3736_v9  ;;  %v3816_v8 = vld [vmem:[%s5446_s1 + $0x134] ss:$36 sps:$4 sm:$0xff]  }
  0x4c   :  { %3458 = vmatpush3.bf16.msra.mxu1 %v3759_v11  ;;  %v3889_v9 = vld [vmem:[%s5445_s0 + $0x238] sm:$0xff]   ;;  %v3819_v11 = vld [vmem:[%s5446_s1 + $0x130] ss:$36 sps:$4 sm:$0xff]  }
  0x4d   :  { %3459 = vmatprep.subr.bf16.mxu1 %v3775_v19  ;;  %v3834_v19 = vld [vmem:[%s5446_s1 + $0x1c0] ss:$36 sps:$4 sm:$0xff]  }
  0x50   :  { %3460 = vmatpush3.bf16.msra.mxu1 %v3777_v22  ;;  %v3842_v22 = vld [vmem:[%s5446_s1 + $0x440] ss:$36 sps:$4 sm:$0xff]  }
  0x51   :  { %3461 = vmatprep.subr.bf16.mxu1 %v3791_v28  ;;  %v3851_v28 = vld [vmem:[%s5446_s1 + $0x29c] ss:$36 sps:$4 sm:$0xff]  }
  0x52   :  { %1571 = vmatmul.mubr.bf16.gmra.mrb[24].mxu0 %v3738_v12  ;;  %1700 = vmatmul.mubr.bf16.gmra.mrb[24].mxu1 %v3739_v13  ;;  %v3823_v12 = vld [vmem:[%s5446_s1 + $0x3b4] ss:$36 sps:$4 sm:$0xff]   ;;  %v3825_v13 = vld [vmem:[%s5446_s1 + $0x17c] ss:$36 sps:$4 sm:$0xff]  }
  0x53   :  { %1578 = vmatprep.mubr.bf16.mxu0 %v3744_v14  ;;  %1707 = vmatprep.mubr.bf16.mxu1 %v3746_v17  ;;  %v3827_v14 = vld [vmem:[%s5446_s1 + $0x3b0] ss:$36 sps:$4 sm:$0xff]   ;;  %v3831_v17 = vld [vmem:[%s5446_s1 + $0x1c4] ss:$36 sps:$4 sm:$0xff]  }
  0x54   :  { %3462 = vmatpush3.bf16.msra.mxu1 %v3792_v29  ;;  %v3853_v29 = vld [vmem:[%s5446_s1 + $0x64] ss:$36 sps:$4 sm:$0xff]  }
  0x55   :  { %3463 = vmatprep.subr.bf16.mxu1 %v3806_v35  ;;  %v3862_v35 = vld [vmem:[%s5446_s1 + $0xa8] ss:$36 sps:$4 sm:$0xff]  }
  0x58   :  { %3464 = vmatpush3.bf16.msra.mxu1 %v3807_v36  ;;  %v3864_v36 = vld [vmem:[%s5446_s1 + $0x32c] ss:$36 sps:$4 sm:$0xff]  }
  0x59   :  { %3465 = vmatprep.subr.bf16.mxu1 %v3821_v42  ;;  %v3874_v42 = vld [vmem:[%s5446_s1 + $0x370] ss:$36 sps:$4 sm:$0xff]  }
  0x5a   :  { %1579 = vmatmul.mubr.bf16.gmra.mrb[28].mxu0 %v3748_v20  ;;  %1708 = vmatmul.mubr.bf16.gmra.mrb[28].mxu1 %v3749_v23  ;;  %v3838_v20 = vld [vmem:[%s5446_s1 + $0x444] ss:$36 sps:$4 sm:$0xff]  }
  0x5b   :  { %1586 = vmatprep.mubr.bf16.mxu0 %v3752_v24  ;;  %1715 = vmatprep.mubr.bf16.mxu1 %v3754_v25  ;;  %v3843_v23 = vld [vmem:[%s5446_s1 + $0x208] ss:$36 sps:$4 sm:$0xff]   ;;  %v3844_v24 = vld [vmem:[%s5446_s1 + $0x254] ss:$36 sps:$4 sm:$0xff]   ;;  %v3848_v25 = vld [vmem:[%s5446_s1 + $0x1c] ss:$36 sps:$4 sm:$0xff]  }
  0x5c   :  { %3466 = vmatpush3.bf16.msra.mxu1 %v3822_v43  ;;  %v3875_v43 = vld [vmem:[%s5446_s1 + $0x138] ss:$36 sps:$4 sm:$0xff]  }
  0x5d   :  { %3467 = vmatprep.subr.bf16.mxu1 %v3836_v48  ;;  %v3883_v48 = vld [vmem:[%s5446_s1 + $0x404] ss:$36 sps:$4 sm:$0xff]  }
  0x60   :  { %3468 = vmatpush3.bf16.msra.mxu1 %v3837_v49  ;;  %v3885_v49 = vld [vmem:[%s5446_s1 + $0x1cc] ss:$36 sps:$4 sm:$0xff]  }
  0x62   :  { %1587 = vmatmul.mubr.bf16.gmra.mrb[32].mxu0 %v3756_v27  ;;  %1716 = vmatmul.mubr.bf16.gmra.mrb[32].mxu1 %v3757_v30  ;;  %v3849_v27 = vld [vmem:[%s5446_s1 + $0x250] ss:$36 sps:$4 sm:$0xff]   ;;  %v3855_v30 = vld [vmem:[%s5446_s1 + $0x298] ss:$36 sps:$4 sm:$0xff]  }
  0x63   :  { %1594 = vmatprep.mubr.bf16.mxu0 %v3760_v31  ;;  %1723 = vmatprep.mubr.bf16.mxu1 %v3762_v32  ;;  %v3856_v31 = vld [vmem:[%s5446_s1 + $0x60] ss:$36 sps:$4 sm:$0xff]  }
  0x64   :  { %v3857_v32 = vld [vmem:[%s5446_s1 + $0x2e4] ss:$36 sps:$4 sm:$0xff]  }
  0x6a   :  { %1595 = vmatmul.mubr.bf16.gmra.mrb[36].mxu0 %v3764_v33  ;;  %1724 = vmatmul.mubr.bf16.gmra.mrb[36].mxu1 %v3765_v34  ;;  %v3859_v33 = vld [vmem:[%s5446_s1 + $0xac] ss:$36 sps:$4 sm:$0xff]   ;;  %v3861_v34 = vld [vmem:[%s5446_s1 + $0x2e0] ss:$36 sps:$4 sm:$0xff]  }
  0x6b   :  { %1602 = vmatprep.mubr.bf16.mxu0 %v3768_v37  ;;  %1731 = vmatprep.mubr.bf16.mxu1 %v3770_v38  ;;  %v3866_v37 = vld [vmem:[%s5446_s1 + $0xf4] ss:$36 sps:$4 sm:$0xff]   ;;  %v3868_v38 = vld [vmem:[%s5446_s1 + $0x328] ss:$36 sps:$4 sm:$0xff]  }
  0x72   :  { %1603 = vmatmul.mubr.bf16.gmra.mrb[40].mxu0 %v3772_v39  ;;  %1732 = vmatmul.mubr.bf16.gmra.mrb[40].mxu1 %v3773_v40  ;;  %v3869_v39 = vld [vmem:[%s5446_s1 + $0xf0] ss:$36 sps:$4 sm:$0xff]  }
  0x73   :  { %1610 = vmatprep.mubr.bf16.mxu0 %v3778_v41  ;;  %1739 = vmatprep.mubr.bf16.mxu1 %v3780_v44  ;;  %v3870_v40 = vld [vmem:[%s5446_s1 + $0x374] ss:$36 sps:$4 sm:$0xff]   ;;  %v3872_v41 = vld [vmem:[%s5446_s1 + $0x13c] ss:$36 sps:$4 sm:$0xff]  }
  0x74   :  { %v3877_v44 = vld [vmem:[%s5446_s1 + $0x3bc] ss:$36 sps:$4 sm:$0xff]  }
  0x7a   :  { %1611 = vmatmul.mubr.bf16.gmra.mrb[44].mxu0 %v3782_v45  ;;  %1740 = vmatmul.mubr.bf16.gmra.mrb[44].mxu1 %v3783_v46  ;;  %v3879_v45 = vld [vmem:[%s5446_s1 + $0x184] ss:$36 sps:$4 sm:$0xff]   ;;  %v3881_v46 = vld [vmem:[%s5446_s1 + $0x3b8] ss:$36 sps:$4 sm:$0xff]  }
  0x7b   :  { %1747 = vmatprep.mubr.bf16.mxu1 %v3784_v47  ;;  %1844 = vmatprep.mubr.bf16.mxu0 %v3788_v50  ;;  %v3882_v47 = vld [vmem:[%s5446_s1 + $0x180] ss:$36 sps:$4 sm:$0xff]  }
  0x7c   :  { %v3887_v50 = vld [vmem:[%s5446_s1 + $0x400] ss:$36 sps:$4 sm:$0xff]  }
  0x82   :  { %1748 = vmatmul.mubr.bf16.gmra.mrb[48].mxu1 %v3789_v52  ;;  %1845 = vmatmul.mubr.bf16.vlgmr.msra.gmra.mrb[48].mxu0 %v3786_v51  ;;  %v3888_v51 = vld [vmem:[%s5446_s1 + $0x1c8] ss:$36 sps:$4 sm:$0xff]  }
  0x83   :  { %3590 = vmatpush3.bf16.msra.mxu0 %v3790_v26  ;;  %1755 = vmatprep.mubr.bf16.mxu1 %v3793_v53  ;;  %v3846_v26 = vld [vmem:[%s5446_s1 + $0x18] ss:$36 sps:$4 sm:$0xff]   ;;  %v3890_v52 = vld [vmem:[%s5446_s1 + $0x44c] ss:$36 sps:$4 sm:$0xff]  }
  0x84   :  { %1852 = vmatprep.mubr.bf16.mxu0 %v3795_v54  ;;  %3591 = vmatprep.subr.bf16.mxu0 %v3805_v55  ;;  %v3892_v53 = vld [vmem:[%s5446_s1 + $0x214] ss:$36 sps:$4 sm:$0xff]  }
  0x87   :  { %3592 = vmatpush3.bf16.msra.mxu0 %v3805_v55 }
  0x88   :  { %3593 = vmatprep.subr.bf16.mxu0 %v3820_v56 }
  0x8a   :  { %1756 = vmatmul.mubr.bf16.gmra.mrb[52].mxu1 %v3797_v57  ;;  %1853 = vmatmul.mubr.bf16.gmra.mrb[52].mxu0 %v3798_v58  ;;  %v3894_v58 = vld [vmem:[%s5446_s1 + $0x448] ss:$36 sps:$4 sm:$0xff]  }
  0x8b   :  { %1763 = vmatprep.mubr.bf16.mxu1 %v3799_v59  ;;  %1860 = vmatprep.mubr.bf16.mxu0 %v3801_v60  ;;  %v3895_v59 = vld [vmem:[%s5446_s1 + $0x210] ss:$36 sps:$4 sm:$0xff]  }
  0x8c   :  { %3594 = vmatpush3.bf16.msra.mxu0 %v3820_v56 }
  0x8d   :  { %3595 = vmatprep.subr.bf16.mxu0 %v3835_v61 }
  0x90   :  { %3596 = vmatpush3.bf16.msra.mxu0 %v3835_v61 }
  0x91   :  { %3597 = vmatprep.subr.bf16.mxu0 %v3850_v62 }
  0x92   :  { %1764 = vmatmul.mubr.bf16.gmra.mrb[56].mxu1 %v3803_v63  ;;  %1861 = vmatmul.mubr.bf16.gmra.mrb[56].mxu0 %v3804_v0  ;;  %v3896_v0 = vld [vmem:[%s5446_s1 + $0x25c] ss:$36 sps:$4 sm:$0xff]  }
  0x93   :  { %1771 = vmatprep.mubr.bf16.mxu1 %v3808_v1  ;;  %1868 = vmatprep.mubr.bf16.mxu0 %v3810_v2  ;;  %v3898_v1 = vld [vmem:[%s5446_s1 + $0x20] ss:$36 sps:$4 sm:$0xff]  }
  0x94   :  { %3598 = vmatpush3.bf16.msra.mxu0 %v3850_v62 }
  0x95   :  { %3599 = vmatprep.subr.bf16.mxu0 %v3863_v3 }
  0x98   :  { %3600 = vmatpush3.bf16.msra.mxu0 %v3863_v3 }
  0x99   :  { %3601 = vmatprep.subr.bf16.mxu0 %v3876_v6 }
  0x9a   :  { %1772 = vmatmul.mubr.bf16.gmra.mrb[60].mxu1 %v3812_v4  ;;  %1869 = vmatmul.mubr.bf16.gmra.mrb[60].mxu0 %v3813_v5 }
  0x9b   :  { %1779 = vmatprep.mubr.bf16.mxu1 %v3814_v7  ;;  %1876 = vmatprep.mubr.bf16.mxu0 %v3816_v8 }
  0x9c   :  { %3602 = vmatpush3.bf16.msra.mxu0 %v3876_v6 }
  0x9d   :  { %3603 = vmatprep.subr.bf16.mxu0 %v3889_v9 }
  0xa0   :  { %3604 = vmatpush3.bf16.msra.mxu0 %v3889_v9 }
  0xa2   :  { %1780 = vmatmul.mubr.bf16.gmra.mrb[64].mxu1 %v3818_v10  ;;  %1877 = vmatmul.mubr.bf16.gmra.mrb[64].mxu0 %v3819_v11  ;;  %v3899_v10 = vld [vmem:[%s5446_s1 + $0x258] ss:$36 sps:$4 sm:$0xff]   ;;  %v3900_v11 = vld [vmem:[%s5446_s1 + $0x68] ss:$36 sps:$4 sm:$0xff]  }
  0xa3   :  { %1787 = vmatprep.mubr.bf16.mxu1 %v3823_v12  ;;  %1884 = vmatprep.mubr.bf16.mxu0 %v3825_v13 }
  0xaa   :  { %1788 = vmatmul.mubr.bf16.gmra.mrb[68].mxu1 %v3827_v14  ;;  %1885 = vmatmul.mubr.bf16.gmra.mrb[68].mxu0 %v3828_v15 }
  0xab   :  { %1795 = vmatprep.mubr.bf16.mxu1 %v3829_v16  ;;  %1892 = vmatprep.mubr.bf16.mxu0 %v3831_v17  ;;  %v3901_v16 = vld [vmem:[%s5446_s1 + $0x2a4] ss:$36 sps:$4 sm:$0xff]   ;;  %v3903_v17 = vld [vmem:[%s5446_s1 + $0xb0] ss:$36 sps:$4 sm:$0xff]  }
  0xb2   :  { %1796 = vmatmul.mubr.bf16.gmra.mrb[72].mxu1 %v3833_v18  ;;  %1893 = vmatmul.mubr.bf16.gmra.mrb[72].mxu0 %v3834_v19 }
  0xb3   :  { %1803 = vmatprep.mubr.bf16.mxu1 %v3838_v20  ;;  %1900 = vmatprep.mubr.bf16.mxu0 %v3840_v21 }
  0xba   :  { %1804 = vmatmul.mubr.bf16.gmra.mrb[76].mxu1 %v3842_v22  ;;  %1901 = vmatmul.mubr.bf16.gmra.mrb[76].mxu0 %v3843_v23 }
  0xbb   :  { %1908 = vmatprep.mubr.bf16.mxu0 %v3844_v24  ;;  %2005 = vmatprep.mubr.bf16.mxu1 %v3848_v25 }
  0xc2   :  { %1909 = vmatmul.mubr.bf16.gmra.mrb[80].mxu0 %v3849_v27  ;;  %2006 = vmatmul.mubr.bf16.vlgmr.msra.gmra.mrb[80].mxu1 %v3846_v26  ;;  %v3904_v26 = vld [vmem:[%s5446_s1 + $0x2a0] ss:$36 sps:$4 sm:$0xff]   ;;  %v3905_v27 = vld [vmem:[%s5446_s1 + $0xf8] ss:$36 sps:$4 sm:$0xff]  }
  0xc3   :  { %1916 = vmatprep.mubr.bf16.mxu0 %v3851_v28  ;;  %2013 = vmatprep.mubr.bf16.mxu1 %v3853_v29 }
  0xca   :  { %1917 = vmatmul.mubr.bf16.gmra.mrb[84].mxu0 %v3855_v30  ;;  %2014 = vmatmul.mubr.bf16.gmra.mrb[84].mxu1 %v3856_v31 }
  0xcb   :  { %1924 = vmatprep.mubr.bf16.mxu0 %v3857_v32  ;;  %2021 = vmatprep.mubr.bf16.mxu1 %v3859_v33  ;;  %v3906_v32 = vld [vmem:[%s5446_s1 + $0x2ec] ss:$36 sps:$4 sm:$0xff]   ;;  %v3908_v33 = vld [vmem:[%s5446_s1 + $0x140] ss:$36 sps:$4 sm:$0xff]  }
  0xd2   :  { %1925 = vmatmul.mubr.bf16.gmra.mrb[88].mxu0 %v3861_v34  ;;  %2022 = vmatmul.mubr.bf16.gmra.mrb[88].mxu1 %v3862_v35 }
  0xd3   :  { %1932 = vmatprep.mubr.bf16.mxu0 %v3864_v36  ;;  %2029 = vmatprep.mubr.bf16.mxu1 %v3866_v37 }
  0xda   :  { %1933 = vmatmul.mubr.bf16.gmra.mrb[92].mxu0 %v3868_v38  ;;  %2030 = vmatmul.mubr.bf16.gmra.mrb[92].mxu1 %v3869_v39 }
  0xdb   :  { %1940 = vmatprep.mubr.bf16.mxu0 %v3870_v40  ;;  %2037 = vmatprep.mubr.bf16.mxu1 %v3872_v41 }
  0xe2   :  { %1941 = vmatmul.mubr.bf16.gmra.mrb[96].mxu0 %v3874_v42  ;;  %2038 = vmatmul.mubr.bf16.gmra.mrb[96].mxu1 %v3875_v43  ;;  %v3909_v42 = vld [vmem:[%s5446_s1 + $0x2e8] ss:$36 sps:$4 sm:$0xff]  }
  0xe3   :  { %1948 = vmatprep.mubr.bf16.mxu0 %v3877_v44  ;;  %2045 = vmatprep.mubr.bf16.mxu1 %v3879_v45  ;;  %v3910_v43 = vld [vmem:[%s5446_s1 + $0x188] ss:$36 sps:$4 sm:$0xff]  }
  0xea   :  { %1949 = vmatmul.mubr.bf16.gmra.mrb[100].mxu0 %v3881_v46  ;;  %2046 = vmatmul.mubr.bf16.gmra.mrb[100].mxu1 %v3882_v47 }
  0xeb   :  { %1956 = vmatprep.mubr.bf16.mxu0 %v3883_v48  ;;  %2053 = vmatprep.mubr.bf16.mxu1 %v3885_v49  ;;  %v3911_v48 = vld [vmem:[%s5446_s1 + $0x334] ss:$36 sps:$4 sm:$0xff]  }
  0xec   :  { %v3913_v49 = vld [vmem:[%s5446_s1 + $0x1d0] ss:$36 sps:$4 sm:$0xff]  }
  0xf2   :  { %1957 = vmatmul.mubr.bf16.gmra.mrb[104].mxu0 %v3887_v50  ;;  %2054 = vmatmul.mubr.bf16.gmra.mrb[104].mxu1 %v3888_v51 }
  0xf3   :  { %1964 = vmatprep.mubr.bf16.mxu0 %v3890_v52  ;;  %2061 = vmatprep.mubr.bf16.mxu1 %v3892_v53 }
  0xf5   :  { %v3133_v54 = vpop.f32.mrb[0].mxu0  ;;  %v3205_v55 = vpop.f32.mrb[0].mxu1 }
  0xf6   :  { %v3134_v56 = vpop.f32.mrb[1].mxu0  ;;  %v3206_v57 = vpop.f32.mrb[1].mxu1 }
  0xf7   :  { %v4530_v60 = vadd.f32 %v3134_v56, %v3133_v54  ;;  %v3136_v61 = vpop.f32.mrb[2].mxu0  ;;  %v4532_v62 = vadd.f32 %v3206_v57, %v3205_v55  ;;  %v3208_v63 = vpop.f32.mrb[2].mxu1 }
  0xf8   :  { %v3137_v2 = vpop.f32.mrb[3].mxu0  ;;  %v3209_v3 = vpop.f32.mrb[3].mxu1 }
  0xf9   :  { %v4540_v4 = vadd.f32 %v3137_v2, %v3136_v61  ;;  %v4542_v5 = vadd.f32 %v3209_v3, %v3208_v63  ;;  %v3916_v2 = vld [vmem:[%s5446_s1 + $0x37c] ss:$36 sps:$4 sm:$0xff]  }
  0xfa   :  { %1965 = vmatmul.mubr.bf16.gmra.mrb[108].mxu0 %v3894_v58  ;;  %2062 = vmatmul.mubr.bf16.gmra.mrb[108].mxu1 %v3895_v59  ;;  %v3914_v58 = vld [vmem:[%s5446_s1 + $0x330] ss:$36 sps:$4 sm:$0xff]   ;;  %v3915_v59 = vld [vmem:[%s5446_s1 + $0x218] ss:$36 sps:$4 sm:$0xff]   ;;  %v3918_v3 = vld [vmem:[%s5446_s1 + $0x260] ss:$36 sps:$4 sm:$0xff]  }
  0xfb   :  { %2069 = vmatprep.mubr.bf16.mxu1 %v3896_v0  ;;  %3605 = vmatprep.mubr.bf16.mxu0 %v3898_v1 }
  0xfd   :  { %v3139_v6 = vpop.f32.mrb[4].mxu0  ;;  %v3211_v7 = vpop.f32.mrb[4].mxu1 }
  0xfe   :  { %v3140_v8 = vpop.f32.mrb[5].mxu0  ;;  %v3212_v9 = vpop.f32.mrb[5].mxu1 }
  0xff   :  { %v4550_v12 = vadd.f32 %v3140_v8, %v3139_v6  ;;  %v3142_v13 = vpop.f32.mrb[6].mxu0  ;;  %v4552_v14 = vadd.f32 %v3212_v9, %v3211_v7  ;;  %v3214_v15 = vpop.f32.mrb[6].mxu1 }
 0x100   :  { %v3143_v18 = vpop.f32.mrb[7].mxu0  ;;  %v3215_v19 = vpop.f32.mrb[7].mxu1 }
 0x101   :  { %v4560_v20 = vadd.f32 %v3143_v18, %v3142_v13  ;;  %v4562_v21 = vadd.f32 %v3215_v19, %v3214_v15  ;;  %v3919_v18 = vld [vmem:[%s5446_s1 + $0x378] ss:$36 sps:$4 sm:$0xff]  }
 0x102   :  { %2070 = vmatmul.mubr.bf16.gmra.mrb[112].mxu1 %v3899_v10  ;;  %3606 = vmatmul.mubr.bf16.vlgmr.msra.gmra.mrb[112].mxu0 %v3900_v11 }
 0x103   :  { %2077 = vmatprep.mubr.bf16.mxu1 %v3901_v16  ;;  %3609 = vmatprep.mubr.bf16.mxu0 %v3903_v17 }
 0x105   :  { %v3145_v22 = vpop.f32.mrb[8].mxu0  ;;  %v3217_v23 = vpop.f32.mrb[8].mxu1 }
 0x106   :  { %v3146_v24 = vpop.f32.mrb[9].mxu0  ;;  %v3218_v25 = vpop.f32.mrb[9].mxu1 }
 0x107   :  { %v4570_v28 = vadd.f32 %v3146_v24, %v3145_v22  ;;  %v3148_v29 = vpop.f32.mrb[10].mxu0  ;;  %v4572_v30 = vadd.f32 %v3218_v25, %v3217_v23  ;;  %v3220_v31 = vpop.f32.mrb[10].mxu1  ;;  %v3921_v24 = vld [vmem:[%s5446_s1 + $0x3c4] ss:$36 sps:$4 sm:$0xff]   ;;  %v3923_v25 = vld [vmem:[%s5446_s1 + $0x2f0] ss:$36 sps:$4 sm:$0xff]  }
 0x108   :  { %v3149_v34 = vpop.f32.mrb[11].mxu0  ;;  %v3221_v35 = vpop.f32.mrb[11].mxu1 }
 0x109   :  { %v4580_v36 = vadd.f32 %v3149_v34, %v3148_v29  ;;  %v4582_v37 = vadd.f32 %v3221_v35, %v3220_v31 }
 0x10a   :  { %2078 = vmatmul.mubr.bf16.gmra.mrb[116].mxu1 %v3904_v26  ;;  %3610 = vmatmul.mubr.bf16.gmra.mrb[116].mxu0 %v3905_v27 }
 0x10b   :  { %2085 = vmatprep.mubr.bf16.mxu1 %v3906_v32  ;;  %3613 = vmatprep.mubr.bf16.mxu0 %v3908_v33 }
 0x10d   :  { %v3151_v38 = vpop.f32.mrb[12].mxu0  ;;  %v3223_v39 = vpop.f32.mrb[12].mxu1 }
 0x10e   :  { %v3152_v40 = vpop.f32.mrb[13].mxu0  ;;  %v3224_v41 = vpop.f32.mrb[13].mxu1 }
 0x10f   :  { %v4590_v44 = vadd.f32 %v3152_v40, %v3151_v38  ;;  %v3154_v45 = vpop.f32.mrb[14].mxu0  ;;  %v4592_v46 = vadd.f32 %v3224_v41, %v3223_v39  ;;  %v3226_v47 = vpop.f32.mrb[14].mxu1  ;;  %v3924_v40 = vld [vmem:[%s5446_s1 + $0x3c0] ss:$36 sps:$4 sm:$0xff]  }
 0x110   :  { %v3155_v50 = vpop.f32.mrb[15].mxu0  ;;  %v3227_v51 = vpop.f32.mrb[15].mxu1 }
 0x111   :  { %v4600_v52 = vadd.f32 %v3155_v50, %v3154_v45  ;;  %v4602_v53 = vadd.f32 %v3227_v51, %v3226_v47  ;;  %v3926_v45 = vld [vmem:[%s5446_s1 + $0x40c] ss:$36 sps:$4 sm:$0xff]   ;;  %v3928_v47 = vld [vmem:[%s5446_s1 + $0x380] ss:$36 sps:$4 sm:$0xff]  }
 0x112   :  { %2086 = vmatmul.mubr.bf16.gmra.mrb[120].mxu1 %v3909_v42  ;;  %3614 = vmatmul.mubr.bf16.gmra.mrb[120].mxu0 %v3910_v43 }
 0x113   :  { %2093 = vmatprep.mubr.bf16.mxu1 %v3911_v48  ;;  %3617 = vmatprep.mubr.bf16.mxu0 %v3913_v49 }
 0x115   :  { %v3157_v54 = vpop.f32.mrb[16].mxu0  ;;  %v3245_v55 = vpop.f32.mrb[16].mxu1 }
 0x116   :  { %v3158_v56 = vpop.f32.mrb[17].mxu0  ;;  %v3246_v57 = vpop.f32.mrb[17].mxu1 }
 0x117   :  { %v4610_v61 = vadd.f32 %v3158_v56, %v3157_v54  ;;  %v3247_v63 = vadd.f32 %v3246_v57, %v3245_v55  ;;  %v3160_v0 = vpop.f32.mrb[18].mxu0  ;;  %v3248_v1 = vpop.f32.mrb[18].mxu1 }
 0x118   :  { %v3161_v6 = vpop.f32.mrb[19].mxu0  ;;  %v3249_v7 = vpop.f32.mrb[19].mxu1 }
 0x119   :  { %v4619_v8 = vadd.f32 %v3247_v63, %v4530_v60  ;;  %v4621_v9 = vadd.f32 %v3161_v6, %v3160_v0  ;;  %v3250_v10 = vadd.f32 %v3249_v7, %v3248_v1  ;;  %v3920_v60 = vld [vmem:[%s5446_s1 + $0x2a8] ss:$36 sps:$4 sm:$0xff]   ;;  %v3933_v6 = vld [vmem:[%s5446_s1 + $0x410] ss:$36 sps:$4 sm:$0xff]  }
 0x11a   :  { %2094 = vmatmul.mubr.bf16.gmra.mrb[124].mxu1 %v3914_v58  ;;  %3618 = vmatmul.mubr.bf16.gmra.mrb[124].mxu0 %v3915_v59  ;;  %v3929_v63 = vld [vmem:[%s5446_s1 + $0x408] ss:$36 sps:$4 sm:$0xff]  }
 0x11b   :  { %v4624_v11 = vadd.f32 %v3250_v10, %v4540_v4  ;;  %2101 = vmatprep.mubr.bf16.mxu1 %v3916_v2  ;;  %3621 = vmatprep.mubr.bf16.mxu0 %v3918_v3  ;;  %v3931_v3 = vld [vmem:[%s5446_s1 + $0x454] ss:$36 sps:$4 sm:$0xff]  }
 0x11d   :  { %v3163_v13 = vpop.f32.mrb[20].mxu0  ;;  %v3251_v15 = vpop.f32.mrb[20].mxu1 }
 0x11e   :  { %v3164_v16 = vpop.f32.mrb[21].mxu0  ;;  %v3252_v17 = vpop.f32.mrb[21].mxu1 }
 0x11f   :  { %v4632_v19 = vadd.f32 %v3164_v16, %v3163_v13  ;;  %v3253_v22 = vadd.f32 %v3252_v17, %v3251_v15  ;;  %v3166_v23 = vpop.f32.mrb[22].mxu0  ;;  %v3254_v4 = vpop.f32.mrb[22].mxu1 }
 0x120   :  { %v3167_v26 = vpop.f32.mrb[23].mxu0  ;;  %v3255_v27 = vpop.f32.mrb[23].mxu1 }
 0x121   :  { %v4641_v29 = vadd.f32 %v3253_v22, %v4550_v12  ;;  %v4643_v31 = vadd.f32 %v3167_v26, %v3166_v23  ;;  %v3256_v32 = vadd.f32 %v3255_v27, %v3254_v4  ;;  %v3925_v12 = vld [vmem:[%s5446_s1 + $0x338] ss:$36 sps:$4 sm:$0xff]   ;;  %v3934_v4 = vld [vmem:[%s5446_s1 + $0x450] ss:$36 sps:$4 sm:$0xff]  }
 0x122   :  { %2102 = vmatmul.mubr.bf16.gmra.mrb[128].mxu1 %v3919_v18  ;;  %3622 = vmatmul.mubr.bf16.gmra.mrb[128].mxu0 %v3920_v60 }
 0x123   :  { %v4646_v33 = vadd.f32 %v3256_v32, %v4560_v20  ;;  %2109 = vmatprep.mubr.bf16.mxu1 %v3921_v24  ;;  %3625 = vmatprep.mubr.bf16.mxu0 %v3923_v25 }
 0x125   :  { %v3169_v34 = vpop.f32.mrb[24].mxu0  ;;  %v3257_v35 = vpop.f32.mrb[24].mxu1 }
 0x126   :  { %v3170_v38 = vpop.f32.mrb[25].mxu0  ;;  %v3258_v39 = vpop.f32.mrb[25].mxu1 }
 0x127   :  { %v4654_v41 = vadd.f32 %v3170_v38, %v3169_v34  ;;  %v3259_v42 = vadd.f32 %v3258_v39, %v3257_v35  ;;  %v3172_v43 = vpop.f32.mrb[26].mxu0  ;;  %v3260_v20 = vpop.f32.mrb[26].mxu1 }
 0x128   :  { %v3173_v48 = vpop.f32.mrb[27].mxu0  ;;  %v3261_v49 = vpop.f32.mrb[27].mxu1 }
 0x129   :  { %v4663_v50 = vadd.f32 %v3259_v42, %v4570_v28  ;;  %v4665_v51 = vadd.f32 %v3173_v48, %v3172_v43  ;;  %v3262_v54 = vadd.f32 %v3261_v49, %v3260_v20  ;;  %v3930_v28 = vld [vmem:[%s5446_s1 + $0x3c8] ss:$36 sps:$4 sm:$0xff]  }
 0x12a   :  { %2110 = vmatmul.mubr.bf16.gmra.mrb[132].mxu1 %v3924_v40  ;;  %3626 = vmatmul.mubr.bf16.gmra.mrb[132].mxu0 %v3925_v12 }
 0x12b   :  { %v4668_v55 = vadd.f32 %v3262_v54, %v4580_v36  ;;  %2117 = vmatprep.mubr.bf16.mxu1 %v3926_v45  ;;  %3629 = vmatprep.mubr.bf16.mxu0 %v3928_v47 }
 0x12d   :  { %v3175_v56 = vpop.f32.mrb[28].mxu0  ;;  %v3263_v57 = vpop.f32.mrb[28].mxu1 }
 0x12e   :  { %v3176_v58 = vpop.f32.mrb[29].mxu0  ;;  %v3264_v59 = vpop.f32.mrb[29].mxu1 }
 0x12f   :  { %v4676_v0 = vadd.f32 %v3176_v58, %v3175_v56  ;;  %v3265_v1 = vadd.f32 %v3264_v59, %v3263_v57  ;;  %v3178_v2 = vpop.f32.mrb[30].mxu0  ;;  %v3266_v36 = vpop.f32.mrb[30].mxu1 }
 0x130   :  { %v3179_v7 = vpop.f32.mrb[31].mxu0  ;;  %v3267_v10 = vpop.f32.mrb[31].mxu1 }
 0x131   :  { %v4685_v13 = vadd.f32 %v3265_v1, %v4590_v44  ;;  %v4687_v15 = vadd.f32 %v3179_v7, %v3178_v2  ;;  %v3268_v16 = vadd.f32 %v3267_v10, %v3266_v36  ;;  %v3935_v44 = vld [vmem:[%s5446_s1 + $0x458] ss:$36 sps:$4 sm:$0xff]  }
 0x132   :  { %2118 = vmatmul.mubr.bf16.gmra.mrb[136].mxu1 %v3929_v63  ;;  %3630 = vmatmul.mubr.bf16.gmra.mrb[136].mxu0 %v3930_v28 }
 0x133   :  { %v4690_v17 = vadd.f32 %v3268_v16, %v4600_v52  ;;  %2125 = vmatprep.mubr.bf16.mxu1 %v3931_v3  ;;  %3633 = vmatprep.mubr.bf16.mxu0 %v3933_v6 }
 0x135   :  { %v3181_v18 = vpop.f32.mrb[32].mxu0  ;;  %v3269_v60 = vpop.f32.mrb[32].mxu1 }
 0x136   :  { %v3182_v22 = vpop.f32.mrb[33].mxu0  ;;  %v3270_v23 = vpop.f32.mrb[33].mxu1 }
 0x137   :  { %v4698_v24 = vadd.f32 %v3182_v22, %v3181_v18  ;;  %v3271_v25 = vadd.f32 %v3270_v23, %v3269_v60  ;;  %v3184_v26 = vpop.f32.mrb[34].mxu0  ;;  %v3272_v52 = vpop.f32.mrb[34].mxu1 }
 0x138   :  { %v3185_v27 = vpop.f32.mrb[35].mxu0  ;;  %v3273_v32 = vpop.f32.mrb[35].mxu1 }
 0x139   :  { %v4701_v34 = vadd.f32 %v3271_v25, %v4610_v61  ;;  %v3186_v35 = vadd.f32 %v3185_v27, %v3184_v26  ;;  %v3274_v38 = vadd.f32 %v3273_v32, %v3272_v52 }
 0x13a   :  { %2126 = vmatmul.mubr.bf16.gmra.mrb[140].mxu1 %v3934_v4  ;;  %3634 = vmatmul.mubr.bf16.gmra.mrb[140].mxu0 %v3935_v44 }
 0x13b   :  { %v4704_v39 = vadd.f32 %v3274_v38, %v4621_v9 }
 0x13d   :  { %v3187_v40 = vpop.f32.mrb[36].mxu0  ;;  %v3275_v12 = vpop.f32.mrb[36].mxu1 }
 0x13e   :  { %v3188_v42 = vpop.f32.mrb[37].mxu0  ;;  %v3276_v43 = vpop.f32.mrb[37].mxu1 }
 0x13f   :  { %v4706_v20 = vadd.f32 %v3188_v42, %v3187_v40  ;;  %v3277_v45 = vadd.f32 %v3276_v43, %v3275_v12  ;;  %v3190_v47 = vpop.f32.mrb[38].mxu0  ;;  %v3278_v48 = vpop.f32.mrb[38].mxu1 }
 0x140   :  { %v3191_v49 = vpop.f32.mrb[39].mxu0  ;;  %v3279_v54 = vpop.f32.mrb[39].mxu1 }
 0x141   :  { %v4709_v61 = vadd.f32 %v3277_v45, %v4632_v19  ;;  %v3192_v56 = vadd.f32 %v3191_v49, %v3190_v47  ;;  %v3280_v57 = vadd.f32 %v3279_v54, %v3278_v48 }
 0x143   :  { %v4712_v58 = vadd.f32 %v3280_v57, %v4643_v31 }
 0x145   :  { %v3193_v9 = vpop.f32.mrb[40].mxu0  ;;  %v3281_v59 = vpop.f32.mrb[40].mxu1 }
 0x146   :  { %v3194_v63 = vpop.f32.mrb[41].mxu0  ;;  %v3282_v28 = vpop.f32.mrb[41].mxu1 }
 0x147   :  { %v4714_v1 = vadd.f32 %v3194_v63, %v3193_v9  ;;  %v3283_v2 = vadd.f32 %v3282_v28, %v3281_v59  ;;  %v3196_v36 = vpop.f32.mrb[42].mxu0  ;;  %v3284_v3 = vpop.f32.mrb[42].mxu1 }
 0x148   :  { %v3197_v6 = vpop.f32.mrb[43].mxu0  ;;  %v3285_v7 = vpop.f32.mrb[43].mxu1 }
 0x149   :  { %v4717_v10 = vadd.f32 %v3283_v2, %v4654_v41  ;;  %v4719_v19 = vadd.f32 %v3197_v6, %v3196_v36  ;;  %v3286_v16 = vadd.f32 %v3285_v7, %v3284_v3 }
 0x14b   :  { %v4722_v31 = vadd.f32 %v3286_v16, %v4665_v51 }
 0x14d   :  { %v3199_v18 = vpop.f32.mrb[44].mxu0  ;;  %v3287_v60 = vpop.f32.mrb[44].mxu1 }
 0x14e   :  { %v3200_v22 = vpop.f32.mrb[45].mxu0  ;;  %v3288_v23 = vpop.f32.mrb[45].mxu1 }
 0x14f   :  { %v4724_v4 = vadd.f32 %v3200_v22, %v3199_v18  ;;  %v3289_v44 = vadd.f32 %v3288_v23, %v3287_v60  ;;  %v3202_v25 = vpop.f32.mrb[46].mxu0  ;;  %v3290_v26 = vpop.f32.mrb[46].mxu1 }
 0x150   :  { %v3203_v52 = vpop.f32.mrb[47].mxu0  ;;  %v3291_v27 = vpop.f32.mrb[47].mxu1 }
 0x151   :  { %v4727_v41 = vadd.f32 %v3289_v44, %v4676_v0  ;;  %v4729_v32 = vadd.f32 %v3203_v52, %v3202_v25  ;;  %v3292_v38 = vadd.f32 %v3291_v27, %v3290_v26 }
 0x153   :  { %v4732_v51 = vadd.f32 %v3292_v38, %v4687_v15 }
 0x155   :  { %v3293_v40 = vpop.f32.mrb[48].mxu1  ;;  %v3357_v12 = vpop.f32.mrb[48].mxu0 }
 0x156   :  { %v3294_v42 = vpop.f32.mrb[49].mxu1  ;;  %v3358_v43 = vpop.f32.mrb[49].mxu0 }
 0x157   :  { %v3295_v45 = vadd.f32 %v3294_v42, %v3293_v40  ;;  %v3359_v47 = vadd.f32 %v3358_v43, %v3357_v12  ;;  %v3296_v48 = vpop.f32.mrb[50].mxu1  ;;  %v3360_v49 = vpop.f32.mrb[50].mxu0 }
 0x158   :  { %v3297_v54 = vpop.f32.mrb[51].mxu1  ;;  %v3361_v57 = vpop.f32.mrb[51].mxu0 }
 0x159   :  { %v4735_v9 = vadd.f32 %v3295_v45, %v4698_v24  ;;  %v4738_v0 = vadd.f32 %v3359_v47, %v4619_v8  ;;  %v3298_v59 = vadd.f32 %v3297_v54, %v3296_v48  ;;  %v3362_v63 = vadd.f32 %v3361_v57, %v3360_v49 }
 0x15b   :  { %v4740_v15 = vadd.f32 %v3298_v59, %v3186_v35  ;;  %v4743_v28 = vadd.f32 %v3362_v63, %v4624_v11 }
 0x15d   :  { %v3299_v2 = vpop.f32.mrb[52].mxu1  ;;  %v3363_v36 = vpop.f32.mrb[52].mxu0 }
 0x15e   :  { %v3300_v3 = vpop.f32.mrb[53].mxu1  ;;  %v3364_v6 = vpop.f32.mrb[53].mxu0 }
 0x15f   :  { %v3301_v7 = vadd.f32 %v3300_v3, %v3299_v2  ;;  %v3365_v16 = vadd.f32 %v3364_v6, %v3363_v36  ;;  %v3302_v18 = vpop.f32.mrb[54].mxu1  ;;  %v3366_v60 = vpop.f32.mrb[54].mxu0 }
 0x160   :  { %v3303_v24 = vpop.f32.mrb[55].mxu1  ;;  %v3367_v22 = vpop.f32.mrb[55].mxu0 }
 0x161   :  { %v4746_v8 = vadd.f32 %v3301_v7, %v4706_v20  ;;  %v4749_v23 = vadd.f32 %v3365_v16, %v4641_v29  ;;  %v3304_v35 = vadd.f32 %v3303_v24, %v3302_v18  ;;  %v3368_v44 = vadd.f32 %v3367_v22, %v3366_v60 }
 0x163   :  { %v4751_v11 = vadd.f32 %v3304_v35, %v3192_v56  ;;  %v4754_v25 = vadd.f32 %v3368_v44, %v4646_v33 }
 0x165   :  { %v3305_v26 = vpop.f32.mrb[56].mxu1  ;;  %v3369_v52 = vpop.f32.mrb[56].mxu0 }
 0x166   :  { %v3306_v27 = vpop.f32.mrb[57].mxu1  ;;  %v3370_v38 = vpop.f32.mrb[57].mxu0 }
 0x167   :  { %v3307_v40 = vadd.f32 %v3306_v27, %v3305_v26  ;;  %v3371_v12 = vadd.f32 %v3370_v38, %v3369_v52  ;;  %v3308_v42 = vpop.f32.mrb[58].mxu1  ;;  %v3372_v43 = vpop.f32.mrb[58].mxu0 }
 0x168   :  { %v3309_v20 = vpop.f32.mrb[59].mxu1  ;;  %v3373_v45 = vpop.f32.mrb[59].mxu0 }
 0x169   :  { %v4757_v29 = vadd.f32 %v3307_v40, %v4714_v1  ;;  %v4760_v47 = vadd.f32 %v3371_v12, %v4663_v50  ;;  %v3310_v56 = vadd.f32 %v3309_v20, %v3308_v42  ;;  %v3374_v48 = vadd.f32 %v3373_v45, %v3372_v43 }
 0x16b   :  { %v4763_v33 = vadd.f32 %v3310_v56, %v4719_v19  ;;  %v4766_v49 = vadd.f32 %v3374_v48, %v4668_v55 }
 0x16d   :  { %v3311_v54 = vpop.f32.mrb[60].mxu1  ;;  %v3375_v57 = vpop.f32.mrb[60].mxu0 }
 0x16e   :  { %v3312_v59 = vpop.f32.mrb[61].mxu1  ;;  %v3376_v63 = vpop.f32.mrb[61].mxu0 }
 0x16f   :  { %v3313_v2 = vadd.f32 %v3312_v59, %v3311_v54  ;;  %v3377_v36 = vadd.f32 %v3376_v63, %v3375_v57  ;;  %v3314_v3 = vpop.f32.mrb[62].mxu1  ;;  %v3378_v1 = vpop.f32.mrb[62].mxu0 }
 0x170   :  { %v3315_v6 = vpop.f32.mrb[63].mxu1  ;;  %v3379_v7 = vpop.f32.mrb[63].mxu0 }
 0x171   :  { %v4769_v50 = vadd.f32 %v3313_v2, %v4724_v4  ;;  %v4772_v16 = vadd.f32 %v3377_v36, %v4685_v13  ;;  %v3316_v19 = vadd.f32 %v3315_v6, %v3314_v3  ;;  %v3380_v18 = vadd.f32 %v3379_v7, %v3378_v1 }
 0x173   :  { %v4775_v55 = vadd.f32 %v3316_v19, %v4729_v32  ;;  %v4778_v60 = vadd.f32 %v3380_v18, %v4690_v17 }
 0x175   :  { %v3317_v24 = vpop.f32.mrb[64].mxu1  ;;  %v3381_v22 = vpop.f32.mrb[64].mxu0 }
 0x176   :  { %v3318_v35 = vpop.f32.mrb[65].mxu1  ;;  %v3382_v44 = vpop.f32.mrb[65].mxu0 }
 0x177   :  { %v3319_v26 = vadd.f32 %v3318_v35, %v3317_v24  ;;  %v3383_v52 = vadd.f32 %v3382_v44, %v3381_v22  ;;  %v3320_v27 = vpop.f32.mrb[66].mxu1  ;;  %v3384_v4 = vpop.f32.mrb[66].mxu0 }
 0x178   :  { %v3321_v38 = vpop.f32.mrb[67].mxu1  ;;  %v3385_v40 = vpop.f32.mrb[67].mxu0 }
 0x179   :  { %v4781_v13 = vadd.f32 %v3319_v26, %v4532_v62  ;;  %v4784_v12 = vadd.f32 %v3383_v52, %v4701_v34  ;;  %v3322_v32 = vadd.f32 %v3321_v38, %v3320_v27  ;;  %v3386_v42 = vadd.f32 %v3385_v40, %v3384_v4 }
 0x17b   :  { %v4787_v17 = vadd.f32 %v3322_v32, %v4542_v5  ;;  %v4790_v43 = vadd.f32 %v3386_v42, %v4704_v39 }
 0x17d   :  { %v3323_v20 = vpop.f32.mrb[68].mxu1  ;;  %v3387_v45 = vpop.f32.mrb[68].mxu0 }
 0x17e   :  { %v3324_v56 = vpop.f32.mrb[69].mxu1  ;;  %v3388_v48 = vpop.f32.mrb[69].mxu0 }
 0x17f   :  { %v3325_v54 = vadd.f32 %v3324_v56, %v3323_v20  ;;  %v3389_v57 = vadd.f32 %v3388_v48, %v3387_v45  ;;  %v3326_v59 = vpop.f32.mrb[70].mxu1  ;;  %v3390_v62 = vpop.f32.mrb[70].mxu0 }
 0x180   :  { %v3327_v63 = vpop.f32.mrb[71].mxu1  ;;  %v3391_v2 = vpop.f32.mrb[71].mxu0 }
 0x181   :  { %v4793_v34 = vadd.f32 %v3325_v54, %v4552_v14  ;;  %v4796_v36 = vadd.f32 %v3389_v57, %v4709_v61  ;;  %v3328_v5 = vadd.f32 %v3327_v63, %v3326_v59  ;;  %v3392_v3 = vadd.f32 %v3391_v2, %v3390_v62 }
 0x183   :  { %v4799_v39 = vadd.f32 %v3328_v5, %v4562_v21  ;;  %v4802_v1 = vadd.f32 %v3392_v3, %v4712_v58 }
 0x185   :  { %v3329_v6 = vpop.f32.mrb[72].mxu1  ;;  %v3393_v7 = vpop.f32.mrb[72].mxu0 }
 0x186   :  { %v3330_v19 = vpop.f32.mrb[73].mxu1  ;;  %v3394_v18 = vpop.f32.mrb[73].mxu0 }
 0x187   :  { %v3331_v24 = vadd.f32 %v3330_v19, %v3329_v6  ;;  %v3395_v22 = vadd.f32 %v3394_v18, %v3393_v7  ;;  %v3332_v35 = vpop.f32.mrb[74].mxu1  ;;  %v3396_v14 = vpop.f32.mrb[74].mxu0 }
 0x188   :  { %v3333_v44 = vpop.f32.mrb[75].mxu1  ;;  %v3397_v26 = vpop.f32.mrb[75].mxu0 }
 0x189   :  { %v4805_v61 = vadd.f32 %v3331_v24, %v4572_v30  ;;  %v4808_v52 = vadd.f32 %v3395_v22, %v4717_v10  ;;  %v3334_v21 = vadd.f32 %v3333_v44, %v3332_v35  ;;  %v3398_v27 = vadd.f32 %v3397_v26, %v3396_v14 }
 0x18b   :  { %v4811_v58 = vadd.f32 %v3334_v21, %v4582_v37  ;;  %v4814_v4 = vadd.f32 %v3398_v27, %v4722_v31 }
 0x18d   :  { %v3335_v38 = vpop.f32.mrb[76].mxu1  ;;  %v3399_v40 = vpop.f32.mrb[76].mxu0 }
 0x18e   :  { %v3336_v32 = vpop.f32.mrb[77].mxu1  ;;  %v3400_v42 = vpop.f32.mrb[77].mxu0 }
 0x18f   :  { %v3337_v20 = vadd.f32 %v3336_v32, %v3335_v38  ;;  %v3401_v45 = vadd.f32 %v3400_v42, %v3399_v40  ;;  %v3338_v56 = vpop.f32.mrb[78].mxu1  ;;  %v3402_v30 = vpop.f32.mrb[78].mxu0 }
 0x190   :  { %v3339_v48 = vpop.f32.mrb[79].mxu1  ;;  %v3403_v54 = vpop.f32.mrb[79].mxu0 }
 0x191   :  { %v4817_v10 = vadd.f32 %v3337_v20, %v4592_v46  ;;  %v4820_v57 = vadd.f32 %v3401_v45, %v4727_v41  ;;  %v3340_v37 = vadd.f32 %v3339_v48, %v3338_v56  ;;  %v3404_v59 = vadd.f32 %v3403_v54, %v3402_v30 }
 0x193   :  { %v4823_v31 = vadd.f32 %v3340_v37, %v4602_v53  ;;  %v4826_v62 = vadd.f32 %v3404_v59, %v4732_v51 }
 0x195   :  { %v3405_v63 = vpop.f32.mrb[80].mxu0  ;;  %v3469_v2 = vpop.f32.mrb[80].mxu1 }
 0x196   :  { %v3406_v5 = vpop.f32.mrb[81].mxu0  ;;  %v3470_v3 = vpop.f32.mrb[81].mxu1 }
 0x197   :  { %v3407_v6 = vadd.f32 %v3406_v5, %v3405_v63  ;;  %v3471_v7 = vadd.f32 %v3470_v3, %v3469_v2  ;;  %v3408_v19 = vpop.f32.mrb[82].mxu0  ;;  %v3472_v46 = vpop.f32.mrb[82].mxu1 }
 0x198   :  { %v3409_v18 = vpop.f32.mrb[83].mxu0  ;;  %v3473_v24 = vpop.f32.mrb[83].mxu1 }
 0x199   :  { %v4829_v41 = vadd.f32 %v3407_v6, %v4735_v9  ;;  %v3410_v22 = vadd.f32 %v3409_v18, %v3408_v19  ;;  %v3474_v35 = vadd.f32 %v3473_v24, %v3472_v46  ;;  %v4832_v53 = vadd.f32 %v3471_v7, %v4738_v0 }
 0x19b   :  { %v4835_v51 = vadd.f32 %v3410_v22, %v4740_v15  ;;  %v4838_v14 = vadd.f32 %v3474_v35, %v4743_v28 }
 0x19d   :  { %v3411_v44 = vpop.f32.mrb[84].mxu0  ;;  %v3475_v26 = vpop.f32.mrb[84].mxu1 }
 0x19e   :  { %v3412_v21 = vpop.f32.mrb[85].mxu0  ;;  %v3476_v27 = vpop.f32.mrb[85].mxu1 }
 0x19f   :  { %v3413_v38 = vadd.f32 %v3412_v21, %v3411_v44  ;;  %v3477_v40 = vadd.f32 %v3476_v27, %v3475_v26  ;;  %v3414_v32 = vpop.f32.mrb[86].mxu0  ;;  %v3478_v9 = vpop.f32.mrb[86].mxu1 }
 0x1a0   :  { %v3415_v42 = vpop.f32.mrb[87].mxu0  ;;  %v3479_v20 = vpop.f32.mrb[87].mxu1 }
 0x1a1   :  { %v4841_v45 = vadd.f32 %v3413_v38, %v4746_v8  ;;  %v3416_v0 = vadd.f32 %v3415_v42, %v3414_v32  ;;  %v3480_v56 = vadd.f32 %v3479_v20, %v3478_v9  ;;  %v4844_v15 = vadd.f32 %v3477_v40, %v4749_v23 }
 0x1a3   :  { %v4847_v28 = vadd.f32 %v3416_v0, %v4751_v11  ;;  %v4850_v30 = vadd.f32 %v3480_v56, %v4754_v25 }
 0x1a5   :  { %v3417_v48 = vpop.f32.mrb[88].mxu0  ;;  %v3481_v54 = vpop.f32.mrb[88].mxu1 }
 0x1a6   :  { %v3418_v37 = vpop.f32.mrb[89].mxu0  ;;  %v3482_v59 = vpop.f32.mrb[89].mxu1 }
 0x1a7   :  { %v3419_v63 = vadd.f32 %v3418_v37, %v3417_v48  ;;  %v3483_v2 = vadd.f32 %v3482_v59, %v3481_v54  ;;  %v3420_v5 = vpop.f32.mrb[90].mxu0  ;;  %v3484_v8 = vpop.f32.mrb[90].mxu1 }
 0x1a8   :  { %v3421_v3 = vpop.f32.mrb[91].mxu0  ;;  %v3485_v6 = vpop.f32.mrb[91].mxu1 }
 0x1a9   :  { %v4853_v7 = vadd.f32 %v3419_v63, %v4757_v29  ;;  %v3422_v23 = vadd.f32 %v3421_v3, %v3420_v5  ;;  %v3486_v19 = vadd.f32 %v3485_v6, %v3484_v8  ;;  %v4856_v11 = vadd.f32 %v3483_v2, %v4760_v47 }
 0x1ab   :  { %v4859_v25 = vadd.f32 %v3422_v23, %v4763_v33  ;;  %v4862_v46 = vadd.f32 %v3486_v19, %v4766_v49 }
 0x1ad   :  { %v3423_v18 = vpop.f32.mrb[92].mxu0  ;;  %v3487_v24 = vpop.f32.mrb[92].mxu1 }
 0x1ae   :  { %v3424_v22 = vpop.f32.mrb[93].mxu0  ;;  %v3488_v35 = vpop.f32.mrb[93].mxu1 }
 0x1af   :  { %v3425_v44 = vadd.f32 %v3424_v22, %v3423_v18  ;;  %v3489_v26 = vadd.f32 %v3488_v35, %v3487_v24  ;;  %v3426_v21 = vpop.f32.mrb[94].mxu0  ;;  %v3490_v29 = vpop.f32.mrb[94].mxu1 }
 0x1b0   :  { %v3427_v27 = vpop.f32.mrb[95].mxu0  ;;  %v3491_v38 = vpop.f32.mrb[95].mxu1 }
 0x1b1   :  { %v4865_v40 = vadd.f32 %v3425_v44, %v4769_v50  ;;  %v3428_v47 = vadd.f32 %v3427_v27, %v3426_v21  ;;  %v3492_v32 = vadd.f32 %v3491_v38, %v3490_v29  ;;  %v4868_v33 = vadd.f32 %v3489_v26, %v4772_v16 }
 0x1b3   :  { %v4871_v49 = vadd.f32 %v3428_v47, %v4775_v55  ;;  %v4874_v9 = vadd.f32 %v3492_v32, %v4778_v60 }
 0x1b5   :  { %v3429_v42 = vpop.f32.mrb[96].mxu0  ;;  %v3493_v20 = vpop.f32.mrb[96].mxu1 }
 0x1b6   :  { %v3430_v0 = vpop.f32.mrb[97].mxu0  ;;  %v3494_v56 = vpop.f32.mrb[97].mxu1 }
 0x1b7   :  { %v3431_v48 = vadd.f32 %v3430_v0, %v3429_v42  ;;  %v3495_v54 = vadd.f32 %v3494_v56, %v3493_v20  ;;  %v3432_v37 = vpop.f32.mrb[98].mxu0  ;;  %v3496_v50 = vpop.f32.mrb[98].mxu1 }
 0x1b8   :  { %v3433_v59 = vpop.f32.mrb[99].mxu0  ;;  %v3497_v63 = vpop.f32.mrb[99].mxu1 }
 0x1b9   :  { %v4877_v2 = vadd.f32 %v3431_v48, %v4781_v13  ;;  %v3434_v16 = vadd.f32 %v3433_v59, %v3432_v37  ;;  %v3498_v5 = vadd.f32 %v3497_v63, %v3496_v50  ;;  %v4880_v55 = vadd.f32 %v3495_v54, %v4784_v12 }
 0x1bb   :  { %v4883_v60 = vadd.f32 %v3434_v16, %v4787_v17  ;;  %v4886_v8 = vadd.f32 %v3498_v5, %v4790_v43 }
 0x1bd   :  { %v3435_v3 = vpop.f32.mrb[100].mxu0  ;;  %v3499_v6 = vpop.f32.mrb[100].mxu1 }
 0x1be   :  { %v3436_v23 = vpop.f32.mrb[101].mxu0  ;;  %v3500_v19 = vpop.f32.mrb[101].mxu1 }
 0x1bf   :  { %v3437_v18 = vadd.f32 %v3436_v23, %v3435_v3  ;;  %v3501_v24 = vadd.f32 %v3500_v19, %v3499_v6  ;;  %v3438_v22 = vpop.f32.mrb[102].mxu0  ;;  %v3502_v13 = vpop.f32.mrb[102].mxu1 }
 0x1c0   :  { %v3439_v35 = vpop.f32.mrb[103].mxu0  ;;  %v3503_v44 = vpop.f32.mrb[103].mxu1 }
 0x1c1   :  { %v4889_v26 = vadd.f32 %v3437_v18, %v4793_v34  ;;  %v3440_v12 = vadd.f32 %v3439_v35, %v3438_v22  ;;  %v3504_v21 = vadd.f32 %v3503_v44, %v3502_v13  ;;  %v4892_v17 = vadd.f32 %v3501_v24, %v4796_v36 }
 0x1c3   :  { %v4895_v43 = vadd.f32 %v3440_v12, %v4799_v39  ;;  %v4898_v29 = vadd.f32 %v3504_v21, %v4802_v1 }
 0x1c5   :  { %v3441_v27 = vpop.f32.mrb[104].mxu0  ;;  %v3505_v38 = vpop.f32.mrb[104].mxu1 }
 0x1c6   :  { %v3442_v47 = vpop.f32.mrb[105].mxu0  ;;  %v3506_v32 = vpop.f32.mrb[105].mxu1 }
 0x1c7   :  { %v3443_v42 = vadd.f32 %v3442_v47, %v3441_v27  ;;  %v3507_v20 = vadd.f32 %v3506_v32, %v3505_v38  ;;  %v3444_v0 = vpop.f32.mrb[106].mxu0  ;;  %v3508_v34 = vpop.f32.mrb[106].mxu1 }
 0x1c8   :  { %v3445_v56 = vpop.f32.mrb[107].mxu0  ;;  %v3509_v48 = vpop.f32.mrb[107].mxu1 }
 0x1c9   :  { %v4901_v54 = vadd.f32 %v3443_v42, %v4805_v61  ;;  %v3446_v36 = vadd.f32 %v3445_v56, %v3444_v0  ;;  %v3510_v37 = vadd.f32 %v3509_v48, %v3508_v34  ;;  %v4904_v39 = vadd.f32 %v3507_v20, %v4808_v52 }
 0x1cb   :  { %v4907_v1 = vadd.f32 %v3446_v36, %v4811_v58  ;;  %v4910_v50 = vadd.f32 %v3510_v37, %v4814_v4 }
 0x1cd   :  { %v3447_v59 = vpop.f32.mrb[108].mxu0  ;;  %v3511_v63 = vpop.f32.mrb[108].mxu1 }
 0x1ce   :  { %v3448_v16 = vpop.f32.mrb[109].mxu0  ;;  %v3512_v5 = vpop.f32.mrb[109].mxu1 }
 0x1cf   :  { %v3449_v3 = vadd.f32 %v3448_v16, %v3447_v59  ;;  %v3513_v6 = vadd.f32 %v3512_v5, %v3511_v63  ;;  %v3450_v23 = vpop.f32.mrb[110].mxu0  ;;  %v3514_v61 = vpop.f32.mrb[110].mxu1 }
 0x1d0   :  { %v3451_v19 = vpop.f32.mrb[111].mxu0  ;;  %v3515_v18 = vpop.f32.mrb[111].mxu1 }
 0x1d1   :  { %v4913_v24 = vadd.f32 %v3449_v3, %v4817_v10  ;;  %v3452_v52 = vadd.f32 %v3451_v19, %v3450_v23  ;;  %v3516_v22 = vadd.f32 %v3515_v18, %v3514_v61  ;;  %v4916_v58 = vadd.f32 %v3513_v6, %v4820_v57 }
 0x1d3   :  { %v4919_v4 = vadd.f32 %v3452_v52, %v4823_v31  ;;  %v4922_v13 = vadd.f32 %v3516_v22, %v4826_v62 }
 0x1d5   :  { %v3517_v35 = vpop.f32.mrb[112].mxu1  ;;  %v3607_v44 = vpop.f32.mrb[112].mxu0 }
 0x1d6   :  { %v4925_v12 = vadd.f32 %v3607_v44, %v4844_v15  ;;  %v3518_v21 = vpop.f32.mrb[113].mxu1  ;;  %v2168_v10 = vpop.f32.mrb[113].mxu0 }
 0x1d7   :  { %v3519_v27 = vadd.f32 %v3518_v21, %v3517_v35  ;;  %v4928_v38 = vadd.f32 %v2168_v10, %v4832_v53  ;;  %v3520_v57 = vpop.f32.mrb[114].mxu1  ;;  %v3608_v47 = vpop.f32.mrb[114].mxu0 }
 0x1d8   :  { %v4931_v31 = vadd.f32 %v3608_v47, %v4850_v30  ;;  %v3521_v32 = vpop.f32.mrb[115].mxu1  ;;  %v2171_v62 = vpop.f32.mrb[115].mxu0  ;;  %v2318_v42 = vsel %vm2311_vm0, %v4925_v12, 0.0 }
 0x1d9   :  { %v3522_v20 = vadd.f32 %v3521_v32, %v3520_v57  ;;  %v4936_v15 = vadd.f32 %v2171_v62, %v4838_v14  ;;  %2319 = vadd.xlane.f32.xlu1 %v2318_v42  ;;  %v2312_v0 = vsel %vm2311_vm0, %v4928_v38, 0.0  ;;  %v4941_v53 = vadd.f32 %v3519_v27, %v4829_v41 }
 0x1da   :  { %2313 = vadd.xlane.f32.xlu0 %v2312_v0  ;;  %v2321_v34 = vsel %vm2311_vm0, %v4931_v31, 0.0 }
 0x1db   :  { %v4944_v30 = vadd.f32 %v3522_v20, %v4835_v51  ;;  %v2315_v14 = vsel %vm2311_vm0, %v4936_v15, 0.0 }
 0x1dd   :  { %v3523_v56 = vpop.f32.mrb[116].mxu1  ;;  %v3611_v48 = vpop.f32.mrb[116].mxu0  ;;  %2322 = vadd.xlane.f32.xlu1 %v2321_v34 }
 0x1de   :  { %v4951_v36 = vadd.f32 %v3611_v48, %v4868_v33  ;;  %v3524_v37 = vpop.f32.mrb[117].mxu1  ;;  %v2184_v59 = vpop.f32.mrb[117].mxu0  ;;  %2316 = vadd.xlane.f32.xlu0 %v2315_v14 }
 0x1df   :  { %v3525_v41 = vadd.f32 %v3524_v37, %v3523_v56  ;;  %v4954_v63 = vadd.f32 %v2184_v59, %v4856_v11  ;;  %v3526_v51 = vpop.f32.mrb[118].mxu1  ;;  %v3612_v16 = vpop.f32.mrb[118].mxu0 }
 0x1e0   :  { %v4957_v5 = vadd.f32 %v3612_v16, %v4874_v9  ;;  %v3527_v3 = vpop.f32.mrb[119].mxu1  ;;  %v2187_v6 = vpop.f32.mrb[119].mxu0  ;;  %v2330_v23 = vsel %vm2311_vm0, %v4951_v36, 0.0 }
 0x1e1   :  { %v3528_v61 = vadd.f32 %v3527_v3, %v3526_v51  ;;  %v4962_v33 = vadd.f32 %v2187_v6, %v4862_v46  ;;  %v2080_v19 = vadd.f32 %v3525_v41, %v4841_v45  ;;  %v2324_v22 = vsel %vm2311_vm0, %v4954_v63, 0.0 }
 0x1e2   :  { %2331 = vadd.xlane.f32.xlu0 %v2330_v23  ;;  %v2333_v11 = vsel %vm2311_vm0, %v4957_v5, 0.0 }
 0x1e3   :  { %2334 = vadd.xlane.f32.xlu1 %v2333_v11  ;;  %v2083_v18 = vadd.f32 %v3528_v61, %v4847_v28  ;;  %v2327_v45 = vsel %vm2311_vm0, %v4962_v33, 0.0 }
 0x1e5   :  { %v3529_v9 = vpop.f32.mrb[120].mxu1  ;;  %v3615_v52 = vpop.f32.mrb[120].mxu0 }
 0x1e6   :  { %v4971_v35 = vadd.f32 %v3615_v52, %v4892_v17  ;;  %v3530_v44 = vpop.f32.mrb[121].mxu1  ;;  %v2200_v46 = vpop.f32.mrb[121].mxu0  ;;  %2325 = vadd.xlane.f32.xlu0 %v2324_v22 }
 0x1e7   :  { %v3531_v21 = vadd.f32 %v3530_v44, %v3529_v9  ;;  %v4976_v10 = vadd.f32 %v2200_v46, %v4880_v55  ;;  %v3532_v27 = vpop.f32.mrb[122].mxu1  ;;  %v3616_v28 = vpop.f32.mrb[122].mxu0  ;;  %2328 = vadd.xlane.f32.xlu1 %v2327_v45 }
 0x1e8   :  { %v4979_v57 = vadd.f32 %v3616_v28, %v4898_v29  ;;  %v3533_v47 = vpop.f32.mrb[123].mxu1  ;;  %v2203_v32 = vpop.f32.mrb[123].mxu0  ;;  %v2350_v17 = vsel %vm2311_vm0, %v4971_v35, 0.0 }
 0x1e9   :  { %v3534_v62 = vadd.f32 %v3533_v47, %v3532_v27  ;;  %v4984_v42 = vadd.f32 %v2203_v32, %v4886_v8  ;;  %v2088_v20 = vadd.f32 %v3531_v21, %v4853_v7  ;;  %v2344_v56 = vsel %vm2311_vm0, %v4976_v10, 0.0 }
 0x1ea   :  { %2351 = vadd.xlane.f32.xlu0 %v2350_v17  ;;  %v2353_v55 = vsel %vm2311_vm0, %v4979_v57, 0.0 }
 0x1eb   :  { %2354 = vadd.xlane.f32.xlu1 %v2353_v55  ;;  %v4990_v0 = vadd.f32 %v3534_v62, %v4859_v25  ;;  %v2347_v7 = vsel %vm2311_vm0, %v4984_v42, 0.0 }
 0x1ed   :  { %v3535_v29 = vpop.f32.mrb[124].mxu1  ;;  %v3619_v34 = vpop.f32.mrb[124].mxu0 }
 0x1ee   :  { %v4995_v48 = vadd.f32 %v3619_v34, %v4916_v58  ;;  %v3536_v8 = vpop.f32.mrb[125].mxu1  ;;  %v2216_v14 = vpop.f32.mrb[125].mxu0  ;;  %2345 = vadd.xlane.f32.xlu0 %v2344_v56 }
 0x1ef   :  { %v3537_v37 = vadd.f32 %v3536_v8, %v3535_v29  ;;  %v5000_v59 = vadd.f32 %v2216_v14, %v4904_v39  ;;  %v3538_v25 = vpop.f32.mrb[126].mxu1  ;;  %v3620_v41 = vpop.f32.mrb[126].mxu0  ;;  %2348 = vadd.xlane.f32.xlu1 %v2347_v7 }
 0x1f0   :  { %v5003_v51 = vadd.f32 %v3620_v41, %v4922_v13  ;;  %v3539_v16 = vpop.f32.mrb[127].mxu1  ;;  %v2219_v3 = vpop.f32.mrb[127].mxu0  ;;  %v2362_v58 = vsel %vm2311_vm0, %v4995_v48, 0.0 }
 0x1f1   :  { %v3540_v6 = vadd.f32 %v3539_v16, %v3538_v25  ;;  %v5008_v23 = vadd.f32 %v2219_v3, %v4910_v50  ;;  %v2096_v61 = vadd.f32 %v3537_v37, %v4865_v40  ;;  %v2356_v52 = vsel %vm2311_vm0, %v5000_v59, 0.0 }
 0x1f2   :  { %2363 = vadd.xlane.f32.xlu0 %v2362_v58  ;;  %v2365_v39 = vsel %vm2311_vm0, %v5003_v51, 0.0 }
 0x1f3   :  { %2366 = vadd.xlane.f32.xlu1 %v2365_v39  ;;  %v2099_v11 = vadd.f32 %v3540_v6, %v4871_v49  ;;  %v2359_v40 = vsel %vm2311_vm0, %v5008_v23, 0.0 }
 0x1f5   :  { %v3541_v13 = vpop.f32.mrb[128].mxu1  ;;  %v3623_v9 = vpop.f32.mrb[128].mxu0 }
 0x1f6   :  { %v5016_v22 = vadd.f32 %v3623_v9, %v2080_v19  ;;  %v3542_v44 = vpop.f32.mrb[129].mxu1  ;;  %v2232_v46 = vpop.f32.mrb[129].mxu0  ;;  %2357 = vadd.xlane.f32.xlu0 %v2356_v52 }
 0x1f7   :  { %v3543_v50 = vadd.f32 %v3542_v44, %v3541_v13  ;;  %v5021_v45 = vadd.f32 %v2232_v46, %v4941_v53  ;;  %v3544_v21 = vpop.f32.mrb[130].mxu1  ;;  %v3624_v27 = vpop.f32.mrb[130].mxu0  ;;  %2360 = vadd.xlane.f32.xlu1 %v2359_v40 }
 0x1f8   :  { %v5023_v49 = vadd.f32 %v3624_v27, %v2083_v18  ;;  %v3545_v28 = vpop.f32.mrb[131].mxu1  ;;  %v2235_v47 = vpop.f32.mrb[131].mxu0  ;;  %v2382_v19 = vsel %vm2311_vm0, %v5016_v22, 0.0 }
 0x1f9   :  { %v3546_v32 = vadd.f32 %v3545_v28, %v3544_v21  ;;  %v5028_v17 = vadd.f32 %v2235_v47, %v4944_v30  ;;  %v2104_v62 = vadd.f32 %v3543_v50, %v4877_v2  ;;  %v2376_v34 = vsel %vm2311_vm0, %v5021_v45, 0.0 }
 0x1fa   :  { %2383 = vadd.xlane.f32.xlu0 %v2382_v19  ;;  %v2385_v53 = vsel %vm2311_vm0, %v5023_v49, 0.0 }
 0x1fb   :  { %2386 = vadd.xlane.f32.xlu1 %v2385_v53  ;;  %v2107_v55 = vadd.f32 %v3546_v32, %v4883_v60  ;;  %v2379_v2 = vsel %vm2311_vm0, %v5028_v17, 0.0 }
 0x1fd   :  { %v3547_v18 = vpop.f32.mrb[132].mxu1  ;;  %v3627_v29 = vpop.f32.mrb[132].mxu0 }
 0x1fe   :  { %v5036_v56 = vadd.f32 %v3627_v29, %v2096_v61  ;;  %v3548_v8 = vpop.f32.mrb[133].mxu1  ;;  %v2248_v14 = vpop.f32.mrb[133].mxu0  ;;  %2377 = vadd.xlane.f32.xlu0 %v2376_v34 }
 0x1ff   :  { %v3549_v30 = vadd.f32 %v3548_v8, %v3547_v18  ;;  %v5040_v7 = vadd.f32 %v2248_v14, %v2088_v20  ;;  %v3550_v37 = vpop.f32.mrb[134].mxu1  ;;  %v3628_v25 = vpop.f32.mrb[134].mxu0  ;;  %2380 = vadd.xlane.f32.xlu1 %v2379_v2 }
 0x200   :  { %v5042_v60 = vadd.f32 %v3628_v25, %v2099_v11  ;;  %v3551_v41 = vpop.f32.mrb[135].mxu1  ;;  %v2251_v16 = vpop.f32.mrb[135].mxu0  ;;  %v2394_v3 = vsel %vm2311_vm0, %v5036_v56, 0.0 }
 0x201   :  { %v3552_v58 = vadd.f32 %v3551_v41, %v3550_v37  ;;  %v5047_v6 = vadd.f32 %v2251_v16, %v4990_v0  ;;  %v2112_v61 = vadd.f32 %v3549_v30, %v4889_v26  ;;  %v2388_v9 = vsel %vm2311_vm0, %v5040_v7, 0.0 }
 0x202   :  { %5456 = vst [vmem:[#allocation2_spill] sm:$0xff] %v5042_v60  ;;  %2395 = vadd.xlane.f32.xlu0 %v2394_v3  ;;  %v2397_v20 = vsel %vm2311_vm0, %v5042_v60, 0.0 }
 0x203   :  { %2398 = vadd.xlane.f32.xlu1 %v2397_v20  ;;  %v2115_v39 = vadd.f32 %v3552_v58, %v4895_v43  ;;  %v2391_v26 = vsel %vm2311_vm0, %v5047_v6, 0.0 }
 0x205   :  { %v3553_v11 = vpop.f32.mrb[136].mxu1  ;;  %v3631_v13 = vpop.f32.mrb[136].mxu0 }
 0x206   :  { %v5055_v52 = vadd.f32 %v3631_v13, %v2112_v61  ;;  %v3554_v44 = vpop.f32.mrb[137].mxu1  ;;  %v2264_v46 = vpop.f32.mrb[137].mxu0  ;;  %2389 = vadd.xlane.f32.xlu0 %v2388_v9 }
 0x207   :  { %v3555_v0 = vadd.f32 %v3554_v44, %v3553_v11  ;;  %v5059_v40 = vadd.f32 %v2264_v46, %v2104_v62  ;;  %v3556_v50 = vpop.f32.mrb[138].mxu1  ;;  %v3632_v21 = vpop.f32.mrb[138].mxu0  ;;  %2392 = vadd.xlane.f32.xlu1 %v2391_v26 }
 0x208   :  { %v5061_v43 = vadd.f32 %v3632_v21, %v2115_v39  ;;  %v3557_v27 = vpop.f32.mrb[139].mxu1  ;;  %v2267_v28 = vpop.f32.mrb[139].mxu0  ;;  %v2414_v47 = vsel %vm2311_vm0, %v5055_v52, 0.0 }
 0x209   :  { %v3558_v19 = vadd.f32 %v3557_v27, %v3556_v50  ;;  %v5065_v32 = vadd.f32 %v2267_v28, %v2107_v55  ;;  %v2120_v53 = vadd.f32 %v3555_v0, %v4901_v54  ;;  %v2408_v8 = vsel %vm2311_vm0, %v5059_v40, 0.0 }
 0x20a   :  { %2415 = vadd.xlane.f32.xlu0 %v2414_v47  ;;  %v2417_v62 = vsel %vm2311_vm0, %v5061_v43, 0.0 }
 0x20b   :  { %2418 = vadd.xlane.f32.xlu1 %v2417_v62  ;;  %v2123_v18 = vadd.f32 %v3558_v19, %v4907_v1  ;;  %v2411_v55 = vsel %vm2311_vm0, %v5065_v32, 0.0 }
 0x20d   :  { %v3559_v29 = vpop.f32.mrb[140].mxu1  ;;  %v3635_v34 = vpop.f32.mrb[140].mxu0 }
 0x20e   :  { %v3560_v14 = vpop.f32.mrb[141].mxu1  ;;  %v2280_v2 = vpop.f32.mrb[141].mxu0  ;;  %2409 = vadd.xlane.f32.xlu0 %v2408_v8 }
 0x20f   :  { %v3561_v30 = vadd.f32 %v3560_v14, %v3559_v29  ;;  %v5075_v54 = vadd.f32 %v2280_v2, %v2120_v53  ;;  %v3562_v37 = vpop.f32.mrb[142].mxu1  ;;  %v3636_v25 = vpop.f32.mrb[142].mxu0  ;;  %2412 = vadd.xlane.f32.xlu1 %v2411_v55 }
 0x210   :  { %v3563_v41 = vpop.f32.mrb[143].mxu1  ;;  %v2283_v16 = vpop.f32.mrb[143].mxu0 }
 0x211   :  { %v2128_v1 = vadd.f32 %v3561_v30, %v4913_v24  ;;  %v3564_v3 = vadd.f32 %v3563_v41, %v3562_v37  ;;  %v5078_v58 = vadd.f32 %v2283_v16, %v2123_v18  ;;  %v2420_v61 = vsel %vm2311_vm0, %v5075_v54, 0.0 }
 0x212   :  { %2421 = vadd.xlane.f32.xlu0 %v2420_v61 }
 0x213   :  { %v5082_v20 = vadd.f32 %v3635_v34, %v2128_v1  ;;  %v2131_v39 = vadd.f32 %v3564_v3, %v4919_v4  ;;  %v2423_v11 = vsel %vm2311_vm0, %v5078_v58, 0.0 }
 0x214   :  { %2424 = vadd.xlane.f32.xlu1 %v2423_v11 }
 0x215   :  { %5457 = vst [vmem:[#allocation3_spill] sm:$0xff] %v5082_v20  ;;  %v5087_v13 = vadd.f32 %v3636_v25, %v2131_v39  ;;  %v2426_v24 = vsel %vm2311_vm0, %v5082_v20, 0.0 }
 0x216   :  { %2427 = vadd.xlane.f32.xlu0 %v2426_v24 }
 0x217   :  { %5458 = vst [vmem:[#allocation4_spill] sm:$0xff] %v5087_v13  ;;  %v2429_v9 = vsel %vm2311_vm0, %v5087_v13, 0.0 }
 0x218   :  { %2430 = vadd.xlane.f32.xlu1 %v2429_v9 }
 0x266   :  { %v2320_v44 = vpop.xlane.xlu1 %2319 }
 0x267   :  { %v2314_v46 = vpop.xlane.xlu0 %2313 }
 0x26a   :  { %v2323_v0 = vpop.xlane.xlu1 %2322 }
 0x26b   :  { %v2317_v26 = vpop.xlane.xlu0 %2316 }
 0x26f   :  { %v2332_v50 = vpop.xlane.xlu0 %2331 }
 0x270   :  { %v2335_v4 = vpop.xlane.xlu1 %2334 }
 0x273   :  { %v5093_v21 = vpop.xlane.xlu0 %2325 }
 0x274   :  { %v5095_v27 = vpop.xlane.xlu1 %2328 }
 0x277   :  { %v2352_v28 = vpop.xlane.xlu0 %2351 }
 0x278   :  { %v2355_v47 = vpop.xlane.xlu1 %2354  ;;  %v2370_v1 = vadd.f32 %v2352_v28, %v2320_v44 }
 0x279   :  { %v2371_v61 = vadd.f32 %v2355_v47, %v2323_v0 }
 0x27b   :  { %v2346_v19 = vpop.xlane.xlu0 %2345 }
 0x27c   :  { %v2349_v53 = vpop.xlane.xlu1 %2348  ;;  %v2368_v13 = vadd.f32 %v2346_v19, %v2314_v46 }
 0x27d   :  { %v2369_v28 = vadd.f32 %v2349_v53, %v2317_v26 }
 0x27f   :  { %v2364_v62 = vpop.xlane.xlu0 %2363 }
 0x280   :  { %v5097_v18 = vadd.f32 %v2364_v62, %v2332_v50  ;;  %v2367_v29 = vpop.xlane.xlu1 %2366 }
 0x281   :  { %v5099_v34 = vadd.f32 %v2367_v29, %v2335_v4 }
 0x283   :  { %v2358_v8 = vpop.xlane.xlu0 %2357 }
 0x284   :  { %v5101_v14 = vpop.xlane.xlu1 %2360 }
 0x287   :  { %v2384_v2 = vpop.xlane.xlu0 %2383 }
 0x288   :  { %v2387_v55 = vpop.xlane.xlu1 %2386  ;;  %v2402_v39 = vadd.f32 %v2384_v2, %v2370_v1 }
 0x289   :  { %v2403_v11 = vadd.f32 %v2387_v55, %v2371_v61 }
 0x28b   :  { %v2378_v30 = vpop.xlane.xlu0 %2377 }
 0x28c   :  { %v2381_v37 = vpop.xlane.xlu1 %2380  ;;  %v2400_v2 = vadd.f32 %v2378_v30, %v2368_v13 }
 0x28d   :  { %v2401_v61 = vadd.f32 %v2381_v37, %v2369_v28 }
 0x28f   :  { %v5103_v25 = vpop.xlane.xlu0 %2395 }
 0x290   :  { %v5105_v41 = vpop.xlane.xlu1 %2398 }
 0x293   :  { %v2390_v16 = vpop.xlane.xlu0 %2389 }
 0x294   :  { %v5107_v3 = vpop.xlane.xlu1 %2392 }
 0x297   :  { %v2416_v24 = vpop.xlane.xlu0 %2415 }
 0x298   :  { %v2434_v9 = vadd.f32 %v2416_v24, %v2402_v39  ;;  %v2419_v50 = vpop.xlane.xlu1 %2418 }
 0x299   :  { %v2435_v4 = vadd.f32 %v2419_v50, %v2403_v11 }
 0x29a   :  { %v5109_v62 = vmul.f32 0.0034722222, %v2434_v9 }
 0x29b   :  { %v5111_v29 = vmul.f32 0.0034722222, %v2435_v4  ;;  %v2410_v60 = vpop.xlane.xlu0 %2409 }
 0x29c   :  { %v2451_v20 = vsub.f32 %v4925_v12, %v5109_v62  ;;  %v2499_v44 = vsub.f32 %v4971_v35, %v5109_v62  ;;  %v2413_v55 = vpop.xlane.xlu1 %2412  ;;  %v2432_v46 = vadd.f32 %v2410_v60, %v2400_v2  ;;  %v2547_v24 = vsub.f32 %v5016_v22, %v5109_v62 }
 0x29d   :  { %v2452_v0 = vsub.f32 %v4931_v31, %v5111_v29  ;;  %v2500_v47 = vsub.f32 %v4979_v57, %v5111_v29  ;;  %v2433_v26 = vadd.f32 %v2413_v55, %v2401_v61  ;;  %v2548_v50 = vsub.f32 %v5023_v49, %v5111_v29 }
 0x29e   :  { %v2459_v1 = vmul.f32 %v2451_v20, %v2451_v20  ;;  %v2507_v11 = vmul.f32 %v2499_v44, %v2499_v44  ;;  %v5127_v13 = vmul.f32 0.0034722222, %v2432_v46  ;;  %v2555_v60 = vmul.f32 %v2547_v24, %v2547_v24 }
 0x29f   :  { %v2460_v39 = vmul.f32 %v2452_v0, %v2452_v0  ;;  %v2508_v9 = vmul.f32 %v2500_v47, %v2500_v47  ;;  %v2595_v30 = vsub.f32 %v5055_v52, %v5109_v62  ;;  %v5132_v37 = vmul.f32 0.0034722222, %v2433_v26  ;;  %v2422_v26 = vpop.xlane.xlu0 %2421 }
 0x2a0   :  { %v2471_v19 = vsel %vm2311_vm0, %v2459_v1, 0.0  ;;  %v2519_v20 = vsel %vm2311_vm0, %v2507_v11, 0.0  ;;  %v2556_v44 = vmul.f32 %v2548_v50, %v2548_v50  ;;  %v2596_v28 = vsub.f32 %v5061_v43, %v5111_v29 }
 0x2a1   :  { %2472 = vadd.xlane.f32.xlu0 %v2471_v19  ;;  %v2474_v53 = vsel %vm2311_vm0, %v2460_v39, 0.0  ;;  %v2522_v4 = vsel %vm2311_vm0, %v2508_v9, 0.0  ;;  %v2567_v0 = vsel %vm2311_vm0, %v2555_v60, 0.0  ;;  %v2603_v47 = vmul.f32 %v2595_v30, %v2595_v30  ;;  %v2425_v60 = vpop.xlane.xlu1 %2424 }
 0x2a2   :  { %2475 = vadd.xlane.f32.xlu1 %v2474_v53  ;;  %v2449_v2 = vsub.f32 %v4928_v38, %v5127_v13  ;;  %v2570_v55 = vsel %vm2311_vm0, %v2556_v44, 0.0  ;;  %v2604_v1 = vmul.f32 %v2596_v28, %v2596_v28  ;;  %v2450_v61 = vsub.f32 %v4936_v15, %v5132_v37 }
 0x2a3   :  { %v2372_v39 = vadd.f32 %v2358_v8, %v5093_v21  ;;  %v2615_v46 = vsel %vm2311_vm0, %v2603_v47, 0.0  ;;  %v2497_v11 = vsub.f32 %v4976_v10, %v5127_v13  ;;  %v2373_v24 = vadd.f32 %v5101_v14, %v5095_v27 }
 0x2a4   :  { %v2457_v19 = vmul.f32 %v2449_v2, %v2449_v2  ;;  %v2618_v53 = vsel %vm2311_vm0, %v2604_v1, 0.0  ;;  %v2458_v9 = vmul.f32 %v2450_v61, %v2450_v61  ;;  %v2498_v50 = vsub.f32 %v4984_v42, %v5132_v37 }
 0x2a5   :  { %2520 = vadd.xlane.f32.xlu0 %v2519_v20  ;;  %v2404_v20 = vadd.f32 %v2390_v16, %v2372_v39  ;;  %v2405_v21 = vadd.f32 %v5107_v3, %v2373_v24  ;;  %v2545_v27 = vsub.f32 %v5021_v45, %v5127_v13  ;;  %v2593_v2 = vsub.f32 %v5059_v40, %v5127_v13 }
 0x2a6   :  { %2523 = vadd.xlane.f32.xlu1 %v2522_v4  ;;  %v2465_v30 = vsel %vm2311_vm0, %v2457_v19, 0.0  ;;  %v2505_v4 = vmul.f32 %v2497_v11, %v2497_v11  ;;  %v2468_v44 = vsel %vm2311_vm0, %v2458_v9, 0.0  ;;  %v2506_v28 = vmul.f32 %v2498_v50, %v2498_v50 }
 0x2a7   :  { %v2436_v8 = vadd.f32 %v2422_v26, %v2404_v20  ;;  %v2437_v14 = vadd.f32 %v2425_v60, %v2405_v21  ;;  %v2553_v47 = vmul.f32 %v2545_v27, %v2545_v27  ;;  %v2594_v39 = vsub.f32 %v5065_v32, %v5132_v37  ;;  %v2428_v60 = vpop.xlane.xlu0 %2427  ;;  %v2431_v27 = vpop.xlane.xlu1 %2430 }
 0x2a8   :  { %v2513_v3 = vsel %vm2311_vm0, %v2505_v4, 0.0  ;;  %v2516_v1 = vsel %vm2311_vm0, %v2506_v28, 0.0  ;;  %v2601_v19 = vmul.f32 %v2593_v2, %v2593_v2  ;;  %v2406_v4 = vadd.f32 %v5103_v25, %v5097_v18 }
 0x2a9   :  { %2568 = vadd.xlane.f32.xlu0 %v2567_v0  ;;  %v2546_v0 = vsub.f32 %v5028_v17, %v5132_v37  ;;  %v5159_v16 = vmul.f32 0.0034722222, %v2436_v8  ;;  %v2602_v26 = vmul.f32 %v2594_v39, %v2594_v39 }
 0x2aa   :  { %2571 = vadd.xlane.f32.xlu1 %v2570_v55  ;;  %v5164_v55 = vmul.f32 0.0034722222, %v2437_v14  ;;  %v2609_v9 = vsel %vm2311_vm0, %v2601_v19, 0.0  ;;  %v2407_v14 = vadd.f32 %v5105_v41, %v5099_v34 }
 0x2ab   :  { %v2554_v61 = vmul.f32 %v2546_v0, %v2546_v0  ;;  %v2453_v11 = vsub.f32 %v4954_v63, %v5159_v16  ;;  %v2501_v20 = vsub.f32 %v5000_v59, %v5159_v16  ;;  %v2612_v21 = vsel %vm2311_vm0, %v2602_v26, 0.0 }
 0x2ac   :  { %v2550_v18 = vsub.f32 %v5047_v6, %v5164_v55 }
 0x2ad   :  { %2616 = vadd.xlane.f32.xlu0 %v2615_v46  ;;  %v2561_v46 = vsel %vm2311_vm0, %v2553_v47, 0.0  ;;  %v2564_v24 = vsel %vm2311_vm0, %v2554_v61, 0.0  ;;  %v2461_v50 = vmul.f32 %v2453_v11, %v2453_v11  ;;  %v2509_v0 = vmul.f32 %v2501_v20, %v2501_v20 }
 0x2ae   :  { %2619 = vadd.xlane.f32.xlu1 %v2618_v53  ;;  %v2454_v53 = vsub.f32 %v4962_v33, %v5164_v55  ;;  %v2439_v47 = vadd.f32 %v2431_v27, %v2407_v14  ;;  %v2597_v61 = vsub.f32 %v5075_v54, %v5159_v16  ;;  %v2558_v19 = vmul.f32 %v2550_v18, %v2550_v18 }
 0x2af   :  { %v2477_v28 = vsel %vm2311_vm0, %v2461_v50, 0.0  ;;  %v2525_v34 = vsel %vm2311_vm0, %v2509_v0, 0.0  ;;  %v2598_v11 = vsub.f32 %v5078_v58, %v5164_v55 }
 0x2b0   :  { %v2462_v8 = vmul.f32 %v2454_v53, %v2454_v53  ;;  %v5196_v39 = vmul.f32 0.0034722222, %v2439_v47  ;;  %v2605_v26 = vmul.f32 %v2597_v61, %v2597_v61  ;;  %v5459_v47 = vld [vmem:[#allocation2_spill] sm:$0xff] }
 0x2b1   :  { %2466 = vadd.xlane.f32.xlu0 %v2465_v30  ;;  %v2502_v30 = vsub.f32 %v5008_v23, %v5164_v55  ;;  %v2606_v50 = vmul.f32 %v2598_v11, %v2598_v11  ;;  %v5461_v11 = vld [vmem:[#allocation4_spill] sm:$0xff] }
 0x2b2   :  { %2469 = vadd.xlane.f32.xlu1 %v2468_v44  ;;  %v2438_v44 = vadd.f32 %v2428_v60, %v2406_v4  ;;  %v2480_v2 = vsel %vm2311_vm0, %v2462_v8, 0.0  ;;  %v2456_v20 = vsub.f32 %v4957_v5, %v5196_v39  ;;  %v2621_v60 = vsel %vm2311_vm0, %v2605_v26, 0.0 }
 0x2b3   :  { %v2504_v27 = vsub.f32 %v5003_v51, %v5196_v39 }
 0x2b4   :  { %v5191_v25 = vmul.f32 0.0034722222, %v2438_v44  ;;  %v2464_v4 = vmul.f32 %v2456_v20, %v2456_v20 }
 0x2b5   :  { %2514 = vadd.xlane.f32.xlu0 %v2513_v3  ;;  %v2549_v3 = vsub.f32 %v5040_v7, %v5159_v16 }
 0x2b6   :  { %2517 = vadd.xlane.f32.xlu1 %v2516_v1  ;;  %v2510_v1 = vmul.f32 %v2502_v30, %v2502_v30  ;;  %v2455_v53 = vsub.f32 %v4951_v36, %v5191_v25  ;;  %v2503_v8 = vsub.f32 %v4995_v48, %v5191_v25  ;;  %v2624_v30 = vsel %vm2311_vm0, %v2606_v50, 0.0 }
 0x2b7   :  { %v2557_v41 = vmul.f32 %v2549_v3, %v2549_v3  ;;  %v2486_v0 = vsel %vm2311_vm0, %v2464_v4, 0.0  ;;  %v2512_v3 = vmul.f32 %v2504_v27, %v2504_v27 }
 0x2b8   :  { %v2511_v44 = vmul.f32 %v2503_v8, %v2503_v8 }
 0x2b9   :  { %2562 = vadd.xlane.f32.xlu0 %v2561_v46  ;;  %v2528_v46 = vsel %vm2311_vm0, %v2510_v1, 0.0  ;;  %v3952_v1 = vmov 0  }
 0x2ba   :  { %2565 = vadd.xlane.f32.xlu1 %v2564_v24  ;;  %v2573_v24 = vsel %vm2311_vm0, %v2557_v41, 0.0  ;;  %3655 = vset.pattern.permute.xlu0 %v3952_v1  ;;  %v2531_v18 = vsel %vm2311_vm0, %v2511_v44, 0.0  ;;  %v5460_v41 = vld [vmem:[#allocation3_spill] sm:$0xff] }
 0x2bb   :  { %3654 = vset.pattern.permute.xlu1 %v3952_v1  ;;  %v2599_v61 = vsub.f32 %v5460_v41, %v5191_v25 }
 0x2bd   :  { %2610 = vadd.xlane.f32.xlu0 %v2609_v9  ;;  %v2576_v9 = vsel %vm2311_vm0, %v2558_v19, 0.0 }
 0x2be   :  { %2613 = vadd.xlane.f32.xlu1 %v2612_v21  ;;  %v2463_v21 = vmul.f32 %v2455_v53, %v2455_v53  ;;  %v2607_v53 = vmul.f32 %v2599_v61, %v2599_v61 }
 0x2c0   :  { %v2483_v14 = vsel %vm2311_vm0, %v2463_v21, 0.0  ;;  %v2627_v20 = vsel %vm2311_vm0, %v2607_v53, 0.0 }
 0x2c1   :  { %2478 = vadd.xlane.f32.xlu0 %v2477_v28  ;;  %v2551_v28 = vsub.f32 %v5036_v56, %v5191_v25 }
 0x2c2   :  { %2481 = vadd.xlane.f32.xlu1 %v2480_v2  ;;  %v2552_v2 = vsub.f32 %v5459_v47, %v5196_v39 }
 0x2c4   :  { %v2560_v19 = vmul.f32 %v2552_v2, %v2552_v2 }
 0x2c5   :  { %2526 = vadd.xlane.f32.xlu0 %v2525_v34  ;;  %v2559_v34 = vmul.f32 %v2551_v28, %v2551_v28 }
 0x2c6   :  { %2529 = vadd.xlane.f32.xlu1 %v2528_v46  ;;  %v2534_v46 = vsel %vm2311_vm0, %v2512_v3, 0.0 }
 0x2c7   :  { %v2579_v26 = vsel %vm2311_vm0, %v2559_v34, 0.0 }
 0x2c9   :  { %2574 = vadd.xlane.f32.xlu0 %v2573_v24  ;;  %v2600_v24 = vsub.f32 %v5461_v11, %v5196_v39 }
 0x2ca   :  { %2577 = vadd.xlane.f32.xlu1 %v2576_v9  ;;  %v2582_v9 = vsel %vm2311_vm0, %v2560_v19, 0.0 }
 0x2cb   :  { %v2608_v50 = vmul.f32 %v2600_v24, %v2600_v24 }
 0x2cd   :  { %2622 = vadd.xlane.f32.xlu0 %v2621_v60  ;;  %v2630_v60 = vsel %vm2311_vm0, %v2608_v50, 0.0 }
 0x2ce   :  { %2625 = vadd.xlane.f32.xlu1 %v2624_v30 }
 0x2d1   :  { %2484 = vadd.xlane.f32.xlu0 %v2483_v14 }
 0x2d2   :  { %2487 = vadd.xlane.f32.xlu1 %v2486_v0 }
 0x2d5   :  { %2532 = vadd.xlane.f32.xlu0 %v2531_v18 }
 0x2d6   :  { %2535 = vadd.xlane.f32.xlu1 %v2534_v46 }
 0x2d9   :  { %2580 = vadd.xlane.f32.xlu0 %v2579_v26 }
 0x2da   :  { %2583 = vadd.xlane.f32.xlu1 %v2582_v9 }
 0x2dd   :  { %2628 = vadd.xlane.f32.xlu0 %v2627_v20 }
 0x2de   :  { %2631 = vadd.xlane.f32.xlu1 %v2630_v60 }
 0x32e   :  { %v2473_v21 = vpop.xlane.xlu0 %2472 }
 0x32f   :  { %v2476_v8 = vpop.xlane.xlu1 %2475 }
 0x332   :  { %v2521_v30 = vpop.xlane.xlu0 %2520 }
 0x333   :  { %v2524_v4 = vpop.xlane.xlu1 %2523  ;;  %v2539_v14 = vadd.f32 %v2521_v30, %v2473_v21 }
 0x334   :  { %v2540_v28 = vadd.f32 %v2524_v4, %v2476_v8  ;;  %v2297_v4 = vld [vmem:[%s5447_s2 + $0x10] sm:$0xff] }
 0x336   :  { %v2569_v27 = vpop.xlane.xlu0 %2568 }
 0x337   :  { %v2572_v44 = vpop.xlane.xlu1 %2571  ;;  %v2587_v0 = vadd.f32 %v2569_v27, %v2539_v14 }
 0x338   :  { %v2588_v3 = vadd.f32 %v2572_v44, %v2540_v28 }
 0x33a   :  { %v2617_v2 = vpop.xlane.xlu0 %2616 }
 0x33b   :  { %v2635_v1 = vadd.f32 %v2617_v2, %v2587_v0  ;;  %v2620_v18 = vpop.xlane.xlu1 %2619 }
 0x33c   :  { %v2636_v34 = vadd.f32 %v2620_v18, %v2588_v3 }
 0x33d   :  { %v2643_v61 = vmul.f32 0.0034722222, %v2635_v1 }
 0x33e   :  { %v2644_v46 = vmul.f32 0.0034722222, %v2636_v34  ;;  %v2467_v19 = vpop.xlane.xlu0 %2466  ;;  %v2298_v34 = vld [vmem:[%s5447_s2 + $0x18] sm:$0xff] }
 0x33f   :  { %v2651_v24 = vadd.f32 1e-05, %v2643_v61  ;;  %v2470_v26 = vpop.xlane.xlu1 %2469 }
 0x340   :  { %v2652_v53 = vadd.f32 1e-05, %v2644_v46 }
 0x341   :  { %3936 = vrsqrt.f32 %v2651_v24 }
 0x342   :  { %v2515_v9 = vpop.xlane.xlu0 %2514  ;;  %3938 = vrsqrt.f32 %v2652_v53 }
 0x343   :  { %v2518_v50 = vpop.xlane.xlu1 %2517  ;;  %v2537_v60 = vadd.f32 %v2515_v9, %v2467_v19 }
 0x344   :  { %v2538_v8 = vadd.f32 %v2518_v50, %v2470_v26 }
 0x346   :  { %v2563_v20 = vpop.xlane.xlu0 %2562 }
 0x347   :  { %v2566_v21 = vpop.xlane.xlu1 %2565  ;;  %v2585_v30 = vadd.f32 %v2563_v20, %v2537_v60 }
 0x348   :  { %v2586_v27 = vadd.f32 %v2566_v21, %v2538_v8 }
 0x34a   :  { %v2611_v14 = vpop.xlane.xlu0 %2610 }
 0x34b   :  { %v3937_v44 = vpop.eup %3936  ;;  %v2633_v28 = vadd.f32 %v2611_v14, %v2585_v30  ;;  %v2614_v0 = vpop.xlane.xlu1 %2613 }
 0x34c   :  { %v2634_v3 = vadd.f32 %v2614_v0, %v2586_v27  ;;  %v2667_v2 = vmul.f32 %v3937_v44, %v2297_v4  ;;  %v3939_v1 = vpop.eup %3938  ;;  %v2295_v4 = vld [vmem:[%s5447_s2] sm:$0xff]  ;;  %v2296_v44 = vld [vmem:[%s5447_s2 + $0x8] sm:$0xff] }
 0x34d   :  { %v2641_v18 = vmul.f32 0.0034722222, %v2633_v28  ;;  %v2668_v53 = vmul.f32 %v3939_v1, %v2298_v34 }
 0x34e   :  { %v2642_v61 = vmul.f32 0.0034722222, %v2634_v3  ;;  %2701 = vperm.xlu1 %3654, %v2667_v2   ;;  %v2479_v46 = vpop.xlane.xlu0 %2478 }
 0x34f   :  { %v2649_v19 = vadd.f32 1e-05, %v2641_v18  ;;  %v2482_v24 = vpop.xlane.xlu1 %2481 }
 0x350   :  { %v2650_v26 = vadd.f32 1e-05, %v2642_v61  ;;  %v2676_v61 = vmul.f32 %v2668_v53, %v5111_v29 }
 0x351   :  { %3940 = vrsqrt.f32 %v2649_v19 }
 0x352   :  { %3942 = vrsqrt.f32 %v2650_v26  ;;  %2706 = vperm.xlu1 %3654, %v2668_v53   ;;  %v2527_v9 = vpop.xlane.xlu0 %2526  ;;  %v2675_v26 = vmul.f32 %v2667_v2, %v5109_v62  ;;  %v2304_v62 = vld [vmem:[%s5448_s3 + $0x8] sm:$0xff] }
 0x353   :  { %v2530_v50 = vpop.xlane.xlu1 %2529  ;;  %v2541_v60 = vadd.f32 %v2527_v9, %v2479_v46 }
 0x354   :  { %v2542_v8 = vadd.f32 %v2530_v50, %v2482_v24  ;;  %v2306_v24 = vld [vmem:[%s5448_s3 + $0x18] sm:$0xff] }
 0x355   :  { %v2684_v29 = vsub.f32 %v2306_v24, %v2676_v61 }
 0x356   :  { %v2575_v20 = vpop.xlane.xlu0 %2574 }
 0x357   :  { %v2578_v21 = vpop.xlane.xlu1 %2577  ;;  %v2589_v30 = vadd.f32 %v2575_v20, %v2541_v60  ;;  %v2305_v20 = vld [vmem:[%s5448_s3 + $0x10] sm:$0xff] }
 0x358   :  { %v2590_v27 = vadd.f32 %v2578_v21, %v2542_v8 }
 0x35a   :  { %v2623_v14 = vpop.xlane.xlu0 %2622 }
 0x35b   :  { %v3941_v28 = vpop.eup %3940  ;;  %v2637_v0 = vadd.f32 %v2623_v14, %v2589_v30  ;;  %v2626_v3 = vpop.xlane.xlu1 %2625  ;;  %v2683_v30 = vsub.f32 %v2305_v20, %v2675_v26 }
 0x35c   :  { %v3943_v1 = vpop.eup %3942  ;;  %v2638_v18 = vadd.f32 %v2626_v3, %v2590_v27  ;;  %v2665_v34 = vmul.f32 %v3941_v28, %v2295_v4  ;;  %v2303_v27 = vld [vmem:[%s5448_s3] sm:$0xff] }
 0x35d   :  { %v2645_v46 = vmul.f32 0.0034722222, %v2637_v0  ;;  %v2666_v19 = vmul.f32 %v3943_v1, %v2296_v44 }
 0x35e   :  { %v2646_v9 = vmul.f32 0.0034722222, %v2638_v18  ;;  %2691 = vperm.xlu0 %3655, %v2665_v34   ;;  %v2485_v50 = vpop.xlane.xlu0 %2484  ;;  %v2673_v2 = vmul.f32 %v2665_v34, %v5127_v13  ;;  %v2299_v13 = vld [vmem:[%s5447_s2 + $0x20] sm:$0xff] }
 0x35f   :  { %v2653_v60 = vadd.f32 1e-05, %v2645_v46  ;;  %v2488_v21 = vpop.xlane.xlu1 %2487  ;;  %2696 = vperm.xlu1 %3654, %v2666_v19   ;;  %v2674_v53 = vmul.f32 %v2666_v19, %v5132_v37  ;;  %v2300_v46 = vld [vmem:[%s5447_s2 + $0x28] sm:$0xff] }
 0x360   :  { %v2654_v8 = vadd.f32 1e-05, %v2646_v9  ;;  %v2681_v28 = vsub.f32 %v2303_v27, %v2673_v2  ;;  %v2302_v27 = vld [vmem:[%s5447_s2 + $0x38] sm:$0xff] }
 0x361   :  { %3944 = vrsqrt.f32 %v2653_v60  ;;  %v2682_v44 = vsub.f32 %v2304_v62, %v2674_v53 }
 0x362   :  { %3946 = vrsqrt.f32 %v2654_v8  ;;  %2778 = vperm.xlu0 %3655, %v2684_v29   ;;  %v2533_v4 = vpop.xlane.xlu0 %2532  ;;  %v2308_v29 = vld [vmem:[%s5448_s3 + $0x28] sm:$0xff] }
 0x363   :  { %v2536_v14 = vpop.xlane.xlu1 %2535  ;;  %2773 = vperm.xlu1 %3654, %v2683_v30   ;;  %v2543_v0 = vadd.f32 %v2533_v4, %v2485_v50  ;;  %v2301_v4 = vld [vmem:[%s5447_s2 + $0x30] sm:$0xff] }
 0x364   :  { %v2544_v1 = vadd.f32 %v2536_v14, %v2488_v21 }
 0x366   :  { %2768 = vperm.xlu0 %3655, %v2682_v44   ;;  %v2581_v37 = vpop.xlane.xlu0 %2580 }
 0x367   :  { %v2584_v3 = vpop.xlane.xlu1 %2583  ;;  %2763 = vperm.xlu1 %3654, %v2681_v28   ;;  %v2591_v18 = vadd.f32 %v2581_v37, %v2543_v0 }
 0x368   :  { %v2592_v34 = vadd.f32 %v2584_v3, %v2544_v1  ;;  %v2310_v3 = vld [vmem:[%s5448_s3 + $0x38] sm:$0xff] }
 0x36a   :  { %v2629_v61 = vpop.xlane.xlu0 %2628 }
 0x36b   :  { %v3945_v19 = vpop.eup %3944  ;;  %v2639_v24 = vadd.f32 %v2629_v61, %v2591_v18  ;;  %v2632_v26 = vpop.xlane.xlu1 %2631 }
 0x36c   :  { %v3947_v9 = vpop.eup %3946  ;;  %v2640_v20 = vadd.f32 %v2632_v26, %v2592_v34  ;;  %v2669_v50 = vmul.f32 %v3945_v19, %v2299_v13 }
 0x36d   :  { %v2647_v60 = vmul.f32 0.0034722222, %v2639_v24  ;;  %v2670_v8 = vmul.f32 %v3947_v9, %v2300_v46 }
 0x36e   :  { %v2648_v21 = vmul.f32 0.0034722222, %v2640_v20  ;;  %2711 = vperm.xlu1 %3654, %v2669_v50   ;;  %v2677_v37 = vmul.f32 %v2669_v50, %v5159_v16  ;;  %v2309_v16 = vld [vmem:[%s5448_s3 + $0x30] sm:$0xff] }
 0x36f   :  { %v2655_v53 = vadd.f32 1e-05, %v2647_v60  ;;  %v2678_v30 = vmul.f32 %v2670_v8, %v5164_v55  ;;  %v2307_v55 = vld [vmem:[%s5448_s3 + $0x20] sm:$0xff] }
 0x370   :  { %v2656_v62 = vadd.f32 1e-05, %v2648_v21  ;;  %v2685_v18 = vsub.f32 %v2307_v55, %v2677_v37 }
 0x371   :  { %3948 = vrsqrt.f32 %v2655_v53  ;;  %v2686_v2 = vsub.f32 %v2308_v29, %v2678_v30 }
 0x372   :  { %3950 = vrsqrt.f32 %v2656_v62  ;;  %2716 = vperm.xlu1 %3654, %v2670_v8  }
 0x373   :  { %2788 = vperm.xlu0 %3655, %v2686_v2  }
 0x37b   :  { %v3949_v14 = vpop.eup %3948 }
 0x37c   :  { %v3951_v44 = vpop.eup %3950  ;;  %v2671_v28 = vmul.f32 %v3949_v14, %v2301_v4 }
 0x37d   :  { %v2672_v0 = vmul.f32 %v3951_v44, %v2302_v27 }
 0x37e   :  { %2721 = vperm.xlu1 %3654, %v2671_v28   ;;  %v2679_v34 = vmul.f32 %v2671_v28, %v5191_v25 }
 0x37f   :  { %v2680_v1 = vmul.f32 %v2672_v0, %v5196_v39 }
 0x380   :  { %v2687_v61 = vsub.f32 %v2309_v16, %v2679_v34 }
 0x381   :  { %v2688_v13 = vsub.f32 %v2310_v3, %v2680_v1 }
 0x382   :  { %2783 = vperm.xlu1 %3654, %v2685_v18  }
 0x383   :  { %2798 = vperm.xlu0 %3655, %v2688_v13  }
 0x386   :  { %2726 = vperm.xlu1 %3654, %v2672_v0  }
 0x38a   :  { %2793 = vperm.xlu1 %3654, %v2687_v61  }
 0x3cd   :  { %v2702_v46 = vpop.permute.xlu1 %2701 }
 0x3ce   :  { %v2731_v26 = vmul.f32 %v2702_v46, %v4925_v12  ;;  %v2739_v39 = vmul.f32 %v2702_v46, %v4971_v35  ;;  %v2747_v9 = vmul.f32 %v2702_v46, %v5016_v22  ;;  %v2755_v20 = vmul.f32 %v2702_v46, %v5055_v52 }
 0x3d1   :  { %v2707_v19 = vpop.permute.xlu1 %2706 }
 0x3d2   :  { %v2732_v25 = vmul.f32 %v2707_v19, %v4931_v31  ;;  %v2740_v60 = vmul.f32 %v2707_v19, %v4979_v57  ;;  %v2748_v8 = vmul.f32 %v2707_v19, %v5023_v49  ;;  %v2756_v21 = vmul.f32 %v2707_v19, %v5061_v43 }
 0x3dd   :  { %v2692_v24 = vpop.permute.xlu0 %2691 }
 0x3de   :  { %v2697_v50 = vpop.permute.xlu1 %2696  ;;  %v2729_v29 = vmul.f32 %v2692_v24, %v4928_v38  ;;  %v2737_v53 = vmul.f32 %v2692_v24, %v4976_v10  ;;  %v2745_v12 = vmul.f32 %v2692_v24, %v5021_v45  ;;  %v2753_v35 = vmul.f32 %v2692_v24, %v5059_v40 }
 0x3df   :  { %v2730_v22 = vmul.f32 %v2697_v50, %v4936_v15  ;;  %v2738_v52 = vmul.f32 %v2697_v50, %v4984_v42  ;;  %v2746_v31 = vmul.f32 %v2697_v50, %v5028_v17  ;;  %v2754_v57 = vmul.f32 %v2697_v50, %v5065_v32 }
 0x3e1   :  { %v2779_v30 = vpop.permute.xlu0 %2778 }
 0x3e2   :  { %v2804_v49 = vadd.f32 %v2779_v30, %v2732_v25  ;;  %v2812_v62 = vadd.f32 %v2779_v30, %v2740_v60  ;;  %v2820_v43 = vadd.f32 %v2779_v30, %v2748_v8  ;;  %v2828_v2 = vadd.f32 %v2779_v30, %v2756_v21  ;;  %v2774_v38 = vpop.permute.xlu1 %2773 }
 0x3e3   :  { %v2803_v4 = vadd.f32 %v2774_v38, %v2731_v26  ;;  %v2811_v10 = vadd.f32 %v2774_v38, %v2739_v39  ;;  %v2819_v27 = vadd.f32 %v2774_v38, %v2747_v9  ;;  %v2827_v45 = vadd.f32 %v2774_v38, %v2755_v20 }
 0x3e4   :  { %v2836_v14 = vmax.f32 %v2804_v49, 0.0  ;;  %v2844_v40 = vmax.f32 %v2812_v62, 0.0  ;;  %v2852_v44 = vmax.f32 %v2820_v43, 0.0  ;;  %v2860_v15 = vmax.f32 %v2828_v2, 0.0 }
 0x3e5   :  { %v2835_v28 = vmax.f32 %v2803_v4, 0.0  ;;  %v2843_v42 = vmax.f32 %v2811_v10, 0.0  ;;  %v2851_v37 = vmax.f32 %v2819_v27, 0.0  ;;  %v2859_v17 = vmax.f32 %v2827_v45, 0.0  ;;  %v2769_v55 = vpop.permute.xlu0 %2768 }
 0x3e6   :  { %2868 = vst.msk [vmem:[%s5449_s4 + $0x18] sm:$0xff] %vm2311_vm0, %v2836_v14  ;;  %2876 = vst.msk [vmem:[%s5449_s4 + $0x58] sm:$0xff] %vm2311_vm0, %v2844_v40  ;;  %v2802_v32 = vadd.f32 %v2769_v55, %v2730_v22  ;;  %v2810_v0 = vadd.f32 %v2769_v55, %v2738_v52  ;;  %v2818_v3 = vadd.f32 %v2769_v55, %v2746_v31  ;;  %v2764_v18 = vpop.permute.xlu1 %2763 }
 0x3e7   :  { %2884 = vst.msk [vmem:[%s5449_s4 + $0x98] sm:$0xff] %vm2311_vm0, %v2852_v44  ;;  %2892 = vst.msk [vmem:[%s5449_s4 + $0xd8] sm:$0xff] %vm2311_vm0, %v2860_v15  ;;  %v2826_v1 = vadd.f32 %v2769_v55, %v2754_v57  ;;  %v2801_v13 = vadd.f32 %v2764_v18, %v2729_v29  ;;  %v2809_v34 = vadd.f32 %v2764_v18, %v2737_v53 }
 0x3e8   :  { %2867 = vst.msk [vmem:[%s5449_s4 + $0x10] sm:$0xff] %vm2311_vm0, %v2835_v28  ;;  %2875 = vst.msk [vmem:[%s5449_s4 + $0x50] sm:$0xff] %vm2311_vm0, %v2843_v42  ;;  %v2817_v16 = vadd.f32 %v2764_v18, %v2745_v12  ;;  %v2825_v61 = vadd.f32 %v2764_v18, %v2753_v35  ;;  %v2834_v46 = vmax.f32 %v2802_v32, 0.0  ;;  %v2842_v19 = vmax.f32 %v2810_v0, 0.0 }
 0x3e9   :  { %2883 = vst.msk [vmem:[%s5449_s4 + $0x90] sm:$0xff] %vm2311_vm0, %v2851_v37  ;;  %2891 = vst.msk [vmem:[%s5449_s4 + $0xd0] sm:$0xff] %vm2311_vm0, %v2859_v17  ;;  %v2850_v24 = vmax.f32 %v2818_v3, 0.0  ;;  %v2858_v26 = vmax.f32 %v2826_v1, 0.0  ;;  %v2833_v39 = vmax.f32 %v2801_v13, 0.0  ;;  %v2841_v9 = vmax.f32 %v2809_v34, 0.0 }
 0x3ea   :  { %v2849_v20 = vmax.f32 %v2817_v16, 0.0  ;;  %v2857_v50 = vmax.f32 %v2825_v61, 0.0  ;;  %2866 = vst.msk [vmem:[%s5449_s4 + $0x8] sm:$0xff] %vm2311_vm0, %v2834_v46  ;;  %2874 = vst.msk [vmem:[%s5449_s4 + $0x48] sm:$0xff] %vm2311_vm0, %v2842_v19 }
 0x3eb   :  { %2882 = vst.msk [vmem:[%s5449_s4 + $0x88] sm:$0xff] %vm2311_vm0, %v2850_v24  ;;  %2890 = vst.msk [vmem:[%s5449_s4 + $0xc8] sm:$0xff] %vm2311_vm0, %v2858_v26 }
 0x3ec   :  { %2865 = vst.msk [vmem:[%s5449_s4] sm:$0xff] %vm2311_vm0, %v2833_v39  ;;  %2873 = vst.msk [vmem:[%s5449_s4 + $0x40] sm:$0xff] %vm2311_vm0, %v2841_v9 }
 0x3ed   :  { %2881 = vst.msk [vmem:[%s5449_s4 + $0x80] sm:$0xff] %vm2311_vm0, %v2849_v20  ;;  %2889 = vst.msk [vmem:[%s5449_s4 + $0xc0] sm:$0xff] %vm2311_vm0, %v2857_v50  ;;  %v2712_v25 = vpop.permute.xlu1 %2711 }
 0x3ee   :  { %v2757_v43 = vmul.f32 %v2712_v25, %v5075_v54 }
 0x3f1   :  { %v2717_v60 = vpop.permute.xlu1 %2716 }
 0x3f2   :  { %v2734_v8 = vmul.f32 %v2717_v60, %v4962_v33  ;;  %v2742_v21 = vmul.f32 %v2717_v60, %v5008_v23  ;;  %v2750_v29 = vmul.f32 %v2717_v60, %v5047_v6  ;;  %v2758_v53 = vmul.f32 %v2717_v60, %v5078_v58  ;;  %v2789_v12 = vpop.permute.xlu0 %2788 }
 0x3f3   :  { %v2733_v23 = vmul.f32 %v2712_v25, %v4954_v63  ;;  %v2741_v6 = vmul.f32 %v2712_v25, %v5000_v59  ;;  %v2749_v58 = vmul.f32 %v2712_v25, %v5040_v7 }
 0x3f4   :  { %v2806_v35 = vadd.f32 %v2789_v12, %v2734_v8  ;;  %v2814_v22 = vadd.f32 %v2789_v12, %v2742_v21  ;;  %v2822_v52 = vadd.f32 %v2789_v12, %v2750_v29  ;;  %v2830_v31 = vadd.f32 %v2789_v12, %v2758_v53 }
 0x3f6   :  { %v2838_v57 = vmax.f32 %v2806_v35, 0.0  ;;  %v2846_v30 = vmax.f32 %v2814_v22, 0.0  ;;  %v2854_v49 = vmax.f32 %v2822_v52, 0.0  ;;  %v2862_v62 = vmax.f32 %v2830_v31, 0.0 }
 0x3f8   :  { %2870 = vst.msk [vmem:[%s5449_s4 + $0x28] sm:$0xff] %vm2311_vm0, %v2838_v57  ;;  %2878 = vst.msk [vmem:[%s5449_s4 + $0x68] sm:$0xff] %vm2311_vm0, %v2846_v30 }
 0x3f9   :  { %2886 = vst.msk [vmem:[%s5449_s4 + $0xa8] sm:$0xff] %vm2311_vm0, %v2854_v49  ;;  %2894 = vst.msk [vmem:[%s5449_s4 + $0xe8] sm:$0xff] %vm2311_vm0, %v2862_v62 }
 0x3fd   :  { %v2722_v33 = vpop.permute.xlu1 %2721 }
 0x3fe   :  { %v2735_v32 = vmul.f32 %v2722_v33, %v4951_v36  ;;  %v2743_v0 = vmul.f32 %v2722_v33, %v4995_v48  ;;  %v2751_v3 = vmul.f32 %v2722_v33, %v5036_v56  ;;  %v2759_v1 = vmul.f32 %v2722_v33, %v5460_v41 }
 0x401   :  { %v2784_v2 = vpop.permute.xlu1 %2783 }
 0x402   :  { %v2805_v38 = vadd.f32 %v2784_v2, %v2733_v23  ;;  %v2813_v4 = vadd.f32 %v2784_v2, %v2741_v6  ;;  %v2821_v10 = vadd.f32 %v2784_v2, %v2749_v58  ;;  %v2829_v27 = vadd.f32 %v2784_v2, %v2757_v43  ;;  %v2799_v28 = vpop.permute.xlu0 %2798 }
 0x404   :  { %v2837_v45 = vmax.f32 %v2805_v38, 0.0  ;;  %v2845_v14 = vmax.f32 %v2813_v4, 0.0  ;;  %v2853_v40 = vmax.f32 %v2821_v10, 0.0  ;;  %v2861_v44 = vmax.f32 %v2829_v27, 0.0 }
 0x405   :  { %v2727_v15 = vpop.permute.xlu1 %2726 }
 0x406   :  { %2869 = vst.msk [vmem:[%s5449_s4 + $0x20] sm:$0xff] %vm2311_vm0, %v2837_v45  ;;  %2877 = vst.msk [vmem:[%s5449_s4 + $0x60] sm:$0xff] %vm2311_vm0, %v2845_v14  ;;  %v2736_v63 = vmul.f32 %v2727_v15, %v4957_v5  ;;  %v2744_v59 = vmul.f32 %v2727_v15, %v5003_v51  ;;  %v2752_v7 = vmul.f32 %v2727_v15, %v5459_v47 }
 0x407   :  { %2885 = vst.msk [vmem:[%s5449_s4 + $0xa0] sm:$0xff] %vm2311_vm0, %v2853_v40  ;;  %2893 = vst.msk [vmem:[%s5449_s4 + $0xe0] sm:$0xff] %vm2311_vm0, %v2861_v44  ;;  %v2760_v54 = vmul.f32 %v2727_v15, %v5461_v11 }
 0x408   :  { %v2808_v42 = vadd.f32 %v2799_v28, %v2736_v63  ;;  %v2816_v37 = vadd.f32 %v2799_v28, %v2744_v59  ;;  %v2824_v17 = vadd.f32 %v2799_v28, %v2752_v7 }
 0x409   :  { %v2832_v55 = vadd.f32 %v2799_v28, %v2760_v54  ;;  %v2794_v5 = vpop.permute.xlu1 %2793 }
 0x40a   :  { %v2840_v18 = vmax.f32 %v2808_v42, 0.0  ;;  %v2848_v51 = vmax.f32 %v2816_v37, 0.0  ;;  %v2856_v13 = vmax.f32 %v2824_v17, 0.0  ;;  %v2807_v34 = vadd.f32 %v2794_v5, %v2735_v32 }
 0x40b   :  { %v2864_v47 = vmax.f32 %v2832_v55, 0.0  ;;  %v2815_v11 = vadd.f32 %v2794_v5, %v2743_v0  ;;  %v2823_v16 = vadd.f32 %v2794_v5, %v2751_v3  ;;  %v2831_v61 = vadd.f32 %v2794_v5, %v2759_v1 }
 0x40c   :  { %2872 = vst.msk [vmem:[%s5449_s4 + $0x38] sm:$0xff] %vm2311_vm0, %v2840_v18  ;;  %2880 = vst.msk [vmem:[%s5449_s4 + $0x78] sm:$0xff] %vm2311_vm0, %v2848_v51  ;;  %v2839_v36 = vmax.f32 %v2807_v34, 0.0 }
 0x40d   :  { %2888 = vst.msk [vmem:[%s5449_s4 + $0xb8] sm:$0xff] %vm2311_vm0, %v2856_v13  ;;  %2896 = vst.msk [vmem:[%s5449_s4 + $0xf8] sm:$0xff] %vm2311_vm0, %v2864_v47  ;;  %v2847_v48 = vmax.f32 %v2815_v11, 0.0  ;;  %v2855_v56 = vmax.f32 %v2823_v16, 0.0  ;;  %v2863_v41 = vmax.f32 %v2831_v61, 0.0 }
 0x40e   :  { %2871 = vst.msk [vmem:[%s5449_s4 + $0x30] sm:$0xff] %vm2311_vm0, %v2839_v36 }
 0x40f   :  { %2879 = vst.msk [vmem:[%s5449_s4 + $0x70] sm:$0xff] %vm2311_vm0, %v2847_v48  ;;  %2887 = vst.msk [vmem:[%s5449_s4 + $0xb0] sm:$0xff] %vm2311_vm0, %v2855_v56 }
 0x410   :  { %2895 = vst.msk [vmem:[%s5449_s4 + $0xf0] sm:$0xff] %vm2311_vm0, %v2863_v41 }

// kernel: generator_forward.7
= control target key start
LH: loop header
LB: loop body
LE: loop exit
PB: predicated region body
PF: predicated region fallthrough
CT: control target
= control target key end

     0   :  { %v1887_v1 = vmov 0   ;;  %vm698_vm0 = vcmask 523264   ;;  %vm1070_vm1 = vcmask 588800   ;;  %s2767_s0 = inlined_call_operand.vmem [shape: bf16[576,200], index: 0, kind: input, shape index: {}]   ;;  %s2768_s1 = inlined_call_operand.vmem [shape: bf16[128,576], index: 1, kind: input, shape index: {}]   ;;  %s2769_s2 = inlined_call_operand.vmem [shape: f32[32,1], index: 2, kind: input, shape index: {}]   ;;  %s2770_s3 = inlined_call_operand.vmem [shape: f32[32,1], index: 3, kind: input, shape index: {}]   ;;  %s2771_s4 = inlined_call_operand.vmem [shape: f32[128,200], index: 4, kind: output, shape index: {}]  }
   0x1   :  { %v1715_v0 = vld [vmem:[%s2767_s0 + $0x4] ss:$8 sps:$4 sm:$0xff]   ;;  %1713 = vset.pattern.permute.xlu0 %v1887_v1  ;;  %1714 = vset.pattern.permute.xlu1 %v1887_v1  ;;  %v1719_v3 = vld [vmem:[%s2767_s0] ss:$8 sps:$4 sm:$0xff]   ;;  %v1721_v5 = vld [vmem:[%s2767_s0 + $0x14] ss:$8 sps:$4 sm:$0xff]  }
   0x2   :  { %v1921_v2 = vld [vmem:[%s2767_s0 + $0x104] ss:$8 sps:$4 sm:$0xff]   ;;  %723 = vmatprep.subr.bf16.mxu1 %v1715_v0  ;;  %v1929_v4 = vld [vmem:[%s2767_s0 + $0x100] ss:$8 sps:$4 sm:$0xff]   ;;  %v1939_v6 = vld [vmem:[%s2767_s0 + $0x114] ss:$8 sps:$4 sm:$0xff]  }
   0x3   :  { %836 = vmatprep.subr.bf16.mxu0 %v1921_v2  ;;  %724 = vmatpush1.bf16.msra.mxu1 %v1719_v3  ;;  %v1725_v7 = vld [vmem:[%s2767_s0 + $0x10] ss:$8 sps:$4 sm:$0xff]   ;;  %v1727_v9 = vld [vmem:[%s2767_s0 + $0x24] ss:$8 sps:$4 sm:$0xff]   ;;  %v1731_v11 = vld [vmem:[%s2767_s0 + $0x20] ss:$8 sps:$4 sm:$0xff]  }
   0x4   :  { %837 = vmatpush1.bf16.msra.mxu0 %v1929_v4  ;;  %725 = vmatprep.subr.bf16.mxu1 %v1721_v5  ;;  %v1947_v8 = vld [vmem:[%s2767_s0 + $0x110] ss:$8 sps:$4 sm:$0xff]   ;;  %v1956_v10 = vld [vmem:[%s2767_s0 + $0x124] ss:$8 sps:$4 sm:$0xff]   ;;  %v1964_v12 = vld [vmem:[%s2767_s0 + $0x120] ss:$8 sps:$4 sm:$0xff]  }
   0x5   :  { %838 = vmatprep.subr.bf16.mxu0 %v1939_v6  ;;  %v1733_v13 = vld [vmem:[%s2767_s0 + $0x34] ss:$8 sps:$4 sm:$0xff]   ;;  %v1737_v15 = vld [vmem:[%s2767_s0 + $0x30] ss:$8 sps:$4 sm:$0xff]   ;;  %v1739_v17 = vld [vmem:[%s2767_s0 + $0x44] ss:$8 sps:$4 sm:$0xff]  }
   0x6   :  { %v1974_v14 = vld [vmem:[%s2767_s0 + $0x134] ss:$8 sps:$4 sm:$0xff]   ;;  %v1983_v16 = vld [vmem:[%s2767_s0 + $0x130] ss:$8 sps:$4 sm:$0xff]   ;;  %v1992_v18 = vld [vmem:[%s2767_s0 + $0x144] ss:$8 sps:$4 sm:$0xff]  }
   0x7   :  { %726 = vmatpush1.bf16.msra.mxu1 %v1725_v7  ;;  %v1743_v19 = vld [vmem:[%s2767_s0 + $0x40] ss:$8 sps:$4 sm:$0xff]   ;;  %v1745_v21 = vld [vmem:[%s2767_s0 + $0x54] ss:$8 sps:$4 sm:$0xff]   ;;  %v1749_v23 = vld [vmem:[%s2767_s0 + $0x50] ss:$8 sps:$4 sm:$0xff]  }
   0x8   :  { %839 = vmatpush1.bf16.msra.mxu0 %v1947_v8  ;;  %727 = vmatprep.subr.bf16.mxu1 %v1727_v9  ;;  %v2000_v20 = vld [vmem:[%s2767_s0 + $0x140] ss:$8 sps:$4 sm:$0xff]   ;;  %v2010_v22 = vld [vmem:[%s2767_s0 + $0x154] ss:$8 sps:$4 sm:$0xff]   ;;  %v2019_v24 = vld [vmem:[%s2767_s0 + $0x150] ss:$8 sps:$4 sm:$0xff]  }
   0x9   :  { %840 = vmatprep.subr.bf16.mxu0 %v1956_v10  ;;  %v1751_v25 = vld [vmem:[%s2767_s0 + $0x64] ss:$8 sps:$4 sm:$0xff]   ;;  %v1755_v27 = vld [vmem:[%s2767_s0 + $0x60] ss:$8 sps:$4 sm:$0xff]   ;;  %v1757_v29 = vld [vmem:[%s2767_s0 + $0x74] ss:$8 sps:$4 sm:$0xff]  }
   0xa   :  { %v2028_v26 = vld [vmem:[%s2767_s0 + $0x164] ss:$8 sps:$4 sm:$0xff]   ;;  %v2036_v28 = vld [vmem:[%s2767_s0 + $0x160] ss:$8 sps:$4 sm:$0xff]   ;;  %v2046_v30 = vld [vmem:[%s2767_s0 + $0x174] ss:$8 sps:$4 sm:$0xff]  }
   0xb   :  { %728 = vmatpush1.bf16.msra.mxu1 %v1731_v11  ;;  %v1761_v31 = vld [vmem:[%s2767_s0 + $0x70] ss:$8 sps:$4 sm:$0xff]   ;;  %v1763_v33 = vld [vmem:[%s2767_s0 + $0x84] ss:$8 sps:$4 sm:$0xff]   ;;  %v1767_v35 = vld [vmem:[%s2767_s0 + $0x80] ss:$8 sps:$4 sm:$0xff]  }
   0xc   :  { %841 = vmatpush1.bf16.msra.mxu0 %v1964_v12  ;;  %729 = vmatprep.subr.bf16.mxu1 %v1733_v13  ;;  %v2055_v32 = vld [vmem:[%s2767_s0 + $0x170] ss:$8 sps:$4 sm:$0xff]   ;;  %v2064_v34 = vld [vmem:[%s2767_s0 + $0x184] ss:$8 sps:$4 sm:$0xff]   ;;  %v2072_v36 = vld [vmem:[%s2767_s0 + $0x180] ss:$8 sps:$4 sm:$0xff]  }
   0xd   :  { %842 = vmatprep.subr.bf16.mxu0 %v1974_v14  ;;  %v1769_v37 = vld [vmem:[%s2767_s0 + $0x94] ss:$8 sps:$4 sm:$0xff]   ;;  %v1773_v39 = vld [vmem:[%s2767_s0 + $0x90] ss:$8 sps:$4 sm:$0xff]   ;;  %v1775_v41 = vld [vmem:[%s2767_s0 + $0xa4] ss:$8 sps:$4 sm:$0xff]  }
   0xe   :  { %v2082_v38 = vld [vmem:[%s2767_s0 + $0x194] ss:$8 sps:$4 sm:$0xff]   ;;  %v2091_v40 = vld [vmem:[%s2767_s0 + $0x190] ss:$8 sps:$4 sm:$0xff]   ;;  %v2100_v42 = vld [vmem:[%s2767_s0 + $0x1a4] ss:$8 sps:$4 sm:$0xff]  }
   0xf   :  { %730 = vmatpush1.bf16.msra.mxu1 %v1737_v15  ;;  %v1779_v43 = vld [vmem:[%s2767_s0 + $0xa0] ss:$8 sps:$4 sm:$0xff]   ;;  %v1781_v45 = vld [vmem:[%s2767_s0 + $0xb4] ss:$8 sps:$4 sm:$0xff]   ;;  %v1785_v47 = vld [vmem:[%s2767_s0 + $0xb0] ss:$8 sps:$4 sm:$0xff]  }
  0x10   :  { %843 = vmatpush1.bf16.msra.mxu0 %v1983_v16  ;;  %731 = vmatprep.subr.bf16.mxu1 %v1739_v17  ;;  %v2108_v44 = vld [vmem:[%s2767_s0 + $0x1a0] ss:$8 sps:$4 sm:$0xff]   ;;  %v2118_v46 = vld [vmem:[%s2767_s0 + $0x1b4] ss:$8 sps:$4 sm:$0xff]   ;;  %v2126_v48 = vld [vmem:[%s2767_s0 + $0x1b0] ss:$8 sps:$4 sm:$0xff]  }
  0x11   :  { %844 = vmatprep.subr.bf16.mxu0 %v1992_v18  ;;  %v1787_v49 = vld [vmem:[%s2767_s0 + $0xc4] ss:$8 sps:$4 sm:$0xff]   ;;  %v1791_v53 = vld [vmem:[%s2767_s0 + $0xc0] ss:$8 sps:$4 sm:$0xff]   ;;  %v1793_v55 = vld [vmem:[%s2767_s0 + $0xd4] ss:$8 sps:$4 sm:$0xff]  }
  0x12   :  { %v1813_v50 = vld [vmem:[%s2768_s1 + $0x4] ss:$20 sps:$4 sm:$0xff]   ;;  %v1816_v52 = vld [vmem:[%s2768_s1 + $0xc] ss:$20 sps:$4 sm:$0xff]   ;;  %v2160_v56 = vld [vmem:[%s2767_s0 + $0x1d4] ss:$8 sps:$4 sm:$0xff]  }
  0x13   :  { %732 = vmatpush1.bf16.msra.mxu1 %v1743_v19  ;;  %v2138_v51 = vld [vmem:[%s2767_s0 + $0x1c4] ss:$8 sps:$4 sm:$0xff]   ;;  %755 = vmatprep.mubr.bf16.mxu1 %v1813_v50  ;;  %v2151_v54 = vld [vmem:[%s2767_s0 + $0x1c0] ss:$8 sps:$4 sm:$0xff]   ;;  %v1797_v57 = vld [vmem:[%s2767_s0 + $0xd0] ss:$8 sps:$4 sm:$0xff]  }
  0x14   :  { %845 = vmatpush1.bf16.msra.mxu0 %v2000_v20  ;;  %733 = vmatprep.subr.bf16.mxu1 %v1745_v21  ;;  %v2169_v58 = vld [vmem:[%s2767_s0 + $0x1d0] ss:$8 sps:$4 sm:$0xff]   ;;  %v1799_v59 = vld [vmem:[%s2767_s0 + $0xe4] ss:$8 sps:$4 sm:$0xff]   ;;  %v1803_v61 = vld [vmem:[%s2767_s0 + $0xe0] ss:$8 sps:$4 sm:$0xff]  }
  0x15   :  { %846 = vmatprep.subr.bf16.mxu0 %v2010_v22  ;;  %868 = vmatprep.mubr.bf16.mxu0 %v1816_v52  ;;  %v2178_v60 = vld [vmem:[%s2767_s0 + $0x1e4] ss:$8 sps:$4 sm:$0xff]   ;;  %v2187_v62 = vld [vmem:[%s2767_s0 + $0x1e0] ss:$8 sps:$4 sm:$0xff]   ;;  %v1805_v63 = vld [vmem:[%s2767_s0 + $0xf4] ss:$8 sps:$4 sm:$0xff]  }
  0x16   :  { %v2196_v0 = vld [vmem:[%s2767_s0 + $0x1f4] ss:$8 sps:$4 sm:$0xff]   ;;  %v1809_v3 = vld [vmem:[%s2767_s0 + $0xf0] ss:$8 sps:$4 sm:$0xff]   ;;  %v1819_v7 = vld [vmem:[%s2767_s0 + $0x204] ss:$8 sps:$4 sm:$0xff]  }
  0x17   :  { %734 = vmatpush1.bf16.msra.mxu1 %v1749_v23  ;;  %v2205_v5 = vld [vmem:[%s2767_s0 + $0x1f0] ss:$8 sps:$4 sm:$0xff]   ;;  %v1811_v9 = vld [vmem:[%s2768_s1] ss:$20 sps:$4 sm:$0xff]   ;;  %v1814_v11 = vld [vmem:[%s2768_s1 + $0x8] ss:$20 sps:$4 sm:$0xff]  }
  0x18   :  { %847 = vmatpush1.bf16.msra.mxu0 %v2019_v24  ;;  %735 = vmatprep.subr.bf16.mxu1 %v1751_v25  ;;  %v1817_v13 = vld [vmem:[%s2767_s0 + $0x200] ss:$8 sps:$4 sm:$0xff]   ;;  %v1828_v19 = vld [vmem:[%s2767_s0 + $0x214] ss:$8 sps:$4 sm:$0xff]   ;;  %v1837_v21 = vld [vmem:[%s2767_s0 + $0x224] ss:$8 sps:$4 sm:$0xff]  }
  0x19   :  { %848 = vmatprep.subr.bf16.mxu0 %v2028_v26  ;;  %v1820_v15 = vld [vmem:[%s2768_s1 + $0x2c] ss:$20 sps:$4 sm:$0xff]   ;;  %v1822_v17 = vld [vmem:[%s2768_s1 + $0x34] ss:$20 sps:$4 sm:$0xff]   ;;  %v1831_v25 = vld [vmem:[%s2768_s1 + $0x5c] ss:$20 sps:$4 sm:$0xff]  }
  0x1a   :  { %v1824_v23 = vld [vmem:[%s2768_s1 + $0x28] ss:$20 sps:$4 sm:$0xff]  }
  0x1b   :  { %736 = vmatpush1.bf16.msra.mxu1 %v1755_v27  ;;  %v1835_v27 = vld [vmem:[%s2767_s0 + $0x220] ss:$8 sps:$4 sm:$0xff]  }
  0x1c   :  { %849 = vmatpush1.bf16.msra.mxu0 %v2036_v28  ;;  %737 = vmatprep.subr.bf16.mxu1 %v1757_v29  ;;  %v1833_v29 = vld [vmem:[%s2768_s1 + $0x50] ss:$20 sps:$4 sm:$0xff]  }
  0x1d   :  { %850 = vmatprep.subr.bf16.mxu0 %v2046_v30 }
  0x1f   :  { %738 = vmatpush1.bf16.msra.mxu1 %v1761_v31  ;;  %v1834_v31 = vld [vmem:[%s2768_s1 + $0x58] ss:$20 sps:$4 sm:$0xff]  }
  0x20   :  { %851 = vmatpush1.bf16.msra.mxu0 %v2055_v32  ;;  %739 = vmatprep.subr.bf16.mxu1 %v1763_v33  ;;  %v1847_v33 = vld [vmem:[%s2768_s1 + $0xa4] ss:$20 sps:$4 sm:$0xff]  }
  0x21   :  { %852 = vmatprep.subr.bf16.mxu0 %v2064_v34 }
  0x23   :  { %740 = vmatpush1.bf16.msra.mxu1 %v1767_v35  ;;  %v1859_v35 = vld [vmem:[%s2768_s1 + $0x11c] ss:$20 sps:$4 sm:$0xff]  }
  0x24   :  { %853 = vmatpush1.bf16.msra.mxu0 %v2072_v36  ;;  %741 = vmatprep.subr.bf16.mxu1 %v1769_v37  ;;  %v1862_v37 = vld [vmem:[%s2768_s1 + $0x88] ss:$20 sps:$4 sm:$0xff]  }
  0x25   :  { %854 = vmatprep.subr.bf16.mxu0 %v2082_v38 }
  0x27   :  { %742 = vmatpush1.bf16.msra.mxu1 %v1773_v39  ;;  %v1863_v39 = vld [vmem:[%s2768_s1 + $0xa8] ss:$20 sps:$4 sm:$0xff]  }
  0x28   :  { %855 = vmatpush1.bf16.msra.mxu0 %v2091_v40  ;;  %743 = vmatprep.subr.bf16.mxu1 %v1775_v41  ;;  %v1867_v41 = vld [vmem:[%s2768_s1 + $0xd4] ss:$20 sps:$4 sm:$0xff]  }
  0x29   :  { %856 = vmatprep.subr.bf16.mxu0 %v2100_v42 }
  0x2b   :  { %744 = vmatpush1.bf16.msra.mxu1 %v1779_v43  ;;  %v1870_v43 = vld [vmem:[%s2768_s1 + $0xd8] ss:$20 sps:$4 sm:$0xff]  }
  0x2c   :  { %857 = vmatpush1.bf16.msra.mxu0 %v2108_v44  ;;  %745 = vmatprep.subr.bf16.mxu1 %v1781_v45  ;;  %v1873_v45 = vld [vmem:[%s2768_s1 + $0xf8] ss:$20 sps:$4 sm:$0xff]  }
  0x2d   :  { %858 = vmatprep.subr.bf16.mxu0 %v2118_v46 }
  0x2f   :  { %746 = vmatpush1.bf16.msra.mxu1 %v1785_v47  ;;  %v1875_v47 = vld [vmem:[%s2768_s1 + $0x124] ss:$20 sps:$4 sm:$0xff]  }
  0x30   :  { %859 = vmatpush1.bf16.msra.mxu0 %v2126_v48  ;;  %747 = vmatprep.subr.bf16.mxu1 %v1787_v49  ;;  %v1878_v49 = vld [vmem:[%s2768_s1 + $0x128] ss:$20 sps:$4 sm:$0xff]  }
  0x31   :  { %860 = vmatprep.subr.bf16.mxu0 %v2138_v51 }
  0x33   :  { %748 = vmatpush1.bf16.msra.mxu1 %v1791_v53 }
  0x34   :  { %861 = vmatpush1.bf16.msra.mxu0 %v2151_v54  ;;  %749 = vmatprep.subr.bf16.mxu1 %v1793_v55 }
  0x35   :  { %862 = vmatprep.subr.bf16.mxu0 %v2160_v56 }
  0x37   :  { %750 = vmatpush1.bf16.msra.mxu1 %v1797_v57 }
  0x38   :  { %863 = vmatpush1.bf16.msra.mxu0 %v2169_v58  ;;  %751 = vmatprep.subr.bf16.mxu1 %v1799_v59 }
  0x39   :  { %864 = vmatprep.subr.bf16.mxu0 %v2178_v60 }
  0x3b   :  { %752 = vmatpush1.bf16.msra.mxu1 %v1803_v61 }
  0x3c   :  { %865 = vmatpush1.bf16.msra.mxu0 %v2187_v62  ;;  %753 = vmatprep.subr.bf16.mxu1 %v1805_v63 }
  0x3d   :  { %866 = vmatprep.subr.bf16.mxu0 %v2196_v0 }
  0x3f   :  { %754 = vmatpush1.bf16.msra.mxu1 %v1809_v3 }
  0x40   :  { %867 = vmatpush1.bf16.msra.mxu0 %v2205_v5  ;;  %1616 = vmatprep.subr.bf16.mxu1 %v1921_v2  ;;  %v1826_v2 = vld [vmem:[%s2767_s0 + $0x210] ss:$8 sps:$4 sm:$0xff]  }
  0x41   :  { %949 = vmatprep.subr.bf16.mxu0 %v1819_v7 }
  0x42   :  { %756 = vmatmul.mubr.bf16.vlgmr.msra.gmra.mrb[0].mxu1 %v1811_v9 }
  0x43   :  { %869 = vmatmul.mubr.bf16.vlgmr.msra.gmra.mrb[0].mxu0 %v1814_v11  ;;  %1632 = vmatpush1.bf16.msra.mxu1 %v1929_v4  ;;  %v1825_v4 = vld [vmem:[%s2768_s1 + $0x30] ss:$20 sps:$4 sm:$0xff]  }
  0x44   :  { %950 = vmatpush1.bf16.msra.mxu0 %v1817_v13  ;;  %1617 = vmatprep.subr.bf16.mxu1 %v1939_v6  ;;  %v1829_v6 = vld [vmem:[%s2768_s1 + $0x54] ss:$20 sps:$4 sm:$0xff]  }
  0x45   :  { %765 = vmatprep.mubr.bf16.mxu1 %v1820_v15  ;;  %878 = vmatprep.mubr.bf16.mxu0 %v1822_v17 }
  0x46   :  { %951 = vmatprep.subr.bf16.mxu0 %v1828_v19 }
  0x47   :  { %1633 = vmatpush1.bf16.msra.mxu1 %v1947_v8  ;;  %v1846_v8 = vld [vmem:[%s2767_s0 + $0x234] ss:$8 sps:$4 sm:$0xff]  }
  0x48   :  { %952 = vmatpush1.bf16.msra.mxu0 %v1826_v2  ;;  %1618 = vmatprep.subr.bf16.mxu1 %v1956_v10  ;;  %v1844_v10 = vld [vmem:[%s2767_s0 + $0x230] ss:$8 sps:$4 sm:$0xff]  }
  0x49   :  { %953 = vmatprep.subr.bf16.mxu0 %v1837_v21 }
  0x4a   :  { %766 = vmatmul.mubr.bf16.gmra.mrb[4].mxu1 %v1824_v23 }
  0x4b   :  { %879 = vmatmul.mubr.bf16.gmra.mrb[4].mxu0 %v1825_v4  ;;  %1634 = vmatpush1.bf16.msra.mxu1 %v1964_v12  ;;  %v1838_v12 = vld [vmem:[%s2768_s1 + $0x7c] ss:$20 sps:$4 sm:$0xff]  }
  0x4c   :  { %775 = vmatprep.mubr.bf16.mxu1 %v1829_v6  ;;  %1619 = vmatprep.subr.bf16.mxu1 %v1974_v14  ;;  %v1840_v14 = vld [vmem:[%s2768_s1 + $0x84] ss:$20 sps:$4 sm:$0xff]  }
  0x4d   :  { %888 = vmatprep.mubr.bf16.mxu0 %v1831_v25  ;;  %954 = vmatpush1.bf16.msra.mxu0 %v1835_v27 }
  0x4e   :  { %955 = vmatprep.subr.bf16.mxu0 %v1846_v8 }
  0x4f   :  { %1635 = vmatpush1.bf16.msra.mxu1 %v1983_v16  ;;  %v1842_v16 = vld [vmem:[%s2768_s1 + $0x78] ss:$20 sps:$4 sm:$0xff]  }
  0x50   :  { %1620 = vmatprep.subr.bf16.mxu1 %v1992_v18  ;;  %v1843_v18 = vld [vmem:[%s2768_s1 + $0x80] ss:$20 sps:$4 sm:$0xff]  }
  0x51   :  { %956 = vmatpush1.bf16.msra.mxu0 %v1844_v10 }
  0x52   :  { %776 = vmatmul.mubr.bf16.gmra.mrb[8].mxu1 %v1833_v29 }
  0x53   :  { %889 = vmatmul.mubr.bf16.gmra.mrb[8].mxu0 %v1834_v31  ;;  %1636 = vmatpush1.bf16.msra.mxu1 %v2000_v20  ;;  %v1849_v20 = vld [vmem:[%s2768_s1 + $0xa0] ss:$20 sps:$4 sm:$0xff]  }
  0x54   :  { %785 = vmatprep.mubr.bf16.mxu1 %v1838_v12  ;;  %1621 = vmatprep.subr.bf16.mxu1 %v2010_v22  ;;  %v1850_v22 = vld [vmem:[%s2768_s1 + $0x10] ss:$20 sps:$4 sm:$0xff]  }
  0x55   :  { %898 = vmatprep.mubr.bf16.mxu0 %v1840_v14 }
  0x57   :  { %1637 = vmatpush1.bf16.msra.mxu1 %v2019_v24  ;;  %v1851_v24 = vld [vmem:[%s2768_s1 + $0xcc] ss:$20 sps:$4 sm:$0xff]  }
  0x58   :  { %1622 = vmatprep.subr.bf16.mxu1 %v2028_v26  ;;  %v1853_v26 = vld [vmem:[%s2768_s1 + $0xc8] ss:$20 sps:$4 sm:$0xff]  }
  0x5a   :  { %786 = vmatmul.mubr.bf16.gmra.mrb[12].mxu1 %v1842_v16 }
  0x5b   :  { %899 = vmatmul.mubr.bf16.gmra.mrb[12].mxu0 %v1843_v18  ;;  %1638 = vmatpush1.bf16.msra.mxu1 %v2036_v28  ;;  %v1854_v28 = vld [vmem:[%s2768_s1 + $0x38] ss:$20 sps:$4 sm:$0xff]  }
  0x5c   :  { %795 = vmatprep.mubr.bf16.mxu1 %v1847_v33  ;;  %1623 = vmatprep.subr.bf16.mxu1 %v2046_v30  ;;  %v1855_v30 = vld [vmem:[%s2768_s1 + $0xf4] ss:$20 sps:$4 sm:$0xff]  }
  0x5d   :  { %981 = vmatprep.mubr.bf16.mxu0 %v1887_v1 }
  0x5f   :  { %1639 = vmatpush1.bf16.msra.mxu1 %v2055_v32  ;;  %v1857_v32 = vld [vmem:[%s2768_s1 + $0xf0] ss:$20 sps:$4 sm:$0xff]  }
  0x60   :  { %1624 = vmatprep.subr.bf16.mxu1 %v2064_v34  ;;  %v1858_v34 = vld [vmem:[%s2768_s1 + $0x60] ss:$20 sps:$4 sm:$0xff]  }
  0x62   :  { %796 = vmatmul.mubr.bf16.gmra.mrb[16].mxu1 %v1849_v20 }
  0x63   :  { %1608 = vmatmul.mubr.msk.bf16.vlgmr.msra.gmra.mrb[0].mxu0 %vm698_vm0, %v1850_v22  ;;  %1640 = vmatpush1.bf16.msra.mxu1 %v2072_v36  ;;  %v1861_v36 = vld [vmem:[%s2768_s1 + $0x118] ss:$20 sps:$4 sm:$0xff]  }
  0x64   :  { %805 = vmatprep.mubr.bf16.mxu1 %v1851_v24  ;;  %1625 = vmatprep.subr.bf16.mxu1 %v2082_v38  ;;  %v1865_v38 = vld [vmem:[%s2768_s1 + $0xac] ss:$20 sps:$4 sm:$0xff]  }
  0x65   :  { %991 = vmatprep.mubr.bf16.mxu0 %v1887_v1 }
  0x67   :  { %1641 = vmatpush1.bf16.msra.mxu1 %v2091_v40  ;;  %v1866_v40 = vld [vmem:[%s2768_s1 + $0xb0] ss:$20 sps:$4 sm:$0xff]  }
  0x68   :  { %1626 = vmatprep.subr.bf16.mxu1 %v2100_v42  ;;  %v1869_v42 = vld [vmem:[%s2768_s1 + $0xd0] ss:$20 sps:$4 sm:$0xff]  }
  0x6a   :  { %806 = vmatmul.mubr.bf16.gmra.mrb[20].mxu1 %v1853_v26 }
  0x6b   :  { %1609 = vmatmul.mubr.msk.bf16.gmra.mrb[4].mxu0 %vm698_vm0, %v1854_v28  ;;  %1642 = vmatpush1.bf16.msra.mxu1 %v2108_v44  ;;  %v1871_v44 = vld [vmem:[%s2768_s1 + $0xfc] ss:$20 sps:$4 sm:$0xff]  }
  0x6c   :  { %815 = vmatprep.mubr.bf16.mxu1 %v1855_v30  ;;  %1627 = vmatprep.subr.bf16.mxu1 %v2118_v46  ;;  %v1874_v46 = vld [vmem:[%s2768_s1 + $0x100] ss:$20 sps:$4 sm:$0xff]  }
  0x6d   :  { %1001 = vmatprep.mubr.bf16.mxu0 %v1887_v1 }
  0x6f   :  { %1643 = vmatpush1.bf16.msra.mxu1 %v2126_v48  ;;  %v1877_v48 = vld [vmem:[%s2768_s1 + $0x120] ss:$20 sps:$4 sm:$0xff]  }
  0x70   :  { %1628 = vmatprep.subr.bf16.mxu1 %v2138_v51 }
  0x72   :  { %816 = vmatmul.mubr.bf16.gmra.mrb[24].mxu1 %v1857_v32 }
  0x73   :  { %1610 = vmatmul.mubr.msk.bf16.gmra.mrb[8].mxu0 %vm698_vm0, %v1858_v34  ;;  %1644 = vmatpush1.bf16.msra.mxu1 %v2151_v54 }
  0x74   :  { %825 = vmatprep.mubr.bf16.mxu1 %v1859_v35  ;;  %1629 = vmatprep.subr.bf16.mxu1 %v2160_v56 }
  0x75   :  { %1011 = vmatprep.mubr.bf16.mxu0 %v1887_v1 }
  0x77   :  { %1645 = vmatpush1.bf16.msra.mxu1 %v2169_v58 }
  0x78   :  { %1630 = vmatprep.subr.bf16.mxu1 %v2178_v60 }
  0x7a   :  { %826 = vmatmul.mubr.bf16.gmra.mrb[28].mxu1 %v1861_v36 }
  0x7b   :  { %1611 = vmatmul.mubr.msk.bf16.gmra.mrb[12].mxu0 %vm698_vm0, %v1862_v37  ;;  %1646 = vmatpush1.bf16.msra.mxu1 %v2187_v62 }
  0x7c   :  { %908 = vmatprep.mubr.bf16.mxu1 %v1865_v38  ;;  %1631 = vmatprep.subr.bf16.mxu1 %v2196_v0 }
  0x7d   :  { %1021 = vmatprep.mubr.bf16.mxu0 %v1887_v1 }
  0x7f   :  { %1647 = vmatpush1.bf16.msra.mxu1 %v2205_v5 }
  0x82   :  { %909 = vmatmul.mubr.bf16.vlgmr.msra.gmra.mrb[16].mxu1 %v1863_v39 }
  0x83   :  { %1612 = vmatmul.mubr.msk.bf16.gmra.mrb[16].mxu0 %vm698_vm0, %v1866_v40  ;;  %918 = vmatprep.mubr.bf16.mxu1 %v1867_v41 }
  0x84   :  { %1031 = vmatprep.mubr.bf16.mxu0 %v1887_v1 }
  0x8a   :  { %919 = vmatmul.mubr.bf16.gmra.mrb[20].mxu1 %v1869_v42 }
  0x8b   :  { %1613 = vmatmul.mubr.msk.bf16.gmra.mrb[20].mxu0 %vm698_vm0, %v1870_v43  ;;  %928 = vmatprep.mubr.bf16.mxu1 %v1871_v44 }
  0x8c   :  { %1041 = vmatprep.mubr.bf16.mxu0 %v1887_v1 }
  0x92   :  { %929 = vmatmul.mubr.bf16.gmra.mrb[24].mxu1 %v1873_v45 }
  0x93   :  { %1614 = vmatmul.mubr.msk.bf16.gmra.mrb[24].mxu0 %vm698_vm0, %v1874_v46  ;;  %938 = vmatprep.mubr.bf16.mxu1 %v1875_v47 }
  0x94   :  { %1051 = vmatprep.mubr.bf16.mxu0 %v1887_v1 }
  0x9a   :  { %939 = vmatmul.mubr.bf16.gmra.mrb[28].mxu1 %v1877_v48 }
  0x9b   :  { %1615 = vmatmul.mubr.msk.bf16.gmra.mrb[28].mxu0 %vm698_vm0, %v1878_v49 }
 0x115   :  { %v757_v50 = vpop.f32.mrb[0].mxu1 }
 0x116   :  { %v759_v51 = vpop.f32.mrb[1].mxu1 }
 0x117   :  { %v761_v52 = vpop.f32.mrb[2].mxu1 }
 0x118   :  { %v763_v53 = vpop.f32.mrb[3].mxu1 }
 0x11d   :  { %v767_v54 = vpop.f32.mrb[4].mxu1 }
 0x11e   :  { %v769_v55 = vpop.f32.mrb[5].mxu1 }
 0x11f   :  { %v771_v56 = vpop.f32.mrb[6].mxu1 }
 0x120   :  { %v773_v57 = vpop.f32.mrb[7].mxu1 }
 0x125   :  { %v777_v1 = vpop.f32.mrb[8].mxu1 }
 0x126   :  { %v779_v58 = vpop.f32.mrb[9].mxu1 }
 0x127   :  { %v781_v59 = vpop.f32.mrb[10].mxu1 }
 0x128   :  { %v783_v60 = vpop.f32.mrb[11].mxu1 }
 0x12d   :  { %v787_v61 = vpop.f32.mrb[12].mxu1 }
 0x12e   :  { %v789_v62 = vpop.f32.mrb[13].mxu1 }
 0x12f   :  { %v791_v63 = vpop.f32.mrb[14].mxu1 }
 0x130   :  { %v793_v0 = vpop.f32.mrb[15].mxu1 }
 0x136   :  { %v983_v3 = vpop.f32.mrb[0].mxu0 }
 0x137   :  { %v2395_v5 = vadd.f32 %v983_v3, %v757_v50  ;;  %v985_v7 = vpop.f32.mrb[1].mxu0 }
 0x138   :  { %v2397_v9 = vadd.f32 %v985_v7, %v759_v51  ;;  %v987_v11 = vpop.f32.mrb[2].mxu0 }
 0x139   :  { %v2399_v13 = vadd.f32 %v987_v11, %v761_v52  ;;  %v989_v15 = vpop.f32.mrb[3].mxu0 }
 0x13a   :  { %v2401_v17 = vadd.f32 %v989_v15, %v763_v53  ;;  %v1071_v19 = vsel %vm1070_vm1, %v2397_v9, 0.0 }
 0x13b   :  { %v1072_v2 = vadd.f32 %v2395_v5, %v1071_v19 }
 0x13c   :  { %v1075_v21 = vsel %vm1070_vm1, %v2401_v17, 0.0 }
 0x13d   :  { %1073 = vadd.xlane.f32.xlu0 %v1072_v2  ;;  %v1076_v25 = vadd.f32 %v2399_v13, %v1075_v21 }
 0x13e   :  { %v993_v23 = vpop.f32.mrb[4].mxu0 }
 0x13f   :  { %v2408_v4 = vadd.f32 %v993_v23, %v767_v54  ;;  %v995_v6 = vpop.f32.mrb[5].mxu0 }
 0x140   :  { %v2411_v27 = vadd.f32 %v995_v6, %v769_v55  ;;  %v997_v8 = vpop.f32.mrb[6].mxu0 }
 0x141   :  { %v2413_v10 = vadd.f32 %v997_v8, %v771_v56  ;;  %v999_v29 = vpop.f32.mrb[7].mxu0  ;;  %1077 = vadd.xlane.f32.xlu0 %v1076_v25 }
 0x142   :  { %v2415_v31 = vadd.f32 %v999_v29, %v773_v57  ;;  %v1079_v12 = vsel %vm1070_vm1, %v2411_v27, 0.0 }
 0x143   :  { %v1080_v14 = vadd.f32 %v2408_v4, %v1079_v12 }
 0x144   :  { %v1083_v16 = vsel %vm1070_vm1, %v2415_v31, 0.0 }
 0x145   :  { %1081 = vadd.xlane.f32.xlu1 %v1080_v14  ;;  %v1084_v22 = vadd.f32 %v2413_v10, %v1083_v16 }
 0x146   :  { %v1003_v18 = vpop.f32.mrb[8].mxu0 }
 0x147   :  { %v2422_v33 = vadd.f32 %v1003_v18, %v777_v1  ;;  %v1005_v20 = vpop.f32.mrb[9].mxu0 }
 0x148   :  { %v2425_v24 = vadd.f32 %v1005_v20, %v779_v58  ;;  %v1007_v26 = vpop.f32.mrb[10].mxu0 }
 0x149   :  { %v2427_v28 = vadd.f32 %v1007_v26, %v781_v59  ;;  %v1009_v30 = vpop.f32.mrb[11].mxu0  ;;  %1085 = vadd.xlane.f32.xlu1 %v1084_v22 }
 0x14a   :  { %v2429_v32 = vadd.f32 %v1009_v30, %v783_v60  ;;  %v1091_v34 = vsel %vm1070_vm1, %v2425_v24, 0.0 }
 0x14b   :  { %v1092_v35 = vadd.f32 %v2422_v33, %v1091_v34 }
 0x14c   :  { %v1095_v36 = vsel %vm1070_vm1, %v2429_v32, 0.0 }
 0x14d   :  { %1093 = vadd.xlane.f32.xlu0 %v1092_v35  ;;  %v1096_v37 = vadd.f32 %v2427_v28, %v1095_v36 }
 0x14e   :  { %v1013_v38 = vpop.f32.mrb[12].mxu0 }
 0x14f   :  { %v2437_v39 = vadd.f32 %v1013_v38, %v787_v61  ;;  %v1015_v40 = vpop.f32.mrb[13].mxu0  ;;  %1097 = vadd.xlane.f32.xlu1 %v1096_v37 }
 0x150   :  { %v2439_v41 = vadd.f32 %v1015_v40, %v789_v62  ;;  %v1017_v42 = vpop.f32.mrb[14].mxu0 }
 0x151   :  { %v2441_v43 = vadd.f32 %v1017_v42, %v791_v63  ;;  %v1019_v44 = vpop.f32.mrb[15].mxu0 }
 0x152   :  { %v2443_v45 = vadd.f32 %v1019_v44, %v793_v0  ;;  %v1099_v46 = vsel %vm1070_vm1, %v2439_v41, 0.0 }
 0x153   :  { %v1100_v47 = vadd.f32 %v2437_v39, %v1099_v46 }
 0x154   :  { %v1103_v48 = vsel %vm1070_vm1, %v2443_v45, 0.0 }
 0x155   :  { %1101 = vadd.xlane.f32.xlu0 %v1100_v47  ;;  %v1104_v49 = vadd.f32 %v2441_v43, %v1103_v48  ;;  %v910_v50 = vpop.f32.mrb[16].mxu1 }
 0x156   :  { %v1023_v51 = vpop.f32.mrb[16].mxu0  ;;  %v912_v54 = vpop.f32.mrb[17].mxu1 }
 0x157   :  { %v2451_v52 = vadd.f32 %v1023_v51, %v910_v50  ;;  %v1025_v53 = vpop.f32.mrb[17].mxu0  ;;  %1105 = vadd.xlane.f32.xlu1 %v1104_v49  ;;  %v914_v56 = vpop.f32.mrb[18].mxu1 }
 0x158   :  { %v2453_v55 = vadd.f32 %v1025_v53, %v912_v54  ;;  %v1027_v57 = vpop.f32.mrb[18].mxu0  ;;  %v916_v58 = vpop.f32.mrb[19].mxu1 }
 0x159   :  { %v2455_v1 = vadd.f32 %v1027_v57, %v914_v56  ;;  %v1029_v59 = vpop.f32.mrb[19].mxu0 }
 0x15a   :  { %v2457_v60 = vadd.f32 %v1029_v59, %v916_v58  ;;  %v1111_v61 = vsel %vm1070_vm1, %v2453_v55, 0.0 }
 0x15b   :  { %v1112_v62 = vadd.f32 %v2451_v52, %v1111_v61 }
 0x15c   :  { %v1115_v63 = vsel %vm1070_vm1, %v2457_v60, 0.0 }
 0x15d   :  { %1113 = vadd.xlane.f32.xlu0 %v1112_v62  ;;  %v1116_v0 = vadd.f32 %v2455_v1, %v1115_v63  ;;  %v920_v3 = vpop.f32.mrb[20].mxu1 }
 0x15e   :  { %v1033_v7 = vpop.f32.mrb[20].mxu0  ;;  %v922_v19 = vpop.f32.mrb[21].mxu1 }
 0x15f   :  { %v2465_v11 = vadd.f32 %v1033_v7, %v920_v3  ;;  %v1035_v15 = vpop.f32.mrb[21].mxu0  ;;  %1117 = vadd.xlane.f32.xlu1 %v1116_v0  ;;  %v924_v21 = vpop.f32.mrb[22].mxu1 }
 0x160   :  { %v2467_v2 = vadd.f32 %v1035_v15, %v922_v19  ;;  %v1037_v23 = vpop.f32.mrb[22].mxu0  ;;  %v926_v25 = vpop.f32.mrb[23].mxu1 }
 0x161   :  { %v2469_v6 = vadd.f32 %v1037_v23, %v924_v21  ;;  %v1039_v8 = vpop.f32.mrb[23].mxu0 }
 0x162   :  { %v2471_v29 = vadd.f32 %v1039_v8, %v926_v25  ;;  %v1119_v12 = vsel %vm1070_vm1, %v2467_v2, 0.0 }
 0x163   :  { %v1120_v14 = vadd.f32 %v2465_v11, %v1119_v12 }
 0x164   :  { %v1123_v16 = vsel %vm1070_vm1, %v2471_v29, 0.0 }
 0x165   :  { %1121 = vadd.xlane.f32.xlu0 %v1120_v14  ;;  %v1124_v18 = vadd.f32 %v2469_v6, %v1123_v16  ;;  %v930_v20 = vpop.f32.mrb[24].mxu1 }
 0x166   :  { %v1043_v22 = vpop.f32.mrb[24].mxu0  ;;  %v932_v34 = vpop.f32.mrb[25].mxu1 }
 0x167   :  { %v2479_v26 = vadd.f32 %v1043_v22, %v930_v20  ;;  %v1045_v30 = vpop.f32.mrb[25].mxu0  ;;  %1125 = vadd.xlane.f32.xlu1 %v1124_v18  ;;  %v934_v36 = vpop.f32.mrb[26].mxu1 }
 0x168   :  { %v2481_v35 = vadd.f32 %v1045_v30, %v932_v34  ;;  %v1047_v37 = vpop.f32.mrb[26].mxu0  ;;  %v936_v40 = vpop.f32.mrb[27].mxu1 }
 0x169   :  { %v2483_v38 = vadd.f32 %v1047_v37, %v934_v36  ;;  %v1049_v42 = vpop.f32.mrb[27].mxu0 }
 0x16a   :  { %v2485_v44 = vadd.f32 %v1049_v42, %v936_v40  ;;  %v1131_v46 = vsel %vm1070_vm1, %v2481_v35, 0.0 }
 0x16b   :  { %v1132_v47 = vadd.f32 %v2479_v26, %v1131_v46 }
 0x16c   :  { %v1135_v48 = vsel %vm1070_vm1, %v2485_v44, 0.0 }
 0x16d   :  { %1133 = vadd.xlane.f32.xlu0 %v1132_v47  ;;  %v1136_v49 = vadd.f32 %v2483_v38, %v1135_v48  ;;  %v940_v50 = vpop.f32.mrb[28].mxu1 }
 0x16e   :  { %v1053_v51 = vpop.f32.mrb[28].mxu0  ;;  %v942_v56 = vpop.f32.mrb[29].mxu1 }
 0x16f   :  { %v2493_v53 = vadd.f32 %v1053_v51, %v940_v50  ;;  %v1055_v54 = vpop.f32.mrb[29].mxu0  ;;  %1137 = vadd.xlane.f32.xlu1 %v1136_v49  ;;  %v944_v58 = vpop.f32.mrb[30].mxu1 }
 0x170   :  { %v2495_v57 = vadd.f32 %v1055_v54, %v942_v56  ;;  %v1057_v59 = vpop.f32.mrb[30].mxu0  ;;  %v946_v62 = vpop.f32.mrb[31].mxu1 }
 0x171   :  { %v2497_v61 = vadd.f32 %v1057_v59, %v944_v58  ;;  %v1059_v63 = vpop.f32.mrb[31].mxu0 }
 0x172   :  { %v2499_v0 = vadd.f32 %v1059_v63, %v946_v62  ;;  %v1139_v3 = vsel %vm1070_vm1, %v2495_v57, 0.0 }
 0x173   :  { %v1140_v7 = vadd.f32 %v2493_v53, %v1139_v3 }
 0x174   :  { %v1143_v15 = vsel %vm1070_vm1, %v2499_v0, 0.0 }
 0x175   :  { %1141 = vadd.xlane.f32.xlu0 %v1140_v7  ;;  %v1144_v19 = vadd.f32 %v2497_v61, %v1143_v15 }
 0x177   :  { %1145 = vadd.xlane.f32.xlu1 %v1144_v19 }
 0x1ca   :  { %v1074_v21 = vpop.xlane.xlu0 %1073 }
 0x1ce   :  { %v1078_v25 = vpop.xlane.xlu0 %1077 }
 0x1d2   :  { %v1082_v23 = vpop.xlane.xlu1 %1081 }
 0x1d6   :  { %v1086_v8 = vpop.xlane.xlu1 %1085 }
 0x1da   :  { %v1094_v12 = vpop.xlane.xlu0 %1093 }
 0x1db   :  { %v1107_v34 = vadd.f32 %v1094_v12, %v1074_v21 }
 0x1dc   :  { %v1098_v14 = vpop.xlane.xlu1 %1097 }
 0x1dd   :  { %v1108_v37 = vadd.f32 %v1098_v14, %v1078_v25 }
 0x1e2   :  { %v1102_v16 = vpop.xlane.xlu0 %1101 }
 0x1e3   :  { %v1109_v51 = vadd.f32 %v1102_v16, %v1082_v23 }
 0x1e4   :  { %v1106_v18 = vpop.xlane.xlu1 %1105 }
 0x1e5   :  { %v1110_v54 = vadd.f32 %v1106_v18, %v1086_v8 }
 0x1ea   :  { %v1114_v20 = vpop.xlane.xlu0 %1113 }
 0x1eb   :  { %v1127_v40 = vadd.f32 %v1114_v20, %v1107_v34 }
 0x1ec   :  { %v1118_v22 = vpop.xlane.xlu1 %1117 }
 0x1ed   :  { %v1128_v46 = vadd.f32 %v1118_v22, %v1108_v37 }
 0x1f2   :  { %v1122_v30 = vpop.xlane.xlu0 %1121 }
 0x1f3   :  { %v1129_v62 = vadd.f32 %v1122_v30, %v1109_v51 }
 0x1f4   :  { %v1126_v36 = vpop.xlane.xlu1 %1125 }
 0x1f5   :  { %v1130_v63 = vadd.f32 %v1126_v36, %v1110_v54 }
 0x1fa   :  { %v1134_v42 = vpop.xlane.xlu0 %1133 }
 0x1fb   :  { %v1147_v47 = vadd.f32 %v1134_v42, %v1127_v40 }
 0x1fc   :  { %v1138_v48 = vpop.xlane.xlu1 %1137 }
 0x1fd   :  { %v2507_v49 = vmul.f32 0.00125, %v1147_v47  ;;  %v1148_v50 = vadd.f32 %v1138_v48, %v1128_v46 }
 0x1ff   :  { %v2509_v56 = vmul.f32 0.00125, %v1148_v50  ;;  %v1156_v58 = vsub.f32 %v2395_v5, %v2507_v49  ;;  %v1157_v59 = vsub.f32 %v2397_v9, %v2507_v49  ;;  %v1192_v3 = vsub.f32 %v2422_v33, %v2507_v49 }
 0x200   :  { %v1193_v7 = vsub.f32 %v2425_v24, %v2507_v49  ;;  %v1229_v16 = vsub.f32 %v2453_v55, %v2507_v49  ;;  %v1228_v42 = vsub.f32 %v2451_v52, %v2507_v49 }
 0x201   :  { %v1164_v15 = vmul.f32 %v1156_v58, %v1156_v58  ;;  %v1165_v19 = vmul.f32 %v1157_v59, %v1157_v59  ;;  %v1158_v21 = vsub.f32 %v2399_v13, %v2509_v56  ;;  %v1159_v23 = vsub.f32 %v2401_v17, %v2509_v56 }
 0x202   :  { %v1142_v25 = vpop.xlane.xlu0 %1141  ;;  %v1201_v8 = vmul.f32 %v1193_v7, %v1193_v7  ;;  %v1194_v12 = vsub.f32 %v2427_v28, %v2509_v56  ;;  %v1195_v14 = vsub.f32 %v2429_v32, %v2509_v56  ;;  %v1200_v37 = vmul.f32 %v1192_v3, %v1192_v3 }
 0x203   :  { %v1149_v18 = vadd.f32 %v1142_v25, %v1129_v62  ;;  %v1172_v20 = vsel %vm1070_vm1, %v1165_v19, 0.0  ;;  %v1166_v22 = vmul.f32 %v1158_v21, %v1158_v21  ;;  %v1167_v30 = vmul.f32 %v1159_v23, %v1159_v23 }
 0x204   :  { %v1146_v34 = vpop.xlane.xlu1 %1145  ;;  %v1173_v36 = vadd.f32 %v1172_v20, %v1164_v15  ;;  %v1203_v40 = vmul.f32 %v1195_v14, %v1195_v14  ;;  %v1208_v48 = vsel %vm1070_vm1, %v1201_v8, 0.0  ;;  %v1202_v50 = vmul.f32 %v1194_v12, %v1194_v12 }
 0x205   :  { %v1150_v46 = vadd.f32 %v1146_v34, %v1130_v63  ;;  %v1176_v47 = vsel %vm1070_vm1, %v1167_v30, 0.0  ;;  %v2534_v51 = vmul.f32 0.00125, %v1149_v18  ;;  %v1237_v59 = vmul.f32 %v1229_v16, %v1229_v16 }
 0x206   :  { %1174 = vadd.xlane.f32.xlu0 %v1173_v36  ;;  %v1177_v54 = vadd.f32 %v1176_v47, %v1166_v22  ;;  %v1212_v58 = vsel %vm1070_vm1, %v1203_v40, 0.0  ;;  %v1230_v3 = vsub.f32 %v2455_v1, %v2509_v56  ;;  %v1231_v63 = vsub.f32 %v2457_v60, %v2509_v56 }
 0x207   :  { %v2537_v62 = vmul.f32 0.00125, %v1150_v46  ;;  %v1209_v7 = vadd.f32 %v1208_v48, %v1200_v37  ;;  %v1236_v15 = vmul.f32 %v1228_v42, %v1228_v42  ;;  %v1264_v19 = vsub.f32 %v2479_v26, %v2507_v49 }
 0x208   :  { %1178 = vadd.xlane.f32.xlu1 %v1177_v54  ;;  %v1265_v21 = vsub.f32 %v2481_v35, %v2507_v49  ;;  %v1213_v23 = vadd.f32 %v1212_v58, %v1202_v50  ;;  %v1244_v25 = vsel %vm1070_vm1, %v1237_v59, 0.0  ;;  %v1239_v8 = vmul.f32 %v1231_v63, %v1231_v63 }
 0x209   :  { %v1267_v12 = vsub.f32 %v2485_v44, %v2509_v56  ;;  %v1238_v14 = vmul.f32 %v1230_v3, %v1230_v3  ;;  %v1266_v18 = vsub.f32 %v2483_v38, %v2509_v56  ;;  %v1161_v20 = vsub.f32 %v2411_v27, %v2534_v51 }
 0x20a   :  { %1210 = vadd.xlane.f32.xlu0 %v1209_v7  ;;  %v1273_v16 = vmul.f32 %v1265_v21, %v1265_v21  ;;  %v1248_v22 = vsel %vm1070_vm1, %v1239_v8, 0.0  ;;  %v1163_v34 = vsub.f32 %v2415_v31, %v2537_v62  ;;  %v1245_v36 = vadd.f32 %v1244_v25, %v1236_v15 }
 0x20b   :  { %v1275_v30 = vmul.f32 %v1267_v12, %v1267_v12  ;;  %v1272_v37 = vmul.f32 %v1264_v19, %v1264_v19  ;;  %v1160_v40 = vsub.f32 %v2408_v4, %v2534_v51  ;;  %v1169_v46 = vmul.f32 %v1161_v20, %v1161_v20 }
 0x20c   :  { %1214 = vadd.xlane.f32.xlu1 %v1213_v23  ;;  %v1280_v42 = vsel %vm1070_vm1, %v1273_v16, 0.0  ;;  %v1249_v47 = vadd.f32 %v1248_v22, %v1238_v14  ;;  %v1274_v48 = vmul.f32 %v1266_v18, %v1266_v18  ;;  %v1162_v50 = vsub.f32 %v2413_v10, %v2537_v62 }
 0x20d   :  { %v1197_v54 = vsub.f32 %v2439_v41, %v2534_v51  ;;  %v1284_v58 = vsel %vm1070_vm1, %v1275_v30, 0.0  ;;  %v1171_v59 = vmul.f32 %v1163_v34, %v1163_v34  ;;  %v1199_v3 = vsub.f32 %v2443_v45, %v2537_v62 }
 0x20e   :  { %1246 = vadd.xlane.f32.xlu0 %v1245_v36  ;;  %v1281_v63 = vadd.f32 %v1280_v42, %v1272_v37  ;;  %v1168_v7 = vmul.f32 %v1160_v40, %v1160_v40  ;;  %v1196_v15 = vsub.f32 %v2437_v39, %v2534_v51  ;;  %v1180_v19 = vsel %vm1070_vm1, %v1169_v46, 0.0 }
 0x20f   :  { %v1205_v21 = vmul.f32 %v1197_v54, %v1197_v54  ;;  %v1233_v23 = vsub.f32 %v2467_v2, %v2534_v51  ;;  %v1285_v25 = vadd.f32 %v1284_v58, %v1274_v48  ;;  %v1170_v8 = vmul.f32 %v1162_v50, %v1162_v50 }
 0x210   :  { %1250 = vadd.xlane.f32.xlu1 %v1249_v47  ;;  %v1198_v12 = vsub.f32 %v2441_v43, %v2537_v62  ;;  %v1184_v14 = vsel %vm1070_vm1, %v1171_v59, 0.0  ;;  %v1207_v16 = vmul.f32 %v1199_v3, %v1199_v3  ;;  %v1235_v18 = vsub.f32 %v2471_v29, %v2537_v62 }
 0x211   :  { %v1181_v20 = vadd.f32 %v1180_v19, %v1168_v7  ;;  %v1204_v22 = vmul.f32 %v1196_v15, %v1196_v15  ;;  %v1232_v30 = vsub.f32 %v2465_v11, %v2534_v51  ;;  %v1216_v34 = vsel %vm1070_vm1, %v1205_v21, 0.0 }
 0x212   :  { %1282 = vadd.xlane.f32.xlu0 %v1281_v63  ;;  %v1241_v36 = vmul.f32 %v1233_v23, %v1233_v23  ;;  %v1269_v37 = vsub.f32 %v2495_v57, %v2534_v51  ;;  %v1185_v40 = vadd.f32 %v1184_v14, %v1170_v8  ;;  %v1206_v42 = vmul.f32 %v1198_v12, %v1198_v12 }
 0x213   :  { %v1234_v46 = vsub.f32 %v2469_v6, %v2537_v62  ;;  %v1220_v47 = vsel %vm1070_vm1, %v1207_v16, 0.0  ;;  %v1243_v48 = vmul.f32 %v1235_v18, %v1235_v18  ;;  %v1271_v50 = vsub.f32 %v2499_v0, %v2537_v62 }
 0x214   :  { %1286 = vadd.xlane.f32.xlu1 %v1285_v25  ;;  %v1217_v54 = vadd.f32 %v1216_v34, %v1204_v22  ;;  %v1240_v58 = vmul.f32 %v1232_v30, %v1232_v30  ;;  %v1268_v59 = vsub.f32 %v2493_v53, %v2534_v51  ;;  %v1252_v3 = vsel %vm1070_vm1, %v1241_v36, 0.0 }
 0x215   :  { %v1277_v63 = vmul.f32 %v1269_v37, %v1269_v37  ;;  %v1221_v7 = vadd.f32 %v1220_v47, %v1206_v42  ;;  %v1242_v15 = vmul.f32 %v1234_v46, %v1234_v46  ;;  %v1270_v19 = vsub.f32 %v2497_v61, %v2537_v62 }
 0x216   :  { %1182 = vadd.xlane.f32.xlu0 %v1181_v20  ;;  %v1256_v21 = vsel %vm1070_vm1, %v1243_v48, 0.0  ;;  %v1279_v23 = vmul.f32 %v1271_v50, %v1271_v50  ;;  %v1253_v25 = vadd.f32 %v1252_v3, %v1240_v58  ;;  %v1276_v8 = vmul.f32 %v1268_v59, %v1268_v59 }
 0x217   :  { %v1288_v12 = vsel %vm1070_vm1, %v1277_v63, 0.0  ;;  %v1257_v14 = vadd.f32 %v1256_v21, %v1242_v15  ;;  %v1278_v16 = vmul.f32 %v1270_v19, %v1270_v19 }
 0x218   :  { %1186 = vadd.xlane.f32.xlu1 %v1185_v40  ;;  %v1292_v18 = vsel %vm1070_vm1, %v1279_v23, 0.0  ;;  %v1289_v20 = vadd.f32 %v1288_v12, %v1276_v8 }
 0x219   :  { %v1293_v22 = vadd.f32 %v1292_v18, %v1278_v16 }
 0x21a   :  { %1218 = vadd.xlane.f32.xlu0 %v1217_v54 }
 0x21c   :  { %1222 = vadd.xlane.f32.xlu1 %v1221_v7 }
 0x21e   :  { %1254 = vadd.xlane.f32.xlu0 %v1253_v25 }
 0x220   :  { %1258 = vadd.xlane.f32.xlu1 %v1257_v14 }
 0x222   :  { %1290 = vadd.xlane.f32.xlu0 %v1289_v20 }
 0x224   :  { %1294 = vadd.xlane.f32.xlu1 %v1293_v22  ;;  %v1062_v22 = vld [vmem:[%s2769_s2] sm:$0xff] }
 0x293   :  { %v1175_v30 = vpop.xlane.xlu0 %1174 }
 0x295   :  { %v1179_v34 = vpop.xlane.xlu1 %1178 }
 0x297   :  { %v1211_v36 = vpop.xlane.xlu0 %1210 }
 0x298   :  { %v1224_v42 = vadd.f32 %v1211_v36, %v1175_v30 }
 0x299   :  { %v1215_v37 = vpop.xlane.xlu1 %1214 }
 0x29a   :  { %v1225_v47 = vadd.f32 %v1215_v37, %v1179_v34 }
 0x29b   :  { %v1247_v40 = vpop.xlane.xlu0 %1246 }
 0x29c   :  { %v1260_v48 = vadd.f32 %v1247_v40, %v1224_v42  ;;  %v1063_v40 = vld [vmem:[%s2769_s2 + $0x8] sm:$0xff] }
 0x29d   :  { %v1251_v46 = vpop.xlane.xlu1 %1250 }
 0x29e   :  { %v1261_v54 = vadd.f32 %v1251_v46, %v1225_v47 }
 0x29f   :  { %v1283_v50 = vpop.xlane.xlu0 %1282 }
 0x2a0   :  { %v1296_v58 = vadd.f32 %v1283_v50, %v1260_v48 }
 0x2a1   :  { %v1287_v59 = vpop.xlane.xlu1 %1286 }
 0x2a2   :  { %v1300_v3 = vmul.f32 0.00125, %v1296_v58  ;;  %v1297_v63 = vadd.f32 %v1287_v59, %v1261_v54 }
 0x2a3   :  { %v1183_v7 = vpop.xlane.xlu0 %1182 }
 0x2a4   :  { %v1304_v15 = vadd.f32 1e-05, %v1300_v3  ;;  %v1301_v19 = vmul.f32 0.00125, %v1297_v63  ;;  %v1066_v63 = vld [vmem:[%s2770_s3] sm:$0xff] }
 0x2a5   :  { %v1187_v21 = vpop.xlane.xlu1 %1186 }
 0x2a6   :  { %1879 = vrsqrt.f32 %v1304_v15  ;;  %v1305_v23 = vadd.f32 1e-05, %v1301_v19 }
 0x2a7   :  { %v1219_v25 = vpop.xlane.xlu0 %1218 }
 0x2a8   :  { %1881 = vrsqrt.f32 %v1305_v23  ;;  %v1226_v14 = vadd.f32 %v1219_v25, %v1183_v7 }
 0x2a9   :  { %v1223_v8 = vpop.xlane.xlu1 %1222 }
 0x2aa   :  { %v1227_v18 = vadd.f32 %v1223_v8, %v1187_v21  ;;  %v1067_v21 = vld [vmem:[%s2770_s3 + $0x8] sm:$0xff] }
 0x2ab   :  { %v1255_v12 = vpop.xlane.xlu0 %1254 }
 0x2ac   :  { %v1262_v20 = vadd.f32 %v1255_v12, %v1226_v14  ;;  %v1065_v14 = vld [vmem:[%s2769_s2 + $0x18] sm:$0xff] }
 0x2ad   :  { %v1259_v16 = vpop.xlane.xlu1 %1258 }
 0x2ae   :  { %v1263_v36 = vadd.f32 %v1259_v16, %v1227_v18  ;;  %v1068_v18 = vld [vmem:[%s2770_s3 + $0x10] sm:$0xff] }
 0x2af   :  { %v1291_v30 = vpop.xlane.xlu0 %1290 }
 0x2b0   :  { %v1880_v34 = vpop.eup %1879  ;;  %v1298_v37 = vadd.f32 %v1291_v30, %v1262_v20  ;;  %v1069_v30 = vld [vmem:[%s2770_s3 + $0x18] sm:$0xff] }
 0x2b1   :  { %v1295_v42 = vpop.xlane.xlu1 %1294  ;;  %v1312_v46 = vmul.f32 %v1880_v34, %v1062_v22 }
 0x2b2   :  { %v1882_v47 = vpop.eup %1881  ;;  %v1302_v48 = vmul.f32 0.00125, %v1298_v37  ;;  %v1299_v50 = vadd.f32 %v1295_v42, %v1263_v36 }
 0x2b3   :  { %1326 = vperm.xlu0 %1713, %v1312_v46   ;;  %v1313_v54 = vmul.f32 %v1882_v47, %v1063_v40  ;;  %v1316_v58 = vmul.f32 %v1312_v46, %v2507_v49  ;;  %v1064_v49 = vld [vmem:[%s2769_s2 + $0x10] sm:$0xff] }
 0x2b4   :  { %v1306_v59 = vadd.f32 1e-05, %v1302_v48  ;;  %v1303_v3 = vmul.f32 0.00125, %v1299_v50 }
 0x2b5   :  { %1331 = vperm.xlu1 %1714, %v1313_v54   ;;  %v1320_v15 = vsub.f32 %v1066_v63, %v1316_v58  ;;  %v1317_v19 = vmul.f32 %v1313_v54, %v2509_v56 }
 0x2b6   :  { %1883 = vrsqrt.f32 %v1306_v59  ;;  %v1307_v7 = vadd.f32 1e-05, %v1303_v3 }
 0x2b7   :  { %v1321_v23 = vsub.f32 %v1067_v21, %v1317_v19 }
 0x2b8   :  { %1885 = vrsqrt.f32 %v1307_v7 }
 0x2b9   :  { %1378 = vperm.xlu1 %1714, %v1320_v15  }
 0x2bd   :  { %1383 = vperm.xlu1 %1714, %v1321_v23  }
 0x2c0   :  { %v1884_v25 = vpop.eup %1883 }
 0x2c1   :  { %v1314_v8 = vmul.f32 %v1884_v25, %v1064_v49 }
 0x2c2   :  { %v1886_v12 = vpop.eup %1885 }
 0x2c3   :  { %1336 = vperm.xlu1 %1714, %v1314_v8   ;;  %v1315_v56 = vmul.f32 %v1886_v12, %v1065_v14  ;;  %v1318_v16 = vmul.f32 %v1314_v8, %v2534_v51 }
 0x2c5   :  { %v1322_v20 = vsub.f32 %v1068_v18, %v1318_v16  ;;  %v1319_v22 = vmul.f32 %v1315_v56, %v2537_v62 }
 0x2c7   :  { %1341 = vperm.xlu1 %1714, %v1315_v56   ;;  %v1323_v34 = vsub.f32 %v1069_v30, %v1319_v22 }
 0x2cb   :  { %1388 = vperm.xlu1 %1714, %v1322_v20  }
 0x2cf   :  { %1393 = vperm.xlu1 %1714, %v1323_v34  }
 0x332   :  { %v1327_v36 = vpop.permute.xlu0 %1326 }
 0x333   :  { %v1344_v40 = vmul.f32 %v2395_v5, %v1327_v36  ;;  %v1345_v51 = vmul.f32 %v2397_v9, %v1327_v36  ;;  %v1352_v42 = vmul.f32 %v2422_v33, %v1327_v36  ;;  %v1353_v46 = vmul.f32 %v2425_v24, %v1327_v36 }
 0x334   :  { %v1332_v37 = vpop.permute.xlu1 %1331  ;;  %v1360_v47 = vmul.f32 %v2451_v52, %v1327_v36  ;;  %v1361_v62 = vmul.f32 %v2453_v55, %v1327_v36  ;;  %v1368_v48 = vmul.f32 %v2479_v26, %v1327_v36  ;;  %v1369_v50 = vmul.f32 %v2481_v35, %v1327_v36 }
 0x335   :  { %v1346_v54 = vmul.f32 %v2399_v13, %v1332_v37  ;;  %v1347_v58 = vmul.f32 %v2401_v17, %v1332_v37  ;;  %v1354_v5 = vmul.f32 %v2427_v28, %v1332_v37  ;;  %v1355_v9 = vmul.f32 %v2429_v32, %v1332_v37 }
 0x336   :  { %v1362_v33 = vmul.f32 %v2455_v1, %v1332_v37  ;;  %v1363_v24 = vmul.f32 %v2457_v60, %v1332_v37  ;;  %v1370_v52 = vmul.f32 %v2483_v38, %v1332_v37  ;;  %v1371_v55 = vmul.f32 %v2485_v44, %v1332_v37 }
 0x338   :  { %v1379_v59 = vpop.permute.xlu1 %1378 }
 0x339   :  { %v1396_v26 = vadd.f32 %v1379_v59, %v1344_v40  ;;  %v1397_v3 = vadd.f32 %v1379_v59, %v1345_v51  ;;  %v1404_v35 = vadd.f32 %v1379_v59, %v1352_v42  ;;  %v1405_v63 = vadd.f32 %v1379_v59, %v1353_v46 }
 0x33a   :  { %v1412_v13 = vadd.f32 %v1379_v59, %v1360_v47  ;;  %v1413_v7 = vadd.f32 %v1379_v59, %v1361_v62  ;;  %v1420_v17 = vadd.f32 %v1379_v59, %v1368_v48  ;;  %v1421_v15 = vadd.f32 %v1379_v59, %v1369_v50 }
 0x33b   :  { %v1428_v28 = vmax.f32 %v1396_v26, 0.0  ;;  %v1429_v19 = vmax.f32 %v1397_v3, 0.0  ;;  %v1436_v32 = vmax.f32 %v1404_v35, 0.0  ;;  %v1437_v21 = vmax.f32 %v1405_v63, 0.0 }
 0x33c   :  { %v1444_v1 = vmax.f32 %v1412_v13, 0.0  ;;  %v1445_v23 = vmax.f32 %v1413_v7, 0.0  ;;  %v1452_v60 = vmax.f32 %v1420_v17, 0.0  ;;  %v1453_v49 = vmax.f32 %v1421_v15, 0.0  ;;  %v1384_v38 = vpop.permute.xlu1 %1383 }
 0x33d   :  { %1460 = vst [vmem:[%s2771_s4] sm:$0xff] %v1428_v28  ;;  %1461 = vst.msk [vmem:[%s2771_s4 + $0x8] sm:$0xff] %vm1070_vm1, %v1429_v19  ;;  %v1398_v44 = vadd.f32 %v1384_v38, %v1346_v54  ;;  %v1399_v25 = vadd.f32 %v1384_v38, %v1347_v58  ;;  %v1406_v8 = vadd.f32 %v1384_v38, %v1354_v5 }
 0x33e   :  { %1468 = vst [vmem:[%s2771_s4 + $0x40] sm:$0xff] %v1436_v32  ;;  %1469 = vst.msk [vmem:[%s2771_s4 + $0x48] sm:$0xff] %vm1070_vm1, %v1437_v21  ;;  %v1407_v12 = vadd.f32 %v1384_v38, %v1355_v9  ;;  %v1414_v14 = vadd.f32 %v1384_v38, %v1362_v33  ;;  %v1415_v56 = vadd.f32 %v1384_v38, %v1363_v24 }
 0x33f   :  { %1476 = vst [vmem:[%s2771_s4 + $0x80] sm:$0xff] %v1444_v1  ;;  %1477 = vst.msk [vmem:[%s2771_s4 + $0x88] sm:$0xff] %vm1070_vm1, %v1445_v23  ;;  %v1422_v16 = vadd.f32 %v1384_v38, %v1370_v52  ;;  %v1423_v18 = vadd.f32 %v1384_v38, %v1371_v55  ;;  %v1430_v20 = vmax.f32 %v1398_v44, 0.0  ;;  %v1431_v22 = vmax.f32 %v1399_v25, 0.0 }
 0x340   :  { %1484 = vst [vmem:[%s2771_s4 + $0xc0] sm:$0xff] %v1452_v60  ;;  %1485 = vst.msk [vmem:[%s2771_s4 + $0xc8] sm:$0xff] %vm1070_vm1, %v1453_v49  ;;  %v1438_v30 = vmax.f32 %v1406_v8, 0.0  ;;  %v1439_v34 = vmax.f32 %v1407_v12, 0.0  ;;  %v1446_v36 = vmax.f32 %v1414_v14, 0.0  ;;  %v1447_v37 = vmax.f32 %v1415_v56, 0.0 }
 0x341   :  { %v1454_v40 = vmax.f32 %v1422_v16, 0.0  ;;  %v1455_v51 = vmax.f32 %v1423_v18, 0.0  ;;  %1462 = vst [vmem:[%s2771_s4 + $0x10] sm:$0xff] %v1430_v20  ;;  %1463 = vst.msk [vmem:[%s2771_s4 + $0x18] sm:$0xff] %vm1070_vm1, %v1431_v22 }
 0x342   :  { %1470 = vst [vmem:[%s2771_s4 + $0x50] sm:$0xff] %v1438_v30  ;;  %1471 = vst.msk [vmem:[%s2771_s4 + $0x58] sm:$0xff] %vm1070_vm1, %v1439_v34  ;;  %v1337_v42 = vpop.permute.xlu1 %1336 }
 0x343   :  { %1478 = vst [vmem:[%s2771_s4 + $0x90] sm:$0xff] %v1446_v36  ;;  %1479 = vst.msk [vmem:[%s2771_s4 + $0x98] sm:$0xff] %vm1070_vm1, %v1447_v37  ;;  %v1348_v47 = vmul.f32 %v2408_v4, %v1337_v42  ;;  %v1349_v62 = vmul.f32 %v2411_v27, %v1337_v42  ;;  %v1356_v48 = vmul.f32 %v2437_v39, %v1337_v42 }
 0x344   :  { %1486 = vst [vmem:[%s2771_s4 + $0xd0] sm:$0xff] %v1454_v40  ;;  %1487 = vst.msk [vmem:[%s2771_s4 + $0xd8] sm:$0xff] %vm1070_vm1, %v1455_v51  ;;  %v1357_v50 = vmul.f32 %v2439_v41, %v1337_v42  ;;  %v1364_v54 = vmul.f32 %v2465_v11, %v1337_v42  ;;  %v1365_v58 = vmul.f32 %v2467_v2, %v1337_v42 }
 0x345   :  { %v1372_v5 = vmul.f32 %v2493_v53, %v1337_v42  ;;  %v1373_v9 = vmul.f32 %v2495_v57, %v1337_v42 }
 0x346   :  { %v1342_v46 = vpop.permute.xlu1 %1341 }
 0x347   :  { %v1350_v33 = vmul.f32 %v2413_v10, %v1342_v46  ;;  %v1351_v24 = vmul.f32 %v2415_v31, %v1342_v46  ;;  %v1358_v4 = vmul.f32 %v2441_v43, %v1342_v46  ;;  %v1359_v27 = vmul.f32 %v2443_v45, %v1342_v46 }
 0x348   :  { %v1366_v39 = vmul.f32 %v2469_v6, %v1342_v46  ;;  %v1367_v41 = vmul.f32 %v2471_v29, %v1342_v46  ;;  %v1374_v11 = vmul.f32 %v2497_v61, %v1342_v46  ;;  %v1375_v2 = vmul.f32 %v2499_v0, %v1342_v46 }
 0x34a   :  { %v1389_v52 = vpop.permute.xlu1 %1388 }
 0x34b   :  { %v1400_v53 = vadd.f32 %v1389_v52, %v1348_v47  ;;  %v1401_v55 = vadd.f32 %v1389_v52, %v1349_v62  ;;  %v1408_v57 = vadd.f32 %v1389_v52, %v1356_v48  ;;  %v1409_v59 = vadd.f32 %v1389_v52, %v1357_v50 }
 0x34c   :  { %v1416_v10 = vadd.f32 %v1389_v52, %v1364_v54  ;;  %v1417_v26 = vadd.f32 %v1389_v52, %v1365_v58  ;;  %v1424_v31 = vadd.f32 %v1389_v52, %v1372_v5  ;;  %v1425_v3 = vadd.f32 %v1389_v52, %v1373_v9 }
 0x34d   :  { %v1432_v43 = vmax.f32 %v1400_v53, 0.0  ;;  %v1433_v35 = vmax.f32 %v1401_v55, 0.0  ;;  %v1440_v45 = vmax.f32 %v1408_v57, 0.0  ;;  %v1441_v63 = vmax.f32 %v1409_v59, 0.0 }
 0x34e   :  { %v1448_v13 = vmax.f32 %v1416_v10, 0.0  ;;  %v1449_v6 = vmax.f32 %v1417_v26, 0.0  ;;  %v1456_v7 = vmax.f32 %v1424_v31, 0.0  ;;  %v1457_v29 = vmax.f32 %v1425_v3, 0.0  ;;  %v1394_v17 = vpop.permute.xlu1 %1393 }
 0x34f   :  { %1464 = vst [vmem:[%s2771_s4 + $0x20] sm:$0xff] %v1432_v43  ;;  %1465 = vst.msk [vmem:[%s2771_s4 + $0x28] sm:$0xff] %vm1070_vm1, %v1433_v35  ;;  %v1402_v61 = vadd.f32 %v1394_v17, %v1350_v33  ;;  %v1403_v0 = vadd.f32 %v1394_v17, %v1351_v24  ;;  %v1410_v15 = vadd.f32 %v1394_v17, %v1358_v4 }
 0x350   :  { %1472 = vst [vmem:[%s2771_s4 + $0x60] sm:$0xff] %v1440_v45  ;;  %1473 = vst.msk [vmem:[%s2771_s4 + $0x68] sm:$0xff] %vm1070_vm1, %v1441_v63  ;;  %v1411_v28 = vadd.f32 %v1394_v17, %v1359_v27  ;;  %v1418_v19 = vadd.f32 %v1394_v17, %v1366_v39  ;;  %v1419_v32 = vadd.f32 %v1394_v17, %v1367_v41 }
 0x351   :  { %1480 = vst [vmem:[%s2771_s4 + $0xa0] sm:$0xff] %v1448_v13  ;;  %1481 = vst.msk [vmem:[%s2771_s4 + $0xa8] sm:$0xff] %vm1070_vm1, %v1449_v6  ;;  %v1426_v21 = vadd.f32 %v1394_v17, %v1374_v11  ;;  %v1427_v1 = vadd.f32 %v1394_v17, %v1375_v2  ;;  %v1434_v23 = vmax.f32 %v1402_v61, 0.0  ;;  %v1435_v60 = vmax.f32 %v1403_v0, 0.0 }
 0x352   :  { %1488 = vst [vmem:[%s2771_s4 + $0xe0] sm:$0xff] %v1456_v7  ;;  %1489 = vst.msk [vmem:[%s2771_s4 + $0xe8] sm:$0xff] %vm1070_vm1, %v1457_v29  ;;  %v1442_v49 = vmax.f32 %v1410_v15, 0.0  ;;  %v1443_v38 = vmax.f32 %v1411_v28, 0.0  ;;  %v1450_v44 = vmax.f32 %v1418_v19, 0.0  ;;  %v1451_v25 = vmax.f32 %v1419_v32, 0.0 }
 0x353   :  { %v1458_v8 = vmax.f32 %v1426_v21, 0.0  ;;  %v1459_v12 = vmax.f32 %v1427_v1, 0.0  ;;  %1466 = vst [vmem:[%s2771_s4 + $0x30] sm:$0xff] %v1434_v23  ;;  %1467 = vst.msk [vmem:[%s2771_s4 + $0x38] sm:$0xff] %vm1070_vm1, %v1435_v60 }
 0x354   :  { %1474 = vst [vmem:[%s2771_s4 + $0x70] sm:$0xff] %v1442_v49  ;;  %1475 = vst.msk [vmem:[%s2771_s4 + $0x78] sm:$0xff] %vm1070_vm1, %v1443_v38 }
 0x355   :  { %1482 = vst [vmem:[%s2771_s4 + $0xb0] sm:$0xff] %v1450_v44  ;;  %1483 = vst.msk [vmem:[%s2771_s4 + $0xb8] sm:$0xff] %vm1070_vm1, %v1451_v25 }
 0x356   :  { %1490 = vst [vmem:[%s2771_s4 + $0xf0] sm:$0xff] %v1458_v8  ;;  %1491 = vst.msk [vmem:[%s2771_s4 + $0xf8] sm:$0xff] %vm1070_vm1, %v1459_v12 }

// kernel: generator_forward.8
= control target key start
LH: loop header
LB: loop body
LE: loop exit
PB: predicated region body
PF: predicated region fallthrough
CT: control target
= control target key end

     0   :  { %v5258_v1 = vmov 0   ;;  %vm613_vm0 = vcmask 261120   ;;  %vm5260_vm1 = vmmov 0   ;;  %vm3440_vm2 = vcmask 539648   ;;  %s6962_s0 = inlined_call_operand.vmem [shape: bf16[4,288,578], index: 0, kind: input, shape index: {}]   ;;  %s6963_s1 = inlined_call_operand.vmem [shape: bf16[4,16,288], index: 1, kind: input, shape index: {}]   ;;  %s6964_s2 = inlined_call_operand.vmem [shape: f32[16,1], index: 2, kind: input, shape index: {}]   ;;  %s6965_s3 = inlined_call_operand.vmem [shape: f32[16,1], index: 3, kind: input, shape index: {}]   ;;  %s6966_s4 = inlined_call_operand.vmem [shape: f32[64,578], index: 4, kind: output, shape index: {}]  }
   0x1   :  { %v4734_v0 = vld [vmem:[%s6962_s0 + $0x4] ss:$20 sps:$4 sm:$0xff]   ;;  %4732 = vset.pattern.permute.xlu0 %v5258_v1  ;;  %4733 = vset.pattern.permute.xlu1 %v5258_v1  ;;  %v4736_v2 = vld [vmem:[%s6962_s0 + $0xc] ss:$20 sps:$4 sm:$0xff]   ;;  %v4739_v4 = vld [vmem:[%s6962_s0 + $0x8] ss:$20 sps:$4 sm:$0xff]  }
   0x2   :  { %617 = vmatprep.subr.bf16.mxu0 %v4734_v0  ;;  %v4738_v3 = vld [vmem:[%s6962_s0] ss:$20 sps:$4 sm:$0xff]   ;;  %703 = vmatprep.subr.bf16.mxu1 %v4736_v2  ;;  %v4744_v7 = vld [vmem:[%s6962_s0 + $0x28] ss:$20 sps:$4 sm:$0xff]   ;;  %v4745_v8 = vld [vmem:[%s6962_s0 + $0x30] ss:$20 sps:$4 sm:$0xff]  }
   0x3   :  { %v4740_v5 = vld [vmem:[%s6962_s0 + $0x2c] ss:$20 sps:$4 sm:$0xff]   ;;  %618 = vmatpush1.bf16.msra.mxu0 %v4738_v3  ;;  %704 = vmatpush1.bf16.msra.mxu1 %v4739_v4  ;;  %v4742_v6 = vld [vmem:[%s6962_s0 + $0x34] ss:$20 sps:$4 sm:$0xff]   ;;  %v4748_v10 = vld [vmem:[%s6962_s0 + $0x5c] ss:$20 sps:$4 sm:$0xff]  }
   0x4   :  { %619 = vmatprep.subr.bf16.mxu0 %v4740_v5  ;;  %705 = vmatprep.subr.bf16.mxu1 %v4742_v6  ;;  %v4746_v9 = vld [vmem:[%s6962_s0 + $0x54] ss:$20 sps:$4 sm:$0xff]   ;;  %v4750_v11 = vld [vmem:[%s6962_s0 + $0x50] ss:$20 sps:$4 sm:$0xff]   ;;  %v4751_v12 = vld [vmem:[%s6962_s0 + $0x58] ss:$20 sps:$4 sm:$0xff]  }
   0x5   :  { %v4752_v13 = vld [vmem:[%s6962_s0 + $0x7c] ss:$20 sps:$4 sm:$0xff]   ;;  %v4754_v14 = vld [vmem:[%s6962_s0 + $0x84] ss:$20 sps:$4 sm:$0xff]   ;;  %v4757_v16 = vld [vmem:[%s6962_s0 + $0x80] ss:$20 sps:$4 sm:$0xff]  }
   0x6   :  { %v4756_v15 = vld [vmem:[%s6962_s0 + $0x78] ss:$20 sps:$4 sm:$0xff]   ;;  %v4762_v19 = vld [vmem:[%s6962_s0 + $0xa0] ss:$20 sps:$4 sm:$0xff]   ;;  %v4763_v20 = vld [vmem:[%s6962_s0 + $0xa8] ss:$20 sps:$4 sm:$0xff]  }
   0x7   :  { %620 = vmatpush1.bf16.msra.mxu0 %v4744_v7  ;;  %706 = vmatpush1.bf16.msra.mxu1 %v4745_v8  ;;  %v4758_v17 = vld [vmem:[%s6962_s0 + $0xa4] ss:$20 sps:$4 sm:$0xff]   ;;  %v4760_v18 = vld [vmem:[%s6962_s0 + $0xac] ss:$20 sps:$4 sm:$0xff]   ;;  %v4766_v22 = vld [vmem:[%s6962_s0 + $0xd4] ss:$20 sps:$4 sm:$0xff]  }
   0x8   :  { %621 = vmatprep.subr.bf16.mxu0 %v4746_v9  ;;  %707 = vmatprep.subr.bf16.mxu1 %v4748_v10  ;;  %v4764_v21 = vld [vmem:[%s6962_s0 + $0xcc] ss:$20 sps:$4 sm:$0xff]   ;;  %v4768_v23 = vld [vmem:[%s6962_s0 + $0xc8] ss:$20 sps:$4 sm:$0xff]   ;;  %v4769_v24 = vld [vmem:[%s6962_s0 + $0xd0] ss:$20 sps:$4 sm:$0xff]  }
   0x9   :  { %v4770_v25 = vld [vmem:[%s6962_s0 + $0xf4] ss:$20 sps:$4 sm:$0xff]   ;;  %v4772_v26 = vld [vmem:[%s6962_s0 + $0xfc] ss:$20 sps:$4 sm:$0xff]   ;;  %v4775_v28 = vld [vmem:[%s6962_s0 + $0xf8] ss:$20 sps:$4 sm:$0xff]  }
   0xa   :  { %v4774_v27 = vld [vmem:[%s6962_s0 + $0xf0] ss:$20 sps:$4 sm:$0xff]   ;;  %v4780_v31 = vld [vmem:[%s6962_s0 + $0x118] ss:$20 sps:$4 sm:$0xff]   ;;  %v4781_v32 = vld [vmem:[%s6962_s0 + $0x120] ss:$20 sps:$4 sm:$0xff]  }
   0xb   :  { %622 = vmatpush1.bf16.msra.mxu0 %v4750_v11  ;;  %708 = vmatpush1.bf16.msra.mxu1 %v4751_v12  ;;  %v4776_v29 = vld [vmem:[%s6962_s0 + $0x11c] ss:$20 sps:$4 sm:$0xff]   ;;  %v4778_v30 = vld [vmem:[%s6962_s0 + $0x124] ss:$20 sps:$4 sm:$0xff]   ;;  %v4784_v34 = vld [vmem:[%s6962_s0 + $0x14c] ss:$20 sps:$4 sm:$0xff]  }
   0xc   :  { %623 = vmatprep.subr.bf16.mxu0 %v4752_v13  ;;  %709 = vmatprep.subr.bf16.mxu1 %v4754_v14  ;;  %v4782_v33 = vld [vmem:[%s6962_s0 + $0x144] ss:$20 sps:$4 sm:$0xff]   ;;  %v4786_v35 = vld [vmem:[%s6962_s0 + $0x140] ss:$20 sps:$4 sm:$0xff]   ;;  %v4787_v36 = vld [vmem:[%s6962_s0 + $0x148] ss:$20 sps:$4 sm:$0xff]  }
   0xd   :  { %v4788_v37 = vld [vmem:[%s6962_s0 + $0x16c] ss:$20 sps:$4 sm:$0xff]   ;;  %v4790_v38 = vld [vmem:[%s6962_s0 + $0x174] ss:$20 sps:$4 sm:$0xff]   ;;  %v4793_v40 = vld [vmem:[%s6962_s0 + $0x170] ss:$20 sps:$4 sm:$0xff]  }
   0xe   :  { %v4792_v39 = vld [vmem:[%s6962_s0 + $0x168] ss:$20 sps:$4 sm:$0xff]   ;;  %v4798_v43 = vld [vmem:[%s6962_s0 + $0x190] ss:$20 sps:$4 sm:$0xff]   ;;  %v4799_v44 = vld [vmem:[%s6962_s0 + $0x198] ss:$20 sps:$4 sm:$0xff]  }
   0xf   :  { %624 = vmatpush1.bf16.msra.mxu0 %v4756_v15  ;;  %710 = vmatpush1.bf16.msra.mxu1 %v4757_v16  ;;  %v4794_v41 = vld [vmem:[%s6962_s0 + $0x194] ss:$20 sps:$4 sm:$0xff]   ;;  %v4796_v42 = vld [vmem:[%s6962_s0 + $0x19c] ss:$20 sps:$4 sm:$0xff]   ;;  %v4802_v46 = vld [vmem:[%s6962_s0 + $0x1c4] ss:$20 sps:$4 sm:$0xff]  }
  0x10   :  { %625 = vmatprep.subr.bf16.mxu0 %v4758_v17  ;;  %711 = vmatprep.subr.bf16.mxu1 %v4760_v18  ;;  %v4800_v45 = vld [vmem:[%s6962_s0 + $0x1bc] ss:$20 sps:$4 sm:$0xff]   ;;  %v4804_v47 = vld [vmem:[%s6962_s0 + $0x1b8] ss:$20 sps:$4 sm:$0xff]   ;;  %v4805_v48 = vld [vmem:[%s6962_s0 + $0x1c0] ss:$20 sps:$4 sm:$0xff]  }
  0x11   :  { %v5435_v49 = vld [vmem:[%s6963_s1 + $0x4] ss:$12 sps:$4 sm:$0xff]   ;;  %v4808_v51 = vld [vmem:[%s6962_s0 + $0x1ec] ss:$20 sps:$4 sm:$0xff]   ;;  %v4811_v53 = vld [vmem:[%s6962_s0 + $0x1e8] ss:$20 sps:$4 sm:$0xff]  }
  0x12   :  { %v4806_v50 = vld [vmem:[%s6962_s0 + $0x1e4] ss:$20 sps:$4 sm:$0xff]   ;;  %649 = vmatprep.mubr.bf16.mxu0 %v5435_v49  ;;  %735 = vmatprep.mubr.bf16.mxu1 %v5435_v49  ;;  %v4810_v52 = vld [vmem:[%s6962_s0 + $0x1e0] ss:$20 sps:$4 sm:$0xff]   ;;  %v4816_v56 = vld [vmem:[%s6962_s0 + $0x208] ss:$20 sps:$4 sm:$0xff]  }
  0x13   :  { %626 = vmatpush1.bf16.msra.mxu0 %v4762_v19  ;;  %712 = vmatpush1.bf16.msra.mxu1 %v4763_v20  ;;  %v4812_v54 = vld [vmem:[%s6962_s0 + $0x20c] ss:$20 sps:$4 sm:$0xff]   ;;  %v4814_v55 = vld [vmem:[%s6962_s0 + $0x214] ss:$20 sps:$4 sm:$0xff]   ;;  %v4817_v57 = vld [vmem:[%s6962_s0 + $0x210] ss:$20 sps:$4 sm:$0xff]  }
  0x14   :  { %627 = vmatprep.subr.bf16.mxu0 %v4764_v21  ;;  %713 = vmatprep.subr.bf16.mxu1 %v4766_v22  ;;  %v4818_v58 = vld [vmem:[%s6962_s0 + $0x234] ss:$20 sps:$4 sm:$0xff]   ;;  %v4820_v59 = vld [vmem:[%s6962_s0 + $0x23c] ss:$20 sps:$4 sm:$0xff]   ;;  %v4823_v61 = vld [vmem:[%s6962_s0 + $0x238] ss:$20 sps:$4 sm:$0xff]  }
  0x15   :  { %v4822_v60 = vld [vmem:[%s6962_s0 + $0x230] ss:$20 sps:$4 sm:$0xff]   ;;  %v4828_v0 = vld [vmem:[%s6962_s0 + $0x258] ss:$20 sps:$4 sm:$0xff]   ;;  %v4829_v2 = vld [vmem:[%s6962_s0 + $0x260] ss:$20 sps:$4 sm:$0xff]  }
  0x16   :  { %v4824_v62 = vld [vmem:[%s6962_s0 + $0x25c] ss:$20 sps:$4 sm:$0xff]   ;;  %v4826_v63 = vld [vmem:[%s6962_s0 + $0x264] ss:$20 sps:$4 sm:$0xff]   ;;  %v5490_v3 = vld [vmem:[%s6963_s1] ss:$12 sps:$4 sm:$0xff]  }
  0x17   :  { %628 = vmatpush1.bf16.msra.mxu0 %v4768_v23  ;;  %714 = vmatpush1.bf16.msra.mxu1 %v4769_v24  ;;  %v4835_v4 = vld [vmem:[%s6962_s0 + $0x28c] ss:$20 sps:$4 sm:$0xff]   ;;  %v4838_v5 = vld [vmem:[%s6962_s0 + $0x284] ss:$20 sps:$4 sm:$0xff]   ;;  %v4833_v6 = vld [vmem:[%s6962_s0 + $0x288] ss:$20 sps:$4 sm:$0xff]  }
  0x18   :  { %629 = vmatprep.subr.bf16.mxu0 %v4770_v25  ;;  %715 = vmatprep.subr.bf16.mxu1 %v4772_v26  ;;  %v4836_v7 = vld [vmem:[%s6962_s0 + $0x280] ss:$20 sps:$4 sm:$0xff]   ;;  %v4839_v10 = vld [vmem:[%s6962_s0 + $0x2b0] ss:$20 sps:$4 sm:$0xff]   ;;  %v4842_v11 = vld [vmem:[%s6962_s0 + $0x2a8] ss:$20 sps:$4 sm:$0xff]  }
  0x19   :  { %v4841_v8 = vld [vmem:[%s6962_s0 + $0x2b4] ss:$20 sps:$4 sm:$0xff]   ;;  %v4844_v9 = vld [vmem:[%s6962_s0 + $0x2ac] ss:$20 sps:$4 sm:$0xff]   ;;  %v4845_v12 = vld [vmem:[%s6962_s0 + $0x150] ss:$20 sps:$4 sm:$0xff]  }
  0x1a   :  { %v5259_v13 = vmov 0.0   ;;  %v4846_v14 = vld [vmem:[%s6963_s1 + $0x8] ss:$12 sps:$4 sm:$0xff]   ;;  %v4847_v15 = vld [vmem:[%s6962_s0 + $0x10] ss:$20 sps:$4 sm:$0xff]  }
  0x1b   :  { %630 = vmatpush1.bf16.msra.mxu0 %v4774_v27  ;;  %716 = vmatpush1.bf16.msra.mxu1 %v4775_v28  ;;  %v4848_v16 = vld [vmem:[%s6962_s0 + $0x290] ss:$20 sps:$4 sm:$0xff]   ;;  %v4849_v17 = vld [vmem:[%s6962_s0 + $0x178] ss:$20 sps:$4 sm:$0xff]   ;;  %v4852_v20 = vld [vmem:[%s6962_s0 + $0x1a0] ss:$20 sps:$4 sm:$0xff]  }
  0x1c   :  { %631 = vmatprep.subr.bf16.mxu0 %v4776_v29  ;;  %717 = vmatprep.subr.bf16.mxu1 %v4778_v30  ;;  %v4850_v18 = vld [vmem:[%s6962_s0 + $0x38] ss:$20 sps:$4 sm:$0xff]   ;;  %v4855_v21 = vld [vmem:[%s6962_s0 + $0x2d4] ss:$20 sps:$4 sm:$0xff]   ;;  %v4853_v22 = vld [vmem:[%s6962_s0 + $0x2d0] ss:$20 sps:$4 sm:$0xff]  }
  0x1d   :  { %v4851_v19 = vld [vmem:[%s6962_s0 + $0x2b8] ss:$20 sps:$4 sm:$0xff]   ;;  %v4856_v23 = vld [vmem:[%s6962_s0 + $0x60] ss:$20 sps:$4 sm:$0xff]   ;;  %v4857_v24 = vld [vmem:[%s6962_s0 + $0x1c8] ss:$20 sps:$4 sm:$0xff]  }
  0x1e   :  { %v4860_v25 = vld [vmem:[%s6962_s0 + $0x2fc] ss:$20 sps:$4 sm:$0xff]   ;;  %v4858_v26 = vld [vmem:[%s6962_s0 + $0x2f8] ss:$20 sps:$4 sm:$0xff]   ;;  %v4863_v30 = vld [vmem:[%s6962_s0 + $0x320] ss:$20 sps:$4 sm:$0xff]  }
  0x1f   :  { %632 = vmatpush1.bf16.msra.mxu0 %v4780_v31  ;;  %718 = vmatpush1.bf16.msra.mxu1 %v4781_v32  ;;  %v4861_v27 = vld [vmem:[%s6962_s0 + $0x88] ss:$20 sps:$4 sm:$0xff]   ;;  %v4862_v28 = vld [vmem:[%s6962_s0 + $0x1f0] ss:$20 sps:$4 sm:$0xff]   ;;  %v4867_v32 = vld [vmem:[%s6962_s0 + $0x218] ss:$20 sps:$4 sm:$0xff]  }
  0x20   :  { %633 = vmatprep.subr.bf16.mxu0 %v4782_v33  ;;  %719 = vmatprep.subr.bf16.mxu1 %v4784_v34  ;;  %v4865_v29 = vld [vmem:[%s6962_s0 + $0x324] ss:$20 sps:$4 sm:$0xff]   ;;  %v4870_v33 = vld [vmem:[%s6962_s0 + $0x34c] ss:$20 sps:$4 sm:$0xff]   ;;  %v4868_v34 = vld [vmem:[%s6962_s0 + $0x348] ss:$20 sps:$4 sm:$0xff]  }
  0x21   :  { %v4866_v31 = vld [vmem:[%s6962_s0 + $0xb0] ss:$20 sps:$4 sm:$0xff]  }
  0x23   :  { %634 = vmatpush1.bf16.msra.mxu0 %v4786_v35  ;;  %720 = vmatpush1.bf16.msra.mxu1 %v4787_v36  ;;  %v4871_v35 = vld [vmem:[%s6962_s0 + $0xd8] ss:$20 sps:$4 sm:$0xff]   ;;  %v4872_v36 = vld [vmem:[%s6962_s0 + $0x240] ss:$20 sps:$4 sm:$0xff]  }
  0x24   :  { %635 = vmatprep.subr.bf16.mxu0 %v4788_v37  ;;  %721 = vmatprep.subr.bf16.mxu1 %v4790_v38  ;;  %v4875_v37 = vld [vmem:[%s6962_s0 + $0x374] ss:$20 sps:$4 sm:$0xff]   ;;  %v4873_v38 = vld [vmem:[%s6962_s0 + $0x370] ss:$20 sps:$4 sm:$0xff]  }
  0x27   :  { %636 = vmatpush1.bf16.msra.mxu0 %v4792_v39  ;;  %722 = vmatpush1.bf16.msra.mxu1 %v4793_v40  ;;  %v4876_v39 = vld [vmem:[%s6962_s0 + $0x100] ss:$20 sps:$4 sm:$0xff]   ;;  %v4877_v40 = vld [vmem:[%s6962_s0 + $0x268] ss:$20 sps:$4 sm:$0xff]  }
  0x28   :  { %637 = vmatprep.subr.bf16.mxu0 %v4794_v41  ;;  %723 = vmatprep.subr.bf16.mxu1 %v4796_v42  ;;  %v4880_v41 = vld [vmem:[%s6962_s0 + $0x39c] ss:$20 sps:$4 sm:$0xff]   ;;  %v4878_v42 = vld [vmem:[%s6962_s0 + $0x398] ss:$20 sps:$4 sm:$0xff]  }
  0x2b   :  { %638 = vmatpush1.bf16.msra.mxu0 %v4798_v43  ;;  %724 = vmatpush1.bf16.msra.mxu1 %v4799_v44  ;;  %v4881_v43 = vld [vmem:[%s6962_s0 + $0x128] ss:$20 sps:$4 sm:$0xff]  }
  0x2c   :  { %639 = vmatprep.subr.bf16.mxu0 %v4800_v45  ;;  %725 = vmatprep.subr.bf16.mxu1 %v4802_v46  ;;  %v5624_v44 = vld [vmem:[%s6963_s1 + $0x1c] ss:$12 sps:$4 sm:$0xff]   ;;  %v4884_v45 = vld [vmem:[%s6962_s0 + $0x3c4] ss:$20 sps:$4 sm:$0xff]  }
  0x2d   :  { %v4887_v46 = vld [vmem:[%s6962_s0 + $0x2dc] ss:$20 sps:$4 sm:$0xff]  }
  0x2f   :  { %640 = vmatpush1.bf16.msra.mxu0 %v4804_v47  ;;  %726 = vmatpush1.bf16.msra.mxu1 %v4805_v48  ;;  %v4882_v47 = vld [vmem:[%s6962_s0 + $0x3c0] ss:$20 sps:$4 sm:$0xff]   ;;  %v4885_v48 = vld [vmem:[%s6962_s0 + $0x2d8] ss:$20 sps:$4 sm:$0xff]  }
  0x30   :  { %641 = vmatprep.subr.bf16.mxu0 %v4806_v50  ;;  %727 = vmatprep.subr.bf16.mxu1 %v4808_v51  ;;  %v4893_v50 = vld [vmem:[%s6962_s0 + $0x304] ss:$20 sps:$4 sm:$0xff]   ;;  %v4888_v51 = vld [vmem:[%s6962_s0 + $0x3e8] ss:$20 sps:$4 sm:$0xff]  }
  0x33   :  { %642 = vmatpush1.bf16.msra.mxu0 %v4810_v52  ;;  %728 = vmatpush1.bf16.msra.mxu1 %v4811_v53  ;;  %v4891_v52 = vld [vmem:[%s6962_s0 + $0x300] ss:$20 sps:$4 sm:$0xff]  }
  0x34   :  { %643 = vmatprep.subr.bf16.mxu0 %v4812_v54  ;;  %729 = vmatprep.subr.bf16.mxu1 %v4814_v55  ;;  %v4896_v53 = vld [vmem:[%s6962_s0 + $0x414] ss:$20 sps:$4 sm:$0xff]   ;;  %v4899_v54 = vld [vmem:[%s6962_s0 + $0x32c] ss:$20 sps:$4 sm:$0xff]   ;;  %v4894_v55 = vld [vmem:[%s6962_s0 + $0x410] ss:$20 sps:$4 sm:$0xff]  }
  0x37   :  { %644 = vmatpush1.bf16.msra.mxu0 %v4816_v56  ;;  %730 = vmatpush1.bf16.msra.mxu1 %v4817_v57  ;;  %v4897_v56 = vld [vmem:[%s6962_s0 + $0x328] ss:$20 sps:$4 sm:$0xff]  }
  0x38   :  { %645 = vmatprep.subr.bf16.mxu0 %v4818_v58  ;;  %731 = vmatprep.subr.bf16.mxu1 %v4820_v59  ;;  %v4902_v57 = vld [vmem:[%s6962_s0 + $0x43c] ss:$20 sps:$4 sm:$0xff]   ;;  %v4905_v58 = vld [vmem:[%s6962_s0 + $0x354] ss:$20 sps:$4 sm:$0xff]   ;;  %v4900_v59 = vld [vmem:[%s6962_s0 + $0x438] ss:$20 sps:$4 sm:$0xff]  }
  0x3b   :  { %646 = vmatpush1.bf16.msra.mxu0 %v4822_v60  ;;  %732 = vmatpush1.bf16.msra.mxu1 %v4823_v61  ;;  %v4903_v60 = vld [vmem:[%s6962_s0 + $0x350] ss:$20 sps:$4 sm:$0xff]  }
  0x3c   :  { %647 = vmatprep.subr.bf16.mxu0 %v4824_v62  ;;  %733 = vmatprep.subr.bf16.mxu1 %v4826_v63  ;;  %v4908_v61 = vld [vmem:[%s6962_s0 + $0x464] ss:$20 sps:$4 sm:$0xff]   ;;  %v4911_v62 = vld [vmem:[%s6962_s0 + $0x37c] ss:$20 sps:$4 sm:$0xff]   ;;  %v4906_v63 = vld [vmem:[%s6962_s0 + $0x460] ss:$20 sps:$4 sm:$0xff]  }
  0x3f   :  { %648 = vmatpush1.bf16.msra.mxu0 %v4828_v0  ;;  %734 = vmatpush1.bf16.msra.mxu1 %v4829_v2  ;;  %v4909_v0 = vld [vmem:[%s6962_s0 + $0x378] ss:$20 sps:$4 sm:$0xff]  }
  0x40   :  { %746 = vmatprep.subr.bf16.mxu1 %v4835_v4  ;;  %660 = vmatprep.subr.bf16.mxu0 %v4838_v5  ;;  %v4914_v2 = vld [vmem:[%s6962_s0 + $0x48c] ss:$20 sps:$4 sm:$0xff]   ;;  %v4912_v4 = vld [vmem:[%s6962_s0 + $0x488] ss:$20 sps:$4 sm:$0xff]  }
  0x41   :  { %v4915_v5 = vld [vmem:[%s6962_s0 + $0x3a0] ss:$20 sps:$4 sm:$0xff]  }
  0x42   :  { %650 = vmatmul.mubr.bf16.vlgmr.msra.gmra.mrb[0].mxu0 %v5490_v3  ;;  %736 = vmatmul.mubr.bf16.vlgmr.msra.gmra.mrb[0].mxu1 %v5490_v3 }
  0x43   :  { %747 = vmatpush1.bf16.msra.mxu1 %v4833_v6  ;;  %661 = vmatpush1.bf16.msra.mxu0 %v4836_v7  ;;  %v4920_v6 = vld [vmem:[%s6962_s0 + $0x4b4] ss:$20 sps:$4 sm:$0xff]   ;;  %v4923_v7 = vld [vmem:[%s6962_s0 + $0x3cc] ss:$20 sps:$4 sm:$0xff]  }
  0x44   :  { %748 = vmatprep.subr.bf16.mxu1 %v4841_v8  ;;  %662 = vmatprep.subr.bf16.mxu0 %v4844_v9  ;;  %v4918_v8 = vld [vmem:[%s6962_s0 + $0x4b0] ss:$20 sps:$4 sm:$0xff]   ;;  %v4921_v9 = vld [vmem:[%s6962_s0 + $0x3c8] ss:$20 sps:$4 sm:$0xff]  }
  0x45   :  { %692 = vmatprep.mubr.bf16.mxu0 %v5258_v1  ;;  %778 = vmatprep.mubr.bf16.mxu1 %v5258_v1 }
  0x47   :  { %749 = vmatpush1.bf16.msra.mxu1 %v4839_v10  ;;  %663 = vmatpush1.bf16.msra.mxu0 %v4842_v11  ;;  %v4926_v10 = vld [vmem:[%s6962_s0 + $0x4dc] ss:$20 sps:$4 sm:$0xff]   ;;  %v4929_v11 = vld [vmem:[%s6962_s0 + $0x3f4] ss:$20 sps:$4 sm:$0xff]  }
  0x48   :  { %4565 = vmatprep.subr.bf16.mxu0 %v4845_v12  ;;  %4665 = vmatprep.subr.bf16.mxu1 %v5259_v13  ;;  %v4924_v12 = vld [vmem:[%s6962_s0 + $0x4d8] ss:$20 sps:$4 sm:$0xff]  }
  0x4e   :  { %3938 = vmatmul.mubr.msk.bf16.vlgmr.msra.gmra.mrb[0].mxu0 %vm613_vm0, %v4846_v14  ;;  %3939 = vmatmul.mubr.msk.bf16.vlgmr.msra.gmra.mrb[0].mxu1 %vm613_vm0, %v4846_v14 }
  0x4f   :  { %4566 = vmatpush3.bf16.msra.mxu0 %v4847_v15  ;;  %4666 = vmatpush3.bf16.msra.mxu1 %v4848_v16  ;;  %v4932_v15 = vld [vmem:[%s6962_s0 + $0x504] ss:$20 sps:$4 sm:$0xff]   ;;  %v4935_v16 = vld [vmem:[%s6962_s0 + $0x41c] ss:$20 sps:$4 sm:$0xff]  }
  0x50   :  { %4567 = vmatprep.subr.bf16.mxu0 %v4849_v17  ;;  %4667 = vmatprep.subr.bf16.mxu1 %v5259_v13  ;;  %v4930_v17 = vld [vmem:[%s6962_s0 + $0x500] ss:$20 sps:$4 sm:$0xff]  }
  0x51   :  { %4669 = vmatprep.mubr.msk.bf16.mxu1 %vm5260_vm1, %v5259_v13  ;;  %821 = vmatprep.mubr.bf16.mxu0 %v5435_v49  ;;  %v4890_v49 = vld [vmem:[%s6962_s0 + $0x3ec] ss:$20 sps:$4 sm:$0xff]  }
  0x53   :  { %4568 = vmatpush3.bf16.msra.mxu0 %v4850_v18  ;;  %4668 = vmatpush3.bf16.msra.mxu1 %v4851_v19  ;;  %v4933_v18 = vld [vmem:[%s6962_s0 + $0x418] ss:$20 sps:$4 sm:$0xff]  }
  0x54   :  { %4569 = vmatprep.subr.bf16.mxu0 %v4852_v20  ;;  %1471 = vmatprep.subr.bf16.mxu1 %v4855_v21  ;;  %v4938_v19 = vld [vmem:[%s6962_s0 + $0x52c] ss:$20 sps:$4 sm:$0xff]   ;;  %v4941_v20 = vld [vmem:[%s6962_s0 + $0x444] ss:$20 sps:$4 sm:$0xff]   ;;  %v4936_v21 = vld [vmem:[%s6962_s0 + $0x528] ss:$20 sps:$4 sm:$0xff]  }
  0x56   :  { %4670 = vmatmul.mubr.msk.bf16.vlgmr.msra.gmra.mrb[4].mxu1 %vm613_vm0, %v4846_v14  ;;  %v4927_v14 = vld [vmem:[%s6962_s0 + $0x3f0] ss:$20 sps:$4 sm:$0xff]  }
  0x57   :  { %4570 = vmatpush3.bf16.msra.mxu0 %v4856_v23  ;;  %1472 = vmatpush1.bf16.msra.mxu1 %v4853_v22  ;;  %v4939_v22 = vld [vmem:[%s6962_s0 + $0x440] ss:$20 sps:$4 sm:$0xff]  }
  0x58   :  { %4571 = vmatprep.subr.bf16.mxu0 %v4857_v24  ;;  %1473 = vmatprep.subr.bf16.mxu1 %v4860_v25  ;;  %v4947_v23 = vld [vmem:[%s6962_s0 + $0x554] ss:$20 sps:$4 sm:$0xff]   ;;  %v4950_v24 = vld [vmem:[%s6962_s0 + $0x46c] ss:$20 sps:$4 sm:$0xff]   ;;  %v5758_v25 = vld [vmem:[%s6963_s1 + $0x18] ss:$12 sps:$4 sm:$0xff]  }
  0x59   :  { %1503 = vmatprep.mubr.bf16.mxu1 %v5624_v44 }
  0x5b   :  { %4572 = vmatpush3.bf16.msra.mxu0 %v4861_v27  ;;  %1474 = vmatpush1.bf16.msra.mxu1 %v4858_v26  ;;  %v4945_v26 = vld [vmem:[%s6962_s0 + $0x550] ss:$20 sps:$4 sm:$0xff]   ;;  %v4948_v27 = vld [vmem:[%s6962_s0 + $0x468] ss:$20 sps:$4 sm:$0xff]  }
  0x5c   :  { %4573 = vmatprep.subr.bf16.mxu0 %v4862_v28  ;;  %1475 = vmatprep.subr.bf16.mxu1 %v4865_v29  ;;  %v4953_v28 = vld [vmem:[%s6962_s0 + $0x494] ss:$20 sps:$4 sm:$0xff]   ;;  %v4956_v29 = vld [vmem:[%s6962_s0 + $0x57c] ss:$20 sps:$4 sm:$0xff]  }
  0x5f   :  { %4574 = vmatpush3.bf16.msra.mxu0 %v4866_v31  ;;  %1476 = vmatpush1.bf16.msra.mxu1 %v4863_v30  ;;  %v4951_v30 = vld [vmem:[%s6962_s0 + $0x490] ss:$20 sps:$4 sm:$0xff]   ;;  %v4954_v31 = vld [vmem:[%s6962_s0 + $0x578] ss:$20 sps:$4 sm:$0xff]  }
  0x60   :  { %4575 = vmatprep.subr.bf16.mxu0 %v4867_v32  ;;  %1477 = vmatprep.subr.bf16.mxu1 %v4870_v33  ;;  %v4959_v32 = vld [vmem:[%s6962_s0 + $0x4bc] ss:$20 sps:$4 sm:$0xff]   ;;  %v4960_v33 = vld [vmem:[%s6962_s0 + $0x420] ss:$20 sps:$4 sm:$0xff]  }
  0x63   :  { %4576 = vmatpush3.bf16.msra.mxu0 %v4871_v35  ;;  %1478 = vmatpush1.bf16.msra.mxu1 %v4868_v34  ;;  %v4957_v34 = vld [vmem:[%s6962_s0 + $0x4b8] ss:$20 sps:$4 sm:$0xff]  }
  0x64   :  { %4577 = vmatprep.subr.bf16.mxu0 %v4872_v36  ;;  %1479 = vmatprep.subr.bf16.mxu1 %v4875_v37  ;;  %v4964_v35 = vld [vmem:[%s6962_s0 + $0x4e4] ss:$20 sps:$4 sm:$0xff]   ;;  %v5795_v36 = vld [vmem:[%s6963_s1 + $0x20] ss:$12 sps:$4 sm:$0xff]  }
  0x65   :  { %v4962_v37 = vld [vmem:[%s6962_s0 + $0x4e0] ss:$20 sps:$4 sm:$0xff]  }
  0x67   :  { %4578 = vmatpush3.bf16.msra.mxu0 %v4876_v39  ;;  %1480 = vmatpush1.bf16.msra.mxu1 %v4873_v38  ;;  %v4965_v38 = vld [vmem:[%s6962_s0 + $0x2e0] ss:$20 sps:$4 sm:$0xff]   ;;  %v4966_v39 = vld [vmem:[%s6962_s0 + $0x448] ss:$20 sps:$4 sm:$0xff]  }
  0x68   :  { %4579 = vmatprep.subr.bf16.mxu0 %v4877_v40  ;;  %1481 = vmatprep.subr.bf16.mxu1 %v4880_v41  ;;  %v4969_v40 = vld [vmem:[%s6962_s0 + $0x50c] ss:$20 sps:$4 sm:$0xff]   ;;  %v4967_v41 = vld [vmem:[%s6962_s0 + $0x508] ss:$20 sps:$4 sm:$0xff]  }
  0x6b   :  { %4580 = vmatpush3.bf16.msra.mxu0 %v4881_v43  ;;  %1482 = vmatpush1.bf16.msra.mxu1 %v4878_v42  ;;  %v4970_v42 = vld [vmem:[%s6962_s0 + $0x308] ss:$20 sps:$4 sm:$0xff]   ;;  %v4971_v43 = vld [vmem:[%s6962_s0 + $0x470] ss:$20 sps:$4 sm:$0xff]  }
  0x6c   :  { %1483 = vmatprep.subr.bf16.mxu1 %v4884_v45  ;;  %1557 = vmatprep.subr.bf16.mxu0 %v4887_v46  ;;  %v4974_v45 = vld [vmem:[%s6962_s0 + $0x534] ss:$20 sps:$4 sm:$0xff]   ;;  %v4972_v46 = vld [vmem:[%s6962_s0 + $0x530] ss:$20 sps:$4 sm:$0xff]  }
  0x6e   :  { %822 = vmatmul.mubr.bf16.vlgmr.msra.gmra.mrb[4].mxu0 %v5490_v3  ;;  %v4917_v3 = vld [vmem:[%s6962_s0 + $0x3a4] ss:$20 sps:$4 sm:$0xff]  }
  0x6f   :  { %1484 = vmatpush1.bf16.msra.mxu1 %v4882_v47  ;;  %1558 = vmatpush1.bf16.msra.mxu0 %v4885_v48  ;;  %v4975_v47 = vld [vmem:[%s6962_s0 + $0x330] ss:$20 sps:$4 sm:$0xff]   ;;  %v4976_v48 = vld [vmem:[%s6962_s0 + $0x498] ss:$20 sps:$4 sm:$0xff]  }
  0x70   :  { %1485 = vmatprep.subr.bf16.mxu1 %v4890_v49  ;;  %1559 = vmatprep.subr.bf16.mxu0 %v4893_v50  ;;  %v4977_v49 = vld [vmem:[%s6962_s0 + $0x358] ss:$20 sps:$4 sm:$0xff]  }
  0x71   :  { %1589 = vmatprep.mubr.bf16.mxu0 %v5624_v44  ;;  %v4978_v50 = vld [vmem:[%s6962_s0 + $0x558] ss:$20 sps:$4 sm:$0xff]  }
  0x73   :  { %1486 = vmatpush1.bf16.msra.mxu1 %v4888_v51  ;;  %1560 = vmatpush1.bf16.msra.mxu0 %v4891_v52  ;;  %v4981_v51 = vld [vmem:[%s6962_s0 + $0x4c0] ss:$20 sps:$4 sm:$0xff]   ;;  %v4985_v52 = vld [vmem:[%s6962_s0 + $0x584] ss:$20 sps:$4 sm:$0xff]  }
  0x74   :  { %1487 = vmatprep.subr.bf16.mxu1 %v4896_v53  ;;  %1561 = vmatprep.subr.bf16.mxu0 %v4899_v54  ;;  %v4982_v53 = vld [vmem:[%s6962_s0 + $0x380] ss:$20 sps:$4 sm:$0xff]  }
  0x75   :  { %v4983_v54 = vld [vmem:[%s6962_s0 + $0x580] ss:$20 sps:$4 sm:$0xff]  }
  0x77   :  { %1488 = vmatpush1.bf16.msra.mxu1 %v4894_v55  ;;  %1562 = vmatpush1.bf16.msra.mxu0 %v4897_v56  ;;  %v4986_v55 = vld [vmem:[%s6962_s0 + $0x4e8] ss:$20 sps:$4 sm:$0xff]  }
  0x78   :  { %1489 = vmatprep.subr.bf16.mxu1 %v4902_v57  ;;  %1563 = vmatprep.subr.bf16.mxu0 %v4905_v58  ;;  %v4987_v56 = vld [vmem:[%s6962_s0 + $0x3a8] ss:$20 sps:$4 sm:$0xff]   ;;  %v4988_v57 = vld [vmem:[%s6962_s0 + $0x510] ss:$20 sps:$4 sm:$0xff]  }
  0x79   :  { %v4989_v58 = vld [vmem:[%s6962_s0 + $0x3d0] ss:$20 sps:$4 sm:$0xff]  }
  0x7b   :  { %1490 = vmatpush1.bf16.msra.mxu1 %v4900_v59  ;;  %1564 = vmatpush1.bf16.msra.mxu0 %v4903_v60  ;;  %v4990_v59 = vld [vmem:[%s6962_s0 + $0x560] ss:$20 sps:$4 sm:$0xff]   ;;  %v4991_v60 = vld [vmem:[%s6962_s0 + $0x538] ss:$20 sps:$4 sm:$0xff]  }
  0x7c   :  { %1491 = vmatprep.subr.bf16.mxu1 %v4908_v61  ;;  %1565 = vmatprep.subr.bf16.mxu0 %v4911_v62  ;;  %v4992_v61 = vld [vmem:[%s6962_s0 + $0x3f8] ss:$20 sps:$4 sm:$0xff]   ;;  %v4993_v62 = vld [vmem:[%s6962_s0 + $0x588] ss:$20 sps:$4 sm:$0xff]  }
  0x7f   :  { %1492 = vmatpush1.bf16.msra.mxu1 %v4906_v63  ;;  %1566 = vmatpush1.bf16.msra.mxu0 %v4909_v0  ;;  %v4996_v63 = vld [vmem:[%s6962_s0 + $0x5a4] ss:$20 sps:$4 sm:$0xff]   ;;  %v4999_v0 = vld [vmem:[%s6962_s0 + $0x5ac] ss:$20 sps:$4 sm:$0xff]  }
  0x80   :  { %1493 = vmatprep.subr.bf16.mxu1 %v4914_v2  ;;  %1567 = vmatprep.subr.bf16.mxu0 %v4917_v3  ;;  %v4994_v2 = vld [vmem:[%s6962_s0 + $0x5a0] ss:$20 sps:$4 sm:$0xff]   ;;  %v4997_v3 = vld [vmem:[%s6962_s0 + $0x5a8] ss:$20 sps:$4 sm:$0xff]  }
  0x83   :  { %1494 = vmatpush1.bf16.msra.mxu1 %v4912_v4  ;;  %1568 = vmatpush1.bf16.msra.mxu0 %v4915_v5  ;;  %v5002_v4 = vld [vmem:[%s6962_s0 + $0x5cc] ss:$20 sps:$4 sm:$0xff]   ;;  %v5005_v5 = vld [vmem:[%s6962_s0 + $0x5d4] ss:$20 sps:$4 sm:$0xff]  }
  0x84   :  { %1495 = vmatprep.subr.bf16.mxu1 %v4920_v6  ;;  %1569 = vmatprep.subr.bf16.mxu0 %v4923_v7  ;;  %v5000_v6 = vld [vmem:[%s6962_s0 + $0x5c8] ss:$20 sps:$4 sm:$0xff]   ;;  %v5910_v7 = vld [vmem:[%s6963_s1 + $0x34] ss:$12 sps:$4 sm:$0xff]  }
  0x87   :  { %1496 = vmatpush1.bf16.msra.mxu1 %v4918_v8  ;;  %1570 = vmatpush1.bf16.msra.mxu0 %v4921_v9  ;;  %v5003_v8 = vld [vmem:[%s6962_s0 + $0x5d0] ss:$20 sps:$4 sm:$0xff]   ;;  %v5008_v9 = vld [vmem:[%s6962_s0 + $0x5f4] ss:$20 sps:$4 sm:$0xff]  }
  0x88   :  { %1497 = vmatprep.subr.bf16.mxu1 %v4926_v10  ;;  %1571 = vmatprep.subr.bf16.mxu0 %v4929_v11  ;;  %v5011_v10 = vld [vmem:[%s6962_s0 + $0x5fc] ss:$20 sps:$4 sm:$0xff]  }
  0x89   :  { %v5006_v11 = vld [vmem:[%s6962_s0 + $0x5f0] ss:$20 sps:$4 sm:$0xff]  }
  0x8b   :  { %1498 = vmatpush1.bf16.msra.mxu1 %v4924_v12  ;;  %1572 = vmatpush1.bf16.msra.mxu0 %v4927_v14  ;;  %v5009_v12 = vld [vmem:[%s6962_s0 + $0x5f8] ss:$20 sps:$4 sm:$0xff]   ;;  %v5014_v14 = vld [vmem:[%s6962_s0 + $0x61c] ss:$20 sps:$4 sm:$0xff]  }
  0x8c   :  { %1499 = vmatprep.subr.bf16.mxu1 %v4932_v15  ;;  %1573 = vmatprep.subr.bf16.mxu0 %v4935_v16  ;;  %v5017_v15 = vld [vmem:[%s6962_s0 + $0x624] ss:$20 sps:$4 sm:$0xff]  }
  0x8d   :  { %v5012_v16 = vld [vmem:[%s6962_s0 + $0x618] ss:$20 sps:$4 sm:$0xff]  }
  0x8f   :  { %1500 = vmatpush1.bf16.msra.mxu1 %v4930_v17  ;;  %1574 = vmatpush1.bf16.msra.mxu0 %v4933_v18  ;;  %v5015_v17 = vld [vmem:[%s6962_s0 + $0x620] ss:$20 sps:$4 sm:$0xff]   ;;  %v5020_v18 = vld [vmem:[%s6962_s0 + $0x644] ss:$20 sps:$4 sm:$0xff]  }
  0x90   :  { %1501 = vmatprep.subr.bf16.mxu1 %v4938_v19  ;;  %1575 = vmatprep.subr.bf16.mxu0 %v4941_v20  ;;  %v5023_v19 = vld [vmem:[%s6962_s0 + $0x64c] ss:$20 sps:$4 sm:$0xff]  }
  0x91   :  { %v5018_v20 = vld [vmem:[%s6962_s0 + $0x640] ss:$20 sps:$4 sm:$0xff]  }
  0x93   :  { %1502 = vmatpush1.bf16.msra.mxu1 %v4936_v21  ;;  %1576 = vmatpush1.bf16.msra.mxu0 %v4939_v22  ;;  %v5021_v21 = vld [vmem:[%s6962_s0 + $0x648] ss:$20 sps:$4 sm:$0xff]   ;;  %v5026_v22 = vld [vmem:[%s6962_s0 + $0x66c] ss:$20 sps:$4 sm:$0xff]  }
  0x94   :  { %1514 = vmatprep.subr.bf16.mxu1 %v4947_v23  ;;  %1577 = vmatprep.subr.bf16.mxu0 %v4950_v24  ;;  %v5029_v23 = vld [vmem:[%s6962_s0 + $0x674] ss:$20 sps:$4 sm:$0xff]  }
  0x95   :  { %v5024_v24 = vld [vmem:[%s6962_s0 + $0x668] ss:$20 sps:$4 sm:$0xff]  }
  0x96   :  { %1504 = vmatmul.mubr.bf16.vlgmr.msra.gmra.mrb[8].mxu1 %v5758_v25 }
  0x97   :  { %1515 = vmatpush1.bf16.msra.mxu1 %v4945_v26  ;;  %1578 = vmatpush1.bf16.msra.mxu0 %v4948_v27  ;;  %v5032_v26 = vld [vmem:[%s6962_s0 + $0x694] ss:$20 sps:$4 sm:$0xff]   ;;  %v5035_v27 = vld [vmem:[%s6962_s0 + $0x69c] ss:$20 sps:$4 sm:$0xff]  }
  0x98   :  { %1579 = vmatprep.subr.bf16.mxu0 %v4953_v28  ;;  %1516 = vmatprep.subr.bf16.mxu1 %v4956_v29  ;;  %v5030_v28 = vld [vmem:[%s6962_s0 + $0x690] ss:$20 sps:$4 sm:$0xff]   ;;  %v5033_v29 = vld [vmem:[%s6962_s0 + $0x698] ss:$20 sps:$4 sm:$0xff]  }
  0x99   :  { %1546 = vmatprep.mubr.bf16.mxu1 %v5258_v1 }
  0x9b   :  { %1580 = vmatpush1.bf16.msra.mxu0 %v4951_v30  ;;  %1517 = vmatpush1.bf16.msra.mxu1 %v4954_v31  ;;  %v5038_v30 = vld [vmem:[%s6962_s0 + $0x6bc] ss:$20 sps:$4 sm:$0xff]   ;;  %v5041_v31 = vld [vmem:[%s6962_s0 + $0x6c4] ss:$20 sps:$4 sm:$0xff]  }
  0x9c   :  { %1581 = vmatprep.subr.bf16.mxu0 %v4959_v32  ;;  %4590 = vmatprep.subr.bf16.mxu1 %v4960_v33  ;;  %v5036_v32 = vld [vmem:[%s6962_s0 + $0x6b8] ss:$20 sps:$4 sm:$0xff]   ;;  %v5039_v33 = vld [vmem:[%s6962_s0 + $0x6c0] ss:$20 sps:$4 sm:$0xff]  }
  0x9f   :  { %1582 = vmatpush1.bf16.msra.mxu0 %v4957_v34  ;;  %v5044_v34 = vld [vmem:[%s6962_s0 + $0x6e4] ss:$20 sps:$4 sm:$0xff]  }
  0xa0   :  { %1583 = vmatprep.subr.bf16.mxu0 %v4964_v35  ;;  %v5047_v35 = vld [vmem:[%s6962_s0 + $0x6ec] ss:$20 sps:$4 sm:$0xff]  }
  0xa2   :  { %4146 = vmatmul.mubr.msk.bf16.vlgmr.msra.gmra.mrb[8].mxu1 %vm613_vm0, %v5795_v36 }
  0xa3   :  { %4591 = vmatpush3.bf16.msra.mxu1 %v4965_v38  ;;  %1584 = vmatpush1.bf16.msra.mxu0 %v4962_v37  ;;  %v5045_v37 = vld [vmem:[%s6962_s0 + $0x6e8] ss:$20 sps:$4 sm:$0xff]   ;;  %v5050_v38 = vld [vmem:[%s6962_s0 + $0x70c] ss:$20 sps:$4 sm:$0xff]  }
  0xa4   :  { %4592 = vmatprep.subr.bf16.mxu1 %v4966_v39  ;;  %1585 = vmatprep.subr.bf16.mxu0 %v4969_v40  ;;  %v5053_v39 = vld [vmem:[%s6962_s0 + $0x714] ss:$20 sps:$4 sm:$0xff]  }
  0xa5   :  { %1675 = vmatprep.mubr.bf16.mxu1 %v5624_v44  ;;  %v4980_v44 = vld [vmem:[%s6962_s0 + $0x55c] ss:$20 sps:$4 sm:$0xff]  }
  0xa6   :  { %v5048_v40 = vld [vmem:[%s6962_s0 + $0x708] ss:$20 sps:$4 sm:$0xff]  }
  0xa7   :  { %4593 = vmatpush3.bf16.msra.mxu1 %v4970_v42  ;;  %1586 = vmatpush1.bf16.msra.mxu0 %v4967_v41  ;;  %v5051_v41 = vld [vmem:[%s6962_s0 + $0x710] ss:$20 sps:$4 sm:$0xff]   ;;  %v5056_v42 = vld [vmem:[%s6962_s0 + $0x734] ss:$20 sps:$4 sm:$0xff]  }
  0xa8   :  { %4594 = vmatprep.subr.bf16.mxu1 %v4971_v43  ;;  %1587 = vmatprep.subr.bf16.mxu0 %v4974_v45  ;;  %v5059_v43 = vld [vmem:[%s6962_s0 + $0x73c] ss:$20 sps:$4 sm:$0xff]  }
  0xa9   :  { %v5054_v45 = vld [vmem:[%s6962_s0 + $0x730] ss:$20 sps:$4 sm:$0xff]  }
  0xab   :  { %4595 = vmatpush3.bf16.msra.mxu1 %v4975_v47  ;;  %1588 = vmatpush1.bf16.msra.mxu0 %v4972_v46  ;;  %v5057_v46 = vld [vmem:[%s6962_s0 + $0x738] ss:$20 sps:$4 sm:$0xff]   ;;  %v5062_v47 = vld [vmem:[%s6962_s0 + $0x75c] ss:$20 sps:$4 sm:$0xff]  }
  0xac   :  { %4596 = vmatprep.subr.bf16.mxu1 %v4976_v48  ;;  %1600 = vmatprep.subr.bf16.mxu0 %v4980_v44  ;;  %v5065_v48 = vld [vmem:[%s6962_s0 + $0x764] ss:$20 sps:$4 sm:$0xff]  }
  0xad   :  { %v5060_v44 = vld [vmem:[%s6962_s0 + $0x758] ss:$20 sps:$4 sm:$0xff]  }
  0xae   :  { %1590 = vmatmul.mubr.bf16.vlgmr.msra.gmra.mrb[8].mxu0 %v5758_v25 }
  0xaf   :  { %4597 = vmatpush3.bf16.msra.mxu1 %v4977_v49  ;;  %1601 = vmatpush1.bf16.msra.mxu0 %v4978_v50  ;;  %v5063_v49 = vld [vmem:[%s6962_s0 + $0x760] ss:$20 sps:$4 sm:$0xff]   ;;  %v5068_v50 = vld [vmem:[%s6962_s0 + $0x784] ss:$20 sps:$4 sm:$0xff]  }
  0xb0   :  { %4598 = vmatprep.subr.bf16.mxu1 %v4981_v51  ;;  %1602 = vmatprep.subr.bf16.mxu0 %v4985_v52  ;;  %v5071_v51 = vld [vmem:[%s6962_s0 + $0x78c] ss:$20 sps:$4 sm:$0xff]  }
  0xb1   :  { %1632 = vmatprep.mubr.bf16.mxu0 %v5258_v1  ;;  %v5066_v52 = vld [vmem:[%s6962_s0 + $0x780] ss:$20 sps:$4 sm:$0xff]  }
  0xb3   :  { %4599 = vmatpush3.bf16.msra.mxu1 %v4982_v53  ;;  %1603 = vmatpush1.bf16.msra.mxu0 %v4983_v54  ;;  %v5069_v53 = vld [vmem:[%s6962_s0 + $0x788] ss:$20 sps:$4 sm:$0xff]   ;;  %v5074_v54 = vld [vmem:[%s6962_s0 + $0x7ac] ss:$20 sps:$4 sm:$0xff]  }
  0xb4   :  { %4600 = vmatprep.subr.bf16.mxu1 %v4986_v55  ;;  %4673 = vmatprep.subr.bf16.mxu0 %v5259_v13  ;;  %v5077_v55 = vld [vmem:[%s6962_s0 + $0x7b4] ss:$20 sps:$4 sm:$0xff]  }
  0xb7   :  { %4601 = vmatpush3.bf16.msra.mxu1 %v4987_v56  ;;  %v5072_v56 = vld [vmem:[%s6962_s0 + $0x7a8] ss:$20 sps:$4 sm:$0xff]  }
  0xb8   :  { %4602 = vmatprep.subr.bf16.mxu1 %v4988_v57  ;;  %v5075_v57 = vld [vmem:[%s6962_s0 + $0x7b0] ss:$20 sps:$4 sm:$0xff]  }
  0xba   :  { %4147 = vmatmul.mubr.msk.bf16.vlgmr.msra.gmra.mrb[8].mxu0 %vm613_vm0, %v5795_v36 }
  0xbb   :  { %4603 = vmatpush3.bf16.msra.mxu1 %v4989_v58  ;;  %4674 = vmatpush3.bf16.msra.mxu0 %v4990_v59  ;;  %v5080_v58 = vld [vmem:[%s6962_s0 + $0x7d4] ss:$20 sps:$4 sm:$0xff]   ;;  %v5083_v59 = vld [vmem:[%s6962_s0 + $0x7dc] ss:$20 sps:$4 sm:$0xff]  }
  0xbc   :  { %4604 = vmatprep.subr.bf16.mxu1 %v4991_v60  ;;  %4675 = vmatprep.subr.bf16.mxu0 %v5259_v13  ;;  %v5078_v60 = vld [vmem:[%s6962_s0 + $0x7d0] ss:$20 sps:$4 sm:$0xff]  }
  0xbd   :  { %4677 = vmatprep.mubr.msk.bf16.mxu0 %vm5260_vm1, %v5259_v13 }
  0xbf   :  { %4605 = vmatpush3.bf16.msra.mxu1 %v4992_v61  ;;  %4676 = vmatpush3.bf16.msra.mxu0 %v4993_v62  ;;  %v5081_v61 = vld [vmem:[%s6962_s0 + $0x7d8] ss:$20 sps:$4 sm:$0xff]   ;;  %v5086_v62 = vld [vmem:[%s6962_s0 + $0x7fc] ss:$20 sps:$4 sm:$0xff]  }
  0xc0   :  { %2325 = vmatprep.subr.bf16.mxu0 %v4996_v63  ;;  %2411 = vmatprep.subr.bf16.mxu1 %v4999_v0  ;;  %v5089_v63 = vld [vmem:[%s6962_s0 + $0x804] ss:$20 sps:$4 sm:$0xff]  }
  0xc1   :  { %v5084_v0 = vld [vmem:[%s6962_s0 + $0x7f8] ss:$20 sps:$4 sm:$0xff]  }
  0xc2   :  { %1676 = vmatmul.mubr.bf16.vlgmr.msra.gmra.mrb[12].mxu1 %v5758_v25  ;;  %4678 = vmatmul.mubr.msk.bf16.vlgmr.msra.gmra.mrb[12].mxu0 %vm613_vm0, %v5795_v36  ;;  %v5027_v25 = vld [vmem:[%s6962_s0 + $0x670] ss:$20 sps:$4 sm:$0xff]   ;;  %v5042_v36 = vld [vmem:[%s6962_s0 + $0x6e0] ss:$20 sps:$4 sm:$0xff]  }
  0xc3   :  { %2326 = vmatpush1.bf16.msra.mxu0 %v4994_v2  ;;  %2412 = vmatpush1.bf16.msra.mxu1 %v4997_v3  ;;  %v5087_v2 = vld [vmem:[%s6962_s0 + $0x800] ss:$20 sps:$4 sm:$0xff]  }
  0xc4   :  { %2327 = vmatprep.subr.bf16.mxu0 %v5002_v4  ;;  %2413 = vmatprep.subr.bf16.mxu1 %v5005_v5  ;;  %v5095_v3 = vld [vmem:[%s6962_s0 + $0x82c] ss:$20 sps:$4 sm:$0xff]   ;;  %v5098_v4 = vld [vmem:[%s6962_s0 + $0x824] ss:$20 sps:$4 sm:$0xff]   ;;  %v6097_v5 = vld [vmem:[%s6963_s1 + $0x30] ss:$12 sps:$4 sm:$0xff]  }
  0xc5   :  { %2357 = vmatprep.mubr.bf16.mxu0 %v5910_v7  ;;  %2443 = vmatprep.mubr.bf16.mxu1 %v5910_v7 }
  0xc7   :  { %2328 = vmatpush1.bf16.msra.mxu0 %v5000_v6  ;;  %2414 = vmatpush1.bf16.msra.mxu1 %v5003_v8  ;;  %v5093_v6 = vld [vmem:[%s6962_s0 + $0x828] ss:$20 sps:$4 sm:$0xff]   ;;  %v5096_v8 = vld [vmem:[%s6962_s0 + $0x820] ss:$20 sps:$4 sm:$0xff]  }
  0xc8   :  { %2329 = vmatprep.subr.bf16.mxu0 %v5008_v9  ;;  %2415 = vmatprep.subr.bf16.mxu1 %v5011_v10  ;;  %v5101_v9 = vld [vmem:[%s6962_s0 + $0x854] ss:$20 sps:$4 sm:$0xff]   ;;  %v5104_v10 = vld [vmem:[%s6962_s0 + $0x84c] ss:$20 sps:$4 sm:$0xff]  }
  0xcb   :  { %2330 = vmatpush1.bf16.msra.mxu0 %v5006_v11  ;;  %2416 = vmatpush1.bf16.msra.mxu1 %v5009_v12  ;;  %v5099_v11 = vld [vmem:[%s6962_s0 + $0x850] ss:$20 sps:$4 sm:$0xff]   ;;  %v5102_v12 = vld [vmem:[%s6962_s0 + $0x848] ss:$20 sps:$4 sm:$0xff]  }
  0xcc   :  { %2331 = vmatprep.subr.bf16.mxu0 %v5014_v14  ;;  %2417 = vmatprep.subr.bf16.mxu1 %v5017_v15  ;;  %v5105_v14 = vld [vmem:[%s6962_s0 + $0x6f0] ss:$20 sps:$4 sm:$0xff]  }
  0xcd   :  { %v5106_v15 = vld [vmem:[%s6963_s1 + $0x38] ss:$12 sps:$4 sm:$0xff]  }
  0xcf   :  { %2332 = vmatpush1.bf16.msra.mxu0 %v5012_v16  ;;  %2418 = vmatpush1.bf16.msra.mxu1 %v5015_v17  ;;  %v5107_v16 = vld [vmem:[%s6962_s0 + $0x5b0] ss:$20 sps:$4 sm:$0xff]  }
  0xd0   :  { %2333 = vmatprep.subr.bf16.mxu0 %v5020_v18  ;;  %2419 = vmatprep.subr.bf16.mxu1 %v5023_v19  ;;  %v5108_v17 = vld [vmem:[%s6962_s0 + $0x830] ss:$20 sps:$4 sm:$0xff]   ;;  %v5109_v18 = vld [vmem:[%s6962_s0 + $0x718] ss:$20 sps:$4 sm:$0xff]  }
  0xd1   :  { %v5110_v19 = vld [vmem:[%s6962_s0 + $0x5d8] ss:$20 sps:$4 sm:$0xff]  }
  0xd3   :  { %2334 = vmatpush1.bf16.msra.mxu0 %v5018_v20  ;;  %2420 = vmatpush1.bf16.msra.mxu1 %v5021_v21  ;;  %v5111_v20 = vld [vmem:[%s6962_s0 + $0x858] ss:$20 sps:$4 sm:$0xff]   ;;  %v5112_v21 = vld [vmem:[%s6962_s0 + $0x740] ss:$20 sps:$4 sm:$0xff]  }
  0xd4   :  { %2335 = vmatprep.subr.bf16.mxu0 %v5026_v22  ;;  %2421 = vmatprep.subr.bf16.mxu1 %v5029_v23  ;;  %v5115_v22 = vld [vmem:[%s6962_s0 + $0x874] ss:$20 sps:$4 sm:$0xff]   ;;  %v5113_v23 = vld [vmem:[%s6962_s0 + $0x870] ss:$20 sps:$4 sm:$0xff]  }
  0xd7   :  { %2336 = vmatpush1.bf16.msra.mxu0 %v5024_v24  ;;  %2422 = vmatpush1.bf16.msra.mxu1 %v5027_v25  ;;  %v5116_v24 = vld [vmem:[%s6962_s0 + $0x600] ss:$20 sps:$4 sm:$0xff]   ;;  %v5117_v25 = vld [vmem:[%s6962_s0 + $0x768] ss:$20 sps:$4 sm:$0xff]  }
  0xd8   :  { %2337 = vmatprep.subr.bf16.mxu0 %v5032_v26  ;;  %2423 = vmatprep.subr.bf16.mxu1 %v5035_v27  ;;  %v6170_v26 = vld [vmem:[%s6963_s1 + $0x4c] ss:$12 sps:$4 sm:$0xff]  }
  0xd9   :  { %v5118_v27 = vld [vmem:[%s6962_s0 + $0x898] ss:$20 sps:$4 sm:$0xff]  }
  0xdb   :  { %2338 = vmatpush1.bf16.msra.mxu0 %v5030_v28  ;;  %2424 = vmatpush1.bf16.msra.mxu1 %v5033_v29  ;;  %v5121_v28 = vld [vmem:[%s6962_s0 + $0x628] ss:$20 sps:$4 sm:$0xff]   ;;  %v5122_v29 = vld [vmem:[%s6962_s0 + $0x790] ss:$20 sps:$4 sm:$0xff]  }
  0xdc   :  { %2339 = vmatprep.subr.bf16.mxu0 %v5038_v30  ;;  %2425 = vmatprep.subr.bf16.mxu1 %v5041_v31  ;;  %v5125_v30 = vld [vmem:[%s6962_s0 + $0x8c4] ss:$20 sps:$4 sm:$0xff]   ;;  %v5123_v31 = vld [vmem:[%s6962_s0 + $0x8c0] ss:$20 sps:$4 sm:$0xff]  }
  0xdf   :  { %2340 = vmatpush1.bf16.msra.mxu0 %v5036_v32  ;;  %2426 = vmatpush1.bf16.msra.mxu1 %v5039_v33  ;;  %v5126_v32 = vld [vmem:[%s6962_s0 + $0x650] ss:$20 sps:$4 sm:$0xff]   ;;  %v5127_v33 = vld [vmem:[%s6962_s0 + $0x7b8] ss:$20 sps:$4 sm:$0xff]  }
  0xe0   :  { %2341 = vmatprep.subr.bf16.mxu0 %v5044_v34  ;;  %2427 = vmatprep.subr.bf16.mxu1 %v5047_v35  ;;  %v5130_v34 = vld [vmem:[%s6962_s0 + $0x8ec] ss:$20 sps:$4 sm:$0xff]   ;;  %v5128_v35 = vld [vmem:[%s6962_s0 + $0x8e8] ss:$20 sps:$4 sm:$0xff]  }
  0xe3   :  { %2342 = vmatpush1.bf16.msra.mxu0 %v5042_v36  ;;  %2428 = vmatpush1.bf16.msra.mxu1 %v5045_v37  ;;  %v5131_v36 = vld [vmem:[%s6962_s0 + $0x678] ss:$20 sps:$4 sm:$0xff]   ;;  %v5132_v37 = vld [vmem:[%s6962_s0 + $0x7e0] ss:$20 sps:$4 sm:$0xff]  }
  0xe4   :  { %2343 = vmatprep.subr.bf16.mxu0 %v5050_v38  ;;  %2429 = vmatprep.subr.bf16.mxu1 %v5053_v39  ;;  %v5135_v38 = vld [vmem:[%s6962_s0 + $0x914] ss:$20 sps:$4 sm:$0xff]  }
  0xe7   :  { %2344 = vmatpush1.bf16.msra.mxu0 %v5048_v40  ;;  %2430 = vmatpush1.bf16.msra.mxu1 %v5051_v41 }
  0xe8   :  { %2345 = vmatprep.subr.bf16.mxu0 %v5056_v42  ;;  %2431 = vmatprep.subr.bf16.mxu1 %v5059_v43 }
  0xeb   :  { %2346 = vmatpush1.bf16.msra.mxu0 %v5054_v45  ;;  %2432 = vmatpush1.bf16.msra.mxu1 %v5057_v46 }
  0xec   :  { %2347 = vmatprep.subr.bf16.mxu0 %v5062_v47  ;;  %2433 = vmatprep.subr.bf16.mxu1 %v5065_v48  ;;  %v5133_v47 = vld [vmem:[%s6962_s0 + $0x910] ss:$20 sps:$4 sm:$0xff]   ;;  %v5136_v48 = vld [vmem:[%s6962_s0 + $0x6a0] ss:$20 sps:$4 sm:$0xff]  }
  0xef   :  { %2348 = vmatpush1.bf16.msra.mxu0 %v5060_v44  ;;  %2434 = vmatpush1.bf16.msra.mxu1 %v5063_v49 }
  0xf0   :  { %2349 = vmatprep.subr.bf16.mxu0 %v5068_v50  ;;  %2435 = vmatprep.subr.bf16.mxu1 %v5071_v51  ;;  %v5137_v50 = vld [vmem:[%s6962_s0 + $0x808] ss:$20 sps:$4 sm:$0xff]  }
  0xf1   :  { %v5140_v51 = vld [vmem:[%s6962_s0 + $0x93c] ss:$20 sps:$4 sm:$0xff]  }
  0xf3   :  { %2350 = vmatpush1.bf16.msra.mxu0 %v5066_v52  ;;  %2436 = vmatpush1.bf16.msra.mxu1 %v5069_v53 }
  0xf4   :  { %2351 = vmatprep.subr.bf16.mxu0 %v5074_v54  ;;  %2437 = vmatprep.subr.bf16.mxu1 %v5077_v55  ;;  %v5138_v54 = vld [vmem:[%s6962_s0 + $0x938] ss:$20 sps:$4 sm:$0xff]   ;;  %v5141_v55 = vld [vmem:[%s6962_s0 + $0x6c8] ss:$20 sps:$4 sm:$0xff]  }
  0xf7   :  { %2352 = vmatpush1.bf16.msra.mxu0 %v5072_v56  ;;  %2438 = vmatpush1.bf16.msra.mxu1 %v5075_v57 }
  0xf8   :  { %2353 = vmatprep.subr.bf16.mxu0 %v5080_v58  ;;  %2439 = vmatprep.subr.bf16.mxu1 %v5083_v59  ;;  %v5144_v58 = vld [vmem:[%s6962_s0 + $0x964] ss:$20 sps:$4 sm:$0xff]   ;;  %v5147_v59 = vld [vmem:[%s6962_s0 + $0x87c] ss:$20 sps:$4 sm:$0xff]  }
  0xfb   :  { %2354 = vmatpush1.bf16.msra.mxu0 %v5078_v60  ;;  %2440 = vmatpush1.bf16.msra.mxu1 %v5081_v61 }
  0xfc   :  { %2355 = vmatprep.subr.bf16.mxu0 %v5086_v62  ;;  %2441 = vmatprep.subr.bf16.mxu1 %v5089_v63 }
  0xff   :  { %2356 = vmatpush1.bf16.msra.mxu0 %v5084_v0  ;;  %2442 = vmatpush1.bf16.msra.mxu1 %v5087_v2  ;;  %v5142_v0 = vld [vmem:[%s6962_s0 + $0x960] ss:$20 sps:$4 sm:$0xff]   ;;  %v5145_v2 = vld [vmem:[%s6962_s0 + $0x878] ss:$20 sps:$4 sm:$0xff]  }
 0x100   :  { %2454 = vmatprep.subr.bf16.mxu1 %v5095_v3  ;;  %2368 = vmatprep.subr.bf16.mxu0 %v5098_v4  ;;  %v5150_v4 = vld [vmem:[%s6962_s0 + $0x98c] ss:$20 sps:$4 sm:$0xff]  }
 0x102   :  { %2358 = vmatmul.mubr.bf16.vlgmr.msra.gmra.mrb[16].mxu0 %v6097_v5  ;;  %2444 = vmatmul.mubr.bf16.vlgmr.msra.gmra.mrb[16].mxu1 %v6097_v5 }
 0x103   :  { %2455 = vmatpush1.bf16.msra.mxu1 %v5093_v6  ;;  %2369 = vmatpush1.bf16.msra.mxu0 %v5096_v8  ;;  %v5153_v6 = vld [vmem:[%s6962_s0 + $0x8a4] ss:$20 sps:$4 sm:$0xff]   ;;  %v5148_v8 = vld [vmem:[%s6962_s0 + $0x988] ss:$20 sps:$4 sm:$0xff]  }
 0x104   :  { %2456 = vmatprep.subr.bf16.mxu1 %v5101_v9  ;;  %2370 = vmatprep.subr.bf16.mxu0 %v5104_v10  ;;  %v5151_v9 = vld [vmem:[%s6962_s0 + $0x8a0] ss:$20 sps:$4 sm:$0xff]  }
 0x105   :  { %2400 = vmatprep.mubr.bf16.mxu0 %v5258_v1  ;;  %2486 = vmatprep.mubr.bf16.mxu1 %v5258_v1  ;;  %v5156_v10 = vld [vmem:[%s6962_s0 + $0x9b4] ss:$20 sps:$4 sm:$0xff]  }
 0x107   :  { %2457 = vmatpush1.bf16.msra.mxu1 %v5099_v11  ;;  %2371 = vmatpush1.bf16.msra.mxu0 %v5102_v12  ;;  %v5154_v11 = vld [vmem:[%s6962_s0 + $0x9b0] ss:$20 sps:$4 sm:$0xff]   ;;  %v5157_v12 = vld [vmem:[%s6962_s0 + $0x8c8] ss:$20 sps:$4 sm:$0xff]  }
 0x108   :  { %4615 = vmatprep.subr.bf16.mxu0 %v5105_v14  ;;  %4681 = vmatprep.subr.bf16.mxu1 %v5259_v13  ;;  %v5162_v14 = vld [vmem:[%s6962_s0 + $0x9dc] ss:$20 sps:$4 sm:$0xff]  }
 0x10e   :  { %4354 = vmatmul.mubr.msk.bf16.vlgmr.msra.gmra.mrb[16].mxu0 %vm613_vm0, %v5106_v15  ;;  %4355 = vmatmul.mubr.msk.bf16.vlgmr.msra.gmra.mrb[16].mxu1 %vm613_vm0, %v5106_v15 }
 0x10f   :  { %4616 = vmatpush3.bf16.msra.mxu0 %v5107_v16  ;;  %4682 = vmatpush3.bf16.msra.mxu1 %v5108_v17  ;;  %v5160_v16 = vld [vmem:[%s6962_s0 + $0x9d8] ss:$20 sps:$4 sm:$0xff]   ;;  %v5163_v17 = vld [vmem:[%s6962_s0 + $0x8f0] ss:$20 sps:$4 sm:$0xff]  }
 0x110   :  { %4617 = vmatprep.subr.bf16.mxu0 %v5109_v18  ;;  %4683 = vmatprep.subr.bf16.mxu1 %v5259_v13  ;;  %v5168_v18 = vld [vmem:[%s6962_s0 + $0xa04] ss:$20 sps:$4 sm:$0xff]  }
 0x111   :  { %4685 = vmatprep.mubr.msk.bf16.mxu1 %vm5260_vm1, %v5259_v13  ;;  %2529 = vmatprep.mubr.bf16.mxu0 %v5910_v7  ;;  %v5120_v7 = vld [vmem:[%s6962_s0 + $0x89c] ss:$20 sps:$4 sm:$0xff]  }
 0x113   :  { %4618 = vmatpush3.bf16.msra.mxu0 %v5110_v19  ;;  %4684 = vmatpush3.bf16.msra.mxu1 %v5111_v20  ;;  %v5171_v19 = vld [vmem:[%s6962_s0 + $0x91c] ss:$20 sps:$4 sm:$0xff]   ;;  %v5166_v20 = vld [vmem:[%s6962_s0 + $0xa00] ss:$20 sps:$4 sm:$0xff]  }
 0x114   :  { %4619 = vmatprep.subr.bf16.mxu0 %v5112_v21  ;;  %3179 = vmatprep.subr.bf16.mxu1 %v5115_v22  ;;  %v5169_v21 = vld [vmem:[%s6962_s0 + $0x918] ss:$20 sps:$4 sm:$0xff]  }
 0x115   :  { %v5174_v22 = vld [vmem:[%s6962_s0 + $0xa2c] ss:$20 sps:$4 sm:$0xff]  }
 0x116   :  { %4686 = vmatmul.mubr.msk.bf16.vlgmr.msra.gmra.mrb[20].mxu1 %vm613_vm0, %v5106_v15  ;;  %v5165_v15 = vld [vmem:[%s6962_s0 + $0x8f4] ss:$20 sps:$4 sm:$0xff]  }
 0x117   :  { %4620 = vmatpush3.bf16.msra.mxu0 %v5116_v24  ;;  %3180 = vmatpush1.bf16.msra.mxu1 %v5113_v23  ;;  %v5177_v23 = vld [vmem:[%s6962_s0 + $0x944] ss:$20 sps:$4 sm:$0xff]   ;;  %v5172_v24 = vld [vmem:[%s6962_s0 + $0xa28] ss:$20 sps:$4 sm:$0xff]  }
 0x118   :  { %4621 = vmatprep.subr.bf16.mxu0 %v5117_v25  ;;  %3181 = vmatprep.subr.bf16.mxu1 %v5120_v7  ;;  %v5175_v25 = vld [vmem:[%s6962_s0 + $0x940] ss:$20 sps:$4 sm:$0xff]  }
 0x119   :  { %3211 = vmatprep.mubr.bf16.mxu1 %v6170_v26  ;;  %v5180_v7 = vld [vmem:[%s6962_s0 + $0xa54] ss:$20 sps:$4 sm:$0xff]  }
 0x11b   :  { %4622 = vmatpush3.bf16.msra.mxu0 %v5121_v28  ;;  %3182 = vmatpush1.bf16.msra.mxu1 %v5118_v27  ;;  %v5183_v27 = vld [vmem:[%s6962_s0 + $0x96c] ss:$20 sps:$4 sm:$0xff]  }
 0x11c   :  { %4623 = vmatprep.subr.bf16.mxu0 %v5122_v29  ;;  %3183 = vmatprep.subr.bf16.mxu1 %v5125_v30 }
 0x11f   :  { %4624 = vmatpush3.bf16.msra.mxu0 %v5126_v32  ;;  %3184 = vmatpush1.bf16.msra.mxu1 %v5123_v31  ;;  %v5178_v32 = vld [vmem:[%s6962_s0 + $0xa50] ss:$20 sps:$4 sm:$0xff]  }
 0x120   :  { %4625 = vmatprep.subr.bf16.mxu0 %v5127_v33  ;;  %3185 = vmatprep.subr.bf16.mxu1 %v5130_v34  ;;  %v5181_v33 = vld [vmem:[%s6962_s0 + $0x968] ss:$20 sps:$4 sm:$0xff]  }
 0x121   :  { %v6210_v39 = vpop.f32.mrb[0].mxu0  ;;  %v6212_v40 = vpop.f32.mrb[0].mxu1 }
 0x122   :  { %v6214_v41 = vpop.f32.mrb[1].mxu0  ;;  %v6216_v42 = vpop.f32.mrb[1].mxu1 }
 0x123   :  { %4626 = vmatpush3.bf16.msra.mxu0 %v5131_v36  ;;  %3186 = vmatpush1.bf16.msra.mxu1 %v5128_v35  ;;  %v3437_v43 = vadd.f32 %v6214_v41, %v6210_v39  ;;  %v6220_v45 = vpop.f32.mrb[2].mxu0  ;;  %v6222_v46 = vpop.f32.mrb[2].mxu1  ;;  %v5186_v35 = vld [vmem:[%s6962_s0 + $0xa7c] ss:$20 sps:$4 sm:$0xff]   ;;  %v5189_v36 = vld [vmem:[%s6962_s0 + $0x994] ss:$20 sps:$4 sm:$0xff]  }
 0x124   :  { %6972 = vst [vmem:[#allocation2_spill] sm:$0xff] %v6220_v45  ;;  %6973 = vst [vmem:[#allocation3_spill] sm:$0xff] %v6222_v46  ;;  %4627 = vmatprep.subr.bf16.mxu0 %v5132_v37  ;;  %3187 = vmatprep.subr.bf16.mxu1 %v5135_v38  ;;  %v6230_v44 = vpop.f32.mrb[3].mxu0  ;;  %v6232_v49 = vpop.f32.mrb[3].mxu1 }
 0x125   :  { %6974 = vst [vmem:[#allocation4_spill] sm:$0xff] %v6230_v44  ;;  %6975 = vst [vmem:[#allocation5_spill] sm:$0xff] %v6232_v49  ;;  %v3445_v52 = vadd.f32 %v6230_v44, %v6220_v45  ;;  %v3438_v53 = vadd.f32 %v3437_v43, %v6212_v40 }
 0x127   :  { %4628 = vmatpush3.bf16.msra.mxu0 %v5136_v48  ;;  %3188 = vmatpush1.bf16.msra.mxu1 %v5133_v47  ;;  %v6250_v56 = vadd.f32 %v3438_v53, %v6216_v42  ;;  %v3446_v57 = vadd.f32 %v3445_v52, %v6222_v46  ;;  %v5184_v47 = vld [vmem:[%s6962_s0 + $0xa78] ss:$20 sps:$4 sm:$0xff]   ;;  %v5187_v48 = vld [vmem:[%s6962_s0 + $0x990] ss:$20 sps:$4 sm:$0xff]  }
 0x128   :  { %4629 = vmatprep.subr.bf16.mxu0 %v5137_v50  ;;  %3189 = vmatprep.subr.bf16.mxu1 %v5140_v51  ;;  %v5192_v52 = vld [vmem:[%s6962_s0 + $0xaa4] ss:$20 sps:$4 sm:$0xff]   ;;  %v5195_v53 = vld [vmem:[%s6962_s0 + $0x9bc] ss:$20 sps:$4 sm:$0xff]  }
 0x129   :  { %v6259_v60 = vpop.f32.mrb[4].mxu1  ;;  %v6262_v61 = vadd.f32 %v3446_v57, %v6232_v49 }
 0x12a   :  { %v4671_v62 = vpop.f32.mrb[5].mxu1 }
 0x12b   :  { %4630 = vmatpush3.bf16.msra.mxu0 %v5141_v55  ;;  %3190 = vmatpush1.bf16.msra.mxu1 %v5138_v54  ;;  %v6264_v63 = vpop.f32.mrb[6].mxu1  ;;  %v5190_v55 = vld [vmem:[%s6962_s0 + $0xaa0] ss:$20 sps:$4 sm:$0xff]  }
 0x12c   :  { %3191 = vmatprep.subr.bf16.mxu1 %v5144_v58  ;;  %3265 = vmatprep.subr.bf16.mxu0 %v5147_v59  ;;  %v4672_v3 = vpop.f32.mrb[7].mxu1  ;;  %v5198_v58 = vld [vmem:[%s6962_s0 + $0xacc] ss:$20 sps:$4 sm:$0xff]   ;;  %v5201_v59 = vld [vmem:[%s6962_s0 + $0x9e4] ss:$20 sps:$4 sm:$0xff]  }
 0x12d   :  { %v5199_v62 = vld [vmem:[%s6962_s0 + $0x9e0] ss:$20 sps:$4 sm:$0xff]   ;;  %v5208_v3 = vld [vmem:[%s6962_s0 + $0xa08] ss:$20 sps:$4 sm:$0xff]  }
 0x12e   :  { %2530 = vmatmul.mubr.bf16.vlgmr.msra.gmra.mrb[20].mxu0 %v6097_v5  ;;  %v5159_v5 = vld [vmem:[%s6962_s0 + $0x8cc] ss:$20 sps:$4 sm:$0xff]  }
 0x12f   :  { %3192 = vmatpush1.bf16.msra.mxu1 %v5142_v0  ;;  %3266 = vmatpush1.bf16.msra.mxu0 %v5145_v2  ;;  %v6403_v0 = vld [vmem:[%s6963_s1 + $0x48] ss:$12 sps:$4 sm:$0xff]   ;;  %v5205_v2 = vld [vmem:[%s6962_s0 + $0xaf0] ss:$20 sps:$4 sm:$0xff]  }
 0x130   :  { %3193 = vmatprep.subr.bf16.mxu1 %v5150_v4  ;;  %3267 = vmatprep.subr.bf16.mxu0 %v5153_v6  ;;  %v5213_v4 = vld [vmem:[%s6962_s0 + $0xa34] ss:$20 sps:$4 sm:$0xff]   ;;  %v5216_v6 = vld [vmem:[%s6962_s0 + $0xb1c] ss:$20 sps:$4 sm:$0xff]  }
 0x131   :  { %3297 = vmatprep.mubr.bf16.mxu0 %v6170_v26 }
 0x133   :  { %3194 = vmatpush1.bf16.msra.mxu1 %v5148_v8  ;;  %3268 = vmatpush1.bf16.msra.mxu0 %v5151_v9  ;;  %v5211_v8 = vld [vmem:[%s6962_s0 + $0xa30] ss:$20 sps:$4 sm:$0xff]   ;;  %v5214_v9 = vld [vmem:[%s6962_s0 + $0xb18] ss:$20 sps:$4 sm:$0xff]  }
 0x134   :  { %3195 = vmatprep.subr.bf16.mxu1 %v5156_v10  ;;  %3269 = vmatprep.subr.bf16.mxu0 %v5159_v5  ;;  %v5219_v10 = vld [vmem:[%s6962_s0 + $0xa5c] ss:$20 sps:$4 sm:$0xff]   ;;  %v5220_v5 = vld [vmem:[%s6962_s0 + $0x9c0] ss:$20 sps:$4 sm:$0xff]  }
 0x137   :  { %3196 = vmatpush1.bf16.msra.mxu1 %v5154_v11  ;;  %3270 = vmatpush1.bf16.msra.mxu0 %v5157_v12  ;;  %v5217_v11 = vld [vmem:[%s6962_s0 + $0xa58] ss:$20 sps:$4 sm:$0xff]  }
 0x138   :  { %3197 = vmatprep.subr.bf16.mxu1 %v5162_v14  ;;  %3271 = vmatprep.subr.bf16.mxu0 %v5165_v15  ;;  %v5224_v12 = vld [vmem:[%s6962_s0 + $0xa84] ss:$20 sps:$4 sm:$0xff]   ;;  %v6440_v14 = vld [vmem:[%s6963_s1 + $0x50] ss:$12 sps:$4 sm:$0xff]   ;;  %v5222_v15 = vld [vmem:[%s6962_s0 + $0xa80] ss:$20 sps:$4 sm:$0xff]  }
 0x13b   :  { %3198 = vmatpush1.bf16.msra.mxu1 %v5160_v16  ;;  %3272 = vmatpush1.bf16.msra.mxu0 %v5163_v17  ;;  %v5225_v16 = vld [vmem:[%s6962_s0 + $0x880] ss:$20 sps:$4 sm:$0xff]   ;;  %v5226_v17 = vld [vmem:[%s6962_s0 + $0x9e8] ss:$20 sps:$4 sm:$0xff]  }
 0x13c   :  { %3199 = vmatprep.subr.bf16.mxu1 %v5168_v18  ;;  %3273 = vmatprep.subr.bf16.mxu0 %v5171_v19  ;;  %v5229_v18 = vld [vmem:[%s6962_s0 + $0xaac] ss:$20 sps:$4 sm:$0xff]   ;;  %v5227_v19 = vld [vmem:[%s6962_s0 + $0xaa8] ss:$20 sps:$4 sm:$0xff]  }
 0x13f   :  { %3200 = vmatpush1.bf16.msra.mxu1 %v5166_v20  ;;  %3274 = vmatpush1.bf16.msra.mxu0 %v5169_v21  ;;  %v5230_v20 = vld [vmem:[%s6962_s0 + $0x8a8] ss:$20 sps:$4 sm:$0xff]   ;;  %v5231_v21 = vld [vmem:[%s6962_s0 + $0xa10] ss:$20 sps:$4 sm:$0xff]  }
 0x140   :  { %3201 = vmatprep.subr.bf16.mxu1 %v5174_v22  ;;  %3275 = vmatprep.subr.bf16.mxu0 %v5177_v23  ;;  %v5234_v22 = vld [vmem:[%s6962_s0 + $0xad4] ss:$20 sps:$4 sm:$0xff]   ;;  %v5232_v23 = vld [vmem:[%s6962_s0 + $0xad0] ss:$20 sps:$4 sm:$0xff]  }
 0x141   :  { %v4581_v28 = vpop.f32.mrb[4].mxu0 }
 0x142   :  { %v4582_v29 = vpop.f32.mrb[5].mxu0 }
 0x143   :  { %3202 = vmatpush1.bf16.msra.mxu1 %v5172_v24  ;;  %3276 = vmatpush1.bf16.msra.mxu0 %v5175_v25  ;;  %v4583_v30 = vadd.f32 %v4582_v29, %v4581_v28  ;;  %v4584_v31 = vpop.f32.mrb[6].mxu0  ;;  %v5235_v24 = vld [vmem:[%s6962_s0 + $0x8d0] ss:$20 sps:$4 sm:$0xff]   ;;  %v5236_v25 = vld [vmem:[%s6962_s0 + $0xa38] ss:$20 sps:$4 sm:$0xff]  }
 0x144   :  { %v4585_v34 = vpop.f32.mrb[7].mxu0  ;;  %3203 = vmatprep.subr.bf16.mxu1 %v5180_v7  ;;  %3277 = vmatprep.subr.bf16.mxu0 %v5183_v27  ;;  %v5237_v7 = vld [vmem:[%s6962_s0 + $0x8f8] ss:$20 sps:$4 sm:$0xff]   ;;  %v5241_v28 = vld [vmem:[%s6962_s0 + $0xa60] ss:$20 sps:$4 sm:$0xff]  }
 0x145   :  { %v6353_v37 = vadd.f32 %v4583_v30, %v6259_v60  ;;  %v4586_v38 = vadd.f32 %v4585_v34, %v4584_v31  ;;  %v5196_v60 = vld [vmem:[%s6962_s0 + $0xac8] ss:$20 sps:$4 sm:$0xff]   ;;  %v5238_v27 = vld [vmem:[%s6962_s0 + $0xaf8] ss:$20 sps:$4 sm:$0xff]   ;;  %v5242_v30 = vld [vmem:[%s6962_s0 + $0x920] ss:$20 sps:$4 sm:$0xff]  }
 0x146   :  { %v5246_v29 = vld [vmem:[%s6962_s0 + $0xb24] ss:$20 sps:$4 sm:$0xff]   ;;  %v5244_v31 = vld [vmem:[%s6962_s0 + $0xb20] ss:$20 sps:$4 sm:$0xff]  }
 0x147   :  { %v6356_v43 = vadd.f32 %v4586_v38, %v6264_v63  ;;  %3204 = vmatpush1.bf16.msra.mxu1 %v5178_v32  ;;  %3278 = vmatpush1.bf16.msra.mxu0 %v5181_v33  ;;  %v3441_v50 = vsel %vm3440_vm2, %v6353_v37, 0.0  ;;  %v5210_v63 = vld [vmem:[%s6962_s0 + $0xa0c] ss:$20 sps:$4 sm:$0xff]   ;;  %v5243_v32 = vld [vmem:[%s6962_s0 + $0xa88] ss:$20 sps:$4 sm:$0xff]  }
 0x148   :  { %3205 = vmatprep.subr.bf16.mxu1 %v5186_v35  ;;  %3279 = vmatprep.subr.bf16.mxu0 %v5189_v36  ;;  %v3442_v51 = vadd.f32 %v3441_v50, %v6250_v56  ;;  %v5193_v56 = vld [vmem:[%s6962_s0 + $0x9b8] ss:$20 sps:$4 sm:$0xff]   ;;  %v5247_v33 = vld [vmem:[%s6962_s0 + $0x948] ss:$20 sps:$4 sm:$0xff]   ;;  %v5248_v34 = vld [vmem:[%s6962_s0 + $0xab0] ss:$20 sps:$4 sm:$0xff]  }
 0x149   :  { %6976 = vst [vmem:[#allocation6_spill] sm:$0xff] %v6356_v43  ;;  %v3448_v54 = vsel %vm3440_vm2, %v6356_v43, 0.0 }
 0x14a   :  { %3443 = vadd.xlane.f32.xlu0 %v3442_v51  ;;  %v3449_v57 = vadd.f32 %v3448_v54, %v6262_v61  ;;  %v5207_v61 = vld [vmem:[%s6962_s0 + $0xaf4] ss:$20 sps:$4 sm:$0xff]   ;;  %v5251_v51 = vld [vmem:[%s6962_s0 + $0xad8] ss:$20 sps:$4 sm:$0xff]  }
 0x14b   :  { %3206 = vmatpush1.bf16.msra.mxu1 %v5184_v47  ;;  %3280 = vmatpush1.bf16.msra.mxu0 %v5187_v48  ;;  %v5249_v47 = vld [vmem:[%s6962_s0 + $0x970] ss:$20 sps:$4 sm:$0xff]   ;;  %v5250_v48 = vld [vmem:[%s6962_s0 + $0xb00] ss:$20 sps:$4 sm:$0xff]   ;;  %v5253_v54 = vld [vmem:[%s6962_s0 + $0xb28] ss:$20 sps:$4 sm:$0xff]  }
 0x14c   :  { %3207 = vmatprep.subr.bf16.mxu1 %v5192_v52  ;;  %3281 = vmatprep.subr.bf16.mxu0 %v5195_v53  ;;  %v5252_v53 = vld [vmem:[%s6962_s0 + $0x998] ss:$20 sps:$4 sm:$0xff]  }
 0x14e   :  { %3450 = vadd.xlane.f32.xlu0 %v3449_v57 }
 0x14f   :  { %3208 = vmatpush1.bf16.msra.mxu1 %v5190_v55  ;;  %3282 = vmatpush1.bf16.msra.mxu0 %v5193_v56 }
 0x150   :  { %3209 = vmatprep.subr.bf16.mxu1 %v5198_v58  ;;  %3283 = vmatprep.subr.bf16.mxu0 %v5201_v59 }
 0x153   :  { %3210 = vmatpush1.bf16.msra.mxu1 %v5196_v60  ;;  %3284 = vmatpush1.bf16.msra.mxu0 %v5199_v62 }
 0x154   :  { %3222 = vmatprep.subr.bf16.mxu1 %v5207_v61  ;;  %3285 = vmatprep.subr.bf16.mxu0 %v5210_v63 }
 0x156   :  { %3212 = vmatmul.mubr.bf16.vlgmr.msra.gmra.mrb[24].mxu1 %v6403_v0 }
 0x157   :  { %3223 = vmatpush1.bf16.msra.mxu1 %v5205_v2  ;;  %3286 = vmatpush1.bf16.msra.mxu0 %v5208_v3 }
 0x158   :  { %3287 = vmatprep.subr.bf16.mxu0 %v5213_v4  ;;  %3224 = vmatprep.subr.bf16.mxu1 %v5216_v6 }
 0x159   :  { %3254 = vmatprep.mubr.bf16.mxu1 %v5258_v1 }
 0x15b   :  { %3288 = vmatpush1.bf16.msra.mxu0 %v5211_v8  ;;  %3225 = vmatpush1.bf16.msra.mxu1 %v5214_v9 }
 0x15c   :  { %3289 = vmatprep.subr.bf16.mxu0 %v5219_v10  ;;  %4640 = vmatprep.subr.bf16.mxu1 %v5220_v5 }
 0x15f   :  { %3290 = vmatpush1.bf16.msra.mxu0 %v5217_v11 }
 0x160   :  { %3291 = vmatprep.subr.bf16.mxu0 %v5224_v12 }
 0x162   :  { %4562 = vmatmul.mubr.msk.bf16.vlgmr.msra.gmra.mrb[24].mxu1 %vm613_vm0, %v6440_v14 }
 0x163   :  { %4641 = vmatpush3.bf16.msra.mxu1 %v5225_v16  ;;  %3292 = vmatpush1.bf16.msra.mxu0 %v5222_v15 }
 0x164   :  { %4642 = vmatprep.subr.bf16.mxu1 %v5226_v17  ;;  %3293 = vmatprep.subr.bf16.mxu0 %v5229_v18 }
 0x165   :  { %3383 = vmatprep.mubr.bf16.mxu1 %v6170_v26  ;;  %v5240_v26 = vld [vmem:[%s6962_s0 + $0xafc] ss:$20 sps:$4 sm:$0xff]  }
 0x167   :  { %4643 = vmatpush3.bf16.msra.mxu1 %v5230_v20  ;;  %3294 = vmatpush1.bf16.msra.mxu0 %v5227_v19 }
 0x168   :  { %4644 = vmatprep.subr.bf16.mxu1 %v5231_v21  ;;  %3295 = vmatprep.subr.bf16.mxu0 %v5234_v22 }
 0x16b   :  { %4645 = vmatpush3.bf16.msra.mxu1 %v5235_v24  ;;  %3296 = vmatpush1.bf16.msra.mxu0 %v5232_v23 }
 0x16c   :  { %4646 = vmatprep.subr.bf16.mxu1 %v5236_v25  ;;  %3308 = vmatprep.subr.bf16.mxu0 %v5240_v26 }
 0x16e   :  { %3298 = vmatmul.mubr.bf16.vlgmr.msra.gmra.mrb[24].mxu0 %v6403_v0 }
 0x16f   :  { %4647 = vmatpush3.bf16.msra.mxu1 %v5237_v7  ;;  %3309 = vmatpush1.bf16.msra.mxu0 %v5238_v27 }
 0x170   :  { %4648 = vmatprep.subr.bf16.mxu1 %v5241_v28  ;;  %3310 = vmatprep.subr.bf16.mxu0 %v5246_v29 }
 0x171   :  { %3340 = vmatprep.mubr.bf16.mxu0 %v5258_v1 }
 0x173   :  { %4649 = vmatpush3.bf16.msra.mxu1 %v5242_v30  ;;  %3311 = vmatpush1.bf16.msra.mxu0 %v5244_v31 }
 0x174   :  { %4650 = vmatprep.subr.bf16.mxu1 %v5243_v32  ;;  %4689 = vmatprep.subr.bf16.mxu0 %v5259_v13 }
 0x175   :  { %v6511_v35 = vpop.f32.mrb[8].mxu1 }
 0x176   :  { %v6513_v36 = vpop.f32.mrb[9].mxu1 }
 0x177   :  { %4651 = vmatpush3.bf16.msra.mxu1 %v5247_v33  ;;  %v3454_v1 = vadd.f32 %v6513_v36, %v6511_v35  ;;  %v6517_v38 = vpop.f32.mrb[10].mxu1 }
 0x178   :  { %4652 = vmatprep.subr.bf16.mxu1 %v5248_v34  ;;  %v6525_v50 = vpop.f32.mrb[11].mxu1 }
 0x179   :  { %v3461_v52 = vadd.f32 %v6525_v50, %v6517_v38 }
 0x17a   :  { %4563 = vmatmul.mubr.msk.bf16.vlgmr.msra.gmra.mrb[24].mxu0 %vm613_vm0, %v6440_v14 }
 0x17b   :  { %4653 = vmatpush3.bf16.msra.mxu1 %v5249_v47  ;;  %4690 = vmatpush3.bf16.msra.mxu0 %v5250_v48 }
 0x17c   :  { %4654 = vmatprep.subr.bf16.mxu1 %v5251_v51  ;;  %4691 = vmatprep.subr.bf16.mxu0 %v5259_v13 }
 0x17d   :  { %4693 = vmatprep.mubr.msk.bf16.mxu0 %vm5260_vm1, %v5259_v13 }
 0x17f   :  { %4655 = vmatpush3.bf16.msra.mxu1 %v5252_v53  ;;  %4692 = vmatpush3.bf16.msra.mxu0 %v5253_v54 }
 0x182   :  { %3384 = vmatmul.mubr.bf16.vlgmr.msra.gmra.mrb[28].mxu1 %v6403_v0  ;;  %4694 = vmatmul.mubr.msk.bf16.vlgmr.msra.gmra.mrb[28].mxu0 %vm613_vm0, %v6440_v14 }
 0x18d   :  { %v6546_v55 = vpop.f32.mrb[8].mxu0 }
 0x18e   :  { %v3455_v56 = vadd.f32 %v3454_v1, %v6546_v55  ;;  %v6549_v57 = vpop.f32.mrb[9].mxu0 }
 0x18f   :  { %v6551_v58 = vpop.f32.mrb[10].mxu0 }
 0x190   :  { %v3462_v59 = vadd.f32 %v3461_v52, %v6551_v58  ;;  %v6554_v60 = vpop.f32.mrb[11].mxu0  ;;  %v3456_v13 = vadd.f32 %v3455_v56, %v6549_v57 }
 0x192   :  { %v3463_v62 = vadd.f32 %v3462_v59, %v6554_v60 }
 0x195   :  { %v4606_v61 = vpop.f32.mrb[12].mxu1  ;;  %v1718_v63 = vpop.f32.mrb[12].mxu0 }
 0x196   :  { %v4607_v0 = vpop.f32.mrb[13].mxu1  ;;  %v4679_v2 = vpop.f32.mrb[13].mxu0 }
 0x197   :  { %v4608_v3 = vadd.f32 %v4607_v0, %v4606_v61  ;;  %v4609_v4 = vpop.f32.mrb[14].mxu1  ;;  %v1721_v6 = vpop.f32.mrb[14].mxu0 }
 0x198   :  { %v4610_v8 = vpop.f32.mrb[15].mxu1  ;;  %v4680_v9 = vpop.f32.mrb[15].mxu0 }
 0x199   :  { %v6558_v10 = vadd.f32 %v4608_v3, %v1718_v63  ;;  %v4611_v5 = vadd.f32 %v4610_v8, %v4609_v4 }
 0x19b   :  { %v6560_v11 = vadd.f32 %v4611_v5, %v1721_v6  ;;  %v3457_v12 = vsel %vm3440_vm2, %v6558_v10, 0.0 }
 0x19c   :  { %v3458_v14 = vadd.f32 %v3457_v12, %v3456_v13 }
 0x19d   :  { %v3464_v15 = vsel %vm3440_vm2, %v6560_v11, 0.0 }
 0x19e   :  { %3459 = vadd.xlane.f32.xlu1 %v3458_v14  ;;  %v3465_v16 = vadd.f32 %v3464_v15, %v3463_v62 }
 0x1a2   :  { %3466 = vadd.xlane.f32.xlu1 %v3465_v16 }
 0x1e1   :  { %v6566_v17 = vpop.f32.mrb[16].mxu0  ;;  %v6568_v18 = vpop.f32.mrb[16].mxu1 }
 0x1e2   :  { %v6570_v19 = vpop.f32.mrb[17].mxu0  ;;  %v6572_v20 = vpop.f32.mrb[17].mxu1 }
 0x1e3   :  { %v3470_v21 = vadd.f32 %v6570_v19, %v6566_v17  ;;  %v6576_v22 = vpop.f32.mrb[18].mxu0  ;;  %v6578_v23 = vpop.f32.mrb[18].mxu1 }
 0x1e4   :  { %v6580_v24 = vpop.f32.mrb[19].mxu0  ;;  %v6582_v25 = vpop.f32.mrb[19].mxu1 }
 0x1e5   :  { %v3477_v26 = vadd.f32 %v6580_v24, %v6576_v22  ;;  %v3471_v7 = vadd.f32 %v3470_v21, %v6568_v18 }
 0x1e7   :  { %v3472_v27 = vadd.f32 %v3471_v7, %v6572_v20  ;;  %v3478_v28 = vadd.f32 %v3477_v26, %v6578_v23 }
 0x1e9   :  { %v2572_v29 = vpop.f32.mrb[20].mxu1  ;;  %v3479_v30 = vadd.f32 %v3478_v28, %v6582_v25 }
 0x1ea   :  { %v4687_v31 = vpop.f32.mrb[21].mxu1 }
 0x1eb   :  { %v2575_v32 = vpop.f32.mrb[22].mxu1 }
 0x1ec   :  { %v4688_v33 = vpop.f32.mrb[23].mxu1 }
 0x201   :  { %v4631_v34 = vpop.f32.mrb[20].mxu0 }
 0x202   :  { %v4632_v1 = vpop.f32.mrb[21].mxu0 }
 0x203   :  { %v4633_v47 = vadd.f32 %v4632_v1, %v4631_v34  ;;  %v4634_v48 = vpop.f32.mrb[22].mxu0 }
 0x204   :  { %v4635_v51 = vpop.f32.mrb[23].mxu0 }
 0x205   :  { %v6590_v52 = vadd.f32 %v4633_v47, %v2572_v29  ;;  %v4636_v53 = vadd.f32 %v4635_v51, %v4634_v48 }
 0x207   :  { %v6592_v54 = vadd.f32 %v4636_v53, %v2575_v32  ;;  %v3473_v56 = vsel %vm3440_vm2, %v6590_v52, 0.0 }
 0x208   :  { %v3474_v59 = vadd.f32 %v3473_v56, %v3472_v27  ;;  %v3444_v56 = vpop.xlane.xlu0 %3443 }
 0x209   :  { %v3480_v13 = vsel %vm3440_vm2, %v6592_v54, 0.0 }
 0x20a   :  { %3475 = vadd.xlane.f32.xlu0 %v3474_v59  ;;  %v3481_v62 = vadd.f32 %v3480_v13, %v3479_v30 }
 0x20c   :  { %3482 = vadd.xlane.f32.xlu1 %v3481_v62  ;;  %v3451_v13 = vpop.xlane.xlu0 %3450 }
 0x22b   :  { %v3460_v59 = vpop.xlane.xlu1 %3459 }
 0x22f   :  { %v3467_v62 = vpop.xlane.xlu1 %3466 }
 0x235   :  { %v6598_v61 = vpop.f32.mrb[24].mxu1 }
 0x236   :  { %v6600_v63 = vpop.f32.mrb[25].mxu1 }
 0x237   :  { %v3486_v0 = vadd.f32 %v6600_v63, %v6598_v61  ;;  %v6604_v2 = vpop.f32.mrb[26].mxu1 }
 0x238   :  { %v6606_v3 = vpop.f32.mrb[27].mxu1 }
 0x239   :  { %v3493_v4 = vadd.f32 %v6606_v3, %v6604_v2 }
 0x24d   :  { %v6610_v6 = vpop.f32.mrb[24].mxu0 }
 0x24e   :  { %v3487_v8 = vadd.f32 %v3486_v0, %v6610_v6  ;;  %v6613_v9 = vpop.f32.mrb[25].mxu0 }
 0x24f   :  { %v6615_v5 = vpop.f32.mrb[26].mxu0 }
 0x250   :  { %v3494_v12 = vadd.f32 %v3493_v4, %v6615_v5  ;;  %v6618_v14 = vpop.f32.mrb[27].mxu0  ;;  %v3488_v15 = vadd.f32 %v3487_v8, %v6613_v9  ;;  %v3468_v4 = vadd.f32 %v3460_v59, %v3444_v56 }
 0x252   :  { %v3495_v16 = vadd.f32 %v3494_v12, %v6618_v14  ;;  %v3469_v12 = vadd.f32 %v3467_v62, %v3451_v13 }
 0x255   :  { %v4656_v21 = vpop.f32.mrb[28].mxu1  ;;  %v3426_v26 = vpop.f32.mrb[28].mxu0 }
 0x256   :  { %v4657_v7 = vpop.f32.mrb[29].mxu1  ;;  %v4695_v27 = vpop.f32.mrb[29].mxu0 }
 0x257   :  { %v4658_v28 = vadd.f32 %v4657_v7, %v4656_v21  ;;  %v4659_v29 = vpop.f32.mrb[30].mxu1  ;;  %v3429_v30 = vpop.f32.mrb[30].mxu0 }
 0x258   :  { %v4660_v31 = vpop.f32.mrb[31].mxu1  ;;  %v4696_v32 = vpop.f32.mrb[31].mxu0 }
 0x259   :  { %v6622_v33 = vadd.f32 %v4658_v28, %v3426_v26  ;;  %v4661_v34 = vadd.f32 %v4660_v31, %v4659_v29 }
 0x25b   :  { %v6624_v1 = vadd.f32 %v4661_v34, %v3429_v30  ;;  %v3489_v47 = vsel %vm3440_vm2, %v6622_v33, 0.0 }
 0x25c   :  { %v3490_v48 = vadd.f32 %v3489_v47, %v3488_v15 }
 0x25d   :  { %v3496_v51 = vsel %vm3440_vm2, %v6624_v1, 0.0 }
 0x25e   :  { %3491 = vadd.xlane.f32.xlu0 %v3490_v48  ;;  %v3497_v53 = vadd.f32 %v3496_v51, %v3495_v16 }
 0x260   :  { %3498 = vadd.xlane.f32.xlu1 %v3497_v53 }
 0x297   :  { %v3476_v0 = vpop.xlane.xlu0 %3475 }
 0x298   :  { %v3484_v21 = vadd.f32 %v3476_v0, %v3468_v4 }
 0x299   :  { %v3483_v8 = vpop.xlane.xlu1 %3482 }
 0x29a   :  { %v3485_v7 = vadd.f32 %v3483_v8, %v3469_v12 }
 0x2eb   :  { %v3492_v26 = vpop.xlane.xlu0 %3491 }
 0x2ec   :  { %v3500_v27 = vadd.f32 %v3492_v26, %v3484_v21 }
 0x2ed   :  { %v3499_v28 = vpop.xlane.xlu1 %3498 }
 0x2ee   :  { %v6630_v15 = vmul.f32 0.00043252597, %v3500_v27  ;;  %v3501_v29 = vadd.f32 %v3499_v28, %v3485_v7 }
 0x2f0   :  { %v6632_v30 = vmul.f32 0.00043252597, %v3501_v29  ;;  %v3505_v16 = vsub.f32 %v6210_v39, %v6630_v15  ;;  %v3506_v31 = vsub.f32 %v6214_v41, %v6630_v15  ;;  %v3507_v32 = vsub.f32 %v6212_v40, %v6630_v15 }
 0x2f1   :  { %v3508_v34 = vsub.f32 %v6216_v42, %v6630_v15  ;;  %v3509_v47 = vsub.f32 %v6353_v37, %v6630_v15  ;;  %v3541_v48 = vsub.f32 %v6511_v35, %v6630_v15  ;;  %v3542_v59 = vsub.f32 %v6513_v36, %v6630_v15 }
 0x2f2   :  { %v3515_v51 = vmul.f32 %v3505_v16, %v3505_v16  ;;  %v3516_v53 = vmul.f32 %v3506_v31, %v3506_v31  ;;  %v3510_v56 = vsub.f32 %v6220_v45, %v6632_v30  ;;  %v3517_v13 = vmul.f32 %v3507_v32, %v3507_v32 }
 0x2f3   :  { %v3519_v62 = vmul.f32 %v3509_v47, %v3509_v47  ;;  %v3511_v0 = vsub.f32 %v6230_v44, %v6632_v30  ;;  %v3512_v4 = vsub.f32 %v6222_v46, %v6632_v30  ;;  %v3513_v12 = vsub.f32 %v6232_v49, %v6632_v30 }
 0x2f4   :  { %v3525_v8 = vadd.f32 %v3516_v53, %v3515_v51  ;;  %v3514_v21 = vsub.f32 %v6356_v43, %v6632_v30  ;;  %v3520_v26 = vmul.f32 %v3510_v56, %v3510_v56  ;;  %v3518_v7 = vmul.f32 %v3508_v34, %v3508_v34 }
 0x2f5   :  { %v3521_v27 = vmul.f32 %v3511_v0, %v3511_v0  ;;  %v3543_v28 = vsub.f32 %v6546_v55, %v6630_v15  ;;  %v3522_v16 = vmul.f32 %v3512_v4, %v3512_v4  ;;  %v3544_v32 = vsub.f32 %v6549_v57, %v6630_v15 }
 0x2f6   :  { %v3526_v29 = vadd.f32 %v3525_v8, %v3517_v13  ;;  %v3524_v31 = vmul.f32 %v3514_v21, %v3514_v21  ;;  %v3545_v51 = vsub.f32 %v6558_v10, %v6630_v15  ;;  %v3551_v53 = vmul.f32 %v3541_v48, %v3541_v48 }
 0x2f7   :  { %v3532_v47 = vadd.f32 %v3521_v27, %v3520_v26  ;;  %v3552_v49 = vmul.f32 %v3542_v59, %v3542_v59  ;;  %v3528_v56 = vsel %vm3440_vm2, %v3519_v62, 0.0  ;;  %v3523_v34 = vmul.f32 %v3513_v12, %v3513_v12 }
 0x2f8   :  { %v3527_v46 = vadd.f32 %v3526_v29, %v3518_v7  ;;  %v3553_v0 = vmul.f32 %v3543_v28, %v3543_v28  ;;  %v3555_v44 = vmul.f32 %v3545_v51, %v3545_v51  ;;  %v3546_v13 = vsub.f32 %v6517_v38, %v6632_v30 }
 0x2f9   :  { %v3533_v43 = vadd.f32 %v3532_v47, %v3522_v16  ;;  %v3561_v45 = vadd.f32 %v3552_v49, %v3551_v53  ;;  %v3535_v8 = vsel %vm3440_vm2, %v3524_v31, 0.0  ;;  %v3547_v21 = vsub.f32 %v6525_v50, %v6632_v30 }
 0x2fa   :  { %v3529_v4 = vadd.f32 %v3528_v56, %v3527_v46  ;;  %v3548_v48 = vsub.f32 %v6551_v58, %v6632_v30  ;;  %v3554_v26 = vmul.f32 %v3544_v32, %v3544_v32  ;;  %v3550_v12 = vsub.f32 %v6560_v11, %v6632_v30 }
 0x2fb   :  { %v3534_v59 = vadd.f32 %v3533_v43, %v3523_v34  ;;  %v3562_v62 = vadd.f32 %v3561_v45, %v3553_v0  ;;  %v3564_v49 = vsel %vm3440_vm2, %v3555_v44, 0.0  ;;  %v3549_v46 = vsub.f32 %v6554_v60, %v6632_v30 }
 0x2fc   :  { %3530 = vadd.xlane.f32.xlu0 %v3529_v4  ;;  %v3556_v7 = vmul.f32 %v3546_v13, %v3546_v13  ;;  %v3557_v27 = vmul.f32 %v3547_v21, %v3547_v21  ;;  %v3560_v16 = vmul.f32 %v3550_v12, %v3550_v12  ;;  %v3577_v31 = vsub.f32 %v6566_v17, %v6630_v15 }
 0x2fd   :  { %v3536_v28 = vadd.f32 %v3535_v8, %v3534_v59  ;;  %v3563_v29 = vadd.f32 %v3562_v62, %v3554_v26  ;;  %v3558_v43 = vmul.f32 %v3548_v48, %v3548_v48  ;;  %v3578_v45 = vsub.f32 %v6570_v19, %v6630_v15 }
 0x2fe   :  { %v3568_v32 = vadd.f32 %v3557_v27, %v3556_v7  ;;  %v3579_v47 = vsub.f32 %v6568_v18, %v6630_v15  ;;  %v3580_v51 = vsub.f32 %v6572_v20, %v6630_v15  ;;  %v3581_v53 = vsub.f32 %v6590_v52, %v6630_v15 }
 0x2ff   :  { %3537 = vadd.xlane.f32.xlu1 %v3536_v28  ;;  %v3565_v44 = vadd.f32 %v3564_v49, %v3563_v29  ;;  %v3587_v56 = vmul.f32 %v3577_v31, %v3577_v31  ;;  %v3559_v34 = vmul.f32 %v3549_v46, %v3549_v46  ;;  %v3571_v13 = vsel %vm3440_vm2, %v3560_v16, 0.0 }
 0x300   :  { %v3569_v0 = vadd.f32 %v3568_v32, %v3558_v43  ;;  %v3588_v4 = vmul.f32 %v3578_v45, %v3578_v45  ;;  %v3589_v8 = vmul.f32 %v3579_v47, %v3579_v47  ;;  %v3582_v21 = vsub.f32 %v6576_v22, %v6632_v30 }
 0x301   :  { %3566 = vadd.xlane.f32.xlu0 %v3565_v44  ;;  %v3583_v48 = vsub.f32 %v6580_v24, %v6632_v30  ;;  %v3584_v59 = vsub.f32 %v6578_v23, %v6632_v30  ;;  %v3591_v62 = vmul.f32 %v3581_v53, %v3581_v53  ;;  %v3586_v49 = vsub.f32 %v6592_v54, %v6632_v30 }
 0x302   :  { %v3570_v26 = vadd.f32 %v3569_v0, %v3559_v34  ;;  %v3597_v12 = vadd.f32 %v3588_v4, %v3587_v56  ;;  %v3590_v46 = vmul.f32 %v3580_v51, %v3580_v51  ;;  %v3585_v7 = vsub.f32 %v6582_v25, %v6632_v30 }
 0x303   :  { %v3592_v27 = vmul.f32 %v3582_v21, %v3582_v21  ;;  %v3593_v28 = vmul.f32 %v3583_v48, %v3583_v48  ;;  %v3594_v31 = vmul.f32 %v3584_v59, %v3584_v59  ;;  %v3596_v43 = vmul.f32 %v3586_v49, %v3586_v49 }
 0x304   :  { %v3572_v29 = vadd.f32 %v3571_v13, %v3570_v26  ;;  %v3598_v16 = vadd.f32 %v3597_v12, %v3589_v8  ;;  %v3613_v45 = vsub.f32 %v6598_v61, %v6630_v15  ;;  %v3614_v47 = vsub.f32 %v6600_v63, %v6630_v15 }
 0x305   :  { %v3604_v32 = vadd.f32 %v3593_v28, %v3592_v27  ;;  %v3615_v44 = vsub.f32 %v6610_v6, %v6630_v15  ;;  %v3600_v53 = vsel %vm3440_vm2, %v3591_v62, 0.0  ;;  %v3616_v56 = vsub.f32 %v6613_v9, %v6630_v15 }
 0x306   :  { %3573 = vadd.xlane.f32.xlu1 %v3572_v29  ;;  %v3599_v51 = vadd.f32 %v3598_v16, %v3590_v46  ;;  %v3617_v34 = vsub.f32 %v6622_v33, %v6630_v15  ;;  %v3595_v0 = vmul.f32 %v3585_v7, %v3585_v7  ;;  %v3623_v4 = vmul.f32 %v3613_v45, %v3613_v45 }
 0x307   :  { %v3605_v13 = vadd.f32 %v3604_v32, %v3594_v31  ;;  %v3624_v8 = vmul.f32 %v3614_v47, %v3614_v47  ;;  %v3607_v48 = vsel %vm3440_vm2, %v3596_v43, 0.0  ;;  %v3625_v59 = vmul.f32 %v3615_v44, %v3615_v44 }
 0x308   :  { %v3601_v21 = vadd.f32 %v3600_v53, %v3599_v51  ;;  %v3618_v26 = vsub.f32 %v6604_v2, %v6632_v30  ;;  %v3619_v62 = vsub.f32 %v6606_v3, %v6632_v30  ;;  %v3620_v46 = vsub.f32 %v6615_v5, %v6632_v30 }
 0x309   :  { %v3606_v12 = vadd.f32 %v3605_v13, %v3595_v0  ;;  %v3633_v49 = vadd.f32 %v3624_v8, %v3623_v4  ;;  %v3626_v7 = vmul.f32 %v3616_v56, %v3616_v56  ;;  %v3627_v27 = vmul.f32 %v3617_v34, %v3617_v34 }
 0x30a   :  { %3602 = vadd.xlane.f32.xlu0 %v3601_v21  ;;  %v3622_v28 = vsub.f32 %v6624_v1, %v6632_v30  ;;  %v3628_v29 = vmul.f32 %v3618_v26, %v3618_v26  ;;  %v3621_v43 = vsub.f32 %v6618_v14, %v6632_v30  ;;  %v3629_v32 = vmul.f32 %v3619_v62, %v3619_v62 }
 0x30b   :  { %v3608_v16 = vadd.f32 %v3607_v48, %v3606_v12  ;;  %v3634_v31 = vadd.f32 %v3633_v49, %v3625_v59  ;;  %v3630_v47 = vmul.f32 %v3620_v46, %v3620_v46  ;;  %v3636_v51 = vsel %vm3440_vm2, %v3627_v27, 0.0 }
 0x30c   :  { %v3640_v44 = vadd.f32 %v3629_v32, %v3628_v29  ;;  %v3632_v53 = vmul.f32 %v3622_v28, %v3622_v28  ;;  %v3631_v56 = vmul.f32 %v3621_v43, %v3621_v43 }
 0x30d   :  { %3609 = vadd.xlane.f32.xlu1 %v3608_v16  ;;  %v3635_v45 = vadd.f32 %v3634_v31, %v3626_v7 }
 0x30e   :  { %v3641_v34 = vadd.f32 %v3640_v44, %v3630_v47  ;;  %v3643_v4 = vsel %vm3440_vm2, %v3632_v53, 0.0  ;;  %v3433_v44 = vld [vmem:[%s6964_s2] sm:$0xff] }
 0x30f   :  { %v3637_v0 = vadd.f32 %v3636_v51, %v3635_v45 }
 0x310   :  { %v3642_v13 = vadd.f32 %v3641_v34, %v3631_v56 }
 0x311   :  { %3638 = vadd.xlane.f32.xlu0 %v3637_v0  ;;  %v3434_v0 = vld [vmem:[%s6964_s2 + $0x8] sm:$0xff] }
 0x312   :  { %v3644_v8 = vadd.f32 %v3643_v4, %v3642_v13  ;;  %v3435_v4 = vld [vmem:[%s6965_s3] sm:$0xff] }
 0x314   :  { %3645 = vadd.xlane.f32.xlu1 %v3644_v8 }
 0x389   :  { %v3531_v21 = vpop.xlane.xlu0 %3530 }
 0x38c   :  { %v3538_v48 = vpop.xlane.xlu1 %3537 }
 0x38e   :  { %v3567_v59 = vpop.xlane.xlu0 %3566 }
 0x38f   :  { %v3575_v49 = vadd.f32 %v3567_v59, %v3531_v21 }
 0x393   :  { %v3574_v26 = vpop.xlane.xlu1 %3573 }
 0x394   :  { %v3576_v27 = vadd.f32 %v3574_v26, %v3538_v48  ;;  %v3436_v48 = vld [vmem:[%s6965_s3 + $0x8] sm:$0xff] }
 0x397   :  { %v3603_v12 = vpop.xlane.xlu0 %3602 }
 0x398   :  { %v3611_v46 = vadd.f32 %v3603_v12, %v3575_v49 }
 0x39a   :  { %v3610_v62 = vpop.xlane.xlu1 %3609 }
 0x39b   :  { %v3612_v29 = vadd.f32 %v3610_v62, %v3576_v27 }
 0x39e   :  { %v3639_v7 = vpop.xlane.xlu0 %3638 }
 0x39f   :  { %v3647_v28 = vadd.f32 %v3639_v7, %v3611_v46 }
 0x3a1   :  { %v3649_v16 = vmul.f32 0.00043252597, %v3647_v28  ;;  %v3646_v31 = vpop.xlane.xlu1 %3645 }
 0x3a2   :  { %v3648_v32 = vadd.f32 %v3646_v31, %v3612_v29  ;;  %v6980_v31 = vld [vmem:[#allocation5_spill] sm:$0xff] }
 0x3a3   :  { %v3651_v43 = vadd.f32 1e-05, %v3649_v16 }
 0x3a4   :  { %v3650_v45 = vmul.f32 0.00043252597, %v3648_v32 }
 0x3a5   :  { %5254 = vrsqrt.f32 %v3651_v43 }
 0x3a6   :  { %v3652_v47 = vadd.f32 1e-05, %v3650_v45 }
 0x3a8   :  { %5256 = vrsqrt.f32 %v3652_v47 }
 0x3af   :  { %v5255_v51 = vpop.eup %5254 }
 0x3b0   :  { %v3655_v53 = vmul.f32 %v5255_v51, %v3433_v44 }
 0x3b2   :  { %3663 = vperm.xlu0 %4732, %v3655_v53   ;;  %v5257_v56 = vpop.eup %5256  ;;  %v3657_v13 = vmul.f32 %v3655_v53, %v6630_v15 }
 0x3b3   :  { %v3656_v34 = vmul.f32 %v5257_v56, %v3434_v0 }
 0x3b4   :  { %v3659_v8 = vsub.f32 %v3435_v4, %v3657_v13 }
 0x3b5   :  { %3668 = vperm.xlu1 %4733, %v3656_v34   ;;  %v3658_v21 = vmul.f32 %v3656_v34, %v6632_v30 }
 0x3b7   :  { %v3660_v59 = vsub.f32 %v3436_v48, %v3658_v21 }
 0x3b9   :  { %3713 = vperm.xlu1 %4733, %v3659_v8  }
 0x3bd   :  { %3718 = vperm.xlu1 %4733, %v3660_v59  }
 0x431   :  { %v3664_v26 = vpop.permute.xlu0 %3663 }
 0x432   :  { %v3671_v12 = vmul.f32 %v3664_v26, %v6210_v39  ;;  %v3672_v15 = vmul.f32 %v3664_v26, %v6214_v41  ;;  %v3673_v49 = vmul.f32 %v3664_v26, %v6212_v40  ;;  %v3674_v62 = vmul.f32 %v3664_v26, %v6216_v42 }
 0x433   :  { %v3675_v46 = vmul.f32 %v3664_v26, %v6353_v37  ;;  %v3681_v30 = vmul.f32 %v3664_v26, %v6511_v35  ;;  %v3682_v7 = vmul.f32 %v3664_v26, %v6513_v36  ;;  %v3683_v27 = vmul.f32 %v3664_v26, %v6546_v55 }
 0x434   :  { %v3684_v28 = vmul.f32 %v3664_v26, %v6549_v57  ;;  %v3685_v29 = vmul.f32 %v3664_v26, %v6558_v10  ;;  %v3691_v39 = vmul.f32 %v3664_v26, %v6566_v17  ;;  %v3692_v41 = vmul.f32 %v3664_v26, %v6570_v19  ;;  %v6752_v16 = vpop.permute.xlu1 %3668  ;;  %v6977_v17 = vld [vmem:[#allocation2_spill] sm:$0xff] }
 0x435   :  { %v3693_v40 = vmul.f32 %v3664_v26, %v6568_v18  ;;  %v3694_v42 = vmul.f32 %v3664_v26, %v6572_v20  ;;  %v3695_v37 = vmul.f32 %v3664_v26, %v6590_v52  ;;  %v3701_v35 = vmul.f32 %v3664_v26, %v6598_v61  ;;  %v6978_v18 = vld [vmem:[#allocation4_spill] sm:$0xff]  ;;  %v6979_v52 = vld [vmem:[#allocation3_spill] sm:$0xff] }
 0x436   :  { %v3702_v36 = vmul.f32 %v3664_v26, %v6600_v63  ;;  %v3703_v55 = vmul.f32 %v3664_v26, %v6610_v6  ;;  %v3704_v57 = vmul.f32 %v3664_v26, %v6613_v9  ;;  %v3705_v10 = vmul.f32 %v3664_v26, %v6622_v33  ;;  %v6981_v6 = vld [vmem:[#allocation6_spill] sm:$0xff] }
 0x437   :  { %v6760_v19 = vmul.f32 %v6752_v16, %v6977_v17  ;;  %v6764_v20 = vmul.f32 %v6752_v16, %v6978_v18  ;;  %v6768_v61 = vmul.f32 %v6752_v16, %v6979_v52  ;;  %v6772_v63 = vmul.f32 %v6752_v16, %v6980_v31 }
 0x438   :  { %v6776_v9 = vmul.f32 %v6752_v16, %v6981_v6  ;;  %v6780_v33 = vmul.f32 %v6752_v16, %v6517_v38  ;;  %v6784_v43 = vmul.f32 %v6752_v16, %v6525_v50  ;;  %v6788_v32 = vmul.f32 %v6752_v16, %v6551_v58  ;;  %v3714_v45 = vpop.permute.xlu1 %3713 }
 0x439   :  { %v6792_v47 = vmul.f32 %v6752_v16, %v6554_v60  ;;  %v6796_v44 = vmul.f32 %v6752_v16, %v6560_v11  ;;  %v6800_v38 = vmul.f32 %v6752_v16, %v6576_v22  ;;  %v6804_v50 = vmul.f32 %v6752_v16, %v6580_v24 }
 0x43a   :  { %v3721_v51 = vadd.f32 %v3714_v45, %v3671_v12  ;;  %v3722_v58 = vadd.f32 %v3714_v45, %v3672_v15  ;;  %v3723_v53 = vadd.f32 %v3714_v45, %v3673_v49  ;;  %v3724_v0 = vadd.f32 %v3714_v45, %v3674_v62 }
 0x43b   :  { %v3725_v56 = vadd.f32 %v3714_v45, %v3675_v46  ;;  %v3731_v34 = vadd.f32 %v3714_v45, %v3681_v30  ;;  %v3732_v60 = vadd.f32 %v3714_v45, %v3682_v7  ;;  %v3733_v13 = vadd.f32 %v3714_v45, %v3683_v27 }
 0x43c   :  { %v3734_v4 = vadd.f32 %v3714_v45, %v3684_v28  ;;  %v3735_v8 = vadd.f32 %v3714_v45, %v3685_v29  ;;  %v3741_v11 = vadd.f32 %v3714_v45, %v3691_v39  ;;  %v3742_v21 = vadd.f32 %v3714_v45, %v3692_v41  ;;  %v3719_v31 = vpop.permute.xlu1 %3718 }
 0x43d   :  { %v3743_v48 = vadd.f32 %v3714_v45, %v3693_v40  ;;  %v3744_v59 = vadd.f32 %v3714_v45, %v3694_v42  ;;  %v3745_v22 = vadd.f32 %v3714_v45, %v3695_v37  ;;  %v3751_v26 = vadd.f32 %v3714_v45, %v3701_v35 }
 0x43e   :  { %v3752_v17 = vadd.f32 %v3714_v45, %v3702_v36  ;;  %v3753_v18 = vadd.f32 %v3714_v45, %v3703_v55  ;;  %v3754_v24 = vadd.f32 %v3714_v45, %v3704_v57  ;;  %v3755_v52 = vadd.f32 %v3714_v45, %v3705_v10 }
 0x43f   :  { %v3761_v12 = vmax.f32 %v3721_v51, 0.0  ;;  %v3762_v15 = vmax.f32 %v3722_v58, 0.0  ;;  %v3763_v49 = vmax.f32 %v3723_v53, 0.0  ;;  %v3764_v62 = vmax.f32 %v3724_v0, 0.0 }
 0x440   :  { %v3765_v46 = vmax.f32 %v3725_v56, 0.0  ;;  %v3771_v30 = vmax.f32 %v3731_v34, 0.0  ;;  %v3772_v7 = vmax.f32 %v3732_v60, 0.0  ;;  %v3773_v27 = vmax.f32 %v3733_v13, 0.0 }
 0x441   :  { %v3774_v28 = vmax.f32 %v3734_v4, 0.0  ;;  %v3775_v29 = vmax.f32 %v3735_v8, 0.0  ;;  %v3781_v39 = vmax.f32 %v3741_v11, 0.0  ;;  %v3782_v41 = vmax.f32 %v3742_v21, 0.0  ;;  %3801 = vst [vmem:[%s6966_s4] sm:$0xff] %v3761_v12  ;;  %3802 = vst [vmem:[%s6966_s4 + $0x8] sm:$0xff] %v3762_v15 }
 0x442   :  { %3803 = vst [vmem:[%s6966_s4 + $0x10] sm:$0xff] %v3763_v49  ;;  %3804 = vst [vmem:[%s6966_s4 + $0x18] sm:$0xff] %v3764_v62  ;;  %v3783_v40 = vmax.f32 %v3743_v48, 0.0  ;;  %v3784_v42 = vmax.f32 %v3744_v59, 0.0  ;;  %v3785_v37 = vmax.f32 %v3745_v22, 0.0  ;;  %v3791_v35 = vmax.f32 %v3751_v26, 0.0 }
 0x443   :  { %3805 = vst.msk [vmem:[%s6966_s4 + $0x20] sm:$0xff] %vm3440_vm2, %v3765_v46  ;;  %3811 = vst [vmem:[%s6966_s4 + $0x50] sm:$0xff] %v3771_v30  ;;  %v3792_v36 = vmax.f32 %v3752_v17, 0.0  ;;  %v3793_v55 = vmax.f32 %v3753_v18, 0.0  ;;  %v3794_v57 = vmax.f32 %v3754_v24, 0.0  ;;  %v3795_v10 = vmax.f32 %v3755_v52, 0.0 }
 0x444   :  { %3812 = vst [vmem:[%s6966_s4 + $0x58] sm:$0xff] %v3772_v7  ;;  %3813 = vst [vmem:[%s6966_s4 + $0x60] sm:$0xff] %v3773_v27  ;;  %v3698_v6 = vmul.f32 %v6752_v16, %v6578_v23  ;;  %v3699_v45 = vmul.f32 %v6752_v16, %v6582_v25  ;;  %v3700_v51 = vmul.f32 %v6752_v16, %v6592_v54 }
 0x445   :  { %3814 = vst [vmem:[%s6966_s4 + $0x68] sm:$0xff] %v3774_v28  ;;  %3815 = vst.msk [vmem:[%s6966_s4 + $0x70] sm:$0xff] %vm3440_vm2, %v3775_v29  ;;  %v3706_v58 = vmul.f32 %v6752_v16, %v6604_v2  ;;  %v3707_v23 = vmul.f32 %v6752_v16, %v6606_v3  ;;  %v3708_v25 = vmul.f32 %v6752_v16, %v6615_v5 }
 0x446   :  { %3821 = vst [vmem:[%s6966_s4 + $0xa0] sm:$0xff] %v3781_v39  ;;  %3822 = vst [vmem:[%s6966_s4 + $0xa8] sm:$0xff] %v3782_v41  ;;  %v3709_v54 = vmul.f32 %v6752_v16, %v6618_v14  ;;  %v3710_v2 = vmul.f32 %v6752_v16, %v6624_v1  ;;  %v3726_v53 = vadd.f32 %v3719_v31, %v6760_v19 }
 0x447   :  { %3823 = vst [vmem:[%s6966_s4 + $0xb0] sm:$0xff] %v3783_v40  ;;  %3824 = vst [vmem:[%s6966_s4 + $0xb8] sm:$0xff] %v3784_v42  ;;  %v3727_v0 = vadd.f32 %v3719_v31, %v6764_v20  ;;  %v3728_v56 = vadd.f32 %v3719_v31, %v6768_v61  ;;  %v3729_v34 = vadd.f32 %v3719_v31, %v6772_v63 }
 0x448   :  { %3825 = vst.msk [vmem:[%s6966_s4 + $0xc0] sm:$0xff] %vm3440_vm2, %v3785_v37  ;;  %3831 = vst [vmem:[%s6966_s4 + $0xf0] sm:$0xff] %v3791_v35  ;;  %v3730_v60 = vadd.f32 %v3719_v31, %v6776_v9  ;;  %v3736_v3 = vadd.f32 %v3719_v31, %v6780_v33  ;;  %v3737_v5 = vadd.f32 %v3719_v31, %v6784_v43  ;;  %v3766_v21 = vmax.f32 %v3726_v53, 0.0 }
 0x449   :  { %3832 = vst [vmem:[%s6966_s4 + $0xf8] sm:$0xff] %v3792_v36  ;;  %3833 = vst [vmem:[%s6966_s4 + $0x100] sm:$0xff] %v3793_v55  ;;  %v3738_v13 = vadd.f32 %v3719_v31, %v6788_v32  ;;  %v3739_v14 = vadd.f32 %v3719_v31, %v6792_v47  ;;  %v3740_v1 = vadd.f32 %v3719_v31, %v6796_v44  ;;  %v3767_v43 = vmax.f32 %v3727_v0, 0.0 }
 0x44a   :  { %3834 = vst [vmem:[%s6966_s4 + $0x108] sm:$0xff] %v3794_v57  ;;  %3835 = vst.msk [vmem:[%s6966_s4 + $0x110] sm:$0xff] %vm3440_vm2, %v3795_v10  ;;  %v3746_v16 = vadd.f32 %v3719_v31, %v6800_v38  ;;  %v3747_v19 = vadd.f32 %v3719_v31, %v6804_v50  ;;  %v3748_v20 = vadd.f32 %v3719_v31, %v3698_v6  ;;  %v3768_v48 = vmax.f32 %v3728_v56, 0.0 }
 0x44b   :  { %v3749_v61 = vadd.f32 %v3719_v31, %v3699_v45  ;;  %v3750_v4 = vadd.f32 %v3719_v31, %v3700_v51  ;;  %v3756_v63 = vadd.f32 %v3719_v31, %v3706_v58  ;;  %v3757_v8 = vadd.f32 %v3719_v31, %v3707_v23  ;;  %3806 = vst [vmem:[%s6966_s4 + $0x28] sm:$0xff] %v3766_v21 }
 0x44c   :  { %v3758_v9 = vadd.f32 %v3719_v31, %v3708_v25  ;;  %v3759_v11 = vadd.f32 %v3719_v31, %v3709_v54  ;;  %v3760_v33 = vadd.f32 %v3719_v31, %v3710_v2  ;;  %v3769_v32 = vmax.f32 %v3729_v34, 0.0  ;;  %3807 = vst [vmem:[%s6966_s4 + $0x30] sm:$0xff] %v3767_v43  ;;  %3808 = vst [vmem:[%s6966_s4 + $0x38] sm:$0xff] %v3768_v48 }
 0x44d   :  { %v3770_v59 = vmax.f32 %v3730_v60, 0.0  ;;  %v3776_v47 = vmax.f32 %v3736_v3, 0.0  ;;  %v3777_v22 = vmax.f32 %v3737_v5, 0.0  ;;  %v3778_v44 = vmax.f32 %v3738_v13, 0.0 }
 0x44e   :  { %v3779_v26 = vmax.f32 %v3739_v14, 0.0  ;;  %v3780_v38 = vmax.f32 %v3740_v1, 0.0  ;;  %v3786_v17 = vmax.f32 %v3746_v16, 0.0  ;;  %v3787_v50 = vmax.f32 %v3747_v19, 0.0  ;;  %3809 = vst [vmem:[%s6966_s4 + $0x40] sm:$0xff] %v3769_v32 }
 0x44f   :  { %v3788_v18 = vmax.f32 %v3748_v20, 0.0  ;;  %v3789_v24 = vmax.f32 %v3749_v61, 0.0  ;;  %v3790_v52 = vmax.f32 %v3750_v4, 0.0  ;;  %v3796_v12 = vmax.f32 %v3756_v63, 0.0  ;;  %3810 = vst.msk [vmem:[%s6966_s4 + $0x48] sm:$0xff] %vm3440_vm2, %v3770_v59  ;;  %3816 = vst [vmem:[%s6966_s4 + $0x78] sm:$0xff] %v3776_v47 }
 0x450   :  { %3817 = vst [vmem:[%s6966_s4 + $0x80] sm:$0xff] %v3777_v22  ;;  %3818 = vst [vmem:[%s6966_s4 + $0x88] sm:$0xff] %v3778_v44  ;;  %v3797_v15 = vmax.f32 %v3757_v8, 0.0  ;;  %v3798_v49 = vmax.f32 %v3758_v9, 0.0  ;;  %v3799_v62 = vmax.f32 %v3759_v11, 0.0  ;;  %v3800_v46 = vmax.f32 %v3760_v33, 0.0 }
 0x451   :  { %3819 = vst [vmem:[%s6966_s4 + $0x90] sm:$0xff] %v3779_v26  ;;  %3820 = vst.msk [vmem:[%s6966_s4 + $0x98] sm:$0xff] %vm3440_vm2, %v3780_v38 }
 0x452   :  { %3826 = vst [vmem:[%s6966_s4 + $0xc8] sm:$0xff] %v3786_v17  ;;  %3827 = vst [vmem:[%s6966_s4 + $0xd0] sm:$0xff] %v3787_v50 }
 0x453   :  { %3828 = vst [vmem:[%s6966_s4 + $0xd8] sm:$0xff] %v3788_v18  ;;  %3829 = vst [vmem:[%s6966_s4 + $0xe0] sm:$0xff] %v3789_v24 }
 0x454   :  { %3830 = vst.msk [vmem:[%s6966_s4 + $0xe8] sm:$0xff] %vm3440_vm2, %v3790_v52  ;;  %3836 = vst [vmem:[%s6966_s4 + $0x118] sm:$0xff] %v3796_v12 }
 0x455   :  { %3837 = vst [vmem:[%s6966_s4 + $0x120] sm:$0xff] %v3797_v15  ;;  %3838 = vst [vmem:[%s6966_s4 + $0x128] sm:$0xff] %v3798_v49 }
 0x456   :  { %3839 = vst [vmem:[%s6966_s4 + $0x130] sm:$0xff] %v3799_v62  ;;  %3840 = vst.msk [vmem:[%s6966_s4 + $0x138] sm:$0xff] %vm3440_vm2, %v3800_v46 }

// kernel: generator_forward.9
= control target key start
LH: loop header
LB: loop body
LE: loop exit
PB: predicated region body
PF: predicated region fallthrough
CT: control target
= control target key end

     0   :  { %s1260_s9 = smov 0   ;;  %s1262_s10 = smov 0   ;;  %s1602_s0 = inlined_call_operand.vmem [shape: bf16[144,2048], index: 0, kind: input, shape index: {}]   ;;  %s1603_s1 = inlined_call_operand.vmem [shape: bf16[12,144], index: 1, kind: input, shape index: {}]   ;;  %s1604_s2 = inlined_call_operand.vmem [shape: f32[12,2048], index: 2, kind: output, shape index: {}]  }
   0x1   :  { %s1264_s11 = smov 0  }
   0x2 LB: > { %s1067_s12 = sadd.s32 4294967295, %s1243_s11   ;;  %s1277_s13 = sadd.s32 1, %s1243_s11   ;;  %s1243_s11 = sphi %s1264_s11, %s1608_s11   ;;  %s1239_s10 = sphi %s1262_s10, %s1607_s10   ;;  %s1235_s9 = sphi %s1260_s9, %s1606_s9  }
   0x3   : > { %s16_s14 = ssub.s32 %s1243_s11, %s1277_s13  ;;  %s19_s15 = sadd.s32 1, %s1239_s10 }
   0x4   : > { %p17_p0 = scmp.eq.s32.totalorder %s16_s14, 0  ;;  %p26_p1 = scmp.ne.s32.totalorder %s1239_s10, %s1235_s9 }
   0x5   : > { %p27_p2 = scmp.eq.s32.totalorder %s1243_s11, 0  ;;  %p77_p3 = scmp.eq.s32.totalorder %s1067_s12, 1 }
   0x6   : > { %s1288_s16 = scalar_select %p17_p0, %s1239_s10, %s19_s15  }
   0x7   : > { %p28_p4 = por %p27_p2, %p26_p1  ;;  %p1290_p5 = por %p77_p3, %p26_p1 }
   0x8   : > { %p1070_p6 = scmp.ge.s32.totalorder %s1243_s11, 2 }
   0xa   : > { %102 = sbr.rel (%p1070_p6) target bundleno = 58 (0x3a), region = 20 }
  0x11   : > { %105 = sbr.rel (!%p28_p4) target bundleno = 58 (0x3a), region = 24  ;;  %s107_s18 = sand.u32 (%p28_p4), 1, %s1239_s10  }
  0x12   : > { %s1158_s19 = sshll.u32 (%p28_p4), %s1243_s11, 5  ;;  %s1160_s20 = smul.u32 (%p28_p4), 576, %s107_s18 }
  0x13   : > { %s1300_s23 = scalar_lea.vmem (%p28_p4), %s1602_s0, %s1158_s19 }
  0x14   : > { %v125_v0 = vld [vmem:[%s1300_s23] sm:$0xff] (%p28_p4)  ;;  %v127_v1 = vld [vmem:[%s1300_s23 + $0x8] sm:$0xff] (%p28_p4)  ;;  %v129_v2 = vld [vmem:[%s1300_s23 + $0x10] sm:$0xff] (%p28_p4)  ;;  %s1308_s24 = scalar_lea.vmem (%p28_p4), [#allocation2], %s1160_s20 }
  0x15   : > { %v131_v3 = vld [vmem:[%s1300_s23 + $0x18] sm:$0xff] (%p28_p4)  ;;  %v133_v4 = vld [vmem:[%s1300_s23 + $0x40] sm:$0xff] (%p28_p4)  ;;  %v135_v5 = vld [vmem:[%s1300_s23 + $0x48] sm:$0xff] (%p28_p4)  ;;  %126 = vst [vmem:[%s1308_s24] sm:$0xff] (%p28_p4), %v125_v0 }
  0x16   : > { %128 = vst [vmem:[%s1308_s24 + $0x8] sm:$0xff] (%p28_p4), %v127_v1  ;;  %130 = vst [vmem:[%s1308_s24 + $0x10] sm:$0xff] (%p28_p4), %v129_v2  ;;  %v137_v6 = vld [vmem:[%s1300_s23 + $0x50] sm:$0xff] (%p28_p4)  ;;  %v139_v7 = vld [vmem:[%s1300_s23 + $0x58] sm:$0xff] (%p28_p4) }
  0x17   : > { %132 = vst [vmem:[%s1308_s24 + $0x18] sm:$0xff] (%p28_p4), %v131_v3  ;;  %134 = vst [vmem:[%s1308_s24 + $0x20] sm:$0xff] (%p28_p4), %v133_v4  ;;  %v141_v8 = vld [vmem:[%s1300_s23 + $0x80] sm:$0xff] (%p28_p4)  ;;  %v143_v9 = vld [vmem:[%s1300_s23 + $0x88] sm:$0xff] (%p28_p4) }
  0x18   : > { %136 = vst [vmem:[%s1308_s24 + $0x28] sm:$0xff] %v135_v5  ;;  %138 = vst [vmem:[%s1308_s24 + $0x30] sm:$0xff] %v137_v6  ;;  %v145_v10 = vld [vmem:[%s1300_s23 + $0x90] sm:$0xff]  ;;  %v147_v11 = vld [vmem:[%s1300_s23 + $0x98] sm:$0xff] }
  0x19   : > { %140 = vst [vmem:[%s1308_s24 + $0x38] sm:$0xff] %v139_v7  ;;  %142 = vst [vmem:[%s1308_s24 + $0x40] sm:$0xff] %v141_v8  ;;  %v149_v12 = vld [vmem:[%s1300_s23 + $0xc0] sm:$0xff]  ;;  %v151_v13 = vld [vmem:[%s1300_s23 + $0xc8] sm:$0xff] }
  0x1a   : > { %144 = vst [vmem:[%s1308_s24 + $0x48] sm:$0xff] %v143_v9  ;;  %146 = vst [vmem:[%s1308_s24 + $0x50] sm:$0xff] %v145_v10  ;;  %v153_v14 = vld [vmem:[%s1300_s23 + $0xd0] sm:$0xff]  ;;  %v155_v15 = vld [vmem:[%s1300_s23 + $0xd8] sm:$0xff] }
  0x1b   : > { %148 = vst [vmem:[%s1308_s24 + $0x58] sm:$0xff] %v147_v11  ;;  %150 = vst [vmem:[%s1308_s24 + $0x60] sm:$0xff] %v149_v12  ;;  %v157_v16 = vld [vmem:[%s1300_s23 + $0x100] sm:$0xff]  ;;  %v159_v17 = vld [vmem:[%s1300_s23 + $0x108] sm:$0xff] }
  0x1c   : > { %152 = vst [vmem:[%s1308_s24 + $0x68] sm:$0xff] %v151_v13  ;;  %154 = vst [vmem:[%s1308_s24 + $0x70] sm:$0xff] %v153_v14  ;;  %v161_v18 = vld [vmem:[%s1300_s23 + $0x110] sm:$0xff]  ;;  %v163_v19 = vld [vmem:[%s1300_s23 + $0x118] sm:$0xff] }
  0x1d   : > { %156 = vst [vmem:[%s1308_s24 + $0x78] sm:$0xff] %v155_v15  ;;  %158 = vst [vmem:[%s1308_s24 + $0x80] sm:$0xff] %v157_v16  ;;  %v165_v20 = vld [vmem:[%s1300_s23 + $0x140] sm:$0xff]  ;;  %v167_v21 = vld [vmem:[%s1300_s23 + $0x148] sm:$0xff] }
  0x1e   : > { %160 = vst [vmem:[%s1308_s24 + $0x88] sm:$0xff] %v159_v17  ;;  %162 = vst [vmem:[%s1308_s24 + $0x90] sm:$0xff] %v161_v18  ;;  %v169_v22 = vld [vmem:[%s1300_s23 + $0x150] sm:$0xff]  ;;  %v171_v23 = vld [vmem:[%s1300_s23 + $0x158] sm:$0xff] }
  0x1f   : > { %164 = vst [vmem:[%s1308_s24 + $0x98] sm:$0xff] %v163_v19  ;;  %166 = vst [vmem:[%s1308_s24 + $0xa0] sm:$0xff] %v165_v20  ;;  %v173_v24 = vld [vmem:[%s1300_s23 + $0x180] sm:$0xff]  ;;  %v175_v25 = vld [vmem:[%s1300_s23 + $0x188] sm:$0xff] }
  0x20   : > { %168 = vst [vmem:[%s1308_s24 + $0xa8] sm:$0xff] %v167_v21  ;;  %170 = vst [vmem:[%s1308_s24 + $0xb0] sm:$0xff] %v169_v22  ;;  %v177_v26 = vld [vmem:[%s1300_s23 + $0x190] sm:$0xff]  ;;  %v179_v27 = vld [vmem:[%s1300_s23 + $0x198] sm:$0xff] }
  0x21   : > { %172 = vst [vmem:[%s1308_s24 + $0xb8] sm:$0xff] %v171_v23  ;;  %174 = vst [vmem:[%s1308_s24 + $0xc0] sm:$0xff] %v173_v24  ;;  %v181_v28 = vld [vmem:[%s1300_s23 + $0x1c0] sm:$0xff]  ;;  %v183_v29 = vld [vmem:[%s1300_s23 + $0x1c8] sm:$0xff] }
  0x22   : > { %176 = vst [vmem:[%s1308_s24 + $0xc8] sm:$0xff] %v175_v25  ;;  %178 = vst [vmem:[%s1308_s24 + $0xd0] sm:$0xff] %v177_v26  ;;  %v185_v30 = vld [vmem:[%s1300_s23 + $0x1d0] sm:$0xff]  ;;  %v187_v31 = vld [vmem:[%s1300_s23 + $0x1d8] sm:$0xff] }
  0x23   : > { %180 = vst [vmem:[%s1308_s24 + $0xd8] sm:$0xff] %v179_v27  ;;  %182 = vst [vmem:[%s1308_s24 + $0xe0] sm:$0xff] %v181_v28  ;;  %v189_v32 = vld [vmem:[%s1300_s23 + $0x200] sm:$0xff]  ;;  %v191_v33 = vld [vmem:[%s1300_s23 + $0x208] sm:$0xff] }
  0x24   : > { %184 = vst [vmem:[%s1308_s24 + $0xe8] sm:$0xff] %v183_v29  ;;  %186 = vst [vmem:[%s1308_s24 + $0xf0] sm:$0xff] %v185_v30  ;;  %v193_v34 = vld [vmem:[%s1300_s23 + $0x210] sm:$0xff]  ;;  %v195_v35 = vld [vmem:[%s1300_s23 + $0x218] sm:$0xff] }
  0x25   : > { %188 = vst [vmem:[%s1308_s24 + $0xf8] sm:$0xff] %v187_v31  ;;  %190 = vst [vmem:[%s1308_s24 + $0x100] sm:$0xff] %v189_v32  ;;  %v197_v36 = vld [vmem:[%s1300_s23 + $0x240] sm:$0xff]  ;;  %v199_v37 = vld [vmem:[%s1300_s23 + $0x248] sm:$0xff] }
  0x26   : > { %192 = vst [vmem:[%s1308_s24 + $0x108] sm:$0xff] %v191_v33  ;;  %194 = vst [vmem:[%s1308_s24 + $0x110] sm:$0xff] %v193_v34  ;;  %v201_v38 = vld [vmem:[%s1300_s23 + $0x250] sm:$0xff]  ;;  %v203_v39 = vld [vmem:[%s1300_s23 + $0x258] sm:$0xff] }
  0x27   : > { %196 = vst [vmem:[%s1308_s24 + $0x118] sm:$0xff] %v195_v35  ;;  %198 = vst [vmem:[%s1308_s24 + $0x120] sm:$0xff] %v197_v36  ;;  %v205_v40 = vld [vmem:[%s1300_s23 + $0x280] sm:$0xff]  ;;  %v207_v41 = vld [vmem:[%s1300_s23 + $0x288] sm:$0xff] }
  0x28   : > { %200 = vst [vmem:[%s1308_s24 + $0x128] sm:$0xff] %v199_v37  ;;  %202 = vst [vmem:[%s1308_s24 + $0x130] sm:$0xff] %v201_v38  ;;  %v209_v42 = vld [vmem:[%s1300_s23 + $0x290] sm:$0xff]  ;;  %v211_v43 = vld [vmem:[%s1300_s23 + $0x298] sm:$0xff] }
  0x29   : > { %204 = vst [vmem:[%s1308_s24 + $0x138] sm:$0xff] %v203_v39  ;;  %206 = vst [vmem:[%s1308_s24 + $0x140] sm:$0xff] %v205_v40  ;;  %v213_v44 = vld [vmem:[%s1300_s23 + $0x2c0] sm:$0xff]  ;;  %v215_v45 = vld [vmem:[%s1300_s23 + $0x2c8] sm:$0xff] }
  0x2a   : > { %208 = vst [vmem:[%s1308_s24 + $0x148] sm:$0xff] %v207_v41  ;;  %210 = vst [vmem:[%s1308_s24 + $0x150] sm:$0xff] %v209_v42  ;;  %v217_v46 = vld [vmem:[%s1300_s23 + $0x2d0] sm:$0xff]  ;;  %v219_v47 = vld [vmem:[%s1300_s23 + $0x2d8] sm:$0xff] }
  0x2b   : > { %212 = vst [vmem:[%s1308_s24 + $0x158] sm:$0xff] %v211_v43  ;;  %214 = vst [vmem:[%s1308_s24 + $0x160] sm:$0xff] %v213_v44  ;;  %v221_v48 = vld [vmem:[%s1300_s23 + $0x300] sm:$0xff]  ;;  %v223_v49 = vld [vmem:[%s1300_s23 + $0x308] sm:$0xff] }
  0x2c   : > { %216 = vst [vmem:[%s1308_s24 + $0x168] sm:$0xff] %v215_v45  ;;  %218 = vst [vmem:[%s1308_s24 + $0x170] sm:$0xff] %v217_v46  ;;  %v225_v50 = vld [vmem:[%s1300_s23 + $0x310] sm:$0xff]  ;;  %v227_v51 = vld [vmem:[%s1300_s23 + $0x318] sm:$0xff] }
  0x2d   : > { %220 = vst [vmem:[%s1308_s24 + $0x178] sm:$0xff] %v219_v47  ;;  %222 = vst [vmem:[%s1308_s24 + $0x180] sm:$0xff] %v221_v48  ;;  %v229_v52 = vld [vmem:[%s1300_s23 + $0x340] sm:$0xff]  ;;  %v231_v53 = vld [vmem:[%s1300_s23 + $0x348] sm:$0xff] }
  0x2e   : > { %224 = vst [vmem:[%s1308_s24 + $0x188] sm:$0xff] %v223_v49  ;;  %226 = vst [vmem:[%s1308_s24 + $0x190] sm:$0xff] %v225_v50  ;;  %v233_v54 = vld [vmem:[%s1300_s23 + $0x350] sm:$0xff]  ;;  %v235_v55 = vld [vmem:[%s1300_s23 + $0x358] sm:$0xff] }
  0x2f   : > { %228 = vst [vmem:[%s1308_s24 + $0x198] sm:$0xff] %v227_v51  ;;  %230 = vst [vmem:[%s1308_s24 + $0x1a0] sm:$0xff] %v229_v52  ;;  %v237_v56 = vld [vmem:[%s1300_s23 + $0x380] sm:$0xff]  ;;  %v239_v57 = vld [vmem:[%s1300_s23 + $0x388] sm:$0xff] }
  0x30   : > { %232 = vst [vmem:[%s1308_s24 + $0x1a8] sm:$0xff] %v231_v53  ;;  %234 = vst [vmem:[%s1308_s24 + $0x1b0] sm:$0xff] %v233_v54  ;;  %v241_v58 = vld [vmem:[%s1300_s23 + $0x390] sm:$0xff]  ;;  %v243_v59 = vld [vmem:[%s1300_s23 + $0x398] sm:$0xff] }
  0x31   : > { %236 = vst [vmem:[%s1308_s24 + $0x1b8] sm:$0xff] %v235_v55  ;;  %238 = vst [vmem:[%s1308_s24 + $0x1c0] sm:$0xff] %v237_v56  ;;  %v245_v60 = vld [vmem:[%s1300_s23 + $0x3c0] sm:$0xff]  ;;  %v247_v61 = vld [vmem:[%s1300_s23 + $0x3c8] sm:$0xff] }
  0x32   : > { %240 = vst [vmem:[%s1308_s24 + $0x1c8] sm:$0xff] %v239_v57  ;;  %242 = vst [vmem:[%s1308_s24 + $0x1d0] sm:$0xff] %v241_v58  ;;  %v249_v62 = vld [vmem:[%s1300_s23 + $0x3d0] sm:$0xff]  ;;  %v251_v63 = vld [vmem:[%s1300_s23 + $0x3d8] sm:$0xff] }
  0x33   : > { %244 = vst [vmem:[%s1308_s24 + $0x1d8] sm:$0xff] %v243_v59  ;;  %246 = vst [vmem:[%s1308_s24 + $0x1e0] sm:$0xff] %v245_v60  ;;  %v253_v0 = vld [vmem:[%s1300_s23 + $0x400] sm:$0xff]  ;;  %v255_v1 = vld [vmem:[%s1300_s23 + $0x408] sm:$0xff] }
  0x34   : > { %248 = vst [vmem:[%s1308_s24 + $0x1e8] sm:$0xff] %v247_v61  ;;  %250 = vst [vmem:[%s1308_s24 + $0x1f0] sm:$0xff] %v249_v62  ;;  %v257_v2 = vld [vmem:[%s1300_s23 + $0x410] sm:$0xff]  ;;  %v259_v3 = vld [vmem:[%s1300_s23 + $0x418] sm:$0xff] }
  0x35   : > { %252 = vst [vmem:[%s1308_s24 + $0x1f8] sm:$0xff] %v251_v63  ;;  %254 = vst [vmem:[%s1308_s24 + $0x200] sm:$0xff] %v253_v0  ;;  %v261_v4 = vld [vmem:[%s1300_s23 + $0x440] sm:$0xff]  ;;  %v263_v5 = vld [vmem:[%s1300_s23 + $0x448] sm:$0xff] }
  0x36   : > { %256 = vst [vmem:[%s1308_s24 + $0x208] sm:$0xff] %v255_v1  ;;  %258 = vst [vmem:[%s1308_s24 + $0x210] sm:$0xff] %v257_v2  ;;  %v265_v6 = vld [vmem:[%s1300_s23 + $0x450] sm:$0xff]  ;;  %v267_v7 = vld [vmem:[%s1300_s23 + $0x458] sm:$0xff] }
  0x37   : > { %260 = vst [vmem:[%s1308_s24 + $0x218] sm:$0xff] %v259_v3  ;;  %262 = vst [vmem:[%s1308_s24 + $0x220] sm:$0xff] %v261_v4 }
  0x38   : > { %264 = vst [vmem:[%s1308_s24 + $0x228] sm:$0xff] %v263_v5  ;;  %266 = vst [vmem:[%s1308_s24 + $0x230] sm:$0xff] %v265_v6 }
  0x39   : > { %268 = vst [vmem:[%s1308_s24 + $0x238] sm:$0xff] %v267_v7 }
  0x3a PF: > { %p1073_p7 = scmp.ge.s32.totalorder %s1243_s11, 1  ;;  %p273_p8 = scmp.lt.s32.totalorder %s1243_s11, 3 }
  0x3c   : > { %p274_p9 = pnand %p1073_p7, %p273_p8 }
  0x3d   : > { %s280_s25 = sand.u32 (!%p274_p9), 1, %s1235_s9   ;;  %vm746_vm0 = vcmask (!%p274_p9), 130048   ;;  %v1456_v8 = vld [vmem:[%s1603_s1 + $0x4] ss:$8 sps:$4 sm:$0x3f] (!%p274_p9)  }
  0x3e   : > { %277 = sbr.rel (%p274_p9) target bundleno = 381 (0x17d), region = 47  ;;  %1149 = vmatprep.mubr.msk.bf16.mxu0 (!%p274_p9), %vm746_vm0, %v1456_v8  ;;  %1150 = vmatprep.mubr.msk.bf16.mxu1 (!%p274_p9), %vm746_vm0, %v1456_v8  ;;  %s1074_s4 = sshll.u32 (!%p274_p9), %s280_s25, 7 }
  0x3f   : > { %s1161_s26 = smul.u32 (!%p274_p9), 576, %s280_s25  ;;  %s1551_s5 = scalar_lea.vmem (!%p274_p9), [#allocation3], %s1074_s4 }
  0x41   : > { %s1462_s29 = scalar_lea.vmem (!%p274_p9), [#allocation2], %s1161_s26 }
  0x42   : > { %v305_v9 = vld [vmem:[%s1462_s29] sm:$0xff] (!%p274_p9)  ;;  %v306_v11 = vld [vmem:[%s1462_s29 + $0x8] sm:$0xff] (!%p274_p9) }
  0x43   : > { %v309_v10 = vld [vmem:[%s1462_s29 + $0x20] sm:$0xff] (!%p274_p9)  ;;  %v310_v13 = vld [vmem:[%s1462_s29 + $0x28] sm:$0xff] (!%p274_p9) }
  0x44   : > { %v1078_v12 = vcombine.high (!%p274_p9), %v305_v9, %v309_v10  ;;  %v1077_v14 = vcombine.low (!%p274_p9), %v305_v9, %v309_v10  ;;  %v313_v15 = vld [vmem:[%s1462_s29 + $0x40] sm:$0xff] (!%p274_p9)  ;;  %v1080_v17 = vcombine.high (!%p274_p9), %v306_v11, %v310_v13  ;;  %v1079_v18 = vcombine.low (!%p274_p9), %v306_v11, %v310_v13  ;;  %v314_v20 = vld [vmem:[%s1462_s29 + $0x48] sm:$0xff] (!%p274_p9) }
  0x45   : > { %v317_v16 = vld [vmem:[%s1462_s29 + $0x60] sm:$0xff]  ;;  %v318_v21 = vld [vmem:[%s1462_s29 + $0x68] sm:$0xff]  ;;  %s1159_s6 = sshll.u32 (%p1290_p5), %s1067_s12, 6 }
  0x46   : > { %v1086_v19 = vcombine.high %v313_v15, %v317_v16  ;;  %v321_v22 = vld [vmem:[%s1462_s29 + $0x80] sm:$0xff]  ;;  %750 = vmatprep.subr.bf16.mxu0 %v1078_v12  ;;  %v1088_v23 = vcombine.high %v314_v20, %v318_v21  ;;  %v322_v25 = vld [vmem:[%s1462_s29 + $0x88] sm:$0xff]  ;;  %793 = vmatprep.subr.bf16.mxu1 %v1080_v17  ;;  %v1085_v27 = vcombine.low %v313_v15, %v317_v16  ;;  %v307_v16 = vld [vmem:[%s1462_s29 + $0x10] sm:$0xff]  ;;  %s963_s9 = scalar_lea.vmem (%p1290_p5), %s1604_s2, %s1159_s6 }
  0x47   : > { %v325_v24 = vld [vmem:[%s1462_s29 + $0xa0] sm:$0xff]  ;;  %v326_v26 = vld [vmem:[%s1462_s29 + $0xa8] sm:$0xff]  ;;  %751 = vmatpush1.bf16.msra.mxu0 %v1077_v14  ;;  %794 = vmatpush1.bf16.msra.mxu1 %v1079_v18  ;;  %v1087_v28 = vcombine.low %v314_v20, %v318_v21  ;;  %v311_v17 = vld [vmem:[%s1462_s29 + $0x30] sm:$0xff] }
  0x48   : > { %752 = vmatprep.subr.bf16.mxu0 %v1086_v19  ;;  %v1094_v29 = vcombine.high %v321_v22, %v325_v24  ;;  %795 = vmatprep.subr.bf16.mxu1 %v1088_v23  ;;  %v1096_v30 = vcombine.high %v322_v25, %v326_v26  ;;  %v329_v31 = vld [vmem:[%s1462_s29 + $0xc0] sm:$0xff]  ;;  %v330_v33 = vld [vmem:[%s1462_s29 + $0xc8] sm:$0xff]  ;;  %v1093_v35 = vcombine.low %v321_v22, %v325_v24  ;;  %v308_v18 = vld [vmem:[%s1462_s29 + $0x18] sm:$0xff] }
  0x49   : > { %v333_v32 = vld [vmem:[%s1462_s29 + $0xe0] sm:$0xff]  ;;  %v334_v34 = vld [vmem:[%s1462_s29 + $0xe8] sm:$0xff]  ;;  %v1095_v36 = vcombine.low %v322_v25, %v326_v26  ;;  %v312_v19 = vld [vmem:[%s1462_s29 + $0x38] sm:$0xff]  ;;  %v1082_v22 = vcombine.high %v307_v16, %v311_v17 }
  0x4a   : > { %v1102_v37 = vcombine.high %v329_v31, %v333_v32  ;;  %v1104_v38 = vcombine.high %v330_v33, %v334_v34  ;;  %v337_v39 = vld [vmem:[%s1462_s29 + $0x100] sm:$0xff]  ;;  %v338_v41 = vld [vmem:[%s1462_s29 + $0x108] sm:$0xff]  ;;  %v1101_v43 = vcombine.low %v329_v31, %v333_v32  ;;  %v1103_v44 = vcombine.low %v330_v33, %v334_v34  ;;  %v315_v24 = vld [vmem:[%s1462_s29 + $0x50] sm:$0xff] }
  0x4b   : > { %753 = vmatpush1.bf16.msra.mxu0 %v1085_v27  ;;  %796 = vmatpush1.bf16.msra.mxu1 %v1087_v28  ;;  %v341_v40 = vld [vmem:[%s1462_s29 + $0x120] sm:$0xff]  ;;  %v342_v42 = vld [vmem:[%s1462_s29 + $0x128] sm:$0xff]  ;;  %v1084_v23 = vcombine.high %v308_v18, %v312_v19  ;;  %v319_v25 = vld [vmem:[%s1462_s29 + $0x70] sm:$0xff] }
  0x4c   : > { %754 = vmatprep.subr.bf16.mxu0 %v1094_v29  ;;  %797 = vmatprep.subr.bf16.mxu1 %v1096_v30  ;;  %v1110_v45 = vcombine.high %v337_v39, %v341_v40  ;;  %v1112_v46 = vcombine.high %v338_v41, %v342_v42  ;;  %v345_v47 = vld [vmem:[%s1462_s29 + $0x140] sm:$0xff]  ;;  %v346_v49 = vld [vmem:[%s1462_s29 + $0x148] sm:$0xff]  ;;  %v1109_v51 = vcombine.low %v337_v39, %v341_v40  ;;  %v316_v27 = vld [vmem:[%s1462_s29 + $0x58] sm:$0xff] }
  0x4d   : > { %v349_v48 = vld [vmem:[%s1462_s29 + $0x160] sm:$0xff]  ;;  %v350_v50 = vld [vmem:[%s1462_s29 + $0x168] sm:$0xff]  ;;  %v1111_v52 = vcombine.low %v338_v41, %v342_v42  ;;  %v320_v28 = vld [vmem:[%s1462_s29 + $0x78] sm:$0xff]  ;;  %v1081_v29 = vcombine.low %v307_v16, %v311_v17  ;;  %v1083_v30 = vcombine.low %v308_v18, %v312_v19  ;;  %v1090_v31 = vcombine.high %v315_v24, %v319_v25 }
  0x4e   : > { %v1118_v53 = vcombine.high %v345_v47, %v349_v48  ;;  %v1120_v54 = vcombine.high %v346_v49, %v350_v50  ;;  %v353_v55 = vld [vmem:[%s1462_s29 + $0x180] sm:$0xff]  ;;  %v354_v57 = vld [vmem:[%s1462_s29 + $0x188] sm:$0xff]  ;;  %v1117_v59 = vcombine.low %v345_v47, %v349_v48  ;;  %v1119_v60 = vcombine.low %v346_v49, %v350_v50  ;;  %v323_v33 = vld [vmem:[%s1462_s29 + $0x90] sm:$0xff] }
  0x4f   : > { %755 = vmatpush1.bf16.msra.mxu0 %v1093_v35  ;;  %798 = vmatpush1.bf16.msra.mxu1 %v1095_v36  ;;  %v357_v56 = vld [vmem:[%s1462_s29 + $0x1a0] sm:$0xff]  ;;  %v358_v58 = vld [vmem:[%s1462_s29 + $0x1a8] sm:$0xff]  ;;  %v1092_v32 = vcombine.high %v316_v27, %v320_v28  ;;  %v327_v34 = vld [vmem:[%s1462_s29 + $0xb0] sm:$0xff] }
  0x50   : > { %756 = vmatprep.subr.bf16.mxu0 %v1102_v37  ;;  %799 = vmatprep.subr.bf16.mxu1 %v1104_v38  ;;  %v1126_v61 = vcombine.high %v353_v55, %v357_v56  ;;  %v1128_v62 = vcombine.high %v354_v57, %v358_v58  ;;  %v361_v63 = vld [vmem:[%s1462_s29 + $0x1c0] sm:$0xff]  ;;  %v362_v1 = vld [vmem:[%s1462_s29 + $0x1c8] sm:$0xff]  ;;  %v1125_v3 = vcombine.low %v353_v55, %v357_v56  ;;  %v324_v35 = vld [vmem:[%s1462_s29 + $0x98] sm:$0xff] }
  0x51   : > { %v365_v0 = vld [vmem:[%s1462_s29 + $0x1e0] sm:$0xff]  ;;  %v366_v2 = vld [vmem:[%s1462_s29 + $0x1e8] sm:$0xff]  ;;  %v1127_v4 = vcombine.low %v354_v57, %v358_v58  ;;  %v328_v36 = vld [vmem:[%s1462_s29 + $0xb8] sm:$0xff]  ;;  %v1089_v37 = vcombine.low %v315_v24, %v319_v25  ;;  %v1091_v38 = vcombine.low %v316_v27, %v320_v28  ;;  %v1098_v39 = vcombine.high %v323_v33, %v327_v34 }
  0x52   : > { %v1134_v5 = vcombine.high %v361_v63, %v365_v0  ;;  %v1136_v6 = vcombine.high %v362_v1, %v366_v2  ;;  %v369_v7 = vld [vmem:[%s1462_s29 + $0x200] sm:$0xff]  ;;  %v370_v10 = vld [vmem:[%s1462_s29 + $0x208] sm:$0xff]  ;;  %v1133_v12 = vcombine.low %v361_v63, %v365_v0  ;;  %v1135_v13 = vcombine.low %v362_v1, %v366_v2  ;;  %v331_v41 = vld [vmem:[%s1462_s29 + $0xd0] sm:$0xff] }
  0x53   : > { %757 = vmatpush1.bf16.msra.mxu0 %v1101_v43  ;;  %800 = vmatpush1.bf16.msra.mxu1 %v1103_v44  ;;  %v373_v9 = vld [vmem:[%s1462_s29 + $0x220] sm:$0xff]  ;;  %v374_v11 = vld [vmem:[%s1462_s29 + $0x228] sm:$0xff]  ;;  %v1100_v40 = vcombine.high %v324_v35, %v328_v36  ;;  %v335_v42 = vld [vmem:[%s1462_s29 + $0xf0] sm:$0xff] }
  0x54   : > { %758 = vmatprep.subr.bf16.mxu0 %v1110_v45  ;;  %801 = vmatprep.subr.bf16.mxu1 %v1112_v46  ;;  %v1142_v14 = vcombine.high %v369_v7, %v373_v9  ;;  %v1144_v15 = vcombine.high %v370_v10, %v374_v11  ;;  %v1141_v20 = vcombine.low %v369_v7, %v373_v9  ;;  %v1509_v26 = vld [vmem:[%s1603_s1] ss:$8 sps:$4 sm:$0x3f]   ;;  %v332_v43 = vld [vmem:[%s1462_s29 + $0xd8] sm:$0xff]  ;;  %v339_v49 = vld [vmem:[%s1462_s29 + $0x110] sm:$0xff] }
  0x55   : > { %v1143_v21 = vcombine.low %v370_v10, %v374_v11  ;;  %v336_v44 = vld [vmem:[%s1462_s29 + $0xf8] sm:$0xff]  ;;  %v1097_v45 = vcombine.low %v323_v33, %v327_v34  ;;  %v1099_v46 = vcombine.low %v324_v35, %v328_v36  ;;  %v1106_v47 = vcombine.high %v331_v41, %v335_v42  ;;  %v343_v50 = vld [vmem:[%s1462_s29 + $0x130] sm:$0xff] }
  0x56   : > { %v1108_v48 = vcombine.high %v332_v43, %v336_v44  ;;  %v347_v56 = vld [vmem:[%s1462_s29 + $0x150] sm:$0xff]  ;;  %v348_v58 = vld [vmem:[%s1462_s29 + $0x158] sm:$0xff] }
  0x57   : > { %759 = vmatpush1.bf16.msra.mxu0 %v1109_v51  ;;  %802 = vmatpush1.bf16.msra.mxu1 %v1111_v52  ;;  %v340_v51 = vld [vmem:[%s1462_s29 + $0x118] sm:$0xff]  ;;  %v351_v57 = vld [vmem:[%s1462_s29 + $0x170] sm:$0xff] }
  0x58   : > { %760 = vmatprep.subr.bf16.mxu0 %v1118_v53  ;;  %803 = vmatprep.subr.bf16.mxu1 %v1120_v54  ;;  %v344_v52 = vld [vmem:[%s1462_s29 + $0x138] sm:$0xff]  ;;  %v1105_v53 = vcombine.low %v331_v41, %v335_v42  ;;  %v1114_v54 = vcombine.high %v339_v49, %v343_v50  ;;  %v355_v0 = vld [vmem:[%s1462_s29 + $0x190] sm:$0xff] }
  0x59   : > { %v1116_v55 = vcombine.high %v340_v51, %v344_v52  ;;  %v359_v1 = vld [vmem:[%s1462_s29 + $0x1b0] sm:$0xff]  ;;  %v356_v2 = vld [vmem:[%s1462_s29 + $0x198] sm:$0xff] }
  0x5a   : > { %v363_v9 = vld [vmem:[%s1462_s29 + $0x1d0] sm:$0xff]  ;;  %v364_v11 = vld [vmem:[%s1462_s29 + $0x1d8] sm:$0xff] }
  0x5b   : > { %761 = vmatpush1.bf16.msra.mxu0 %v1117_v59  ;;  %804 = vmatpush1.bf16.msra.mxu1 %v1119_v60  ;;  %v352_v59 = vld [vmem:[%s1462_s29 + $0x178] sm:$0xff]  ;;  %v1113_v60 = vcombine.low %v339_v49, %v343_v50  ;;  %v367_v10 = vld [vmem:[%s1462_s29 + $0x1f0] sm:$0xff] }
  0x5c   : > { %762 = vmatprep.subr.bf16.mxu0 %v1126_v61  ;;  %805 = vmatprep.subr.bf16.mxu1 %v1128_v62  ;;  %v1115_v61 = vcombine.low %v340_v51, %v344_v52  ;;  %v1122_v62 = vcombine.high %v347_v56, %v351_v57  ;;  %v1124_v63 = vcombine.high %v348_v58, %v352_v59  ;;  %v371_v17 = vld [vmem:[%s1462_s29 + $0x210] sm:$0xff]  ;;  %v372_v19 = vld [vmem:[%s1462_s29 + $0x218] sm:$0xff] }
  0x5d   : > { %v375_v18 = vld [vmem:[%s1462_s29 + $0x230] sm:$0xff] }
  0x5e   : > { %v1145_v25 = vcombine.low %v371_v17, %v375_v18 }
  0x5f   : > { %763 = vmatpush1.bf16.msra.mxu0 %v1125_v3  ;;  %806 = vmatpush1.bf16.msra.mxu1 %v1127_v4  ;;  %v360_v3 = vld [vmem:[%s1462_s29 + $0x1b8] sm:$0xff]  ;;  %v1121_v4 = vcombine.low %v347_v56, %v351_v57 }
  0x60   : > { %764 = vmatprep.subr.bf16.mxu0 %v1134_v5  ;;  %807 = vmatprep.subr.bf16.mxu1 %v1136_v6  ;;  %v1123_v5 = vcombine.low %v348_v58, %v352_v59  ;;  %v1130_v6 = vcombine.high %v355_v0, %v359_v1  ;;  %v1132_v7 = vcombine.high %v356_v2, %v360_v3 }
  0x63   : > { %765 = vmatpush1.bf16.msra.mxu0 %v1133_v12  ;;  %808 = vmatpush1.bf16.msra.mxu1 %v1135_v13  ;;  %v368_v12 = vld [vmem:[%s1462_s29 + $0x1f8] sm:$0xff]  ;;  %v1129_v13 = vcombine.low %v355_v0, %v359_v1 }
  0x64   : > { %766 = vmatprep.subr.bf16.mxu0 %v1142_v14  ;;  %809 = vmatprep.subr.bf16.mxu1 %v1144_v15  ;;  %v1131_v14 = vcombine.low %v356_v2, %v360_v3  ;;  %v1138_v15 = vcombine.high %v363_v9, %v367_v10  ;;  %v1140_v16 = vcombine.high %v364_v11, %v368_v12 }
  0x67   : > { %767 = vmatpush1.bf16.msra.mxu0 %v1141_v20  ;;  %810 = vmatpush1.bf16.msra.mxu1 %v1143_v21  ;;  %v376_v20 = vld [vmem:[%s1462_s29 + $0x238] sm:$0xff]  ;;  %v1137_v21 = vcombine.low %v363_v9, %v367_v10 }
  0x68   : > { %836 = vmatprep.subr.bf16.mxu0 %v1082_v22  ;;  %879 = vmatprep.subr.bf16.mxu1 %v1084_v23  ;;  %v1139_v22 = vcombine.low %v364_v11, %v368_v12  ;;  %v1146_v23 = vcombine.high %v371_v17, %v375_v18  ;;  %v1148_v24 = vcombine.high %v372_v19, %v376_v20 }
  0x69   : > { %v1147_v27 = vcombine.low %v372_v19, %v376_v20 }
  0x6a   : > { %783 = vmatmul.mubr.bf16.vlgmr.msra.gmra.mrb[0].mxu0 %v1509_v26  ;;  %826 = vmatmul.mubr.bf16.vlgmr.msra.gmra.mrb[0].mxu1 %v1509_v26 }
  0x6b   : > { %837 = vmatpush1.bf16.msra.mxu0 %v1081_v29  ;;  %880 = vmatpush1.bf16.msra.mxu1 %v1083_v30 }
  0x6c   : > { %838 = vmatprep.subr.bf16.mxu0 %v1090_v31  ;;  %881 = vmatprep.subr.bf16.mxu1 %v1092_v32 }
  0x6d   : > { %1151 = vmatprep.mubr.msk.bf16.mxu0 %vm746_vm0, %v1456_v8  ;;  %1152 = vmatprep.mubr.msk.bf16.mxu1 %vm746_vm0, %v1456_v8  ;;  %v1107_v8 = vcombine.low %v332_v43, %v336_v44 }
  0x6f   : > { %839 = vmatpush1.bf16.msra.mxu0 %v1089_v37  ;;  %882 = vmatpush1.bf16.msra.mxu1 %v1091_v38 }
  0x70   : > { %840 = vmatprep.subr.bf16.mxu0 %v1098_v39  ;;  %883 = vmatprep.subr.bf16.mxu1 %v1100_v40 }
  0x73   : > { %841 = vmatpush1.bf16.msra.mxu0 %v1097_v45  ;;  %884 = vmatpush1.bf16.msra.mxu1 %v1099_v46 }
  0x74   : > { %842 = vmatprep.subr.bf16.mxu0 %v1106_v47  ;;  %885 = vmatprep.subr.bf16.mxu1 %v1108_v48 }
  0x77   : > { %843 = vmatpush1.bf16.msra.mxu0 %v1105_v53  ;;  %886 = vmatpush1.bf16.msra.mxu1 %v1107_v8 }
  0x78   : > { %844 = vmatprep.subr.bf16.mxu0 %v1114_v54  ;;  %887 = vmatprep.subr.bf16.mxu1 %v1116_v55 }
  0x7b   : > { %845 = vmatpush1.bf16.msra.mxu0 %v1113_v60  ;;  %888 = vmatpush1.bf16.msra.mxu1 %v1115_v61 }
  0x7c   : > { %846 = vmatprep.subr.bf16.mxu0 %v1122_v62  ;;  %889 = vmatprep.subr.bf16.mxu1 %v1124_v63 }
  0x7f   : > { %847 = vmatpush1.bf16.msra.mxu0 %v1121_v4  ;;  %890 = vmatpush1.bf16.msra.mxu1 %v1123_v5 }
  0x80   : > { %848 = vmatprep.subr.bf16.mxu0 %v1130_v6  ;;  %891 = vmatprep.subr.bf16.mxu1 %v1132_v7 }
  0x83   : > { %849 = vmatpush1.bf16.msra.mxu0 %v1129_v13  ;;  %892 = vmatpush1.bf16.msra.mxu1 %v1131_v14 }
  0x84   : > { %850 = vmatprep.subr.bf16.mxu0 %v1138_v15  ;;  %893 = vmatprep.subr.bf16.mxu1 %v1140_v16 }
  0x87   : > { %851 = vmatpush1.bf16.msra.mxu0 %v1137_v21  ;;  %894 = vmatpush1.bf16.msra.mxu1 %v1139_v22 }
  0x88   : > { %852 = vmatprep.subr.bf16.mxu0 %v1146_v23  ;;  %895 = vmatprep.subr.bf16.mxu1 %v1148_v24 }
  0x8b   : > { %853 = vmatpush1.bf16.msra.mxu0 %v1145_v25  ;;  %896 = vmatpush1.bf16.msra.mxu1 %v1147_v27 }
  0x8e   : > { %869 = vmatmul.mubr.bf16.vlgmr.msra.gmra.mrb[4].mxu0 %v1509_v26  ;;  %912 = vmatmul.mubr.bf16.vlgmr.msra.gmra.mrb[4].mxu1 %v1509_v26 }
 0x13d   : > { %v784_v28 = vpop.f32.mrb[0].mxu0  ;;  %v827_v29 = vpop.f32.mrb[0].mxu1 }
 0x13e   : > { %1189 = vtanh.f32 %v784_v28  ;;  %v786_v30 = vpop.f32.mrb[1].mxu0  ;;  %v829_v31 = vpop.f32.mrb[1].mxu1 }
 0x13f   : > { %1191 = vtanh.f32 %v827_v29  ;;  %v788_v32 = vpop.f32.mrb[2].mxu0  ;;  %v831_v33 = vpop.f32.mrb[2].mxu1 }
 0x140   : > { %1193 = vtanh.f32 %v786_v30  ;;  %v790_v34 = vpop.f32.mrb[3].mxu0  ;;  %v833_v35 = vpop.f32.mrb[3].mxu1 }
 0x141   : > { %1195 = vtanh.f32 %v829_v31 }
 0x142   : > { %1197 = vtanh.f32 %v788_v32 }
 0x143   : > { %1199 = vtanh.f32 %v831_v33 }
 0x144   : > { %1201 = vtanh.f32 %v790_v34 }
 0x145   : > { %1203 = vtanh.f32 %v833_v35 }
 0x148   : > { %v1190_v36 = vpop.eup %1189 }
 0x149   : > { %v1192_v26 = vpop.eup %1191  ;;  %938 = vst [vmem:[%s1551_s5] sm:$0xff] %v1190_v36 }
 0x14a   : > { %v1194_v37 = vpop.eup %1193  ;;  %940 = vst [vmem:[%s1551_s5 + $0x10] sm:$0xff] %v1192_v26 }
 0x14b   : > { %v1196_v38 = vpop.eup %1195  ;;  %939 = vst [vmem:[%s1551_s5 + $0x8] sm:$0xff] %v1194_v37 }
 0x14c   : > { %v1198_v39 = vpop.eup %1197  ;;  %941 = vst [vmem:[%s1551_s5 + $0x18] sm:$0xff] %v1196_v38 }
 0x14d   : > { %v1200_v40 = vpop.eup %1199  ;;  %946 = vst [vmem:[%s1551_s5 + $0x40] sm:$0xf] %v1198_v39 }
 0x14e   : > { %v1202_v41 = vpop.eup %1201  ;;  %948 = vst [vmem:[%s1551_s5 + $0x50] sm:$0xf] %v1200_v40 }
 0x14f   : > { %v1204_v42 = vpop.eup %1203  ;;  %947 = vst [vmem:[%s1551_s5 + $0x48] sm:$0xf] %v1202_v41 }
 0x150   : > { %949 = vst [vmem:[%s1551_s5 + $0x58] sm:$0xf] %v1204_v42  ;;  %v976_v58 = vld [vmem:[%s1551_s5] sm:$0xff] (%p1290_p5) }
 0x151   : > { %v980_v60 = vld [vmem:[%s1551_s5 + $0x10] sm:$0xff] (%p1290_p5)  ;;  %977 = vst [vmem:[%s963_s9] sm:$0xff] (%p1290_p5), %v976_v58 }
 0x152   : > { %v978_v59 = vld [vmem:[%s1551_s5 + $0x8] sm:$0xff] (%p1290_p5)  ;;  %981 = vst [vmem:[%s963_s9 + $0x10] sm:$0xff] (%p1290_p5), %v980_v60 }
 0x153   : > { %v982_v61 = vld [vmem:[%s1551_s5 + $0x18] sm:$0xff] (%p1290_p5)  ;;  %979 = vst [vmem:[%s963_s9 + $0x8] sm:$0xff] (%p1290_p5), %v978_v59 }
 0x154   : > { %983 = vst [vmem:[%s963_s9 + $0x18] sm:$0xff] (%p1290_p5), %v982_v61  ;;  %v992_v2 = vld [vmem:[%s1551_s5 + $0x40] sm:$0xff] (%p1290_p5) }
 0x155   : > { %993 = vst [vmem:[%s963_s9 + $0x80] sm:$0xff] (%p1290_p5), %v992_v2  ;;  %v996_v4 = vld [vmem:[%s1551_s5 + $0x50] sm:$0xff] (%p1290_p5) }
 0x156   : > { %v994_v3 = vld [vmem:[%s1551_s5 + $0x48] sm:$0xff] (%p1290_p5)  ;;  %997 = vst [vmem:[%s963_s9 + $0x90] sm:$0xff] (%p1290_p5), %v996_v4 }
 0x157   : > { %v998_v5 = vld [vmem:[%s1551_s5 + $0x58] sm:$0xff] (%p1290_p5)  ;;  %995 = vst [vmem:[%s963_s9 + $0x88] sm:$0xff] (%p1290_p5), %v994_v3 }
 0x158   : > { %999 = vst [vmem:[%s963_s9 + $0x98] sm:$0xff] (%p1290_p5), %v998_v5 }
 0x161   : > { %v870_v43 = vpop.f32.mrb[4].mxu0  ;;  %v913_v44 = vpop.f32.mrb[4].mxu1 }
 0x162   : > { %1205 = vtanh.f32 %v870_v43  ;;  %v872_v45 = vpop.f32.mrb[5].mxu0  ;;  %v915_v46 = vpop.f32.mrb[5].mxu1 }
 0x163   : > { %1207 = vtanh.f32 %v913_v44  ;;  %v874_v47 = vpop.f32.mrb[6].mxu0  ;;  %v917_v48 = vpop.f32.mrb[6].mxu1 }
 0x164   : > { %1209 = vtanh.f32 %v872_v45  ;;  %v876_v49 = vpop.f32.mrb[7].mxu0  ;;  %v919_v50 = vpop.f32.mrb[7].mxu1 }
 0x165   : > { %1211 = vtanh.f32 %v915_v46 }
 0x166   : > { %1213 = vtanh.f32 %v874_v47 }
 0x167   : > { %1215 = vtanh.f32 %v917_v48 }
 0x168   : > { %1217 = vtanh.f32 %v876_v49 }
 0x169   : > { %1219 = vtanh.f32 %v919_v50 }
 0x16c   : > { %v1206_v51 = vpop.eup %1205 }
 0x16d   : > { %v1208_v52 = vpop.eup %1207  ;;  %942 = vst [vmem:[%s1551_s5 + $0x20] sm:$0xff] %v1206_v51 }
 0x16e   : > { %v1210_v53 = vpop.eup %1209  ;;  %944 = vst [vmem:[%s1551_s5 + $0x30] sm:$0xff] %v1208_v52  ;;  %960 = sbr.rel (!%p1290_p5) target bundleno = 381 (0x17d), region = 55 }
 0x16f   : > { %v1212_v8 = vpop.eup %1211  ;;  %943 = vst [vmem:[%s1551_s5 + $0x28] sm:$0xff] %v1210_v53 }
 0x170   : > { %v1214_v54 = vpop.eup %1213  ;;  %945 = vst [vmem:[%s1551_s5 + $0x38] sm:$0xff] %v1212_v8 }
 0x171   : > { %v1216_v55 = vpop.eup %1215  ;;  %950 = vst [vmem:[%s1551_s5 + $0x60] sm:$0xf] %v1214_v54 }
 0x172   : > { %v1218_v56 = vpop.eup %1217  ;;  %952 = vst [vmem:[%s1551_s5 + $0x70] sm:$0xf] %v1216_v55 }
 0x173   : > { %v1220_v57 = vpop.eup %1219  ;;  %951 = vst [vmem:[%s1551_s5 + $0x68] sm:$0xf] %v1218_v56 }
 0x174   : > { %953 = vst [vmem:[%s1551_s5 + $0x78] sm:$0xf] %v1220_v57  ;;  %v984_v62 = vld [vmem:[%s1551_s5 + $0x20] sm:$0xff] (%p1290_p5) }
 0x175   : > { %985 = vst [vmem:[%s963_s9 + $0x20] sm:$0xff] %v984_v62  ;;  %v988_v0 = vld [vmem:[%s1551_s5 + $0x30] sm:$0xff] }
 0x176   : > { %v986_v63 = vld [vmem:[%s1551_s5 + $0x28] sm:$0xff]  ;;  %989 = vst [vmem:[%s963_s9 + $0x30] sm:$0xff] %v988_v0 }
 0x177   : > { %987 = vst [vmem:[%s963_s9 + $0x28] sm:$0xff] %v986_v63  ;;  %v990_v1 = vld [vmem:[%s1551_s5 + $0x38] sm:$0xff] }
 0x178   : > { %991 = vst [vmem:[%s963_s9 + $0x38] sm:$0xff] %v990_v1  ;;  %v1000_v6 = vld [vmem:[%s1551_s5 + $0x60] sm:$0xff] }
 0x179   : > { %v1004_v9 = vld [vmem:[%s1551_s5 + $0x70] sm:$0xff]  ;;  %1001 = vst [vmem:[%s963_s9 + $0xa0] sm:$0xff] %v1000_v6 }
 0x17a   : > { %v1002_v7 = vld [vmem:[%s1551_s5 + $0x68] sm:$0xff]  ;;  %1005 = vst [vmem:[%s963_s9 + $0xb0] sm:$0xff] %v1004_v9 }
 0x17b   : > { %1003 = vst [vmem:[%s963_s9 + $0xa8] sm:$0xff] %v1002_v7  ;;  %v1006_v10 = vld [vmem:[%s1551_s5 + $0x78] sm:$0xff] }
 0x17c   : > { %1007 = vst [vmem:[%s963_s9 + $0xb8] sm:$0xff] %v1006_v10 }
 0x17d PF: > { %p9_p10 = scmp.ge.s32.totalorder %s1277_s13, 4   ;;  %s1606_s9 = smov %s1239_s10 }
 0x17e   : > { %s1607_s10 = smov %s1288_s16  ;;  %s1608_s11 = smov %s1277_s13 }
 0x17f   :  { %11 = sbr.rel (!%p9_p10) target bundleno = 2 (0x2), region = 109 }

</bundles_post_ra>
